<compile_context>
chip_gen: v5e
topology: v5e:2x2
jax: 0.10.0
libtpu: 0.0.40
codegen_flags: <defaults>
</compile_context>

<pallas_src>
import jax
import jax.numpy as jnp
from jax.experimental import pallas as pl
from jax.experimental.pallas import tpu as pltpu

HIDDEN = 512
D_IN, D_IN_PAD = 3000, 3072        # 3000 -> 24*128
D_MID, D_MID_PAD = 700, 768        # 700  -> 6*128
D_OUT, D_OUT_PAD = 10, 128         # lane-dense final store
TK = 1024                          # layer-1 K tile (3072 / 1024 = 3 grid steps)


def _mlp_fused_kernel(x_ref, w1_ref, bias_ref,
                      w2_hbm, w3_hbm, w4_hbm, w5_hbm, w6_hbm,
                      o_ref,
                      acc_ref, w2_vm, w3_vm, w4_vm, w5_vm, w6_vm, sems):
    k = pl.program_id(0)

    def later_layer_copies():
        # Same descriptors are used for .start() (step 0) and .wait() (last step).
        return (
            pltpu.make_async_copy(w2_hbm, w2_vm, sems.at[0]),
            pltpu.make_async_copy(w3_hbm, w3_vm, sems.at[1]),
            pltpu.make_async_copy(w4_hbm, w4_vm, sems.at[2]),
            pltpu.make_async_copy(w5_hbm, w5_vm, sems.at[3]),
            pltpu.make_async_copy(w6_hbm, w6_vm, sems.at[4]),
        )

    @pl.when(k == 0)
    def _prologue():
        acc_ref[...] = jnp.zeros_like(acc_ref)
        for cp in later_layer_copies():
            cp.start()           # overlap W2..W6 DMA with the W1 contraction

    # Layer-1 partial contraction for this K tile (bf16 MXU, f32 accumulate).
    acc_ref[...] += jnp.dot(x_ref[...], w1_ref[...],
                            preferred_element_type=jnp.float32)

    @pl.when(k == pl.num_programs(0) - 1)
    def _epilogue():
        cps = later_layer_copies()
        b1 = bias_ref[0:1, :HIDDEN]
        b2 = bias_ref[1:2, :D_MID_PAD]
        b3 = bias_ref[2:3, :HIDDEN]
        b4 = bias_ref[3:4, :D_MID_PAD]
        b5 = bias_ref[4:5, :HIDDEN]
        b6 = bias_ref[5:6, :D_OUT_PAD]

        # block_1 tail: bias + ReLU (f32 VPU), then Linear(512, 700pad)
        h = jnp.maximum(acc_ref[...] + b1, 0.0).astype(jnp.bfloat16)
        cps[0].wait()
        h = jnp.dot(h, w2_vm[...], preferred_element_type=jnp.float32) + b2
        # block_2: Linear(700pad,512) -> ReLU -> Linear(512,700pad)
        h = h.astype(jnp.bfloat16)
        cps[1].wait()
        h = jnp.maximum(
            jnp.dot(h, w3_vm[...], preferred_element_type=jnp.float32) + b3, 0.0
        ).astype(jnp.bfloat16)
        cps[2].wait()
        h = jnp.dot(h, w4_vm[...], preferred_element_type=jnp.float32) + b4
        # block_3: Linear(700pad,512) -> ReLU -> Linear(512,10pad)
        h = h.astype(jnp.bfloat16)
        cps[3].wait()
        h = jnp.maximum(
            jnp.dot(h, w5_vm[...], preferred_element_type=jnp.float32) + b5, 0.0
        ).astype(jnp.bfloat16)
        cps[4].wait()
        out = jnp.dot(h, w6_vm[...], preferred_element_type=jnp.float32) + b6
        o_ref[...] = out.astype(o_ref.dtype)


def _mlp_pallas(p, x):
    """Fused forward. x: [B, 3000] float32. Returns [B, 10] float32."""
    B = x.shape[0]
    Bp = max(16, ((B + 15) // 16) * 16)       # bf16 packs 16 sublanes per vreg
    xp = jnp.zeros((Bp, D_IN_PAD), jnp.bfloat16)
    xp = xp.at[:B, :D_IN].set(x.astype(jnp.bfloat16))

    nk = D_IN_PAD // TK
    const = lambda k: (0, 0)
    hbm = pl.BlockSpec(memory_space=pl.ANY)   # raw HBM ref -> manual async DMA

    grid_spec = pltpu.PrefetchScalarGridSpec(
        num_scalar_prefetch=0,
        grid=(nk,),
        in_specs=[
            pl.BlockSpec((Bp, TK), lambda k: (0, k)),       # x   (K-tiled)
            pl.BlockSpec((TK, HIDDEN), lambda k: (k, 0)),   # W1  (K-tiled, streamed)
            pl.BlockSpec((8, D_MID_PAD), const),            # packed biases (1 DMA)
            hbm, hbm, hbm, hbm, hbm,                        # W2..W6 (manual DMA)
        ],
        out_specs=pl.BlockSpec((Bp, D_OUT_PAD), const),
        scratch_shapes=[
            pltpu.VMEM((Bp, HIDDEN), jnp.float32),          # layer-1 f32 accumulator
            pltpu.VMEM((HIDDEN, D_MID_PAD), jnp.bfloat16),  # W2 buffer
            pltpu.VMEM((D_MID_PAD, HIDDEN), jnp.bfloat16),  # W3 buffer
            pltpu.VMEM((HIDDEN, D_MID_PAD), jnp.bfloat16),  # W4 buffer
            pltpu.VMEM((D_MID_PAD, HIDDEN), jnp.bfloat16),  # W5 buffer
            pltpu.VMEM((HIDDEN, D_OUT_PAD), jnp.bfloat16),  # W6 buffer
            pltpu.SemaphoreType.DMA((5,)),
        ],
    )

    out = pl.pallas_call(
        _mlp_fused_kernel,
        out_shape=jax.ShapeDtypeStruct((Bp, D_OUT_PAD), jnp.float32),
        grid_spec=grid_spec,
        compiler_params=pltpu.CompilerParams(
            dimension_semantics=("arbitrary",),     # grid axis is a reduction
            vmem_limit_bytes=32 * 1024 * 1024,
        ),
    )(xp, p["w1"], p["biases"], p["w2"], p["w3"], p["w4"], p["w5"], p["w6"])
    return out[:B, :D_OUT]


mlp_forward = jax.jit(_mlp_pallas)


# ----------------------------- parameters --------------------------------- #

def init_linear(key, in_features, out_features, dtype=jnp.float32):
    """PyTorch-style uniform init; weight stored [in, out]."""
    kw, kb = jax.random.split(key)
    bound = 1.0 / (in_features ** 0.5)
    w = jax.random.uniform(kw, (in_features, out_features), dtype, -bound, bound)
    b = jax.random.uniform(kb, (out_features,), dtype, -bound, bound)
    return w, b


def init_mlp_params(key):
    keys = jax.random.split(key, 6)
    return {
        "b1_l1": init_linear(keys[0], 3000, 512),
        "b1_l2": init_linear(keys[1], 512, 700),
        "b2_l1": init_linear(keys[2], 700, 512),
        "b2_l2": init_linear(keys[3], 512, 700),
        "b3_l1": init_linear(keys[4], 700, 512),
        "b3_l2": init_linear(keys[5], 512, 10),
    }


def pack_params(params):
    """Zero-pad to lane-aligned shapes; weights bf16 in HBM, biases packed f32.

    Padding is exact: padded rows/cols and padded bias entries are zero, so they
    contribute nothing to the real outputs.
    """
    def padw(key, rows_pad=None, cols_pad=None):
        w = params[key][0]
        r, c = w.shape
        rp, cp = rows_pad or r, cols_pad or c
        return jnp.pad(w, ((0, rp - r), (0, cp - c))).astype(jnp.bfloat16)

    biases = jnp.zeros((8, D_MID_PAD), jnp.float32)
    for i, key in enumerate(["b1_l1", "b1_l2", "b2_l1", "b2_l2", "b3_l1", "b3_l2"]):
        b = params[key][1]
        biases = biases.at[i, : b.shape[0]].set(b)

    return {
        "w1": padw("b1_l1", rows_pad=D_IN_PAD),
        "w2": padw("b1_l2", cols_pad=D_MID_PAD),
        "w3": padw("b2_l1", rows_pad=D_MID_PAD),
        "w4": padw("b2_l2", cols_pad=D_MID_PAD),
        "w5": padw("b3_l1", rows_pad=D_MID_PAD),
        "w6": padw("b3_l2", cols_pad=D_OUT_PAD),
        "biases": biases,
    }


def mlp_forward_ref(params, x):
    """Pure-JAX f32 reference using the same bf16-rounded weights."""
    def block(h, l1, l2):
        (w1, b1), (w2, b2) = l1, l2
        w1 = w1.astype(jnp.bfloat16).astype(jnp.float32)
        w2 = w2.astype(jnp.bfloat16).astype(jnp.float32)
        h = jnp.maximum(h @ w1 + b1, 0.0)
        return h @ w2 + b2

    h = block(x, params["b1_l1"], params["b1_l2"])
    h = block(h, params["b2_l1"], params["b2_l2"])
    return block(h, params["b3_l1"], params["b3_l2"])


if __name__ == "__main__":
    key = jax.random.PRNGKey(0)
    k_params, k_x = jax.random.split(key)

    params = init_mlp_params(k_params)
    packed = pack_params(params)            # bf16 weights + packed f32 biases (HBM)

    batch = 8                                # small batch; feature dim 3000 fixed by module
    x = jax.random.normal(k_x, (batch, 3000), dtype=jnp.float32)

    out = mlp_forward(packed, x)
    out = jax.block_until_ready(out)
    assert out.shape == (batch, 10), out.shape

    ref = mlp_forward_ref(params, x)
    # bf16 weights + bf16 activation casts between layers => loosened tolerance.
    assert jnp.allclose(out, ref, atol=2e-2, rtol=2e-2), "mismatch vs JAX reference"

    print("KERNEL_OK")
</pallas_src>

<mosaic_0001>
module attributes {stable_mosaic.version = 11 : i64} {
  func.func @_mlp_fused_kernel(%arg0: i32, %arg1: memref<16x1024xbf16, #tpu.memory_space<vmem>>, %arg2: memref<1024x512xbf16, #tpu.memory_space<vmem>>, %arg3: memref<8x768xf32, #tpu.memory_space<vmem>>, %arg4: memref<512x768xbf16, #tpu.memory_space<any>>, %arg5: memref<768x512xbf16, #tpu.memory_space<any>>, %arg6: memref<512x768xbf16, #tpu.memory_space<any>>, %arg7: memref<768x512xbf16, #tpu.memory_space<any>>, %arg8: memref<512x128xbf16, #tpu.memory_space<any>>, %arg9: memref<16x128xf32, #tpu.memory_space<vmem>>, %arg10: memref<16x512xf32, #tpu.memory_space<vmem>>, %arg11: memref<512x768xbf16, #tpu.memory_space<vmem>>, %arg12: memref<768x512xbf16, #tpu.memory_space<vmem>>, %arg13: memref<512x768xbf16, #tpu.memory_space<vmem>>, %arg14: memref<768x512xbf16, #tpu.memory_space<vmem>>, %arg15: memref<512x128xbf16, #tpu.memory_space<vmem>>, %arg16: memref<5x!tpu.dma_semaphore, #tpu.memory_space<semaphore_mem>>) attributes {dimension_semantics = [#tpu.dimension_semantics<arbitrary>], iteration_bounds = array<i64: 3>, scalar_prefetch = 0 : i64, scratch_operands = 7 : i64, tpu.core_type = #tpu.core_type<tc>, window_params = [{transform_indices = @transform_0, window_bounds = array<i64: 16, 1024>}, {transform_indices = @transform_1, window_bounds = array<i64: 1024, 512>}, {pipeline_mode = #tpu.pipeline_mode<synchronous>, transform_indices = @transform_2, window_bounds = array<i64: 8, 768>}, {}, {}, {}, {}, {}, {pipeline_mode = #tpu.pipeline_mode<synchronous>, transform_indices = @transform_8, window_bounds = array<i64: 16, 128>}]} {
    %c0_i32 = arith.constant 0 : i32
    %0 = arith.cmpi eq, %arg0, %c0_i32 : i32
    %1 = arith.extui %0 : i1 to i32
    %c0_i32_0 = arith.constant 0 : i32
    %2 = arith.cmpi ne, %1, %c0_i32_0 : i32
    scf.if %2 {
      %cst_9 = arith.constant 0.000000e+00 : f32
      %12 = vector.broadcast %cst_9 : f32 to vector<16x512xf32>
      %c0_10 = arith.constant 0 : index
      %c0_11 = arith.constant 0 : index
      %13 = vector.load %arg10[%c0_10, %c0_11] : memref<16x512xf32, #tpu.memory_space<vmem>>, vector<16x512xf32>
      tpu.vector_store %arg10[%c0_10, %c0_11], %12 {strides = array<i32>} : memref<16x512xf32, #tpu.memory_space<vmem>>, vector<16x512xf32>,
      %c0_i32_12 = arith.constant 0 : i32
      %14 = tpu.memref_slice %arg16[%c0_i32_12] : memref<5x!tpu.dma_semaphore, #tpu.memory_space<semaphore_mem>> -> memref<1x!tpu.dma_semaphore, #tpu.memory_space<semaphore_mem>>
      %15 = tpu.memref_squeeze %14 : memref<1x!tpu.dma_semaphore, #tpu.memory_space<semaphore_mem>> -> memref<!tpu.dma_semaphore, #tpu.memory_space<semaphore_mem>>
      tpu.enqueue_dma source(%arg4 : memref<512x768xbf16, #tpu.memory_space<any>>) target(%arg11 : memref<512x768xbf16, #tpu.memory_space<vmem>>) target_semaphore(%15 : memref<!tpu.dma_semaphore, #tpu.memory_space<semaphore_mem>>)
      %c1_i32 = arith.constant 1 : i32
      %16 = tpu.memref_slice %arg16[%c1_i32] : memref<5x!tpu.dma_semaphore, #tpu.memory_space<semaphore_mem>> -> memref<1x!tpu.dma_semaphore, #tpu.memory_space<semaphore_mem>>
      %17 = tpu.memref_squeeze %16 : memref<1x!tpu.dma_semaphore, #tpu.memory_space<semaphore_mem>> -> memref<!tpu.dma_semaphore, #tpu.memory_space<semaphore_mem>>
      tpu.enqueue_dma source(%arg5 : memref<768x512xbf16, #tpu.memory_space<any>>) target(%arg12 : memref<768x512xbf16, #tpu.memory_space<vmem>>) target_semaphore(%17 : memref<!tpu.dma_semaphore, #tpu.memory_space<semaphore_mem>>)
      %c2_i32_13 = arith.constant 2 : i32
      %18 = tpu.memref_slice %arg16[%c2_i32_13] : memref<5x!tpu.dma_semaphore, #tpu.memory_space<semaphore_mem>> -> memref<1x!tpu.dma_semaphore, #tpu.memory_space<semaphore_mem>>
      %19 = tpu.memref_squeeze %18 : memref<1x!tpu.dma_semaphore, #tpu.memory_space<semaphore_mem>> -> memref<!tpu.dma_semaphore, #tpu.memory_space<semaphore_mem>>
      tpu.enqueue_dma source(%arg6 : memref<512x768xbf16, #tpu.memory_space<any>>) target(%arg13 : memref<512x768xbf16, #tpu.memory_space<vmem>>) target_semaphore(%19 : memref<!tpu.dma_semaphore, #tpu.memory_space<semaphore_mem>>)
      %c3_i32 = arith.constant 3 : i32
      %20 = tpu.memref_slice %arg16[%c3_i32] : memref<5x!tpu.dma_semaphore, #tpu.memory_space<semaphore_mem>> -> memref<1x!tpu.dma_semaphore, #tpu.memory_space<semaphore_mem>>
      %21 = tpu.memref_squeeze %20 : memref<1x!tpu.dma_semaphore, #tpu.memory_space<semaphore_mem>> -> memref<!tpu.dma_semaphore, #tpu.memory_space<semaphore_mem>>
      tpu.enqueue_dma source(%arg7 : memref<768x512xbf16, #tpu.memory_space<any>>) target(%arg14 : memref<768x512xbf16, #tpu.memory_space<vmem>>) target_semaphore(%21 : memref<!tpu.dma_semaphore, #tpu.memory_space<semaphore_mem>>)
      %c4_i32 = arith.constant 4 : i32
      %22 = tpu.memref_slice %arg16[%c4_i32] : memref<5x!tpu.dma_semaphore, #tpu.memory_space<semaphore_mem>> -> memref<1x!tpu.dma_semaphore, #tpu.memory_space<semaphore_mem>>
      %23 = tpu.memref_squeeze %22 : memref<1x!tpu.dma_semaphore, #tpu.memory_space<semaphore_mem>> -> memref<!tpu.dma_semaphore, #tpu.memory_space<semaphore_mem>>
      tpu.enqueue_dma source(%arg8 : memref<512x128xbf16, #tpu.memory_space<any>>) target(%arg15 : memref<512x128xbf16, #tpu.memory_space<vmem>>) target_semaphore(%23 : memref<!tpu.dma_semaphore, #tpu.memory_space<semaphore_mem>>)
    } else {
    }
    %c0 = arith.constant 0 : index
    %c0_1 = arith.constant 0 : index
    %3 = vector.load %arg10[%c0, %c0_1] : memref<16x512xf32, #tpu.memory_space<vmem>>, vector<16x512xf32>
    %c0_2 = arith.constant 0 : index
    %c0_3 = arith.constant 0 : index
    %4 = vector.load %arg1[%c0_2, %c0_3] : memref<16x1024xbf16, #tpu.memory_space<vmem>>, vector<16x1024xbf16>
    %c0_4 = arith.constant 0 : index
    %c0_5 = arith.constant 0 : index
    %5 = vector.load %arg2[%c0_4, %c0_5] : memref<1024x512xbf16, #tpu.memory_space<vmem>>, vector<1024x512xbf16>
    %cst = arith.constant dense<0.000000e+00> : vector<16x512xf32>
    %6 = tpu.matmul %4, %5, %cst {dimension_numbers = #tpu.dot_dimension_numbers<[1], [0], [0], [1], [0, 0, 1, 1], [], []>} : vector<16x1024xbf16>, vector<1024x512xbf16>, vector<16x512xf32> -> vector<16x512xf32>
    %7 = arith.addf %3, %6 : vector<16x512xf32>
    %c0_6 = arith.constant 0 : index
    %c0_7 = arith.constant 0 : index
    %8 = vector.load %arg10[%c0_6, %c0_7] : memref<16x512xf32, #tpu.memory_space<vmem>>, vector<16x512xf32>
    tpu.vector_store %arg10[%c0_6, %c0_7], %7 {strides = array<i32>} : memref<16x512xf32, #tpu.memory_space<vmem>>, vector<16x512xf32>,
    %c2_i32 = arith.constant 2 : i32
    %9 = arith.cmpi eq, %arg0, %c2_i32 : i32
    %10 = arith.extui %9 : i1 to i32
    %c0_i32_8 = arith.constant 0 : i32
    %11 = arith.cmpi ne, %10, %c0_i32_8 : i32
    scf.if %11 {
      %c0_9 = arith.constant 0 : index
      %c0_10 = arith.constant 0 : index
      %12 = vector.load %arg3[%c0_9, %c0_10] : memref<8x768xf32, #tpu.memory_space<vmem>>, vector<1x512xf32>
      %c1 = arith.constant 1 : index
      %c0_11 = arith.constant 0 : index
      %13 = vector.load %arg3[%c1, %c0_11] : memref<8x768xf32, #tpu.memory_space<vmem>>, vector<1x768xf32>
      %c2 = arith.constant 2 : index
      %c0_12 = arith.constant 0 : index
      %14 = vector.load %arg3[%c2, %c0_12] : memref<8x768xf32, #tpu.memory_space<vmem>>, vector<1x512xf32>
      %c3 = arith.constant 3 : index
      %c0_13 = arith.constant 0 : index
      %15 = vector.load %arg3[%c3, %c0_13] : memref<8x768xf32, #tpu.memory_space<vmem>>, vector<1x768xf32>
      %c4 = arith.constant 4 : index
      %c0_14 = arith.constant 0 : index
      %16 = vector.load %arg3[%c4, %c0_14] : memref<8x768xf32, #tpu.memory_space<vmem>>, vector<1x512xf32>
      %c5 = arith.constant 5 : index
      %c0_15 = arith.constant 0 : index
      %17 = vector.load %arg3[%c5, %c0_15] : memref<8x768xf32, #tpu.memory_space<vmem>>, vector<1x128xf32>
      %c0_16 = arith.constant 0 : index
      %c0_17 = arith.constant 0 : index
      %18 = vector.load %arg10[%c0_16, %c0_17] : memref<16x512xf32, #tpu.memory_space<vmem>>, vector<16x512xf32>
      %19 = vector.broadcast %12 : vector<1x512xf32> to vector<16x512xf32>
      %20 = arith.addf %18, %19 : vector<16x512xf32>
      %cst_18 = arith.constant 0.000000e+00 : f32
      %21 = vector.broadcast %cst_18 : f32 to vector<16x512xf32>
      %22 = arith.maximumf %20, %21 : vector<16x512xf32>
      %23 = arith.truncf %22 : vector<16x512xf32> to vector<16x512xbf16>
      %c0_i32_19 = arith.constant 0 : i32
      %24 = tpu.memref_slice %arg16[%c0_i32_19] : memref<5x!tpu.dma_semaphore, #tpu.memory_space<semaphore_mem>> -> memref<1x!tpu.dma_semaphore, #tpu.memory_space<semaphore_mem>>
      %25 = tpu.memref_squeeze %24 : memref<1x!tpu.dma_semaphore, #tpu.memory_space<semaphore_mem>> -> memref<!tpu.dma_semaphore, #tpu.memory_space<semaphore_mem>>
      tpu.wait_dma2 semaphore(%25 : memref<!tpu.dma_semaphore, #tpu.memory_space<semaphore_mem>>) src(%arg4 : memref<512x768xbf16, #tpu.memory_space<any>>) dst(%arg11 : memref<512x768xbf16, #tpu.memory_space<vmem>>)
      %c0_20 = arith.constant 0 : index
      %c0_21 = arith.constant 0 : index
      %26 = vector.load %arg11[%c0_20, %c0_21] : memref<512x768xbf16, #tpu.memory_space<vmem>>, vector<512x768xbf16>
      %cst_22 = arith.constant dense<0.000000e+00> : vector<16x768xf32>
      %27 = tpu.matmul %23, %26, %cst_22 {dimension_numbers = #tpu.dot_dimension_numbers<[1], [0], [0], [1], [0, 0, 1, 1], [], []>} : vector<16x512xbf16>, vector<512x768xbf16>, vector<16x768xf32> -> vector<16x768xf32>
      %28 = vector.broadcast %13 : vector<1x768xf32> to vector<16x768xf32>
      %29 = arith.addf %27, %28 : vector<16x768xf32>
      %30 = arith.truncf %29 : vector<16x768xf32> to vector<16x768xbf16>
      %c1_i32 = arith.constant 1 : i32
      %31 = tpu.memref_slice %arg16[%c1_i32] : memref<5x!tpu.dma_semaphore, #tpu.memory_space<semaphore_mem>> -> memref<1x!tpu.dma_semaphore, #tpu.memory_space<semaphore_mem>>
      %32 = tpu.memref_squeeze %31 : memref<1x!tpu.dma_semaphore, #tpu.memory_space<semaphore_mem>> -> memref<!tpu.dma_semaphore, #tpu.memory_space<semaphore_mem>>
      tpu.wait_dma2 semaphore(%32 : memref<!tpu.dma_semaphore, #tpu.memory_space<semaphore_mem>>) src(%arg5 : memref<768x512xbf16, #tpu.memory_space<any>>) dst(%arg12 : memref<768x512xbf16, #tpu.memory_space<vmem>>)
      %c0_23 = arith.constant 0 : index
      %c0_24 = arith.constant 0 : index
      %33 = vector.load %arg12[%c0_23, %c0_24] : memref<768x512xbf16, #tpu.memory_space<vmem>>, vector<768x512xbf16>
      %cst_25 = arith.constant dense<0.000000e+00> : vector<16x512xf32>
      %34 = tpu.matmul %30, %33, %cst_25 {dimension_numbers = #tpu.dot_dimension_numbers<[1], [0], [0], [1], [0, 0, 1, 1], [], []>} : vector<16x768xbf16>, vector<768x512xbf16>, vector<16x512xf32> -> vector<16x512xf32>
      %35 = vector.broadcast %14 : vector<1x512xf32> to vector<16x512xf32>
      %36 = arith.addf %34, %35 : vector<16x512xf32>
      %cst_26 = arith.constant 0.000000e+00 : f32
      %37 = vector.broadcast %cst_26 : f32 to vector<16x512xf32>
      %38 = arith.maximumf %36, %37 : vector<16x512xf32>
      %39 = arith.truncf %38 : vector<16x512xf32> to vector<16x512xbf16>
      %c2_i32_27 = arith.constant 2 : i32
      %40 = tpu.memref_slice %arg16[%c2_i32_27] : memref<5x!tpu.dma_semaphore, #tpu.memory_space<semaphore_mem>> -> memref<1x!tpu.dma_semaphore, #tpu.memory_space<semaphore_mem>>
      %41 = tpu.memref_squeeze %40 : memref<1x!tpu.dma_semaphore, #tpu.memory_space<semaphore_mem>> -> memref<!tpu.dma_semaphore, #tpu.memory_space<semaphore_mem>>
      tpu.wait_dma2 semaphore(%41 : memref<!tpu.dma_semaphore, #tpu.memory_space<semaphore_mem>>) src(%arg6 : memref<512x768xbf16, #tpu.memory_space<any>>) dst(%arg13 : memref<512x768xbf16, #tpu.memory_space<vmem>>)
      %c0_28 = arith.constant 0 : index
      %c0_29 = arith.constant 0 : index
      %42 = vector.load %arg13[%c0_28, %c0_29] : memref<512x768xbf16, #tpu.memory_space<vmem>>, vector<512x768xbf16>
      %cst_30 = arith.constant dense<0.000000e+00> : vector<16x768xf32>
      %43 = tpu.matmul %39, %42, %cst_30 {dimension_numbers = #tpu.dot_dimension_numbers<[1], [0], [0], [1], [0, 0, 1, 1], [], []>} : vector<16x512xbf16>, vector<512x768xbf16>, vector<16x768xf32> -> vector<16x768xf32>
      %44 = vector.broadcast %15 : vector<1x768xf32> to vector<16x768xf32>
      %45 = arith.addf %43, %44 : vector<16x768xf32>
      %46 = arith.truncf %45 : vector<16x768xf32> to vector<16x768xbf16>
      %c3_i32 = arith.constant 3 : i32
      %47 = tpu.memref_slice %arg16[%c3_i32] : memref<5x!tpu.dma_semaphore, #tpu.memory_space<semaphore_mem>> -> memref<1x!tpu.dma_semaphore, #tpu.memory_space<semaphore_mem>>
      %48 = tpu.memref_squeeze %47 : memref<1x!tpu.dma_semaphore, #tpu.memory_space<semaphore_mem>> -> memref<!tpu.dma_semaphore, #tpu.memory_space<semaphore_mem>>
      tpu.wait_dma2 semaphore(%48 : memref<!tpu.dma_semaphore, #tpu.memory_space<semaphore_mem>>) src(%arg7 : memref<768x512xbf16, #tpu.memory_space<any>>) dst(%arg14 : memref<768x512xbf16, #tpu.memory_space<vmem>>)
      %c0_31 = arith.constant 0 : index
      %c0_32 = arith.constant 0 : index
      %49 = vector.load %arg14[%c0_31, %c0_32] : memref<768x512xbf16, #tpu.memory_space<vmem>>, vector<768x512xbf16>
      %cst_33 = arith.constant dense<0.000000e+00> : vector<16x512xf32>
      %50 = tpu.matmul %46, %49, %cst_33 {dimension_numbers = #tpu.dot_dimension_numbers<[1], [0], [0], [1], [0, 0, 1, 1], [], []>} : vector<16x768xbf16>, vector<768x512xbf16>, vector<16x512xf32> -> vector<16x512xf32>
      %51 = vector.broadcast %16 : vector<1x512xf32> to vector<16x512xf32>
      %52 = arith.addf %50, %51 : vector<16x512xf32>
      %cst_34 = arith.constant 0.000000e+00 : f32
      %53 = vector.broadcast %cst_34 : f32 to vector<16x512xf32>
      %54 = arith.maximumf %52, %53 : vector<16x512xf32>
      %55 = arith.truncf %54 : vector<16x512xf32> to vector<16x512xbf16>
      %c4_i32 = arith.constant 4 : i32
      %56 = tpu.memref_slice %arg16[%c4_i32] : memref<5x!tpu.dma_semaphore, #tpu.memory_space<semaphore_mem>> -> memref<1x!tpu.dma_semaphore, #tpu.memory_space<semaphore_mem>>
      %57 = tpu.memref_squeeze %56 : memref<1x!tpu.dma_semaphore, #tpu.memory_space<semaphore_mem>> -> memref<!tpu.dma_semaphore, #tpu.memory_space<semaphore_mem>>
      tpu.wait_dma2 semaphore(%57 : memref<!tpu.dma_semaphore, #tpu.memory_space<semaphore_mem>>) src(%arg8 : memref<512x128xbf16, #tpu.memory_space<any>>) dst(%arg15 : memref<512x128xbf16, #tpu.memory_space<vmem>>)
      %c0_35 = arith.constant 0 : index
      %c0_36 = arith.constant 0 : index
      %58 = vector.load %arg15[%c0_35, %c0_36] : memref<512x128xbf16, #tpu.memory_space<vmem>>, vector<512x128xbf16>
      %cst_37 = arith.constant dense<0.000000e+00> : vector<16x128xf32>
      %59 = tpu.matmul %55, %58, %cst_37 {dimension_numbers = #tpu.dot_dimension_numbers<[1], [0], [0], [1], [0, 0, 1, 1], [], []>} : vector<16x512xbf16>, vector<512x128xbf16>, vector<16x128xf32> -> vector<16x128xf32>
      %60 = vector.broadcast %17 : vector<1x128xf32> to vector<16x128xf32>
      %61 = arith.addf %59, %60 : vector<16x128xf32>
      %c0_38 = arith.constant 0 : index
      %c0_39 = arith.constant 0 : index
      %62 = vector.load %arg9[%c0_38, %c0_39] : memref<16x128xf32, #tpu.memory_space<vmem>>, vector<16x128xf32>
      tpu.vector_store %arg9[%c0_38, %c0_39], %61 {strides = array<i32>} : memref<16x128xf32, #tpu.memory_space<vmem>>, vector<16x128xf32>,
    } else {
    }
    return
  }
  func.func @transform_0(%arg0: i32) -> (i32, i32) {
    %c0_i32 = arith.constant 0 : i32
    %c0_i32_0 = arith.constant 0 : i32
    return %c0_i32, %arg0 : i32, i32
  }
  func.func @transform_1(%arg0: i32) -> (i32, i32) {
    %c0_i32 = arith.constant 0 : i32
    %c0_i32_0 = arith.constant 0 : i32
    return %arg0, %c0_i32 : i32, i32
  }
  func.func @transform_2(%arg0: i32) -> (i32, i32) {
    %c0_i32 = arith.constant 0 : i32
    %c0_i32_0 = arith.constant 0 : i32
    %c0_i32_1 = arith.constant 0 : i32
    return %c0_i32, %c0_i32_0 : i32, i32
  }
  func.func @transform_8(%arg0: i32) -> (i32, i32) {
    %c0_i32 = arith.constant 0 : i32
    %c0_i32_0 = arith.constant 0 : i32
    %c0_i32_1 = arith.constant 0 : i32
    return %c0_i32, %c0_i32_0 : i32, i32
  }
}

</mosaic_0001>

<bundles_post_ra>
// kernel: _mlp_pallas.1
= control target key start
LH: loop header
LB: loop body
LE: loop exit
PB: predicated region body
PF: predicated region fallthrough
CT: control target
= control target key end

     0   :  { %s15485_s0 = inlined_call_operand.vmem [shape: bf16[16,3072], index: 0, kind: input, shape index: {}]   ;;  %s15486_s1 = inlined_call_operand.hbm [shape: bf16[3072,512], index: 1, kind: input, shape index: {}]   ;;  %s15487_s2 = inlined_call_operand.hbm [shape: f32[8,768], index: 2, kind: input, shape index: {}]   ;;  %s15488_s3 = inlined_call_operand.hbm [shape: bf16[512,768], index: 3, kind: input, shape index: {}]   ;;  %s15489_s4 = inlined_call_operand.hbm [shape: bf16[768,512], index: 4, kind: input, shape index: {}]   ;;  %s15490_s5 = inlined_call_operand.hbm [shape: bf16[512,768], index: 5, kind: input, shape index: {}]   ;;  %s15491_s6 = inlined_call_operand.hbm [shape: bf16[768,512], index: 6, kind: input, shape index: {}]   ;;  %s15492_s7 = inlined_call_operand.hbm [shape: bf16[512,128], index: 7, kind: input, shape index: {}]   ;;  %s15493_s8 = inlined_call_operand.vmem [shape: f32[16,128], index: 8, kind: output, shape index: {}]  }
   0x1   :  { %15494 = sst [smem:[#allocation33_spill]] %s15485_s0 }
   0x2   :  { %15495 = sst [smem:[#allocation34_spill]] %s15487_s2 }
   0x3   :  { %13 = vsyncpa [#allocation11], 0 }
   0x4   :  { %15 = vsyncpa [#allocation11 + $0x1], 0 }
   0x5   :  { %16 = vsyncpa [#allocation13], 0  ;;  %s14595_s27 = smov 0   ;;  %s14597_s28 = smov 0  }
   0x6   :  { %s14599_s29 = smov 0   ;;  %s14601_s30 = smov 0  }
   0x7 LB: > { %s14614_s9 = sadd.s32 4294967295, %s14539_s30   ;;  %s14617_s10 = sadd.s32 1, %s14539_s30   ;;  %s14539_s30 = sphi %s14601_s30, %s15504_s30   ;;  %s14535_s29 = sphi %s14599_s29, %s15503_s29   ;;  %s14531_s28 = sphi %s14597_s28, %s15502_s28   ;;  %s14527_s27 = sphi %s14595_s27, %s15501_s27  }
   0x8   : > { %s26_s11 = ssub.s32 %s14539_s30, %s14617_s10  ;;  %s29_s12 = sadd.s32 1, %s14535_s29 }
   0x9   : > { %p27_p0 = scmp.eq.s32.totalorder %s26_s11, 0  ;;  %p36_p1 = scmp.ne.s32.totalorder %s14535_s29, %s14531_s28 }
   0xa   : > { %p37_p2 = scmp.eq.s32.totalorder %s14539_s30, 0  ;;  %p68_p3 = scmp.ne.s32.totalorder %s14531_s28, %s14527_s27 }
   0xb   : > { %s14627_s13 = scalar_select %p27_p0, %s14535_s29, %s29_s12  }
   0xc   : > { %p14629_p4 = por %p37_p2, %p36_p1  ;;  %p69_p5 = scmp.eq.s32.totalorder %s14614_s9, 0 }
   0xd   : > { %p8914_p6 = scmp.ge.s32.totalorder %s14539_s30, 1  ;;  %p121_p7 = scmp.lt.s32.totalorder %s14539_s30, 4 }
   0xe   : > { %p14638_p8 = por %p69_p5, %p68_p3  ;;  %p8915_p9 = scmp.ne.s32.totalorder %s14614_s9, 0 }
   0xf   : > { %p14643_p10 = pnand %p8914_p6, %p121_p7  ;;  %s15499_s2 = sld [smem:[#allocation34_spill]] }
  0x10   : > { %s14541_s20 = smov [#allocation12]   ;;  %p8916_p13 = scmp.ge.s32.totalorder %s14539_s30, 3 }
  0x11   : > { %p14266_p11 = pneg %p14643_p10  ;;  %s135_s21 = sshll.u32 %s14541_s20, 4  ;;  %s136_s21 = int_to_ptr.vmem [resolvable:$true] %s135_s21 }
  0x12   : > { %142 = sbr.rel (%p8916_p13) target bundleno = 58 (0x3a), region = 20 }
  0x13   : > { %p14267_p12 = pnand %p14266_p11, %p69_p5 }
  0x15   : > { %s133_s19 = sshll.u32 %s15499_s2, 4  ;;  %s134_s19 = int_to_ptr.hbm [resolvable:$true] %s133_s19 }
  0x16   : > { %14269 = dma.hbm_to_vmem [thread:$0]  (!%p14267_p12), %s134_s19, 768, %s136_s21, [#allocation13]  }
  0x17   : > { %145 = sbr.rel (!%p14629_p4) target bundleno = 41 (0x29), region = 24  ;;  %s147_s22 = sand.u32 (%p14629_p4), 1, %s14535_s29  }
  0x18   : > { %s13193_s23 = sshll.u32 (%p14629_p4), %s14539_s30, 5  ;;  %s8917_s24 = sshll.u32 (%p14629_p4), %s147_s22, 6 }
  0x19   : > { %s15500_s0 = sld [smem:[#allocation33_spill]] (%p14629_p4)  ;;  %s149_s11 = scalar_lea.vmem (%p14629_p4), [#allocation9], %s8917_s24 }
  0x1f   : > { %s152_s27 = scalar_lea.vmem %s15500_s0, %s13193_s23 }
  0x20   : > { %v165_v0 = vld [vmem:[%s152_s27] sm:$0xff]  ;;  %v167_v1 = vld [vmem:[%s152_s27 + $0x8] sm:$0xff]  ;;  %v169_v2 = vld [vmem:[%s152_s27 + $0x10] sm:$0xff] }
  0x21   : > { %166 = vst [vmem:[%s149_s11] sm:$0xff] %v165_v0  ;;  %v171_v3 = vld [vmem:[%s152_s27 + $0x18] sm:$0xff]  ;;  %v173_v4 = vld [vmem:[%s152_s27 + $0x60] sm:$0xff]  ;;  %v175_v5 = vld [vmem:[%s152_s27 + $0x68] sm:$0xff] }
  0x22   : > { %168 = vst [vmem:[%s149_s11 + $0x8] sm:$0xff] %v167_v1  ;;  %v177_v6 = vld [vmem:[%s152_s27 + $0x70] sm:$0xff]  ;;  %v179_v7 = vld [vmem:[%s152_s27 + $0x78] sm:$0xff] }
  0x23   : > { %170 = vst [vmem:[%s149_s11 + $0x10] sm:$0xff] %v169_v2 }
  0x24   : > { %172 = vst [vmem:[%s149_s11 + $0x18] sm:$0xff] %v171_v3 }
  0x25   : > { %174 = vst [vmem:[%s149_s11 + $0x20] sm:$0xff] %v173_v4 }
  0x26   : > { %176 = vst [vmem:[%s149_s11 + $0x28] sm:$0xff] %v175_v5 }
  0x27   : > { %178 = vst [vmem:[%s149_s11 + $0x30] sm:$0xff] %v177_v6 }
  0x28   : > { %180 = vst [vmem:[%s149_s11 + $0x38] sm:$0xff] %v179_v7 }
  0x29 PF: > { %s187_s12 = sand.u32 1, %s14535_s29   ;;  %s13195_s17 = sshll.u32 %s14539_s30, 11 }
  0x2a   : > { %s8920_s18 = sshll.u32 %s187_s12, 11  ;;  %s197_s21 = scalar_lea.hbm %s15486_s1, %s13195_s17 }
  0x2b   : > { %s198_s22 = sshll.u32 %s197_s21, 4  ;;  %s191_s23 = scalar_lea.vmem [#allocation10], %s8920_s18  ;;  %s199_s22 = int_to_ptr.hbm [resolvable:$true] %s198_s22 }
  0x2c   : > { %s200_s24 = sshll.u32 %s191_s23, 4  ;;  %s188_s25 = scalar_lea.sflag [#allocation11], %s187_s12  ;;  %s201_s24 = int_to_ptr.vmem [resolvable:$true] %s200_s24 }
  0x2d   : > { %s14343_s26 = sshra.s32 %s199_s22, 4  ;;  %s14349_s0 = scalar_lea.hbm %s15486_s1, 6144  ;;  %s14344_s26 = int_to_ptr.hbm [resolvable:$true] %s14343_s26 }
  0x2e   : > { %s14345_s27 = scalar_lea.hbm %s14344_s26, 2048  ;;  %p14350_p3 = scmp.lt.s32.totalorder %s14344_s26, %s15486_s1 }
  0x2f   : > { %p14346_p0 = scmp.ne.s32.totalorder %s14344_s26, %s14345_s27  ;;  %p14351_p6 = scmp.lt.s32.totalorder %s14349_s0, %s14345_s27 }
  0x31   : > { %p14347_p1 = pnand %p14346_p0, %p14629_p4  ;;  %p14352_p7 = por %p14351_p6, %p14350_p3 }
  0x33   : > { %p14348_p2 = pneg %p14347_p1 }
  0x35   : > { %p14353_p11 = pnand %p14352_p7, %p14348_p2 }
  0x37   : > { %14356 = shalt.err (!%p14353_p11)
}
  0x38   : > { %s14542_s12 = smov 256   ;;  %s14543_s17 = smov 16  }
  0x39   : > { %14262 = dma.hbm_to_vmem [thread:$0]  (%p14629_p4), %s199_s22, 32768, %s201_s24, %s188_s25, %s14542_s12, %s14542_s12, %s14543_s17  }
  0x3a PF: > { %212 = sbr.rel (%p14643_p10) target bundleno = 2053 (0x805), region = 51  ;;  %s215_s18 = sand.u32 (!%p14643_p10), 1, %s14531_s28  }
  0x3b   : > { %s8925_s20 = sshll.u32 (!%p14643_p10), %s215_s18, 6  ;;  %s8926_s21 = sshll.u32 (!%p14643_p10), %s215_s18, 11 }
  0x3c   : > { %s14680_s2 = scalar_lea.vmem (!%p14643_p10), [#allocation9], %s8925_s20  ;;  %s222_s0 = scalar_lea.sflag (!%p14643_p10), [#allocation11], %s215_s18 }
  0x3d   : > { %s14682_s23 = scalar_lea.vmem (!%p14643_p10), [#allocation10], %s8926_s21 }
  0x3f   : > { %14508 = dma.done.wait (%p14638_p8), %s222_s0, 32768  }
  0x40   : > { %14510 = vsyncadd (%p14638_p8), %s222_s0, 4294934528 }
  0x41   : > { %14512 = dma.done.wait (%p69_p5), [#allocation13], 768  }
  0x42   : > { %14514 = vsyncadd (%p69_p5), [#allocation13], 4294966528  ;;  %258 = sbr.rel (%p8915_p9) target bundleno = 80 (0x50), region = 67  ;;  %s274_s22 = sshll.u32 (!%p8915_p9), %s15488_s3, 4  ;;  %s275_s22 = int_to_ptr.hbm [resolvable:$true] %s274_s22 }
  0x43   : > { %s14544_s24 = smov (!%p8915_p9), [#allocation3]   ;;  %s288_s27 = sshll.u32 (!%p8915_p9), %s15489_s4, 4  ;;  %s289_s27 = int_to_ptr.hbm [resolvable:$true] %s288_s27 }
  0x44   : > { %s276_s25 = sshll.u32 (!%p8915_p9), %s14544_s24, 4  ;;  %s14546_s11 = smov (!%p8915_p9), [#allocation4]   ;;  %s277_s25 = int_to_ptr.vmem [resolvable:$true] %s276_s25 }
  0x45   : > { %279 = dma.hbm_to_vmem [thread:$0]  (!%p8915_p9), %s275_s22, 24576, %s277_s25, [#allocation8] }
  0x46   : > { %s290_s30 = sshll.u32 (!%p8915_p9), %s14546_s11, 4  ;;  %s302_s17 = sshll.u32 (!%p8915_p9), %s15490_s5, 4  ;;  %s291_s30 = int_to_ptr.vmem [resolvable:$true] %s290_s30  ;;  %s303_s17 = int_to_ptr.hbm [resolvable:$true] %s302_s17 }
  0x47   : > { %v14545_v8 = vmov 0.0   ;;  %293 = dma.hbm_to_vmem [thread:$0]  %s289_s27, 24576, %s291_s30, [#allocation8 + $0x1] }
  0x48   : > { %259 = vst [vmem:[#allocation2 + $0x30] sm:$0xff] %v14545_v8  ;;  %s316_s21 = sshll.u32 %s15491_s6, 4  ;;  %s14547_s0 = smov [#allocation5]   ;;  %s317_s21 = int_to_ptr.hbm [resolvable:$true] %s316_s21 }
  0x49   : > { %260 = vst [vmem:[#allocation2] sm:$0xff] %v14545_v8  ;;  %s304_s14 = sshll.u32 %s14547_s0, 4  ;;  %s14548_s16 = smov [#allocation6]   ;;  %s305_s14 = int_to_ptr.vmem [resolvable:$true] %s304_s14 }
  0x4a   : > { %261 = vst [vmem:[#allocation2 + $0x18] sm:$0xff] %v14545_v8  ;;  %307 = dma.hbm_to_vmem [thread:$0]  %s303_s17, 24576, %s305_s14, [#allocation8 + $0x2] }
  0x4b   : > { %262 = vst [vmem:[#allocation2 + $0x10] sm:$0xff] %v14545_v8  ;;  %s318_s22 = sshll.u32 %s14548_s16, 4  ;;  %s330_s15 = sshll.u32 %s15492_s7, 4  ;;  %s319_s22 = int_to_ptr.vmem [resolvable:$true] %s318_s22  ;;  %s331_s15 = int_to_ptr.hbm [resolvable:$true] %s330_s15 }
  0x4c   : > { %263 = vst [vmem:[#allocation2 + $0x8] sm:$0xff] %v14545_v8  ;;  %321 = dma.hbm_to_vmem [thread:$0]  %s317_s21, 24576, %s319_s22, [#allocation8 + $0x3] }
  0x4d   : > { %264 = vst [vmem:[#allocation2 + $0x20] sm:$0xff] %v14545_v8  ;;  %s14549_s26 = smov [#allocation7]  }
  0x4e   : > { %265 = vst [vmem:[#allocation2 + $0x28] sm:$0xff] %v14545_v8  ;;  %s332_s27 = sshll.u32 %s14549_s26, 4  ;;  %s333_s27 = int_to_ptr.vmem [resolvable:$true] %s332_s27 }
  0x4f   : > { %266 = vst [vmem:[#allocation2 + $0x38] sm:$0xff] %v14545_v8  ;;  %335 = dma.hbm_to_vmem [thread:$0]  %s331_s15, 4096, %s333_s27, [#allocation8 + $0x4] }
  0x50 PF: > { %v9075_v9 = vld [vmem:[%s14682_s23 + $0xe0] sm:$0xf]  ;;  %v13234_v10 = vld [vmem:[%s14682_s23 + $0xec] sm:$0xf0]  ;;  %p9985_p4 = scmp.ne.s32.totalorder %s14614_s9, 2 }
  0x51   : > { %v9203_v11 = vld [vmem:[%s14682_s23 + $0x1e0] sm:$0xf]  ;;  %v9076_v12 = vor.u32 %v13234_v10, %v9075_v9  ;;  %v13266_v13 = vld [vmem:[%s14682_s23 + $0x1ec] sm:$0xf0] }
  0x52   : > { %v9331_v14 = vld [vmem:[%s14682_s23 + $0x2e0] sm:$0xf]  ;;  %v13298_v15 = vld [vmem:[%s14682_s23 + $0x2ec] sm:$0xf0]  ;;  %v9204_v16 = vor.u32 %v13266_v13, %v9203_v11 }
  0x53   : > { %v9332_v17 = vor.u32 %v13298_v15, %v9331_v14  ;;  %v9459_v18 = vld [vmem:[%s14682_s23 + $0x3e0] sm:$0xf]  ;;  %v13330_v19 = vld [vmem:[%s14682_s23 + $0x3ec] sm:$0xf0]  ;;  %1928 = vmatpush.bf16.msra.mxu0 %v9076_v12 }
  0x54   : > { %v9059_v20 = vld [vmem:[%s14682_s23 + $0xc0] sm:$0xf]  ;;  %v9460_v21 = vor.u32 %v13330_v19, %v9459_v18  ;;  %v13230_v22 = vld [vmem:[%s14682_s23 + $0xcc] sm:$0xf0]  ;;  %1942 = vmatpush.bf16.msra.mxu1 %v9204_v16 }
  0x55   : > { %v9187_v23 = vld [vmem:[%s14682_s23 + $0x1c0] sm:$0xf]  ;;  %v13262_v24 = vld [vmem:[%s14682_s23 + $0x1cc] sm:$0xf0]  ;;  %1956 = vmatpush.bf16.msra.mxu2 %v9332_v17  ;;  %v9060_v25 = vor.u32 %v13230_v22, %v9059_v20 }
  0x56   : > { %v9188_v26 = vor.u32 %v13262_v24, %v9187_v23  ;;  %v9315_v27 = vld [vmem:[%s14682_s23 + $0x2c0] sm:$0xf]  ;;  %v13294_v28 = vld [vmem:[%s14682_s23 + $0x2cc] sm:$0xf0]  ;;  %1970 = vmatpush.bf16.msra.mxu3 %v9460_v21 }
  0x57   : > { %v9443_v29 = vld [vmem:[%s14682_s23 + $0x3c0] sm:$0xf]  ;;  %v9316_v30 = vor.u32 %v13294_v28, %v9315_v27  ;;  %v13326_v31 = vld [vmem:[%s14682_s23 + $0x3cc] sm:$0xf0]  ;;  %1929 = vmatpush.bf16.msra.mxu0 %v9060_v25 }
  0x58   : > { %v9043_v32 = vld [vmem:[%s14682_s23 + $0xa0] sm:$0xf]  ;;  %v13226_v33 = vld [vmem:[%s14682_s23 + $0xac] sm:$0xf0]  ;;  %v9444_v34 = vor.u32 %v13326_v31, %v9443_v29  ;;  %1943 = vmatpush.bf16.msra.mxu1 %v9188_v26 }
  0x59   : > { %v9171_v35 = vld [vmem:[%s14682_s23 + $0x1a0] sm:$0xf]  ;;  %v13258_v36 = vld [vmem:[%s14682_s23 + $0x1ac] sm:$0xf0]  ;;  %v9044_v38 = vor.u32 %v13226_v33, %v9043_v32  ;;  %1957 = vmatpush.bf16.msra.mxu2 %v9316_v30 }
  0x5a   : > { %v9299_v37 = vld [vmem:[%s14682_s23 + $0x2a0] sm:$0xf]  ;;  %v13290_v39 = vld [vmem:[%s14682_s23 + $0x2ac] sm:$0xf0]  ;;  %v9172_v42 = vor.u32 %v13258_v36, %v9171_v35  ;;  %1971 = vmatpush.bf16.msra.mxu3 %v9444_v34 }
  0x5b   : > { %v9427_v40 = vld [vmem:[%s14682_s23 + $0x3a0] sm:$0xf]  ;;  %v13322_v41 = vld [vmem:[%s14682_s23 + $0x3ac] sm:$0xf0]  ;;  %v9300_v43 = vor.u32 %v13290_v39, %v9299_v37  ;;  %1930 = vmatpush.bf16.msra.mxu0 %v9044_v38 }
  0x5c   : > { %v9027_v44 = vld [vmem:[%s14682_s23 + $0x80] sm:$0xf]  ;;  %v13222_v45 = vld [vmem:[%s14682_s23 + $0x8c] sm:$0xf0]  ;;  %v9428_v47 = vor.u32 %v13322_v41, %v9427_v40  ;;  %1944 = vmatpush.bf16.msra.mxu1 %v9172_v42 }
  0x5d   : > { %v9155_v46 = vld [vmem:[%s14682_s23 + $0x180] sm:$0xf]  ;;  %v13254_v48 = vld [vmem:[%s14682_s23 + $0x18c] sm:$0xf0]  ;;  %v9028_v53 = vor.u32 %v13222_v45, %v9027_v44  ;;  %1958 = vmatpush.bf16.msra.mxu2 %v9300_v43 }
  0x5e   : > { %v9283_v49 = vld [vmem:[%s14682_s23 + $0x280] sm:$0xf]  ;;  %v13286_v50 = vld [vmem:[%s14682_s23 + $0x28c] sm:$0xf0]  ;;  %v9156_v54 = vor.u32 %v13254_v48, %v9155_v46  ;;  %1972 = vmatpush.bf16.msra.mxu3 %v9428_v47 }
  0x5f   : > { %v9411_v51 = vld [vmem:[%s14682_s23 + $0x380] sm:$0xf]  ;;  %v13318_v52 = vld [vmem:[%s14682_s23 + $0x38c] sm:$0xf0]  ;;  %v9284_v55 = vor.u32 %v13286_v50, %v9283_v49  ;;  %1931 = vmatpush.bf16.msra.mxu0 %v9028_v53 }
  0x60   : > { %v9011_v56 = vld [vmem:[%s14682_s23 + $0x60] sm:$0xf]  ;;  %v13218_v57 = vld [vmem:[%s14682_s23 + $0x6c] sm:$0xf0]  ;;  %v9412_v59 = vor.u32 %v13318_v52, %v9411_v51  ;;  %1945 = vmatpush.bf16.msra.mxu1 %v9156_v54 }
  0x61   : > { %v9139_v58 = vld [vmem:[%s14682_s23 + $0x160] sm:$0xf]  ;;  %v13250_v60 = vld [vmem:[%s14682_s23 + $0x16c] sm:$0xf0]  ;;  %v9012_v1 = vor.u32 %v13218_v57, %v9011_v56  ;;  %1959 = vmatpush.bf16.msra.mxu2 %v9284_v55 }
  0x62   : > { %v9267_v61 = vld [vmem:[%s14682_s23 + $0x260] sm:$0xf]  ;;  %v13282_v62 = vld [vmem:[%s14682_s23 + $0x26c] sm:$0xf0]  ;;  %v9140_v2 = vor.u32 %v13250_v60, %v9139_v58  ;;  %1973 = vmatpush.bf16.msra.mxu3 %v9412_v59 }
  0x63   : > { %v9395_v63 = vld [vmem:[%s14682_s23 + $0x360] sm:$0xf]  ;;  %v13314_v0 = vld [vmem:[%s14682_s23 + $0x36c] sm:$0xf0]  ;;  %v9268_v3 = vor.u32 %v13282_v62, %v9267_v61  ;;  %1932 = vmatpush.bf16.msra.mxu0 %v9012_v1 }
  0x64   : > { %v8995_v4 = vld [vmem:[%s14682_s23 + $0x40] sm:$0xf]  ;;  %v13214_v5 = vld [vmem:[%s14682_s23 + $0x4c] sm:$0xf0]  ;;  %v9396_v7 = vor.u32 %v13314_v0, %v9395_v63  ;;  %1946 = vmatpush.bf16.msra.mxu1 %v9140_v2  ;;  %v8939_v63 = vld [vmem:[%s14680_s2 + $0x8] sm:$0xf] }
  0x65   : > { %v9123_v6 = vld [vmem:[%s14682_s23 + $0x140] sm:$0xf]  ;;  %v13246_v8 = vld [vmem:[%s14682_s23 + $0x14c] sm:$0xf0]  ;;  %v8996_v13 = vor.u32 %v13214_v5, %v8995_v4  ;;  %1960 = vmatpush.bf16.msra.mxu2 %v9268_v3  ;;  %v13201_v4 = vld [vmem:[%s14680_s2 + $0x24] sm:$0xf0] }
  0x66   : > { %v9251_v9 = vld [vmem:[%s14682_s23 + $0x240] sm:$0xf]  ;;  %v13278_v10 = vld [vmem:[%s14682_s23 + $0x24c] sm:$0xf0]  ;;  %v9124_v14 = vor.u32 %v13246_v8, %v9123_v6  ;;  %1974 = vmatpush.bf16.msra.mxu3 %v9396_v7 }
  0x67   : > { %v9379_v11 = vld [vmem:[%s14682_s23 + $0x340] sm:$0xf]  ;;  %v13310_v12 = vld [vmem:[%s14682_s23 + $0x34c] sm:$0xf0]  ;;  %v9252_v15 = vor.u32 %v13278_v10, %v9251_v9  ;;  %1933 = vmatpush.bf16.msra.mxu0 %v8996_v13  ;;  %v14800_v10 = vor.u32 %v13201_v4, %v8939_v63 }
  0x68   : > { %v8979_v16 = vld [vmem:[%s14682_s23 + $0x20] sm:$0xf]  ;;  %v13210_v17 = vld [vmem:[%s14682_s23 + $0x2c] sm:$0xf0]  ;;  %v9380_v19 = vor.u32 %v13310_v12, %v9379_v11  ;;  %1947 = vmatpush.bf16.msra.mxu1 %v9124_v14 }
  0x69   : > { %v9107_v18 = vld [vmem:[%s14682_s23 + $0x120] sm:$0xf]  ;;  %v13242_v20 = vld [vmem:[%s14682_s23 + $0x12c] sm:$0xf0]  ;;  %v8980_v25 = vor.u32 %v13210_v17, %v8979_v16  ;;  %1961 = vmatpush.bf16.msra.mxu2 %v9252_v15  ;;  %v13196_v15 = vld [vmem:[%s14680_s2 + $0x4] sm:$0xf] }
  0x6a   : > { %v9235_v21 = vld [vmem:[%s14682_s23 + $0x220] sm:$0xf]  ;;  %v13274_v22 = vld [vmem:[%s14682_s23 + $0x22c] sm:$0xf0]  ;;  %v9108_v28 = vor.u32 %v13242_v20, %v9107_v18  ;;  %1975 = vmatpush.bf16.msra.mxu3 %v9380_v19  ;;  %v8933_v16 = vld [vmem:[%s14680_s2 + $0x20] sm:$0xf0] }
  0x6b   : > { %v9363_v23 = vld [vmem:[%s14682_s23 + $0x320] sm:$0xf]  ;;  %v13306_v24 = vld [vmem:[%s14682_s23 + $0x32c] sm:$0xf0]  ;;  %v9236_v29 = vor.u32 %v13274_v22, %v9235_v21  ;;  %1934 = vmatpush.bf16.msra.mxu0 %v8980_v25  ;;  %v13197_v17 = vld [vmem:[%s14680_s2 + $0xc] sm:$0xf]  ;;  %v14810_v19 = vor.u32 %v13196_v15, %v8933_v16 }
  0x6c   : > { %v8963_v26 = vld [vmem:[%s14682_s23] sm:$0xf]  ;;  %v13206_v27 = vld [vmem:[%s14682_s23 + $0xc] sm:$0xf0]  ;;  %v9364_v33 = vor.u32 %v13306_v24, %v9363_v23  ;;  %1948 = vmatpush.bf16.msra.mxu1 %v9108_v28  ;;  %v8941_v20 = vld [vmem:[%s14680_s2 + $0x28] sm:$0xf0] }
  0x6d   : > { %v9091_v30 = vld [vmem:[%s14682_s23 + $0x100] sm:$0xf]  ;;  %v13238_v31 = vld [vmem:[%s14682_s23 + $0x10c] sm:$0xf0]  ;;  %v8964_v40 = vor.u32 %v13206_v27, %v8963_v26  ;;  %1962 = vmatpush.bf16.msra.mxu2 %v9236_v29  ;;  %v14816_v26 = vor.u32 %v13197_v17, %v8941_v20 }
  0x6e   : > { %v9219_v32 = vld [vmem:[%s14682_s23 + $0x200] sm:$0xf]  ;;  %v13270_v34 = vld [vmem:[%s14682_s23 + $0x20c] sm:$0xf0]  ;;  %v9092_v44 = vor.u32 %v13238_v31, %v9091_v30  ;;  %1976 = vmatpush.bf16.msra.mxu3 %v9364_v33 }
  0x6f   : > { %v9347_v35 = vld [vmem:[%s14682_s23 + $0x300] sm:$0xf]  ;;  %v13302_v36 = vld [vmem:[%s14682_s23 + $0x30c] sm:$0xf0]  ;;  %v9220_v45 = vor.u32 %v13270_v34, %v9219_v32  ;;  %1935 = vmatpush.bf16.msra.mxu0 %v8964_v40 }
  0x70   : > { %v9587_v37 = vld [vmem:[%s14682_s23 + $0x4e0] sm:$0xf]  ;;  %v13362_v38 = vld [vmem:[%s14682_s23 + $0x4ec] sm:$0xf0]  ;;  %v9348_v48 = vor.u32 %v13302_v36, %v9347_v35  ;;  %1949 = vmatpush.bf16.msra.mxu1 %v9092_v44 }
  0x71   : > { %v9715_v39 = vld [vmem:[%s14682_s23 + $0x5e0] sm:$0xf]  ;;  %v13394_v41 = vld [vmem:[%s14682_s23 + $0x5ec] sm:$0xf0]  ;;  %v9588_v49 = vor.u32 %v13362_v38, %v9587_v37  ;;  %1963 = vmatpush.bf16.msra.mxu2 %v9220_v45 }
  0x72   : > { %v9843_v42 = vld [vmem:[%s14682_s23 + $0x6e0] sm:$0xf]  ;;  %v13426_v43 = vld [vmem:[%s14682_s23 + $0x6ec] sm:$0xf0]  ;;  %v9716_v52 = vor.u32 %v13394_v41, %v9715_v39  ;;  %1977 = vmatpush.bf16.msra.mxu3 %v9348_v48 }
  0x73   : > { %v9971_v46 = vld [vmem:[%s14682_s23 + $0x7e0] sm:$0xf]  ;;  %v13458_v47 = vld [vmem:[%s14682_s23 + $0x7ec] sm:$0xf0]  ;;  %v9844_v53 = vor.u32 %v13426_v43, %v9843_v42  ;;  %1984 = vmatpush.bf16.msrb.mxu0 %v9588_v49  ;;  %1950 = vmatmul.bf16.vlgmr.msra.gmra.mxu1 %v14810_v19 }
  0x74   : > { %v9571_v50 = vld [vmem:[%s14682_s23 + $0x4c0] sm:$0xf]  ;;  %v13358_v51 = vld [vmem:[%s14682_s23 + $0x4cc] sm:$0xf0]  ;;  %v9972_v57 = vor.u32 %v13458_v47, %v9971_v46  ;;  %1998 = vmatpush.bf16.msrb.mxu1 %v9716_v52  ;;  %1964 = vmatmul.bf16.vlgmr.msra.gmra.mxu2 %v14800_v10 }
  0x75   : > { %v9699_v54 = vld [vmem:[%s14682_s23 + $0x5c0] sm:$0xf]  ;;  %v13390_v55 = vld [vmem:[%s14682_s23 + $0x5cc] sm:$0xf0]  ;;  %v9572_v0 = vor.u32 %v13358_v51, %v9571_v50  ;;  %2012 = vmatpush.bf16.msrb.mxu2 %v9844_v53  ;;  %1978 = vmatmul.bf16.vlgmr.msra.gmra.mxu3 %v14816_v26 }
  0x76   : > { %v9827_v56 = vld [vmem:[%s14682_s23 + $0x6c0] sm:$0xf]  ;;  %v13422_v58 = vld [vmem:[%s14682_s23 + $0x6cc] sm:$0xf0]  ;;  %v9700_v5 = vor.u32 %v13390_v55, %v9699_v54  ;;  %2026 = vmatpush.bf16.msrb.mxu3 %v9972_v57 }
  0x77   : > { %v9955_v59 = vld [vmem:[%s14682_s23 + $0x7c0] sm:$0xf]  ;;  %v13454_v60 = vld [vmem:[%s14682_s23 + $0x7cc] sm:$0xf0]  ;;  %v9828_v6 = vor.u32 %v13422_v58, %v9827_v56  ;;  %1985 = vmatpush.bf16.msrb.mxu0 %v9572_v0 }
  0x78   : > { %v8931_v61 = vld [vmem:[%s14680_s2] sm:$0xf]  ;;  %v13354_v2 = vld [vmem:[%s14682_s23 + $0x4ac] sm:$0xf0]  ;;  %v9956_v11 = vor.u32 %v13454_v60, %v9955_v59  ;;  %1999 = vmatpush.bf16.msrb.mxu1 %v9700_v5 }
  0x79   : > { %v13200_v62 = vld [vmem:[%s14680_s2 + $0x1c] sm:$0xf0]  ;;  %v13386_v8 = vld [vmem:[%s14682_s23 + $0x5ac] sm:$0xf0]  ;;  %2013 = vmatpush.bf16.msrb.mxu2 %v9828_v6 }
  0x7a   : > { %v9555_v1 = vld [vmem:[%s14682_s23 + $0x4a0] sm:$0xf]  ;;  %v14794_v3 = vor.u32 %v13200_v62, %v8931_v61  ;;  %v13418_v12 = vld [vmem:[%s14682_s23 + $0x6ac] sm:$0xf0]  ;;  %2027 = vmatpush.bf16.msrb.mxu3 %v9956_v11 }
  0x7b   : > { %v9683_v7 = vld [vmem:[%s14682_s23 + $0x5a0] sm:$0xf]  ;;  %v13450_v14 = vld [vmem:[%s14682_s23 + $0x7ac] sm:$0xf0]  ;;  %v9556_v18 = vor.u32 %v13354_v2, %v9555_v1 }
  0x7c   : > { %v9811_v9 = vld [vmem:[%s14682_s23 + $0x6a0] sm:$0xf]  ;;  %1936 = vmatmul.bf16.vlgmr.msra.gmra.mxu0 %v14794_v3  ;;  %v9684_v21 = vor.u32 %v13386_v8, %v9683_v7  ;;  %v13350_v24 = vld [vmem:[%s14682_s23 + $0x48c] sm:$0xf0] }
  0x7d   : > { %v9939_v13 = vld [vmem:[%s14682_s23 + $0x7a0] sm:$0xf]  ;;  %v9812_v22 = vor.u32 %v13418_v12, %v9811_v9  ;;  %v13382_v28 = vld [vmem:[%s14682_s23 + $0x58c] sm:$0xf0]  ;;  %1986 = vmatpush.bf16.msrb.mxu0 %v9556_v18  ;;  %v13232_v18 = vld [vmem:[%s14682_s23 + $0xe4] sm:$0xf] }
  0x7e   : > { %v9539_v23 = vld [vmem:[%s14682_s23 + $0x480] sm:$0xf]  ;;  %v9940_v27 = vor.u32 %v13450_v14, %v9939_v13  ;;  %v13414_v30 = vld [vmem:[%s14682_s23 + $0x68c] sm:$0xf0]  ;;  %2000 = vmatpush.bf16.msrb.mxu1 %v9684_v21  ;;  %v9077_v21 = vld [vmem:[%s14682_s23 + $0xf0] sm:$0xf0] }
  0x7f   : > { %v9667_v25 = vld [vmem:[%s14682_s23 + $0x580] sm:$0xf]  ;;  %v13446_v32 = vld [vmem:[%s14682_s23 + $0x78c] sm:$0xf0]  ;;  %v9540_v33 = vor.u32 %v13350_v24, %v9539_v23  ;;  %2014 = vmatpush.bf16.msrb.mxu2 %v9812_v22  ;;  %v13264_v22 = vld [vmem:[%s14682_s23 + $0x1e4] sm:$0xf] }
  0x80   : > { %v9795_v29 = vld [vmem:[%s14682_s23 + $0x680] sm:$0xf]  ;;  %v9668_v34 = vor.u32 %v13382_v28, %v9667_v25  ;;  %v13346_v37 = vld [vmem:[%s14682_s23 + $0x46c] sm:$0xf0]  ;;  %2028 = vmatpush.bf16.msrb.mxu3 %v9940_v27  ;;  %v9205_v23 = vld [vmem:[%s14682_s23 + $0x1f0] sm:$0xf0] }
  0x81   : > { %v9923_v31 = vld [vmem:[%s14682_s23 + $0x780] sm:$0xf]  ;;  %v9796_v35 = vor.u32 %v13414_v30, %v9795_v29  ;;  %v13378_v40 = vld [vmem:[%s14682_s23 + $0x56c] sm:$0xf0]  ;;  %1987 = vmatpush.bf16.msrb.mxu0 %v9540_v33  ;;  %v13296_v24 = vld [vmem:[%s14682_s23 + $0x2e4] sm:$0xf] }
  0x82   : > { %v9523_v36 = vld [vmem:[%s14682_s23 + $0x460] sm:$0xf]  ;;  %v9924_v39 = vor.u32 %v13446_v32, %v9923_v31  ;;  %v13410_v42 = vld [vmem:[%s14682_s23 + $0x66c] sm:$0xf0]  ;;  %2001 = vmatpush.bf16.msrb.mxu1 %v9668_v34  ;;  %v9333_v25 = vld [vmem:[%s14682_s23 + $0x2f0] sm:$0xf0] }
  0x83   : > { %v9651_v38 = vld [vmem:[%s14682_s23 + $0x560] sm:$0xf]  ;;  %v13442_v44 = vld [vmem:[%s14682_s23 + $0x76c] sm:$0xf0]  ;;  %v9524_v45 = vor.u32 %v13346_v37, %v9523_v36  ;;  %2015 = vmatpush.bf16.msrb.mxu2 %v9796_v35  ;;  %v13328_v27 = vld [vmem:[%s14682_s23 + $0x3e4] sm:$0xf] }
  0x84   : > { %v9779_v41 = vld [vmem:[%s14682_s23 + $0x660] sm:$0xf]  ;;  %v9652_v46 = vor.u32 %v13378_v40, %v9651_v38  ;;  %v13342_v49 = vld [vmem:[%s14682_s23 + $0x44c] sm:$0xf0]  ;;  %2029 = vmatpush.bf16.msrb.mxu3 %v9924_v39  ;;  %v9461_v29 = vld [vmem:[%s14682_s23 + $0x3f0] sm:$0xf0]  ;;  %v9080_v38 = vor.u32 %v13232_v18, %v9077_v21 }
  0x85   : > { %v9907_v43 = vld [vmem:[%s14682_s23 + $0x760] sm:$0xf]  ;;  %v9780_v47 = vor.u32 %v13410_v42, %v9779_v41  ;;  %v13374_v52 = vld [vmem:[%s14682_s23 + $0x54c] sm:$0xf0]  ;;  %1988 = vmatpush.bf16.msrb.mxu0 %v9524_v45  ;;  %v8955_v34 = vld [vmem:[%s14680_s2 + $0x18] sm:$0xf]  ;;  %v9208_v42 = vor.u32 %v13264_v22, %v9205_v23 }
  0x86   : > { %v9507_v48 = vld [vmem:[%s14682_s23 + $0x440] sm:$0xf]  ;;  %v9908_v51 = vor.u32 %v13442_v44, %v9907_v43  ;;  %v13406_v54 = vld [vmem:[%s14682_s23 + $0x64c] sm:$0xf0]  ;;  %2002 = vmatpush.bf16.msrb.mxu1 %v9652_v46  ;;  %v13203_v35 = vld [vmem:[%s14680_s2 + $0x34] sm:$0xf0]  ;;  %v9336_v43 = vor.u32 %v13296_v24, %v9333_v25 }
  0x87   : > { %v9635_v50 = vld [vmem:[%s14682_s23 + $0x540] sm:$0xf]  ;;  %v13438_v56 = vld [vmem:[%s14682_s23 + $0x74c] sm:$0xf0]  ;;  %v9508_v57 = vor.u32 %v13342_v49, %v9507_v48  ;;  %2016 = vmatpush.bf16.msrb.mxu2 %v9780_v47  ;;  %v13198_v36 = vld [vmem:[%s14680_s2 + $0x14] sm:$0xf]  ;;  %v9464_v47 = vor.u32 %v13328_v27, %v9461_v29 }
  0x88   : > { %v9763_v53 = vld [vmem:[%s14682_s23 + $0x640] sm:$0xf]  ;;  %v9636_v59 = vor.u32 %v13374_v52, %v9635_v50  ;;  %v13338_v61 = vld [vmem:[%s14682_s23 + $0x42c] sm:$0xf0]  ;;  %2030 = vmatpush.bf16.msrb.mxu3 %v9908_v51  ;;  %v8949_v39 = vld [vmem:[%s14680_s2 + $0x30] sm:$0xf0]  ;;  %v14881_v52 = vor.u32 %v13203_v35, %v8955_v34 }
  0x89   : > { %v9891_v55 = vld [vmem:[%s14682_s23 + $0x740] sm:$0xf]  ;;  %v9764_v60 = vor.u32 %v13406_v54, %v9763_v53  ;;  %v13370_v63 = vld [vmem:[%s14682_s23 + $0x52c] sm:$0xf0]  ;;  %1989 = vmatpush.bf16.msrb.mxu0 %v9508_v57  ;;  %v13199_v40 = vld [vmem:[%s14680_s2 + $0x1c] sm:$0xf]  ;;  %v14883_v53 = vor.u32 %v13198_v36, %v8949_v39 }
  0x8a   : > { %v9491_v58 = vld [vmem:[%s14682_s23 + $0x420] sm:$0xf]  ;;  %v9892_v0 = vor.u32 %v13438_v56, %v9891_v55  ;;  %v13402_v2 = vld [vmem:[%s14682_s23 + $0x62c] sm:$0xf0]  ;;  %2003 = vmatpush.bf16.msrb.mxu1 %v9636_v59  ;;  %v8957_v41 = vld [vmem:[%s14680_s2 + $0x38] sm:$0xf0] }
  0x8b   : > { %v9619_v62 = vld [vmem:[%s14682_s23 + $0x520] sm:$0xf]  ;;  %v13434_v5 = vld [vmem:[%s14682_s23 + $0x72c] sm:$0xf0]  ;;  %v9492_v8 = vor.u32 %v13338_v61, %v9491_v58  ;;  %2017 = vmatpush.bf16.msrb.mxu2 %v9764_v60  ;;  %v13228_v44 = vld [vmem:[%s14682_s23 + $0xc4] sm:$0xf]  ;;  %v14887_v56 = vor.u32 %v13199_v40, %v8957_v41 }
  0x8c   : > { %v9747_v1 = vld [vmem:[%s14682_s23 + $0x620] sm:$0xf]  ;;  %v13334_v7 = vld [vmem:[%s14682_s23 + $0x40c] sm:$0xf0]  ;;  %v9620_v14 = vor.u32 %v13370_v63, %v9619_v62  ;;  %2031 = vmatpush.bf16.msrb.mxu3 %v9892_v0  ;;  %v9061_v45 = vld [vmem:[%s14682_s23 + $0xd0] sm:$0xf0] }
  0x8d   : > { %v9875_v4 = vld [vmem:[%s14682_s23 + $0x720] sm:$0xf]  ;;  %v13366_v11 = vld [vmem:[%s14682_s23 + $0x50c] sm:$0xf0]  ;;  %v9748_v15 = vor.u32 %v13402_v2, %v9747_v1  ;;  %1990 = vmatpush.bf16.msrb.mxu0 %v9492_v8  ;;  %v13260_v46 = vld [vmem:[%s14682_s23 + $0x1c4] sm:$0xf]  ;;  %v9064_v57 = vor.u32 %v13228_v44, %v9061_v45 }
  0x8e   : > { %v9475_v6 = vld [vmem:[%s14682_s23 + $0x400] sm:$0xf]  ;;  %v13398_v13 = vld [vmem:[%s14682_s23 + $0x60c] sm:$0xf0]  ;;  %v9876_v20 = vor.u32 %v13434_v5, %v9875_v4  ;;  %2004 = vmatpush.bf16.msrb.mxu1 %v9620_v14  ;;  %v9189_v49 = vld [vmem:[%s14682_s23 + $0x1d0] sm:$0xf0] }
  0x8f   : > { %v9603_v9 = vld [vmem:[%s14682_s23 + $0x500] sm:$0xf]  ;;  %v13430_v17 = vld [vmem:[%s14682_s23 + $0x70c] sm:$0xf0]  ;;  %v9476_v28 = vor.u32 %v13334_v7, %v9475_v6  ;;  %2018 = vmatpush.bf16.msrb.mxu2 %v9748_v15  ;;  %v13292_v50 = vld [vmem:[%s14682_s23 + $0x2c4] sm:$0xf]  ;;  %v9192_v58 = vor.u32 %v13260_v46, %v9189_v49 }
  0x90   : > { %v9731_v12 = vld [vmem:[%s14682_s23 + $0x600] sm:$0xf]  ;;  %v8947_v30 = vld [vmem:[%s14680_s2 + $0x10] sm:$0xf]  ;;  %v9604_v32 = vor.u32 %v13366_v11, %v9603_v9  ;;  %2032 = vmatpush.bf16.msrb.mxu3 %v9876_v20  ;;  %v9317_v51 = vld [vmem:[%s14682_s23 + $0x2d0] sm:$0xf0] }
  0x91   : > { %v9859_v16 = vld [vmem:[%s14682_s23 + $0x700] sm:$0xf]  ;;  %v13202_v31 = vld [vmem:[%s14680_s2 + $0x2c] sm:$0xf0]  ;;  %v9732_v33 = vor.u32 %v13398_v13, %v9731_v12  ;;  %1991 = vmatpush.bf16.msrb.mxu0 %v9476_v28  ;;  %v13324_v54 = vld [vmem:[%s14682_s23 + $0x3c4] sm:$0xf]  ;;  %v9320_v59 = vor.u32 %v13292_v50, %v9317_v51 }
  0x92   : > { %v9860_v37 = vor.u32 %v13430_v17, %v9859_v16  ;;  %v14876_v48 = vor.u32 %v13202_v31, %v8947_v30  ;;  %2005 = vmatpush.bf16.msrb.mxu1 %v9604_v32  ;;  %v9445_v55 = vld [vmem:[%s14682_s23 + $0x3d0] sm:$0xf0]  ;;  %v13224_v60 = vld [vmem:[%s14682_s23 + $0xa4] sm:$0xf] }
  0x93   : > { %2019 = vmatpush.bf16.msrb.mxu2 %v9732_v33  ;;  %v9045_v61 = vld [vmem:[%s14682_s23 + $0xb0] sm:$0xf0]  ;;  %v13256_v62 = vld [vmem:[%s14682_s23 + $0x1a4] sm:$0xf]  ;;  %v9448_v63 = vor.u32 %v13324_v54, %v9445_v55 }
  0x94   : > { %2033 = vmatpush.bf16.msrb.mxu3 %v9860_v37  ;;  %1992 = vmatmul.bf16.vlgmr.msrb.gmra.mxu0 %v14876_v48  ;;  %v9173_v0 = vld [vmem:[%s14682_s23 + $0x1b0] sm:$0xf0]  ;;  %v13288_v1 = vld [vmem:[%s14682_s23 + $0x2a4] sm:$0xf]  ;;  %v9048_v6 = vor.u32 %v13224_v60, %v9045_v61 }
  0x95   : > { %2040 = vmatpush.bf16.msra.mxu0 %v9080_v38  ;;  %v9301_v2 = vld [vmem:[%s14682_s23 + $0x2b0] sm:$0xf0]  ;;  %2006 = vmatmul.bf16.vlgmr.msrb.gmra.mxu1 %v14883_v53  ;;  %v13320_v4 = vld [vmem:[%s14682_s23 + $0x3a4] sm:$0xf]  ;;  %v9176_v7 = vor.u32 %v13256_v62, %v9173_v0 }
  0x96   : > { %2054 = vmatpush.bf16.msra.mxu1 %v9208_v42  ;;  %2020 = vmatmul.bf16.vlgmr.msrb.gmra.mxu2 %v14881_v52  ;;  %v9429_v5 = vld [vmem:[%s14682_s23 + $0x3b0] sm:$0xf0]  ;;  %v9304_v8 = vor.u32 %v13288_v1, %v9301_v2  ;;  %v13220_v9 = vld [vmem:[%s14682_s23 + $0x84] sm:$0xf] }
  0x97   : > { %2068 = vmatpush.bf16.msra.mxu2 %v9336_v43  ;;  %2034 = vmatmul.bf16.vlgmr.msrb.gmra.mxu3 %v14887_v56  ;;  %v9029_v11 = vld [vmem:[%s14682_s23 + $0x90] sm:$0xf0]  ;;  %v13252_v12 = vld [vmem:[%s14682_s23 + $0x184] sm:$0xf]  ;;  %v9432_v13 = vor.u32 %v13320_v4, %v9429_v5 }
  0x98   : > { %2082 = vmatpush.bf16.msra.mxu3 %v9464_v47  ;;  %v9157_v14 = vld [vmem:[%s14682_s23 + $0x190] sm:$0xf0]  ;;  %v13284_v15 = vld [vmem:[%s14682_s23 + $0x284] sm:$0xf]  ;;  %v9032_v20 = vor.u32 %v13220_v9, %v9029_v11 }
  0x99   : > { %2041 = vmatpush.bf16.msra.mxu0 %v9064_v57  ;;  %v9285_v16 = vld [vmem:[%s14682_s23 + $0x290] sm:$0xf0]  ;;  %v13316_v17 = vld [vmem:[%s14682_s23 + $0x384] sm:$0xf]  ;;  %v9160_v21 = vor.u32 %v13252_v12, %v9157_v14 }
  0x9a   : > { %2055 = vmatpush.bf16.msra.mxu1 %v9192_v58  ;;  %v9413_v18 = vld [vmem:[%s14682_s23 + $0x390] sm:$0xf0]  ;;  %v9288_v22 = vor.u32 %v13284_v15, %v9285_v16  ;;  %v13216_v23 = vld [vmem:[%s14682_s23 + $0x64] sm:$0xf] }
  0x9b   : > { %2069 = vmatpush.bf16.msra.mxu2 %v9320_v59  ;;  %v9013_v24 = vld [vmem:[%s14682_s23 + $0x70] sm:$0xf0]  ;;  %v13248_v25 = vld [vmem:[%s14682_s23 + $0x164] sm:$0xf]  ;;  %v9416_v27 = vor.u32 %v13316_v17, %v9413_v18 }
  0x9c   : > { %2083 = vmatpush.bf16.msra.mxu3 %v9448_v63  ;;  %v9141_v28 = vld [vmem:[%s14682_s23 + $0x170] sm:$0xf0]  ;;  %v13280_v29 = vld [vmem:[%s14682_s23 + $0x264] sm:$0xf]  ;;  %v9016_v33 = vor.u32 %v13216_v23, %v9013_v24 }
  0x9d   : > { %2042 = vmatpush.bf16.msra.mxu0 %v9048_v6  ;;  %v9269_v30 = vld [vmem:[%s14682_s23 + $0x270] sm:$0xf0]  ;;  %v13312_v31 = vld [vmem:[%s14682_s23 + $0x364] sm:$0xf]  ;;  %v9144_v34 = vor.u32 %v13248_v25, %v9141_v28 }
  0x9e   : > { %2056 = vmatpush.bf16.msra.mxu1 %v9176_v7  ;;  %v9397_v32 = vld [vmem:[%s14682_s23 + $0x370] sm:$0xf0]  ;;  %v9272_v35 = vor.u32 %v13280_v29, %v9269_v30  ;;  %v13212_v36 = vld [vmem:[%s14682_s23 + $0x44] sm:$0xf] }
  0x9f   : > { %2070 = vmatpush.bf16.msra.mxu2 %v9304_v8  ;;  %v8997_v37 = vld [vmem:[%s14682_s23 + $0x50] sm:$0xf0]  ;;  %v13244_v38 = vld [vmem:[%s14682_s23 + $0x144] sm:$0xf]  ;;  %v9400_v39 = vor.u32 %v13312_v31, %v9397_v32 }
  0xa0   : > { %2084 = vmatpush.bf16.msra.mxu3 %v9432_v13  ;;  %v9125_v40 = vld [vmem:[%s14682_s23 + $0x150] sm:$0xf0]  ;;  %v13276_v41 = vld [vmem:[%s14682_s23 + $0x244] sm:$0xf]  ;;  %v9000_v45 = vor.u32 %v13212_v36, %v8997_v37 }
  0xa1   : > { %2043 = vmatpush.bf16.msra.mxu0 %v9032_v20  ;;  %v9253_v42 = vld [vmem:[%s14682_s23 + $0x250] sm:$0xf0]  ;;  %v13308_v43 = vld [vmem:[%s14682_s23 + $0x344] sm:$0xf]  ;;  %v9128_v46 = vor.u32 %v13244_v38, %v9125_v40 }
  0xa2   : > { %2057 = vmatpush.bf16.msra.mxu1 %v9160_v21  ;;  %v9381_v44 = vld [vmem:[%s14682_s23 + $0x350] sm:$0xf0]  ;;  %v9256_v47 = vor.u32 %v13276_v41, %v9253_v42  ;;  %v13208_v49 = vld [vmem:[%s14682_s23 + $0x24] sm:$0xf] }
  0xa3   : > { %2071 = vmatpush.bf16.msra.mxu2 %v9288_v22  ;;  %v8981_v50 = vld [vmem:[%s14682_s23 + $0x30] sm:$0xf0]  ;;  %v13240_v51 = vld [vmem:[%s14682_s23 + $0x124] sm:$0xf]  ;;  %v9384_v54 = vor.u32 %v13308_v43, %v9381_v44 }
  0xa4   : > { %2085 = vmatpush.bf16.msra.mxu3 %v9416_v27  ;;  %v9109_v55 = vld [vmem:[%s14682_s23 + $0x130] sm:$0xf0]  ;;  %v13272_v57 = vld [vmem:[%s14682_s23 + $0x224] sm:$0xf]  ;;  %v8984_v61 = vor.u32 %v13208_v49, %v8981_v50 }
  0xa5   : > { %2044 = vmatpush.bf16.msra.mxu0 %v9016_v33  ;;  %v9237_v58 = vld [vmem:[%s14682_s23 + $0x230] sm:$0xf0]  ;;  %v13304_v59 = vld [vmem:[%s14682_s23 + $0x324] sm:$0xf]  ;;  %v9112_v0 = vor.u32 %v13240_v51, %v9109_v55 }
  0xa6   : > { %2058 = vmatpush.bf16.msra.mxu1 %v9144_v34  ;;  %v9365_v60 = vld [vmem:[%s14682_s23 + $0x330] sm:$0xf0]  ;;  %v13204_v62 = vld [vmem:[%s14682_s23 + $0x4] sm:$0xf]  ;;  %v9240_v1 = vor.u32 %v13272_v57, %v9237_v58 }
  0xa7   : > { %2072 = vmatpush.bf16.msra.mxu2 %v9272_v35  ;;  %v8965_v63 = vld [vmem:[%s14682_s23 + $0x10] sm:$0xf0]  ;;  %v13236_v2 = vld [vmem:[%s14682_s23 + $0x104] sm:$0xf]  ;;  %v9368_v6 = vor.u32 %v13304_v59, %v9365_v60 }
  0xa8   : > { %2086 = vmatpush.bf16.msra.mxu3 %v9400_v39  ;;  %v9093_v4 = vld [vmem:[%s14682_s23 + $0x110] sm:$0xf0]  ;;  %v13268_v5 = vld [vmem:[%s14682_s23 + $0x204] sm:$0xf]  ;;  %v8968_v14 = vor.u32 %v13204_v62, %v8965_v63 }
  0xa9   : > { %2045 = vmatpush.bf16.msra.mxu0 %v9000_v45  ;;  %v9221_v7 = vld [vmem:[%s14682_s23 + $0x210] sm:$0xf0]  ;;  %v13300_v8 = vld [vmem:[%s14682_s23 + $0x304] sm:$0xf]  ;;  %v9096_v18 = vor.u32 %v13236_v2, %v9093_v4 }
  0xaa   : > { %2059 = vmatpush.bf16.msra.mxu1 %v9128_v46  ;;  %v9349_v9 = vld [vmem:[%s14682_s23 + $0x310] sm:$0xf0]  ;;  %v13360_v11 = vld [vmem:[%s14682_s23 + $0x4e4] sm:$0xf]  ;;  %v9224_v20 = vor.u32 %v13268_v5, %v9221_v7 }
  0xab   : > { %2073 = vmatpush.bf16.msra.mxu2 %v9256_v47  ;;  %v9589_v12 = vld [vmem:[%s14682_s23 + $0x4f0] sm:$0xf0]  ;;  %v13392_v13 = vld [vmem:[%s14682_s23 + $0x5e4] sm:$0xf]  ;;  %v9352_v23 = vor.u32 %v13300_v8, %v9349_v9 }
  0xac   : > { %2087 = vmatpush.bf16.msra.mxu3 %v9384_v54  ;;  %v9717_v15 = vld [vmem:[%s14682_s23 + $0x5f0] sm:$0xf0]  ;;  %v13424_v16 = vld [vmem:[%s14682_s23 + $0x6e4] sm:$0xf]  ;;  %v9592_v24 = vor.u32 %v13360_v11, %v9589_v12 }
  0xad   : > { %2046 = vmatpush.bf16.msra.mxu0 %v8984_v61  ;;  %v9845_v17 = vld [vmem:[%s14682_s23 + $0x6f0] sm:$0xf0]  ;;  %v13456_v21 = vld [vmem:[%s14682_s23 + $0x7e4] sm:$0xf]  ;;  %v9720_v25 = vor.u32 %v13392_v13, %v9717_v15 }
  0xae   : > { %2060 = vmatpush.bf16.msra.mxu1 %v9112_v0  ;;  %v9973_v22 = vld [vmem:[%s14682_s23 + $0x7f0] sm:$0xf0]  ;;  %v9848_v27 = vor.u32 %v13424_v16, %v9845_v17  ;;  %v13356_v28 = vld [vmem:[%s14682_s23 + $0x4c4] sm:$0xf] }
  0xaf   : > { %2074 = vmatpush.bf16.msra.mxu2 %v9240_v1  ;;  %v9573_v29 = vld [vmem:[%s14682_s23 + $0x4d0] sm:$0xf0]  ;;  %v13388_v30 = vld [vmem:[%s14682_s23 + $0x5c4] sm:$0xf]  ;;  %v9976_v31 = vor.u32 %v13456_v21, %v9973_v22 }
  0xb0   : > { %2088 = vmatpush.bf16.msra.mxu3 %v9368_v6  ;;  %v9701_v32 = vld [vmem:[%s14682_s23 + $0x5d0] sm:$0xf0]  ;;  %v13420_v33 = vld [vmem:[%s14682_s23 + $0x6c4] sm:$0xf]  ;;  %v9576_v37 = vor.u32 %v13356_v28, %v9573_v29 }
  0xb1   : > { %2047 = vmatpush.bf16.msra.mxu0 %v8968_v14  ;;  %v9829_v34 = vld [vmem:[%s14682_s23 + $0x6d0] sm:$0xf0]  ;;  %v13452_v35 = vld [vmem:[%s14682_s23 + $0x7c4] sm:$0xf]  ;;  %v9704_v38 = vor.u32 %v13388_v30, %v9701_v32 }
  0xb2   : > { %2061 = vmatpush.bf16.msra.mxu1 %v9096_v18  ;;  %v9957_v36 = vld [vmem:[%s14682_s23 + $0x7d0] sm:$0xf0]  ;;  %v9832_v39 = vor.u32 %v13420_v33, %v9829_v34  ;;  %v13352_v40 = vld [vmem:[%s14682_s23 + $0x4a4] sm:$0xf] }
  0xb3   : > { %2075 = vmatpush.bf16.msra.mxu2 %v9224_v20  ;;  %v9557_v41 = vld [vmem:[%s14682_s23 + $0x4b0] sm:$0xf0]  ;;  %v13384_v42 = vld [vmem:[%s14682_s23 + $0x5a4] sm:$0xf]  ;;  %v9960_v43 = vor.u32 %v13452_v35, %v9957_v36 }
  0xb4   : > { %2089 = vmatpush.bf16.msra.mxu3 %v9352_v23  ;;  %v9685_v44 = vld [vmem:[%s14682_s23 + $0x5b0] sm:$0xf0]  ;;  %v13416_v45 = vld [vmem:[%s14682_s23 + $0x6a4] sm:$0xf]  ;;  %2048 = vmatmul.bf16.vlgmr.msra.gmra.mxu0 %v14794_v3  ;;  %v9560_v50 = vor.u32 %v13352_v40, %v9557_v41 }
  0xb5   : > { %2096 = vmatpush.bf16.msrb.mxu0 %v9592_v24  ;;  %v9813_v46 = vld [vmem:[%s14682_s23 + $0x6b0] sm:$0xf0]  ;;  %v13448_v47 = vld [vmem:[%s14682_s23 + $0x7a4] sm:$0xf]  ;;  %2062 = vmatmul.bf16.vlgmr.msra.gmra.mxu1 %v14810_v19  ;;  %v9688_v51 = vor.u32 %v13384_v42, %v9685_v44 }
  0xb6   : > { %2110 = vmatpush.bf16.msrb.mxu1 %v9720_v25  ;;  %v9941_v49 = vld [vmem:[%s14682_s23 + $0x7b0] sm:$0xf0]  ;;  %2076 = vmatmul.bf16.vlgmr.msra.gmra.mxu2 %v14800_v10  ;;  %v9816_v54 = vor.u32 %v13416_v45, %v9813_v46  ;;  %v13348_v55 = vld [vmem:[%s14682_s23 + $0x484] sm:$0xf] }
  0xb7   : > { %2124 = vmatpush.bf16.msrb.mxu2 %v9848_v27  ;;  %2090 = vmatmul.bf16.vlgmr.msra.gmra.mxu3 %v14816_v26  ;;  %v9541_v57 = vld [vmem:[%s14682_s23 + $0x490] sm:$0xf0]  ;;  %v13380_v58 = vld [vmem:[%s14682_s23 + $0x584] sm:$0xf]  ;;  %v9944_v59 = vor.u32 %v13448_v47, %v9941_v49 }
  0xb8   : > { %2138 = vmatpush.bf16.msrb.mxu3 %v9976_v31  ;;  %v9669_v60 = vld [vmem:[%s14682_s23 + $0x590] sm:$0xf0]  ;;  %v13412_v61 = vld [vmem:[%s14682_s23 + $0x684] sm:$0xf]  ;;  %v9544_v1 = vor.u32 %v13348_v55, %v9541_v57  ;;  %v9083_v57 = vld [vmem:[%s14682_s23 + $0xe8] sm:$0xf] }
  0xb9   : > { %2097 = vmatpush.bf16.msrb.mxu0 %v9576_v37  ;;  %v9797_v62 = vld [vmem:[%s14682_s23 + $0x690] sm:$0xf0]  ;;  %v13444_v63 = vld [vmem:[%s14682_s23 + $0x784] sm:$0xf]  ;;  %v9672_v2 = vor.u32 %v13380_v58, %v9669_v60  ;;  %v13235_v58 = vld [vmem:[%s14682_s23 + $0xf4] sm:$0xf0] }
  0xba   : > { %2111 = vmatpush.bf16.msrb.mxu1 %v9704_v38  ;;  %v9925_v0 = vld [vmem:[%s14682_s23 + $0x790] sm:$0xf0]  ;;  %v9800_v4 = vor.u32 %v13412_v61, %v9797_v62  ;;  %v13344_v5 = vld [vmem:[%s14682_s23 + $0x464] sm:$0xf]  ;;  %v13267_v61 = vld [vmem:[%s14682_s23 + $0x1f4] sm:$0xf0] }
  0xbb   : > { %2125 = vmatpush.bf16.msrb.mxu2 %v9832_v39  ;;  %v9525_v6 = vld [vmem:[%s14682_s23 + $0x470] sm:$0xf0]  ;;  %v13376_v7 = vld [vmem:[%s14682_s23 + $0x564] sm:$0xf]  ;;  %v9928_v8 = vor.u32 %v13444_v63, %v9925_v0  ;;  %v9339_v62 = vld [vmem:[%s14682_s23 + $0x2e8] sm:$0xf] }
  0xbc   : > { %2139 = vmatpush.bf16.msrb.mxu3 %v9960_v43  ;;  %v9653_v9 = vld [vmem:[%s14682_s23 + $0x570] sm:$0xf0]  ;;  %v13408_v11 = vld [vmem:[%s14682_s23 + $0x664] sm:$0xf]  ;;  %v9528_v15 = vor.u32 %v13344_v5, %v9525_v6  ;;  %v13299_v63 = vld [vmem:[%s14682_s23 + $0x2f4] sm:$0xf0]  ;;  %v9084_v6 = vor.u32 %v13235_v58, %v9083_v57 }
  0xbd   : > { %2098 = vmatpush.bf16.msrb.mxu0 %v9560_v50  ;;  %v9781_v12 = vld [vmem:[%s14682_s23 + $0x670] sm:$0xf0]  ;;  %v13440_v13 = vld [vmem:[%s14682_s23 + $0x764] sm:$0xf]  ;;  %v9656_v16 = vor.u32 %v13376_v7, %v9653_v9  ;;  %v9067_v9 = vld [vmem:[%s14682_s23 + $0xc8] sm:$0xf] }
  0xbe   : > { %2112 = vmatpush.bf16.msrb.mxu1 %v9688_v51  ;;  %v9909_v14 = vld [vmem:[%s14682_s23 + $0x770] sm:$0xf0]  ;;  %v9784_v17 = vor.u32 %v13408_v11, %v9781_v12  ;;  %v13340_v18 = vld [vmem:[%s14682_s23 + $0x444] sm:$0xf]  ;;  %v13231_v11 = vld [vmem:[%s14682_s23 + $0xd4] sm:$0xf0] }
  0xbf   : > { %2126 = vmatpush.bf16.msrb.mxu2 %v9816_v54  ;;  %v9509_v20 = vld [vmem:[%s14682_s23 + $0x450] sm:$0xf0]  ;;  %v13372_v21 = vld [vmem:[%s14682_s23 + $0x544] sm:$0xf]  ;;  %v9912_v22 = vor.u32 %v13440_v13, %v9909_v14  ;;  %v9195_v12 = vld [vmem:[%s14682_s23 + $0x1c8] sm:$0xf] }
  0xc0   : > { %2140 = vmatpush.bf16.msrb.mxu3 %v9944_v59  ;;  %v9637_v23 = vld [vmem:[%s14682_s23 + $0x550] sm:$0xf0]  ;;  %v13404_v24 = vld [vmem:[%s14682_s23 + $0x644] sm:$0xf]  ;;  %v9512_v29 = vor.u32 %v13340_v18, %v9509_v20  ;;  %v9211_v59 = vld [vmem:[%s14682_s23 + $0x1e8] sm:$0xf]  ;;  %v9068_v20 = vor.u32 %v13231_v11, %v9067_v9 }
  0xc1   : > { %2099 = vmatpush.bf16.msrb.mxu0 %v9544_v1  ;;  %v9765_v25 = vld [vmem:[%s14682_s23 + $0x650] sm:$0xf0]  ;;  %v13436_v27 = vld [vmem:[%s14682_s23 + $0x744] sm:$0xf]  ;;  %v9640_v30 = vor.u32 %v13372_v21, %v9637_v23  ;;  %v9212_v7 = vor.u32 %v13267_v61, %v9211_v59  ;;  %v13263_v14 = vld [vmem:[%s14682_s23 + $0x1d4] sm:$0xf0] }
  0xc2   : > { %2113 = vmatpush.bf16.msrb.mxu1 %v9672_v2  ;;  %v9893_v28 = vld [vmem:[%s14682_s23 + $0x750] sm:$0xf0]  ;;  %v9768_v31 = vor.u32 %v13404_v24, %v9765_v25  ;;  %v13336_v32 = vld [vmem:[%s14682_s23 + $0x424] sm:$0xf]  ;;  %v9467_v2 = vld [vmem:[%s14682_s23 + $0x3e8] sm:$0xf]  ;;  %v9196_v21 = vor.u32 %v13263_v14, %v9195_v12 }
  0xc3   : > { %2127 = vmatpush.bf16.msrb.mxu2 %v9800_v4  ;;  %v9493_v33 = vld [vmem:[%s14682_s23 + $0x430] sm:$0xf0]  ;;  %v13368_v34 = vld [vmem:[%s14682_s23 + $0x524] sm:$0xf]  ;;  %v9896_v35 = vor.u32 %v13436_v27, %v9893_v28  ;;  %v13331_v4 = vld [vmem:[%s14682_s23 + $0x3f4] sm:$0xf0] }
  0xc4   : > { %2141 = vmatpush.bf16.msrb.mxu3 %v9928_v8  ;;  %v9621_v36 = vld [vmem:[%s14682_s23 + $0x530] sm:$0xf0]  ;;  %v13400_v37 = vld [vmem:[%s14682_s23 + $0x624] sm:$0xf]  ;;  %v9496_v41 = vor.u32 %v13336_v32, %v9493_v33  ;;  %v9340_v8 = vor.u32 %v13299_v63, %v9339_v62  ;;  %v9468_v13 = vor.u32 %v13331_v4, %v9467_v2  ;;  %v13327_v18 = vld [vmem:[%s14682_s23 + $0x3d4] sm:$0xf0] }
  0xc5   : > { %2100 = vmatpush.bf16.msrb.mxu0 %v9528_v15  ;;  %v9749_v38 = vld [vmem:[%s14682_s23 + $0x630] sm:$0xf0]  ;;  %v13432_v39 = vld [vmem:[%s14682_s23 + $0x724] sm:$0xf]  ;;  %v9624_v44 = vor.u32 %v13368_v34, %v9621_v36  ;;  %v9323_v15 = vld [vmem:[%s14682_s23 + $0x2c8] sm:$0xf] }
  0xc6   : > { %2114 = vmatpush.bf16.msrb.mxu1 %v9656_v16  ;;  %v9877_v40 = vld [vmem:[%s14682_s23 + $0x730] sm:$0xf0]  ;;  %v13332_v42 = vld [vmem:[%s14682_s23 + $0x404] sm:$0xf]  ;;  %v9752_v45 = vor.u32 %v13400_v37, %v9749_v38  ;;  %v13295_v16 = vld [vmem:[%s14682_s23 + $0x2d4] sm:$0xf0] }
  0xc7   : > { %2128 = vmatpush.bf16.msrb.mxu2 %v9784_v17  ;;  %v9477_v43 = vld [vmem:[%s14682_s23 + $0x410] sm:$0xf0]  ;;  %v13364_v46 = vld [vmem:[%s14682_s23 + $0x504] sm:$0xf]  ;;  %v9880_v50 = vor.u32 %v13432_v39, %v9877_v40  ;;  %v9451_v17 = vld [vmem:[%s14682_s23 + $0x3c8] sm:$0xf] }
  0xc8   : > { %2142 = vmatpush.bf16.msrb.mxu3 %v9912_v22  ;;  %v9605_v47 = vld [vmem:[%s14682_s23 + $0x510] sm:$0xf0]  ;;  %v13396_v49 = vld [vmem:[%s14682_s23 + $0x604] sm:$0xf]  ;;  %v9480_v60 = vor.u32 %v13332_v42, %v9477_v43  ;;  %v9324_v22 = vor.u32 %v13295_v16, %v9323_v15  ;;  %v9051_v23 = vld [vmem:[%s14682_s23 + $0xa8] sm:$0xf]  ;;  %v9452_v27 = vor.u32 %v13327_v18, %v9451_v17 }
  0xc9   : > { %2101 = vmatpush.bf16.msrb.mxu0 %v9512_v29  ;;  %v9733_v51 = vld [vmem:[%s14682_s23 + $0x610] sm:$0xf0]  ;;  %v13428_v54 = vld [vmem:[%s14682_s23 + $0x704] sm:$0xf]  ;;  %v9608_v0 = vor.u32 %v13364_v46, %v9605_v47  ;;  %v13227_v24 = vld [vmem:[%s14682_s23 + $0xb4] sm:$0xf0] }
  0xca   : > { %2115 = vmatpush.bf16.msrb.mxu1 %v9640_v30  ;;  %v9861_v55 = vld [vmem:[%s14682_s23 + $0x710] sm:$0xf0]  ;;  %v9736_v1 = vor.u32 %v13396_v49, %v9733_v51  ;;  %v9179_v25 = vld [vmem:[%s14682_s23 + $0x1a8] sm:$0xf]  ;;  %v13259_v28 = vld [vmem:[%s14682_s23 + $0x1b4] sm:$0xf0]  ;;  %v9052_v33 = vor.u32 %v13227_v24, %v9051_v23 }
  0xcb   : > { %2129 = vmatpush.bf16.msrb.mxu2 %v9768_v31  ;;  %v9864_v5 = vor.u32 %v13428_v54, %v9861_v55  ;;  %v9307_v29 = vld [vmem:[%s14682_s23 + $0x2a8] sm:$0xf]  ;;  %v13291_v30 = vld [vmem:[%s14682_s23 + $0x2b4] sm:$0xf0]  ;;  %v9180_v34 = vor.u32 %v13259_v28, %v9179_v25 }
  0xcc   : > { %2143 = vmatpush.bf16.msrb.mxu3 %v9896_v35  ;;  %v9435_v31 = vld [vmem:[%s14682_s23 + $0x3a8] sm:$0xf]  ;;  %v13323_v32 = vld [vmem:[%s14682_s23 + $0x3b4] sm:$0xf0]  ;;  %v9308_v35 = vor.u32 %v13291_v30, %v9307_v29 }
  0xcd   : > { %2102 = vmatpush.bf16.msrb.mxu0 %v9496_v41  ;;  %v9035_v36 = vld [vmem:[%s14682_s23 + $0x88] sm:$0xf]  ;;  %v13223_v37 = vld [vmem:[%s14682_s23 + $0x94] sm:$0xf0]  ;;  %v9436_v39 = vor.u32 %v13323_v32, %v9435_v31 }
  0xce   : > { %2116 = vmatpush.bf16.msrb.mxu1 %v9624_v44  ;;  %v9163_v38 = vld [vmem:[%s14682_s23 + $0x188] sm:$0xf]  ;;  %v13255_v40 = vld [vmem:[%s14682_s23 + $0x194] sm:$0xf0] }
  0xcf   : > { %2130 = vmatpush.bf16.msrb.mxu2 %v9752_v45  ;;  %v9291_v41 = vld [vmem:[%s14682_s23 + $0x288] sm:$0xf]  ;;  %v13287_v42 = vld [vmem:[%s14682_s23 + $0x294] sm:$0xf0]  ;;  %v9036_v45 = vor.u32 %v13223_v37, %v9035_v36  ;;  %v9164_v46 = vor.u32 %v13255_v40, %v9163_v38 }
  0xd0   : > { %2144 = vmatpush.bf16.msrb.mxu3 %v9880_v50  ;;  %v9419_v43 = vld [vmem:[%s14682_s23 + $0x388] sm:$0xf]  ;;  %v13319_v44 = vld [vmem:[%s14682_s23 + $0x394] sm:$0xf0]  ;;  %v9292_v47 = vor.u32 %v13287_v42, %v9291_v41 }
  0xd1   : > { %2103 = vmatpush.bf16.msrb.mxu0 %v9480_v60  ;;  %v9019_v49 = vld [vmem:[%s14682_s23 + $0x68] sm:$0xf]  ;;  %v13219_v50 = vld [vmem:[%s14682_s23 + $0x74] sm:$0xf0]  ;;  %v9420_v54 = vor.u32 %v13319_v44, %v9419_v43 }
  0xd2   : > { %2117 = vmatpush.bf16.msrb.mxu1 %v9608_v0  ;;  %v9147_v51 = vld [vmem:[%s14682_s23 + $0x168] sm:$0xf]  ;;  %v13251_v55 = vld [vmem:[%s14682_s23 + $0x174] sm:$0xf0]  ;;  %v9020_v61 = vor.u32 %v13219_v50, %v9019_v49 }
  0xd3   : > { %2131 = vmatpush.bf16.msrb.mxu2 %v9736_v1  ;;  %v9275_v57 = vld [vmem:[%s14682_s23 + $0x268] sm:$0xf]  ;;  %v13283_v58 = vld [vmem:[%s14682_s23 + $0x274] sm:$0xf0]  ;;  %v9148_v62 = vor.u32 %v13251_v55, %v9147_v51 }
  0xd4   : > { %2145 = vmatpush.bf16.msrb.mxu3 %v9864_v5  ;;  %2104 = vmatmul.bf16.vlgmr.msrb.gmra.mxu0 %v14876_v48  ;;  %v9403_v59 = vld [vmem:[%s14682_s23 + $0x368] sm:$0xf]  ;;  %v13315_v60 = vld [vmem:[%s14682_s23 + $0x374] sm:$0xf0]  ;;  %v9276_v63 = vor.u32 %v13283_v58, %v9275_v57 }
  0xd5   : > { %2152 = vmatpush.bf16.msra.mxu0 %v9084_v6  ;;  %2118 = vmatmul.bf16.vlgmr.msrb.gmra.mxu1 %v14883_v53  ;;  %v9003_v0 = vld [vmem:[%s14682_s23 + $0x48] sm:$0xf]  ;;  %v13215_v1 = vld [vmem:[%s14682_s23 + $0x54] sm:$0xf0]  ;;  %v9404_v4 = vor.u32 %v13315_v60, %v9403_v59 }
  0xd6   : > { %2166 = vmatpush.bf16.msra.mxu1 %v9212_v7  ;;  %2132 = vmatmul.bf16.vlgmr.msrb.gmra.mxu2 %v14881_v52  ;;  %v9131_v2 = vld [vmem:[%s14682_s23 + $0x148] sm:$0xf]  ;;  %v13247_v5 = vld [vmem:[%s14682_s23 + $0x154] sm:$0xf0]  ;;  %v9004_v11 = vor.u32 %v13215_v1, %v9003_v0 }
  0xd7   : > { %2180 = vmatpush.bf16.msra.mxu2 %v9340_v8  ;;  %2146 = vmatmul.bf16.vlgmr.msrb.gmra.mxu3 %v14887_v56  ;;  %v9259_v6 = vld [vmem:[%s14682_s23 + $0x248] sm:$0xf]  ;;  %v13279_v7 = vld [vmem:[%s14682_s23 + $0x254] sm:$0xf0]  ;;  %v9132_v12 = vor.u32 %v13247_v5, %v9131_v2 }
  0xd8   : > { %2194 = vmatpush.bf16.msra.mxu3 %v9468_v13  ;;  %v9387_v8 = vld [vmem:[%s14682_s23 + $0x348] sm:$0xf]  ;;  %v13311_v9 = vld [vmem:[%s14682_s23 + $0x354] sm:$0xf0]  ;;  %v9260_v13 = vor.u32 %v13279_v7, %v9259_v6 }
  0xd9   : > { %2153 = vmatpush.bf16.msra.mxu0 %v9068_v20  ;;  %v8987_v14 = vld [vmem:[%s14682_s23 + $0x28] sm:$0xf]  ;;  %v13211_v15 = vld [vmem:[%s14682_s23 + $0x34] sm:$0xf0]  ;;  %v9388_v17 = vor.u32 %v13311_v9, %v9387_v8 }
  0xda   : > { %2167 = vmatpush.bf16.msra.mxu1 %v9196_v21  ;;  %v9115_v16 = vld [vmem:[%s14682_s23 + $0x128] sm:$0xf]  ;;  %v13243_v18 = vld [vmem:[%s14682_s23 + $0x134] sm:$0xf0]  ;;  %v8988_v24 = vor.u32 %v13211_v15, %v8987_v14 }
  0xdb   : > { %2181 = vmatpush.bf16.msra.mxu2 %v9324_v22  ;;  %v9243_v20 = vld [vmem:[%s14682_s23 + $0x228] sm:$0xf]  ;;  %v13275_v21 = vld [vmem:[%s14682_s23 + $0x234] sm:$0xf0]  ;;  %v9116_v28 = vor.u32 %v13243_v18, %v9115_v16 }
  0xdc   : > { %2195 = vmatpush.bf16.msra.mxu3 %v9452_v27  ;;  %v9371_v22 = vld [vmem:[%s14682_s23 + $0x328] sm:$0xf]  ;;  %v13307_v23 = vld [vmem:[%s14682_s23 + $0x334] sm:$0xf0]  ;;  %v9244_v29 = vor.u32 %v13275_v21, %v9243_v20 }
  0xdd   : > { %2154 = vmatpush.bf16.msra.mxu0 %v9052_v33  ;;  %v8971_v25 = vld [vmem:[%s14682_s23 + $0x8] sm:$0xf]  ;;  %v13207_v27 = vld [vmem:[%s14682_s23 + $0x14] sm:$0xf0]  ;;  %v9372_v33 = vor.u32 %v13307_v23, %v9371_v22 }
  0xde   : > { %2168 = vmatpush.bf16.msra.mxu1 %v9180_v34  ;;  %v9099_v30 = vld [vmem:[%s14682_s23 + $0x108] sm:$0xf]  ;;  %v13239_v31 = vld [vmem:[%s14682_s23 + $0x114] sm:$0xf0]  ;;  %v8972_v40 = vor.u32 %v13207_v27, %v8971_v25 }
  0xdf   : > { %2182 = vmatpush.bf16.msra.mxu2 %v9308_v35  ;;  %v9227_v32 = vld [vmem:[%s14682_s23 + $0x208] sm:$0xf]  ;;  %v13271_v34 = vld [vmem:[%s14682_s23 + $0x214] sm:$0xf0]  ;;  %v9100_v44 = vor.u32 %v13239_v31, %v9099_v30 }
  0xe0   : > { %2196 = vmatpush.bf16.msra.mxu3 %v9436_v39  ;;  %v9355_v35 = vld [vmem:[%s14682_s23 + $0x308] sm:$0xf]  ;;  %v13303_v36 = vld [vmem:[%s14682_s23 + $0x314] sm:$0xf0] }
  0xe1   : > { %2155 = vmatpush.bf16.msra.mxu0 %v9036_v45  ;;  %v9595_v37 = vld [vmem:[%s14682_s23 + $0x4e8] sm:$0xf]  ;;  %v13363_v38 = vld [vmem:[%s14682_s23 + $0x4f4] sm:$0xf0]  ;;  %v9228_v45 = vor.u32 %v13271_v34, %v9227_v32  ;;  %v9356_v49 = vor.u32 %v13303_v36, %v9355_v35 }
  0xe2   : > { %2169 = vmatpush.bf16.msra.mxu1 %v9164_v46  ;;  %v9723_v39 = vld [vmem:[%s14682_s23 + $0x5e8] sm:$0xf]  ;;  %v13395_v41 = vld [vmem:[%s14682_s23 + $0x5f4] sm:$0xf0]  ;;  %v9596_v50 = vor.u32 %v13363_v38, %v9595_v37 }
  0xe3   : > { %2183 = vmatpush.bf16.msra.mxu2 %v9292_v47  ;;  %v9851_v42 = vld [vmem:[%s14682_s23 + $0x6e8] sm:$0xf]  ;;  %v13427_v43 = vld [vmem:[%s14682_s23 + $0x6f4] sm:$0xf0]  ;;  %v9724_v51 = vor.u32 %v13395_v41, %v9723_v39 }
  0xe4   : > { %2197 = vmatpush.bf16.msra.mxu3 %v9420_v54  ;;  %v9979_v46 = vld [vmem:[%s14682_s23 + $0x7e8] sm:$0xf]  ;;  %v13459_v47 = vld [vmem:[%s14682_s23 + $0x7f4] sm:$0xf0]  ;;  %v9852_v54 = vor.u32 %v13427_v43, %v9851_v42 }
  0xe5   : > { %2156 = vmatpush.bf16.msra.mxu0 %v9020_v61  ;;  %v9579_v55 = vld [vmem:[%s14682_s23 + $0x4c8] sm:$0xf]  ;;  %v13359_v57 = vld [vmem:[%s14682_s23 + $0x4d4] sm:$0xf0]  ;;  %v9980_v59 = vor.u32 %v13459_v47, %v9979_v46 }
  0xe6   : > { %2170 = vmatpush.bf16.msra.mxu1 %v9148_v62  ;;  %v9707_v58 = vld [vmem:[%s14682_s23 + $0x5c8] sm:$0xf]  ;;  %v13391_v60 = vld [vmem:[%s14682_s23 + $0x5d4] sm:$0xf0]  ;;  %v9580_v1 = vor.u32 %v13359_v57, %v9579_v55 }
  0xe7   : > { %2184 = vmatpush.bf16.msra.mxu2 %v9276_v63  ;;  %v9835_v61 = vld [vmem:[%s14682_s23 + $0x6c8] sm:$0xf]  ;;  %v13423_v62 = vld [vmem:[%s14682_s23 + $0x6d4] sm:$0xf0]  ;;  %v9708_v2 = vor.u32 %v13391_v60, %v9707_v58 }
  0xe8   : > { %2198 = vmatpush.bf16.msra.mxu3 %v9404_v4  ;;  %v9963_v63 = vld [vmem:[%s14682_s23 + $0x7c8] sm:$0xf]  ;;  %v13455_v0 = vld [vmem:[%s14682_s23 + $0x7d4] sm:$0xf0]  ;;  %v9836_v4 = vor.u32 %v13423_v62, %v9835_v61 }
  0xe9   : > { %2157 = vmatpush.bf16.msra.mxu0 %v9004_v11  ;;  %v9563_v5 = vld [vmem:[%s14682_s23 + $0x4a8] sm:$0xf]  ;;  %v13355_v6 = vld [vmem:[%s14682_s23 + $0x4b4] sm:$0xf0]  ;;  %v9964_v8 = vor.u32 %v13455_v0, %v9963_v63 }
  0xea   : > { %2171 = vmatpush.bf16.msra.mxu1 %v9132_v12  ;;  %v9691_v7 = vld [vmem:[%s14682_s23 + $0x5a8] sm:$0xf]  ;;  %v13387_v9 = vld [vmem:[%s14682_s23 + $0x5b4] sm:$0xf0]  ;;  %v9564_v15 = vor.u32 %v13355_v6, %v9563_v5 }
  0xeb   : > { %2185 = vmatpush.bf16.msra.mxu2 %v9260_v13  ;;  %v9819_v11 = vld [vmem:[%s14682_s23 + $0x6a8] sm:$0xf]  ;;  %v13419_v12 = vld [vmem:[%s14682_s23 + $0x6b4] sm:$0xf0]  ;;  %v9692_v16 = vor.u32 %v13387_v9, %v9691_v7 }
  0xec   : > { %2199 = vmatpush.bf16.msra.mxu3 %v9388_v17  ;;  %v9947_v13 = vld [vmem:[%s14682_s23 + $0x7a8] sm:$0xf]  ;;  %v13451_v14 = vld [vmem:[%s14682_s23 + $0x7b4] sm:$0xf0]  ;;  %v9820_v17 = vor.u32 %v13419_v12, %v9819_v11 }
  0xed   : > { %2158 = vmatpush.bf16.msra.mxu0 %v8988_v24  ;;  %v9547_v18 = vld [vmem:[%s14682_s23 + $0x488] sm:$0xf]  ;;  %v13351_v20 = vld [vmem:[%s14682_s23 + $0x494] sm:$0xf0]  ;;  %v9948_v22 = vor.u32 %v13451_v14, %v9947_v13 }
  0xee   : > { %2172 = vmatpush.bf16.msra.mxu1 %v9116_v28  ;;  %v9675_v21 = vld [vmem:[%s14682_s23 + $0x588] sm:$0xf]  ;;  %v13383_v23 = vld [vmem:[%s14682_s23 + $0x594] sm:$0xf0] }
  0xef   : > { %2186 = vmatpush.bf16.msra.mxu2 %v9244_v29  ;;  %v9803_v24 = vld [vmem:[%s14682_s23 + $0x688] sm:$0xf]  ;;  %v13415_v25 = vld [vmem:[%s14682_s23 + $0x694] sm:$0xf0]  ;;  %v9548_v29 = vor.u32 %v13351_v20, %v9547_v18  ;;  %v9676_v30 = vor.u32 %v13383_v23, %v9675_v21  ;;  %v9085_v23 = vld [vmem:[%s14682_s23 + $0xf8] sm:$0xf0] }
  0xf0   : > { %2200 = vmatpush.bf16.msra.mxu3 %v9372_v33  ;;  %v9931_v27 = vld [vmem:[%s14682_s23 + $0x788] sm:$0xf]  ;;  %v13447_v28 = vld [vmem:[%s14682_s23 + $0x794] sm:$0xf0]  ;;  %v9804_v31 = vor.u32 %v13415_v25, %v9803_v24  ;;  %v1951_v5 = vpop.f32.mrf.mxu1  ;;  %v13265_v24 = vld [vmem:[%s14682_s23 + $0x1ec] sm:$0xf] }
  0xf1   : > { %2159 = vmatpush.bf16.msra.mxu0 %v8972_v40  ;;  %v9531_v32 = vld [vmem:[%s14682_s23 + $0x468] sm:$0xf]  ;;  %v13347_v33 = vld [vmem:[%s14682_s23 + $0x474] sm:$0xf0]  ;;  %v9932_v35 = vor.u32 %v13447_v28, %v9931_v27  ;;  %v9213_v27 = vld [vmem:[%s14682_s23 + $0x1f8] sm:$0xf0] }
  0xf2   : > { %2173 = vmatpush.bf16.msra.mxu1 %v9100_v44  ;;  %v9659_v34 = vld [vmem:[%s14682_s23 + $0x568] sm:$0xf]  ;;  %v13379_v36 = vld [vmem:[%s14682_s23 + $0x574] sm:$0xf0]  ;;  %v9532_v41 = vor.u32 %v13347_v33, %v9531_v32  ;;  %v13297_v28 = vld [vmem:[%s14682_s23 + $0x2ec] sm:$0xf] }
  0xf3   : > { %2187 = vmatpush.bf16.msra.mxu2 %v9228_v45  ;;  %v9787_v37 = vld [vmem:[%s14682_s23 + $0x668] sm:$0xf]  ;;  %v13411_v38 = vld [vmem:[%s14682_s23 + $0x674] sm:$0xf0]  ;;  %v9660_v42 = vor.u32 %v13379_v36, %v9659_v34  ;;  %v13329_v33 = vld [vmem:[%s14682_s23 + $0x3ec] sm:$0xf] }
  0xf4   : > { %2201 = vmatpush.bf16.msra.mxu3 %v9356_v49  ;;  %2160 = vmatmul.bf16.vlgmr.msra.gmra.mxu0 %v14794_v3  ;;  %v9915_v39 = vld [vmem:[%s14682_s23 + $0x768] sm:$0xf]  ;;  %v13443_v40 = vld [vmem:[%s14682_s23 + $0x774] sm:$0xf0]  ;;  %v9788_v43 = vor.u32 %v13411_v38, %v9787_v37  ;;  %v9469_v34 = vld [vmem:[%s14682_s23 + $0x3f8] sm:$0xf0] }
  0xf5   : > { %2208 = vmatpush.bf16.msrb.mxu0 %v9596_v50  ;;  %2174 = vmatmul.bf16.vlgmr.msra.gmra.mxu1 %v14810_v19  ;;  %v9515_v44 = vld [vmem:[%s14682_s23 + $0x448] sm:$0xf]  ;;  %v13343_v45 = vld [vmem:[%s14682_s23 + $0x454] sm:$0xf0]  ;;  %v9916_v47 = vor.u32 %v13443_v40, %v9915_v39  ;;  %v9216_v39 = vor.u32 %v13265_v24, %v9213_v27  ;;  %v9421_v24 = vld [vmem:[%s14682_s23 + $0x398] sm:$0xf0] }
  0xf6   : > { %2222 = vmatpush.bf16.msrb.mxu1 %v9724_v51  ;;  %2188 = vmatmul.bf16.vlgmr.msra.gmra.mxu2 %v14800_v10  ;;  %v9643_v46 = vld [vmem:[%s14682_s23 + $0x548] sm:$0xf]  ;;  %v13375_v49 = vld [vmem:[%s14682_s23 + $0x554] sm:$0xf0]  ;;  %v9516_v57 = vor.u32 %v13343_v45, %v9515_v44  ;;  %v13261_v44 = vld [vmem:[%s14682_s23 + $0x1cc] sm:$0xf]  ;;  %v9472_v45 = vor.u32 %v13329_v33, %v9469_v34 }
  0xf7   : > { %2236 = vmatpush.bf16.msrb.mxu2 %v9852_v54  ;;  %2202 = vmatmul.bf16.vlgmr.msra.gmra.mxu3 %v14816_v26  ;;  %v9771_v50 = vld [vmem:[%s14682_s23 + $0x648] sm:$0xf]  ;;  %v13407_v51 = vld [vmem:[%s14682_s23 + $0x654] sm:$0xf0]  ;;  %v9644_v58 = vor.u32 %v13375_v49, %v9643_v46  ;;  %v9197_v46 = vld [vmem:[%s14682_s23 + $0x1d8] sm:$0xf0] }
  0xf8   : > { %2250 = vmatpush.bf16.msrb.mxu3 %v9980_v59  ;;  %v9899_v54 = vld [vmem:[%s14682_s23 + $0x748] sm:$0xf]  ;;  %v13439_v55 = vld [vmem:[%s14682_s23 + $0x754] sm:$0xf0]  ;;  %v9772_v59 = vor.u32 %v13407_v51, %v9771_v50  ;;  %v9325_v49 = vld [vmem:[%s14682_s23 + $0x2d8] sm:$0xf0]  ;;  %v1953_v50 = vpop.f32.mrf.mxu1 }
  0xf9   : > { %2209 = vmatpush.bf16.msrb.mxu0 %v9580_v1  ;;  %v1937_v60 = vpop.f32.mrf.mxu0  ;;  %v9499_v61 = vld [vmem:[%s14682_s23 + $0x428] sm:$0xf]  ;;  %v13339_v62 = vld [vmem:[%s14682_s23 + $0x434] sm:$0xf0]  ;;  %v9900_v0 = vor.u32 %v13439_v55, %v9899_v54  ;;  %v13325_v51 = vld [vmem:[%s14682_s23 + $0x3cc] sm:$0xf] }
  0xfa   : > { %2223 = vmatpush.bf16.msrb.mxu1 %v9708_v2  ;;  %v9627_v63 = vld [vmem:[%s14682_s23 + $0x528] sm:$0xf]  ;;  %v13371_v1 = vld [vmem:[%s14682_s23 + $0x534] sm:$0xf0]  ;;  %v1952_v36 = vadd.f32 %v1951_v5, %v1937_v60  ;;  %v9453_v54 = vld [vmem:[%s14682_s23 + $0x3d8] sm:$0xf0] }
  0xfb   : > { %2237 = vmatpush.bf16.msrb.mxu2 %v9836_v4  ;;  %v9755_v2 = vld [vmem:[%s14682_s23 + $0x628] sm:$0xf]  ;;  %v13403_v4 = vld [vmem:[%s14682_s23 + $0x634] sm:$0xf0]  ;;  %v9628_v12 = vor.u32 %v13371_v1, %v9627_v63  ;;  %v13225_v60 = vld [vmem:[%s14682_s23 + $0xac] sm:$0xf]  ;;  %v9456_v63 = vor.u32 %v13325_v51, %v9453_v54 }
  0xfc   : > { %2251 = vmatpush.bf16.msrb.mxu3 %v9964_v8  ;;  %v9883_v6 = vld [vmem:[%s14682_s23 + $0x728] sm:$0xf]  ;;  %v13435_v7 = vld [vmem:[%s14682_s23 + $0x734] sm:$0xf0]  ;;  %v9500_v8 = vor.u32 %v13339_v62, %v9499_v61  ;;  %v9756_v13 = vor.u32 %v13403_v4, %v9755_v2  ;;  %v9053_v61 = vld [vmem:[%s14682_s23 + $0xb8] sm:$0xf0] }
  0xfd   : > { %2210 = vmatpush.bf16.msrb.mxu0 %v9564_v15  ;;  %v9483_v9 = vld [vmem:[%s14682_s23 + $0x408] sm:$0xf]  ;;  %v13335_v11 = vld [vmem:[%s14682_s23 + $0x414] sm:$0xf0]  ;;  %v13257_v62 = vld [vmem:[%s14682_s23 + $0x1ac] sm:$0xf] }
  0xfe   : > { %2224 = vmatpush.bf16.msrb.mxu1 %v9692_v16  ;;  %v9611_v14 = vld [vmem:[%s14682_s23 + $0x508] sm:$0xf]  ;;  %v13367_v15 = vld [vmem:[%s14682_s23 + $0x514] sm:$0xf0]  ;;  %v9484_v25 = vor.u32 %v13335_v11, %v9483_v9  ;;  %v13289_v1 = vld [vmem:[%s14682_s23 + $0x2ac] sm:$0xf] }
  0xff   : > { %2238 = vmatpush.bf16.msrb.mxu2 %v9820_v17  ;;  %v9739_v16 = vld [vmem:[%s14682_s23 + $0x608] sm:$0xf]  ;;  %v9884_v17 = vor.u32 %v13435_v7, %v9883_v6  ;;  %v13399_v18 = vld [vmem:[%s14682_s23 + $0x614] sm:$0xf0]  ;;  %v9309_v2 = vld [vmem:[%s14682_s23 + $0x2b8] sm:$0xf0]  ;;  %v9056_v7 = vor.u32 %v13225_v60, %v9053_v61 }
 0x100   : > { %2252 = vmatpush.bf16.msrb.mxu3 %v9948_v22  ;;  %v9867_v20 = vld [vmem:[%s14682_s23 + $0x708] sm:$0xf]  ;;  %v13431_v21 = vld [vmem:[%s14682_s23 + $0x714] sm:$0xf0]  ;;  %v13233_v22 = vld [vmem:[%s14682_s23 + $0xec] sm:$0xf]  ;;  %v9740_v32 = vor.u32 %v13399_v18, %v9739_v16  ;;  %v9312_v11 = vor.u32 %v13289_v1, %v9309_v2 }
 0x101   : > { %2211 = vmatpush.bf16.msrb.mxu0 %v9548_v29  ;;  %v9341_v29 = vld [vmem:[%s14682_s23 + $0x2f8] sm:$0xf0]  ;;  %v9868_v37 = vor.u32 %v13431_v21, %v9867_v20  ;;  %v9088_v38 = vor.u32 %v13233_v22, %v9085_v23  ;;  %v13321_v4 = vld [vmem:[%s14682_s23 + $0x3ac] sm:$0xf] }
 0x102   : > { %2225 = vmatpush.bf16.msrb.mxu1 %v9676_v30  ;;  %v1965_v30 = vpop.f32.mrf.mxu2  ;;  %v9344_v40 = vor.u32 %v13297_v28, %v9341_v29  ;;  %v9437_v5 = vld [vmem:[%s14682_s23 + $0x3b8] sm:$0xf0]  ;;  %v13285_v18 = vld [vmem:[%s14682_s23 + $0x28c] sm:$0xf] }
 0x103   : > { %2239 = vmatpush.bf16.msrb.mxu2 %v9804_v31  ;;  %v9612_v31 = vor.u32 %v13367_v15, %v9611_v14  ;;  %v1966_v55 = vadd.f32 %v1965_v30, %v1952_v36  ;;  %v9037_v14 = vld [vmem:[%s14682_s23 + $0x98] sm:$0xf0]  ;;  %v13253_v15 = vld [vmem:[%s14682_s23 + $0x18c] sm:$0xf]  ;;  %v9440_v16 = vor.u32 %v13321_v4, %v9437_v5 }
 0x104   : > { %2253 = vmatpush.bf16.msrb.mxu3 %v9932_v35  ;;  %v1979_v35 = vpop.f32.mrf.mxu3  ;;  %v9293_v20 = vld [vmem:[%s14682_s23 + $0x298] sm:$0xf0]  ;;  %v13317_v23 = vld [vmem:[%s14682_s23 + $0x38c] sm:$0xf] }
 0x105   : > { %2212 = vmatpush.bf16.msrb.mxu0 %v9532_v41  ;;  %v1939_v41 = vpop.f32.mrf.mxu0  ;;  %v1980_v6 = vadd.f32 %v1979_v35, %v1966_v55  ;;  %v9296_v30 = vor.u32 %v13285_v18, %v9293_v20  ;;  %v13249_v33 = vld [vmem:[%s14682_s23 + $0x16c] sm:$0xf]  ;;  %v9424_v34 = vor.u32 %v13317_v23, %v9421_v24  ;;  %v9149_v35 = vld [vmem:[%s14682_s23 + $0x178] sm:$0xf0] }
 0x106   : > { %2226 = vmatpush.bf16.msrb.mxu1 %v9660_v42  ;;  %v13229_v42 = vld [vmem:[%s14682_s23 + $0xcc] sm:$0xf]  ;;  %v1954_v21 = vadd.f32 %v1953_v50, %v1939_v41  ;;  %v9405_v41 = vld [vmem:[%s14682_s23 + $0x378] sm:$0xf0] }
 0x107   : > { %2240 = vmatpush.bf16.msrb.mxu2 %v9788_v43  ;;  %v9069_v43 = vld [vmem:[%s14682_s23 + $0xd8] sm:$0xf0]  ;;  %v13281_v36 = vld [vmem:[%s14682_s23 + $0x26c] sm:$0xf] }
 0x108   : > { %2254 = vmatpush.bf16.msrb.mxu3 %v9916_v47  ;;  %v13293_v47 = vld [vmem:[%s14682_s23 + $0x2cc] sm:$0xf]  ;;  %v9261_v55 = vld [vmem:[%s14682_s23 + $0x258] sm:$0xf0] }
 0x109   : > { %2213 = vmatpush.bf16.msrb.mxu0 %v9516_v57  ;;  %v9072_v57 = vor.u32 %v13229_v42, %v9069_v43  ;;  %v13213_v43 = vld [vmem:[%s14682_s23 + $0x4c] sm:$0xf] }
 0x10a   : > { %2227 = vmatpush.bf16.msrb.mxu1 %v9644_v58  ;;  %v9200_v58 = vor.u32 %v13261_v44, %v9197_v46  ;;  %v9152_v44 = vor.u32 %v13249_v33, %v9149_v35  ;;  %v9005_v46 = vld [vmem:[%s14682_s23 + $0x58] sm:$0xf0]  ;;  %v13277_v54 = vld [vmem:[%s14682_s23 + $0x24c] sm:$0xf] }
 0x10b   : > { %2241 = vmatpush.bf16.msrb.mxu2 %v9772_v59  ;;  %v9328_v59 = vor.u32 %v13293_v47, %v9325_v49  ;;  %v13245_v47 = vld [vmem:[%s14682_s23 + $0x14c] sm:$0xf]  ;;  %v9133_v49 = vld [vmem:[%s14682_s23 + $0x158] sm:$0xf0]  ;;  %v9264_v5 = vor.u32 %v13277_v54, %v9261_v55 }
 0x10c   : > { %2255 = vmatpush.bf16.msrb.mxu3 %v9900_v0  ;;  %v9181_v0 = vld [vmem:[%s14682_s23 + $0x1b8] sm:$0xf0]  ;;  %v13309_v61 = vld [vmem:[%s14682_s23 + $0x34c] sm:$0xf]  ;;  %v9136_v1 = vor.u32 %v13245_v47, %v9133_v49 }
 0x10d   : > { %2214 = vmatpush.bf16.msrb.mxu0 %v9500_v8  ;;  %v1967_v8 = vpop.f32.mrf.mxu2  ;;  %v9184_v9 = vor.u32 %v13257_v62, %v9181_v0  ;;  %v9389_v62 = vld [vmem:[%s14682_s23 + $0x358] sm:$0xf0]  ;;  %v9008_v0 = vor.u32 %v13213_v43, %v9005_v46  ;;  %v13205_v20 = vld [vmem:[%s14682_s23 + $0xc] sm:$0xf] }
 0x10e   : > { %2228 = vmatpush.bf16.msrb.mxu1 %v9628_v12  ;;  %v1981_v12 = vpop.f32.mrf.mxu3  ;;  %v13301_v33 = vld [vmem:[%s14682_s23 + $0x30c] sm:$0xf]  ;;  %v9853_v43 = vld [vmem:[%s14682_s23 + $0x6f8] sm:$0xf0] }
 0x10f   : > { %2242 = vmatpush.bf16.msrb.mxu2 %v9756_v13  ;;  %v13221_v13 = vld [vmem:[%s14682_s23 + $0x8c] sm:$0xf]  ;;  %v9981_v49 = vld [vmem:[%s14682_s23 + $0x7f8] sm:$0xf0] }
 0x110   : > { %2256 = vmatpush.bf16.msrb.mxu3 %v9884_v17  ;;  %v9165_v17 = vld [vmem:[%s14682_s23 + $0x198] sm:$0xf0]  ;;  %v9040_v27 = vor.u32 %v13221_v13, %v9037_v14  ;;  %v13273_v13 = vld [vmem:[%s14682_s23 + $0x22c] sm:$0xf] }
 0x111   : > { %2215 = vmatpush.bf16.msrb.mxu0 %v9484_v25  ;;  %v1993_v22 = vpop.f32.mrf.mxu0  ;;  %v9168_v29 = vor.u32 %v13253_v15, %v9165_v17  ;;  %v9245_v14 = vld [vmem:[%s14682_s23 + $0x238] sm:$0xf0]  ;;  %v13457_v47 = vld [vmem:[%s14682_s23 + $0x7ec] sm:$0xf] }
 0x112   : > { %2229 = vmatpush.bf16.msrb.mxu1 %v9612_v31  ;;  %v1994_v25 = vadd.f32 %v1993_v22, %v1980_v6  ;;  %v2007_v28 = vpop.f32.mrf.mxu1  ;;  %v13217_v31 = vld [vmem:[%s14682_s23 + $0x6c] sm:$0xf]  ;;  %v9373_v17 = vld [vmem:[%s14682_s23 + $0x338] sm:$0xf0] }
 0x113   : > { %2243 = vmatpush.bf16.msrb.mxu2 %v9740_v32  ;;  %v9021_v32 = vld [vmem:[%s14682_s23 + $0x78] sm:$0xf0]  ;;  %v13209_v6 = vld [vmem:[%s14682_s23 + $0x2c] sm:$0xf] }
 0x114   : > { %2257 = vmatpush.bf16.msrb.mxu3 %v9868_v37  ;;  %2216 = vmatmul.bf16.vlgmr.msrb.gmra.mxu0 %v14876_v48  ;;  %v9277_v37 = vld [vmem:[%s14682_s23 + $0x278] sm:$0xf0]  ;;  %v9024_v42 = vor.u32 %v13217_v31, %v9021_v32  ;;  %v13237_v22 = vld [vmem:[%s14682_s23 + $0x10c] sm:$0xf] }
 0x115   : > { %2264 = vmatpush.bf16.msra.mxu0 %v9088_v38  ;;  %2230 = vmatmul.bf16.vlgmr.msrb.gmra.mxu1 %v14883_v53  ;;  %v1968_v38 = vadd.f32 %v1967_v8, %v1954_v21  ;;  %v13241_v8 = vld [vmem:[%s14682_s23 + $0x12c] sm:$0xf]  ;;  %v8973_v21 = vld [vmem:[%s14682_s23 + $0x18] sm:$0xf0] }
 0x116   : > { %2278 = vmatpush.bf16.msra.mxu1 %v9216_v39  ;;  %2244 = vmatmul.bf16.vlgmr.msrb.gmra.mxu2 %v14881_v52  ;;  %v2008_v39 = vadd.f32 %v2007_v28, %v1994_v25  ;;  %v9248_v25 = vor.u32 %v13273_v13, %v9245_v14  ;;  %v13269_v28 = vld [vmem:[%s14682_s23 + $0x20c] sm:$0xf]  ;;  %v9229_v32 = vld [vmem:[%s14682_s23 + $0x218] sm:$0xf0] }
 0x117   : > { %2292 = vmatpush.bf16.msra.mxu2 %v9344_v40  ;;  %2258 = vmatmul.bf16.vlgmr.msrb.gmra.mxu3 %v14887_v56  ;;  %v13313_v40 = vld [vmem:[%s14682_s23 + $0x36c] sm:$0xf]  ;;  %v9232_v46 = vor.u32 %v13269_v28, %v9229_v32  ;;  %v9821_v14 = vld [vmem:[%s14682_s23 + $0x6b8] sm:$0xf0] }
 0x118   : > { %2306 = vmatpush.bf16.msra.mxu3 %v9472_v45  ;;  %v9280_v45 = vor.u32 %v13281_v36, %v9277_v37  ;;  %v9408_v50 = vor.u32 %v13313_v40, %v9405_v41  ;;  %v340_v31 = vld [vmem:[#allocation2 + $0x8] sm:$0xff]  ;;  %v8976_v40 = vor.u32 %v13205_v20, %v8973_v21  ;;  %v9725_v41 = vld [vmem:[%s14682_s23 + $0x5f8] sm:$0xf0] }
 0x119   : > { %2265 = vmatpush.bf16.msra.mxu0 %v9072_v57  ;;  %v2021_v51 = vpop.f32.mrf.mxu2  ;;  %v1982_v57 = vadd.f32 %v1981_v12, %v1968_v38  ;;  %v9117_v12 = vld [vmem:[%s14682_s23 + $0x138] sm:$0xf0]  ;;  %v13361_v37 = vld [vmem:[%s14682_s23 + $0x4ec] sm:$0xf] }
 0x11a   : > { %2279 = vmatpush.bf16.msra.mxu1 %v9200_v58  ;;  %v2022_v58 = vadd.f32 %v2021_v51, %v2008_v39  ;;  %v2035_v60 = vpop.f32.mrf.mxu3  ;;  %v9120_v24 = vor.u32 %v13241_v8, %v9117_v12  ;;  %v9597_v38 = vld [vmem:[%s14682_s23 + $0x4f8] sm:$0xf0]  ;;  %v13393_v39 = vld [vmem:[%s14682_s23 + $0x5ec] sm:$0xf] }
 0x11b   : > { %2293 = vmatpush.bf16.msra.mxu2 %v9328_v59  ;;  %v1995_v59 = vpop.f32.mrf.mxu0  ;;  %v9600_v51 = vor.u32 %v13361_v37, %v9597_v38  ;;  %v9728_v55 = vor.u32 %v13393_v39, %v9725_v41  ;;  %v9565_v8 = vld [vmem:[%s14682_s23 + $0x4b8] sm:$0xf0]  ;;  %v13417_v13 = vld [vmem:[%s14682_s23 + $0x6ac] sm:$0xf] }
 0x11c   : > { %2307 = vmatpush.bf16.msra.mxu3 %v9456_v63  ;;  %v336_v63 = vld [vmem:[#allocation2 + $0x30] sm:$0xff]  ;;  %v1996_v2 = vadd.f32 %v1995_v59, %v1982_v57  ;;  %v2036_v4 = vadd.f32 %v2035_v60, %v2022_v58  ;;  %v13357_v58 = vld [vmem:[%s14682_s23 + $0x4cc] sm:$0xf]  ;;  %v9581_v59 = vld [vmem:[%s14682_s23 + $0x4d8] sm:$0xf0] }
 0x11d   : > { %2266 = vmatpush.bf16.msra.mxu0 %v9056_v7  ;;  %v8989_v7 = vld [vmem:[%s14682_s23 + $0x38] sm:$0xf0]  ;;  %v13389_v60 = vld [vmem:[%s14682_s23 + $0x5cc] sm:$0xf] }
 0x11e   : > { %2280 = vmatpush.bf16.msra.mxu1 %v9184_v9  ;;  %v9392_v9 = vor.u32 %v13309_v61, %v9389_v62  ;;  %v2376_v15 = vadd.f32 %v2036_v4, %v336_v63  ;;  %v8992_v18 = vor.u32 %v13209_v6, %v8989_v7  ;;  %v9984_v61 = vor.u32 %v13457_v47, %v9981_v49  ;;  %v9709_v62 = vld [vmem:[%s14682_s23 + $0x5d8] sm:$0xf0]  ;;  %v13421_v63 = vld [vmem:[%s14682_s23 + $0x6cc] sm:$0xf] }
 0x11f   : > { %2294 = vmatpush.bf16.msra.mxu2 %v9312_v11  ;;  %v2009_v11 = vpop.f32.mrf.mxu1  ;;  %v9584_v4 = vor.u32 %v13357_v58, %v9581_v59  ;;  %v13353_v7 = vld [vmem:[%s14682_s23 + $0x4ac] sm:$0xf]  ;;  %v9693_v12 = vld [vmem:[%s14682_s23 + $0x5b8] sm:$0xf0] }
 0x120   : > { %2308 = vmatpush.bf16.msra.mxu3 %v9440_v16  ;;  %v13305_v16 = vld [vmem:[%s14682_s23 + $0x32c] sm:$0xf]  ;;  %2384 = vst [vmem:[#allocation2 + $0x30] sm:$0xff] %v2376_v15  ;;  %v2010_v23 = vadd.f32 %v2009_v11, %v1996_v2  ;;  %v9965_v2 = vld [vmem:[%s14682_s23 + $0x7d8] sm:$0xf0] }
 0x121   : > { %2267 = vmatpush.bf16.msra.mxu0 %v9040_v27  ;;  %v9101_v27 = vld [vmem:[%s14682_s23 + $0x118] sm:$0xf0]  ;;  %v13449_v15 = vld [vmem:[%s14682_s23 + $0x7ac] sm:$0xf] }
 0x122   : > { %2281 = vmatpush.bf16.msra.mxu1 %v9168_v29  ;;  %v9376_v29 = vor.u32 %v13305_v16, %v9373_v17  ;;  %v2037_v36 = vpop.f32.mrf.mxu3  ;;  %v9949_v16 = vld [vmem:[%s14682_s23 + $0x7b8] sm:$0xf0]  ;;  %v9568_v17 = vor.u32 %v13353_v7, %v9565_v8  ;;  %v13349_v20 = vld [vmem:[%s14682_s23 + $0x48c] sm:$0xf] }
 0x123   : > { %2295 = vmatpush.bf16.msra.mxu2 %v9296_v30  ;;  %v2023_v30 = vpop.f32.mrf.mxu2  ;;  %v13381_v21 = vld [vmem:[%s14682_s23 + $0x58c] sm:$0xf]  ;;  %v9917_v38 = vld [vmem:[%s14682_s23 + $0x778] sm:$0xf0] }
 0x124   : > { %2309 = vmatpush.bf16.msra.mxu3 %v9424_v34  ;;  %v9357_v34 = vld [vmem:[%s14682_s23 + $0x318] sm:$0xf0]  ;;  %v2024_v35 = vadd.f32 %v2023_v30, %v2010_v23  ;;  %v13345_v30 = vld [vmem:[%s14682_s23 + $0x46c] sm:$0xf] }
 0x125   : > { %2268 = vmatpush.bf16.msra.mxu0 %v9024_v42  ;;  %v13425_v42 = vld [vmem:[%s14682_s23 + $0x6ec] sm:$0xf]  ;;  %v9677_v23 = vld [vmem:[%s14682_s23 + $0x598] sm:$0xf0] }
 0x126   : > { %2282 = vmatpush.bf16.msra.mxu1 %v9152_v44  ;;  %v2038_v44 = vadd.f32 %v2037_v36, %v2024_v35  ;;  %v9856_v57 = vor.u32 %v13425_v42, %v9853_v43  ;;  %v9680_v28 = vor.u32 %v13381_v21, %v9677_v23  ;;  %v13377_v32 = vld [vmem:[%s14682_s23 + $0x56c] sm:$0xf]  ;;  %v9789_v36 = vld [vmem:[%s14682_s23 + $0x678] sm:$0xf0] }
 0x127   : > { %2296 = vmatpush.bf16.msra.mxu2 %v9280_v45  ;;  %v9104_v45 = vor.u32 %v13237_v22, %v9101_v27  ;;  %v9952_v22 = vor.u32 %v13449_v15, %v9949_v16  ;;  %v13409_v35 = vld [vmem:[%s14682_s23 + $0x66c] sm:$0xf]  ;;  %v9517_v43 = vld [vmem:[%s14682_s23 + $0x458] sm:$0xf0] }
 0x128   : > { %2310 = vmatpush.bf16.msra.mxu3 %v9408_v50  ;;  %v9360_v50 = vor.u32 %v13301_v33, %v9357_v34  ;;  %v2380_v54 = vadd.f32 %v2038_v44, %v340_v31  ;;  %v9533_v31 = vld [vmem:[%s14682_s23 + $0x478] sm:$0xf0]  ;;  %v13441_v37 = vld [vmem:[%s14682_s23 + $0x76c] sm:$0xf]  ;;  %v9792_v41 = vor.u32 %v13409_v35, %v9789_v36 }
 0x129   : > { %2269 = vmatpush.bf16.msra.mxu0 %v9008_v0  ;;  %v9837_v0 = vld [vmem:[%s14682_s23 + $0x6d8] sm:$0xf0]  ;;  %v9536_v39 = vor.u32 %v13345_v30, %v9533_v31  ;;  %v13341_v42 = vld [vmem:[%s14682_s23 + $0x44c] sm:$0xf] }
 0x12a   : > { %2283 = vmatpush.bf16.msra.mxu1 %v9136_v1  ;;  %2388 = vst [vmem:[#allocation2 + $0x8] sm:$0xff] %v2380_v54  ;;  %v13453_v1 = vld [vmem:[%s14682_s23 + $0x7cc] sm:$0xf]  ;;  %v9840_v6 = vor.u32 %v13421_v63, %v9837_v0  ;;  %v9661_v34 = vld [vmem:[%s14682_s23 + $0x578] sm:$0xf0]  ;;  %v9520_v54 = vor.u32 %v13341_v42, %v9517_v43 }
 0x12b   : > { %2297 = vmatpush.bf16.msra.mxu2 %v9264_v5  ;;  %v9712_v5 = vor.u32 %v13389_v60, %v9709_v62  ;;  %v9968_v11 = vor.u32 %v13453_v1, %v9965_v2  ;;  %v13373_v44 = vld [vmem:[%s14682_s23 + $0x54c] sm:$0xf]  ;;  %v9773_v49 = vld [vmem:[%s14682_s23 + $0x658] sm:$0xf0] }
 0x12c   : > { %2311 = vmatpush.bf16.msra.mxu3 %v9392_v9  ;;  %v13385_v9 = vld [vmem:[%s14682_s23 + $0x5ac] sm:$0xf]  ;;  %v9501_v60 = vld [vmem:[%s14682_s23 + $0x438] sm:$0xf0] }
 0x12d   : > { %2270 = vmatpush.bf16.msra.mxu0 %v8992_v18  ;;  %v9824_v18 = vor.u32 %v13417_v13, %v9821_v14  ;;  %v13405_v47 = vld [vmem:[%s14682_s23 + $0x64c] sm:$0xf]  ;;  %v9629_v63 = vld [vmem:[%s14682_s23 + $0x538] sm:$0xf0] }
 0x12e   : > { %2284 = vmatpush.bf16.msra.mxu1 %v9120_v24  ;;  %v9805_v24 = vld [vmem:[%s14682_s23 + $0x698] sm:$0xf0]  ;;  %v13337_v59 = vld [vmem:[%s14682_s23 + $0x42c] sm:$0xf] }
 0x12f   : > { %2298 = vmatpush.bf16.msra.mxu2 %v9248_v25  ;;  %v13445_v25 = vld [vmem:[%s14682_s23 + $0x78c] sm:$0xf]  ;;  %v9757_v1 = vld [vmem:[%s14682_s23 + $0x638] sm:$0xf0] }
 0x130   : > { %2312 = vmatpush.bf16.msra.mxu3 %v9376_v29  ;;  %v13401_v0 = vld [vmem:[%s14682_s23 + $0x62c] sm:$0xf]  ;;  %v9613_v14 = vld [vmem:[%s14682_s23 + $0x518] sm:$0xf0] }
 0x131   : > { %2271 = vmatpush.bf16.msra.mxu0 %v8976_v40  ;;  %v9664_v40 = vor.u32 %v13377_v32, %v9661_v34  ;;  %v2049_v58 = vpop.f32.mrf.mxu0  ;;  %v9760_v8 = vor.u32 %v13401_v0, %v9757_v1  ;;  %v13397_v15 = vld [vmem:[%s14682_s23 + $0x60c] sm:$0xf]  ;;  %v9741_v16 = vld [vmem:[%s14682_s23 + $0x618] sm:$0xf0] }
 0x132   : > { %2285 = vmatpush.bf16.msra.mxu1 %v9104_v45  ;;  %v9920_v45 = vor.u32 %v13441_v37, %v9917_v38  ;;  %v2063_v2 = vpop.f32.mrf.mxu1  ;;  %v9744_v21 = vor.u32 %v13397_v15, %v9741_v16 }
 0x133   : > { %2299 = vmatpush.bf16.msra.mxu2 %v9232_v46  ;;  %v9645_v46 = vld [vmem:[%s14682_s23 + $0x558] sm:$0xf0]  ;;  %v2064_v23 = vadd.f32 %v2063_v2, %v2049_v58 }
 0x134   : > { %2313 = vmatpush.bf16.msra.mxu3 %v9360_v50  ;;  %2272 = vmatmul.bf16.vlgmr.msra.gmra.mxu0 %v14794_v3  ;;  %v13413_v3 = vld [vmem:[%s14682_s23 + $0x68c] sm:$0xf] }
 0x135   : > { %2320 = vmatpush.bf16.msrb.mxu0 %v9600_v51  ;;  %2286 = vmatmul.bf16.vlgmr.msra.gmra.mxu1 %v14810_v19  ;;  %v9933_v19 = vld [vmem:[%s14682_s23 + $0x798] sm:$0xf0]  ;;  %v9808_v29 = vor.u32 %v13413_v3, %v9805_v24  ;;  %v13437_v50 = vld [vmem:[%s14682_s23 + $0x74c] sm:$0xf] }
 0x136   : > { %2334 = vmatpush.bf16.msrb.mxu1 %v9728_v55  ;;  %2300 = vmatmul.bf16.vlgmr.msra.gmra.mxu2 %v14800_v10  ;;  %v9696_v10 = vor.u32 %v13385_v9, %v9693_v12  ;;  %v9936_v33 = vor.u32 %v13445_v25, %v9933_v19  ;;  %v9901_v51 = vld [vmem:[%s14682_s23 + $0x758] sm:$0xf0]  ;;  %v9648_v55 = vor.u32 %v13373_v44, %v9645_v46  ;;  %v13333_v9 = vld [vmem:[%s14682_s23 + $0x40c] sm:$0xf]  ;;  %v341_v46 = vld [vmem:[#allocation2 + $0x20] sm:$0xff] }
 0x137   : > { %2348 = vmatpush.bf16.msrb.mxu2 %v9856_v57  ;;  %2314 = vmatmul.bf16.vlgmr.msra.gmra.mxu3 %v14816_v26  ;;  %v9549_v26 = vld [vmem:[%s14682_s23 + $0x498] sm:$0xf0]  ;;  %v9776_v57 = vor.u32 %v13405_v47, %v9773_v49  ;;  %v9904_v62 = vor.u32 %v13437_v50, %v9901_v51  ;;  %v13365_v12 = vld [vmem:[%s14682_s23 + $0x50c] sm:$0xf] }
 0x138   : > { %2362 = vmatpush.bf16.msrb.mxu3 %v9984_v61  ;;  %v9552_v27 = vor.u32 %v13349_v20, %v9549_v26  ;;  %v13369_v61 = vld [vmem:[%s14682_s23 + $0x52c] sm:$0xf]  ;;  %v9616_v26 = vor.u32 %v13365_v12, %v9613_v14 }
 0x139   : > { %2321 = vmatpush.bf16.msrb.mxu0 %v9584_v4  ;;  %v13433_v4 = vld [vmem:[%s14682_s23 + $0x72c] sm:$0xf]  ;;  %v9632_v7 = vor.u32 %v13369_v61, %v9629_v63  ;;  %v2077_v20 = vpop.f32.mrf.mxu2  ;;  %v2051_v24 = vpop.f32.mrf.mxu0 }
 0x13a   : > { %2335 = vmatpush.bf16.msrb.mxu1 %v9712_v5  ;;  %v9885_v5 = vld [vmem:[%s14682_s23 + $0x738] sm:$0xf0]  ;;  %v2065_v25 = vpop.f32.mrf.mxu1  ;;  %v2078_v19 = vadd.f32 %v2077_v20, %v2064_v23 }
 0x13b   : > { %2349 = vmatpush.bf16.msrb.mxu2 %v9840_v6  ;;  %v9504_v6 = vor.u32 %v13337_v59, %v9501_v60  ;;  %v9888_v13 = vor.u32 %v13433_v4, %v9885_v5  ;;  %v2066_v30 = vadd.f32 %v2065_v25, %v2051_v24 }
 0x13c   : > { %2363 = vmatpush.bf16.msrb.mxu3 %v9968_v11  ;;  %v9485_v11 = vld [vmem:[%s14682_s23 + $0x418] sm:$0xf0] }
 0x13d   : > { %2322 = vmatpush.bf16.msrb.mxu0 %v9568_v17  ;;  %v13429_v17 = vld [vmem:[%s14682_s23 + $0x70c] sm:$0xf] }
 0x13e   : > { %2336 = vmatpush.bf16.msrb.mxu1 %v9696_v10  ;;  %v9869_v10 = vld [vmem:[%s14682_s23 + $0x718] sm:$0xf0] }
 0x13f   : > { %2350 = vmatpush.bf16.msrb.mxu2 %v9824_v18  ;;  %v9488_v18 = vor.u32 %v13333_v9, %v9485_v11  ;;  %v9872_v3 = vor.u32 %v13429_v17, %v9869_v10 }
 0x140   : > { %2364 = vmatpush.bf16.msrb.mxu3 %v9952_v22  ;;  %v2091_v22 = vpop.f32.mrf.mxu3 }
 0x141   : > { %2323 = vmatpush.bf16.msrb.mxu0 %v9552_v27  ;;  %v2092_v27 = vadd.f32 %v2091_v22, %v2078_v19 }
 0x142   : > { %2337 = vmatpush.bf16.msrb.mxu1 %v9680_v28  ;;  %v2079_v28 = vpop.f32.mrf.mxu2 }
 0x143   : > { %2351 = vmatpush.bf16.msrb.mxu2 %v9808_v29  ;;  %v2080_v34 = vadd.f32 %v2079_v28, %v2066_v30 }
 0x144   : > { %2365 = vmatpush.bf16.msrb.mxu3 %v9936_v33 }
 0x145   : > { %2324 = vmatpush.bf16.msrb.mxu0 %v9536_v39 }
 0x146   : > { %2338 = vmatpush.bf16.msrb.mxu1 %v9664_v40  ;;  %v337_v40 = vld [vmem:[#allocation2] sm:$0xff] }
 0x147   : > { %2352 = vmatpush.bf16.msrb.mxu2 %v9792_v41 }
 0x148   : > { %2366 = vmatpush.bf16.msrb.mxu3 %v9920_v45  ;;  %v2093_v29 = vpop.f32.mrf.mxu3 }
 0x149   : > { %2325 = vmatpush.bf16.msrb.mxu0 %v9520_v54  ;;  %v2094_v37 = vadd.f32 %v2093_v29, %v2080_v34 }
 0x14a   : > { %2339 = vmatpush.bf16.msrb.mxu1 %v9648_v55 }
 0x14b   : > { %2353 = vmatpush.bf16.msrb.mxu2 %v9776_v57 }
 0x14c   : > { %2367 = vmatpush.bf16.msrb.mxu3 %v9904_v62 }
 0x14d   : > { %2326 = vmatpush.bf16.msrb.mxu0 %v9504_v6 }
 0x14e   : > { %2340 = vmatpush.bf16.msrb.mxu1 %v9632_v7 }
 0x14f   : > { %2354 = vmatpush.bf16.msrb.mxu2 %v9760_v8 }
 0x150   : > { %2368 = vmatpush.bf16.msrb.mxu3 %v9888_v13  ;;  %v338_v13 = vld [vmem:[#allocation2 + $0x18] sm:$0xff] }
 0x151   : > { %2327 = vmatpush.bf16.msrb.mxu0 %v9488_v18  ;;  %v2105_v31 = vpop.f32.mrf.mxu0 }
 0x152   : > { %2341 = vmatpush.bf16.msrb.mxu1 %v9616_v26  ;;  %v2106_v32 = vadd.f32 %v2105_v31, %v2092_v27  ;;  %v2119_v33 = vpop.f32.mrf.mxu1 }
 0x153   : > { %2355 = vmatpush.bf16.msrb.mxu2 %v9744_v21  ;;  %v342_v21 = vld [vmem:[#allocation2 + $0x28] sm:$0xff] }
 0x154   : > { %2369 = vmatpush.bf16.msrb.mxu3 %v9872_v3  ;;  %2328 = vmatmul.bf16.vlgmr.msrb.gmra.mxu0 %v14876_v48  ;;  %v2120_v35 = vadd.f32 %v2119_v33, %v2106_v32 }
 0x155   : > { %2342 = vmatmul.bf16.vlgmr.msrb.gmra.mxu1 %v14883_v53 }
 0x156   : > { %2356 = vmatmul.bf16.vlgmr.msrb.gmra.mxu2 %v14881_v52 }
 0x157   : > { %2370 = vmatmul.bf16.vlgmr.msrb.gmra.mxu3 %v14887_v56 }
 0x159   : > { %v2133_v36 = vpop.f32.mrf.mxu2  ;;  %v2107_v39 = vpop.f32.mrf.mxu0 }
 0x15a   : > { %v2134_v38 = vadd.f32 %v2133_v36, %v2120_v35  ;;  %v2147_v48 = vpop.f32.mrf.mxu3  ;;  %v2108_v53 = vadd.f32 %v2107_v39, %v2094_v37  ;;  %v2121_v52 = vpop.f32.mrf.mxu1 }
 0x15c   : > { %v2148_v41 = vadd.f32 %v2147_v48, %v2134_v38  ;;  %v2122_v56 = vadd.f32 %v2121_v52, %v2108_v53 }
 0x15e   : > { %v2377_v42 = vadd.f32 %v2148_v41, %v337_v40 }
 0x160   : > { %2385 = vst [vmem:[#allocation2] sm:$0xff] %v2377_v42  ;;  %v339_v42 = vld [vmem:[#allocation2 + $0x10] sm:$0xff] }
 0x161   : > { %v2135_v43 = vpop.f32.mrf.mxu2 }
 0x162   : > { %v2136_v44 = vadd.f32 %v2135_v43, %v2122_v56  ;;  %v2149_v45 = vpop.f32.mrf.mxu3 }
 0x164   : > { %v2150_v47 = vadd.f32 %v2149_v45, %v2136_v44 }
 0x166   : > { %v2381_v49 = vadd.f32 %v2150_v47, %v341_v46 }
 0x168   : > { %2389 = vst [vmem:[#allocation2 + $0x20] sm:$0xff] %v2381_v49 }
 0x171   : > { %v2161_v50 = vpop.f32.mrf.mxu0 }
 0x172   : > { %v2175_v51 = vpop.f32.mrf.mxu1 }
 0x173   : > { %v2176_v57 = vadd.f32 %v2175_v51, %v2161_v50  ;;  %v343_v50 = vld [vmem:[#allocation2 + $0x38] sm:$0xff] }
 0x179   : > { %v2189_v54 = vpop.f32.mrf.mxu2  ;;  %v2163_v58 = vpop.f32.mrf.mxu0 }
 0x17a   : > { %v2203_v55 = vpop.f32.mrf.mxu3  ;;  %v2177_v59 = vpop.f32.mrf.mxu1  ;;  %v2190_v60 = vadd.f32 %v2189_v54, %v2176_v57 }
 0x17b   : > { %v2178_v0 = vadd.f32 %v2177_v59, %v2163_v58 }
 0x17c   : > { %v2204_v61 = vadd.f32 %v2203_v55, %v2190_v60 }
 0x181   : > { %v2191_v62 = vpop.f32.mrf.mxu2 }
 0x182   : > { %v2205_v63 = vpop.f32.mrf.mxu3  ;;  %v2192_v5 = vadd.f32 %v2191_v62, %v2178_v0 }
 0x184   : > { %v2206_v8 = vadd.f32 %v2205_v63, %v2192_v5 }
 0x191   : > { %v2217_v1 = vpop.f32.mrf.mxu0 }
 0x192   : > { %v2218_v2 = vadd.f32 %v2217_v1, %v2204_v61  ;;  %v2231_v4 = vpop.f32.mrf.mxu1 }
 0x194   : > { %v2232_v6 = vadd.f32 %v2231_v4, %v2218_v2 }
 0x199   : > { %v2245_v7 = vpop.f32.mrf.mxu2  ;;  %v2219_v11 = vpop.f32.mrf.mxu0 }
 0x19a   : > { %v2246_v9 = vadd.f32 %v2245_v7, %v2232_v6  ;;  %v2259_v12 = vpop.f32.mrf.mxu3  ;;  %v2220_v14 = vadd.f32 %v2219_v11, %v2206_v8  ;;  %v2233_v16 = vpop.f32.mrf.mxu1 }
 0x19c   : > { %v2260_v15 = vadd.f32 %v2259_v12, %v2246_v9  ;;  %v2234_v10 = vadd.f32 %v2233_v16, %v2220_v14 }
 0x19e   : > { %v2378_v17 = vadd.f32 %v2260_v15, %v338_v13 }
 0x1a0   : > { %2386 = vst [vmem:[#allocation2 + $0x18] sm:$0xff] %v2378_v17 }
 0x1a1   : > { %v2247_v18 = vpop.f32.mrf.mxu2 }
 0x1a2   : > { %v2248_v20 = vadd.f32 %v2247_v18, %v2234_v10  ;;  %v2261_v26 = vpop.f32.mrf.mxu3 }
 0x1a4   : > { %v2262_v22 = vadd.f32 %v2261_v26, %v2248_v20 }
 0x1a6   : > { %v2382_v23 = vadd.f32 %v2262_v22, %v342_v21 }
 0x1a8   : > { %2390 = vst [vmem:[#allocation2 + $0x28] sm:$0xff] %v2382_v23 }
 0x1b1   : > { %v2273_v3 = vpop.f32.mrf.mxu0 }
 0x1b2   : > { %v2287_v24 = vpop.f32.mrf.mxu1 }
 0x1b3   : > { %v2288_v27 = vadd.f32 %v2287_v24, %v2273_v3 }
 0x1b9   : > { %v2301_v25 = vpop.f32.mrf.mxu2  ;;  %v2275_v28 = vpop.f32.mrf.mxu0 }
 0x1ba   : > { %v2315_v19 = vpop.f32.mrf.mxu3  ;;  %v2289_v29 = vpop.f32.mrf.mxu1  ;;  %v2302_v30 = vadd.f32 %v2301_v25, %v2288_v27 }
 0x1bb   : > { %v2290_v33 = vadd.f32 %v2289_v29, %v2275_v28 }
 0x1bc   : > { %v2316_v32 = vadd.f32 %v2315_v19, %v2302_v30 }
 0x1c1   : > { %v2303_v31 = vpop.f32.mrf.mxu2 }
 0x1c2   : > { %v2317_v34 = vpop.f32.mrf.mxu3  ;;  %v2304_v38 = vadd.f32 %v2303_v31, %v2290_v33 }
 0x1c4   : > { %v2318_v40 = vadd.f32 %v2317_v34, %v2304_v38 }
 0x1d1   : > { %v2329_v35 = vpop.f32.mrf.mxu0 }
 0x1d2   : > { %v2330_v36 = vadd.f32 %v2329_v35, %v2316_v32  ;;  %v2343_v37 = vpop.f32.mrf.mxu1 }
 0x1d4   : > { %v2344_v39 = vadd.f32 %v2343_v37, %v2330_v36 }
 0x1d9   : > { %v2357_v48 = vpop.f32.mrf.mxu2  ;;  %v2331_v52 = vpop.f32.mrf.mxu0 }
 0x1da   : > { %v2358_v53 = vadd.f32 %v2357_v48, %v2344_v39  ;;  %v2371_v41 = vpop.f32.mrf.mxu3  ;;  %v2332_v43 = vadd.f32 %v2331_v52, %v2318_v40  ;;  %v2345_v45 = vpop.f32.mrf.mxu1 }
 0x1dc   : > { %v2372_v56 = vadd.f32 %v2371_v41, %v2358_v53  ;;  %v2346_v46 = vadd.f32 %v2345_v45, %v2332_v43 }
 0x1de   : > { %v2379_v44 = vadd.f32 %v2372_v56, %v339_v42 }
 0x1e0   : > { %2387 = vst [vmem:[#allocation2 + $0x10] sm:$0xff] %v2379_v44 }
 0x1e1   : > { %v2359_v47 = vpop.f32.mrf.mxu2 }
 0x1e2   : > { %v2360_v49 = vadd.f32 %v2359_v47, %v2346_v46  ;;  %v2373_v51 = vpop.f32.mrf.mxu3 }
 0x1e4   : > { %v2374_v54 = vadd.f32 %v2373_v51, %v2360_v49  ;;  %2395 = sbr.rel (%p9985_p4) target bundleno = 2053 (0x805), region = 91 }
 0x1e6   : > { %v2383_v55 = vadd.f32 %v2374_v54, %v343_v50 }
 0x1e8   : > { %2391 = vst [vmem:[#allocation2 + $0x38] sm:$0xff] %v2383_v55 }
 0x1e9   : > { %v2396_v57 = vld [vmem:[#allocation12] ss:$8 sm:$0xf]  ;;  %v2398_v58 = vld [vmem:[#allocation12 + $0x1] ss:$8 sm:$0xf] }
 0x1ea   : > { %v2399_v59 = vld [vmem:[#allocation12 + $0x1] ss:$8 sm:$0x30]  ;;  %v15286_v60 = vld [vmem:[#allocation12 + $0x2] ss:$8 sm:$0xf] }
 0x1eb   : > { %v15288_v61 = vor.u32 %v2399_v59, %v2398_v58  ;;  %v2404_v62 = vld [vmem:[#allocation12 + $0x3] ss:$8 sm:$0xf]  ;;  %v15292_v1 = vld [vmem:[#allocation12 + $0x4] ss:$8 sm:$0xf] }
 0x1ec   : > { %v2405_v63 = vld [vmem:[#allocation12 + $0x3] ss:$8 sm:$0x30]  ;;  %v15294_v2 = vld [vmem:[#allocation12 + $0x5] ss:$0 sm:$0xff]  ;;  %v2410_v4 = vld [vmem:[#allocation2 + $0x30] sm:$0xff] }
 0x1ed   : > { %v15290_v0 = vor.u32 %v2405_v63, %v2404_v62  ;;  %v2411_v5 = vld [vmem:[#allocation2] sm:$0xff]  ;;  %v2412_v6 = vld [vmem:[#allocation2 + $0x18] sm:$0xff]  ;;  %v2413_v7 = vld [vmem:[#allocation2 + $0x10] sm:$0xff]  ;;  %v2419_v8 = vperm.slane %v2396_v57, 0  ;;  %v2420_v9 = vperm.slane %v2396_v57, 1  ;;  %v2421_v11 = vperm.slane %v2396_v57, 2 }
 0x1ee   : > { %v2414_v12 = vld [vmem:[#allocation2 + $0x8] sm:$0xff]  ;;  %v2415_v13 = vld [vmem:[#allocation2 + $0x20] sm:$0xff]  ;;  %v2422_v15 = vperm.slane %v2396_v57, 3 }
 0x1ef   : > { %v2416_v14 = vld [vmem:[#allocation2 + $0x28] sm:$0xff]  ;;  %v2417_v16 = vld [vmem:[#allocation2 + $0x38] sm:$0xff]  ;;  %v2427_v17 = vadd.f32 %v2419_v8, %v2410_v4  ;;  %v2428_v10 = vadd.f32 %v2420_v9, %v2411_v5  ;;  %v2429_v18 = vadd.f32 %v2421_v11, %v2412_v6  ;;  %v2431_v20 = vadd.f32 %v2419_v8, %v2414_v12 }
 0x1f0   : > { %v2430_v26 = vadd.f32 %v2422_v15, %v2413_v7  ;;  %v2432_v21 = vadd.f32 %v2420_v9, %v2415_v13  ;;  %v2433_v22 = vadd.f32 %v2421_v11, %v2416_v14  ;;  %v2434_v23 = vadd.f32 %v2422_v15, %v2417_v16 }
 0x1f1   : > { %v2435_v3 = vmax.f32 %v2427_v17, 0.0  ;;  %v2436_v24 = vmax.f32 %v2428_v10, 0.0  ;;  %v2437_v25 = vmax.f32 %v2429_v18, 0.0  ;;  %v2439_v19 = vmax.f32 %v2431_v20, 0.0 }
 0x1f2   : > { %v2438_v27 = vmax.f32 %v2430_v26, 0.0  ;;  %v2440_v28 = vmax.f32 %v2432_v21, 0.0  ;;  %v2441_v29 = vmax.f32 %v2433_v22, 0.0  ;;  %v2442_v30 = vmax.f32 %v2434_v23, 0.0 }
 0x1f3   : > { %v15296_v31 = vpack.c.bf16 %v2439_v19, %v2435_v3 }
 0x1f4   : > { %v15298_v32 = vpack.c.bf16 %v2440_v28, %v2436_v24  ;;  %v15300_v33 = vpack.c.bf16 %v2441_v29, %v2437_v25  ;;  %v15302_v34 = vpack.c.bf16 %v2442_v30, %v2438_v27 }
 0x1f5   : > { %14515 = dma.done.wait [#allocation8], 24576 }
 0x1f6   : > { %14516 = vsyncadd [#allocation8], 4294942720  ;;  %v10156_v35 = vld [vmem:[#allocation3 + $0x150] sm:$0xf]  ;;  %v13505_v36 = vld [vmem:[#allocation3 + $0x164] sm:$0xf0] }
 0x1f7   : > { %v10348_v37 = vld [vmem:[#allocation3 + $0x2d0] sm:$0xf]  ;;  %v10157_v38 = vor.u32 %v13505_v36, %v10156_v35  ;;  %v13553_v39 = vld [vmem:[#allocation3 + $0x2e4] sm:$0xf0]  ;;  %v10132_v56 = vld [vmem:[#allocation3 + $0x120] sm:$0xf] }
 0x1f8   : > { %v10540_v48 = vld [vmem:[#allocation3 + $0x450] sm:$0xf]  ;;  %v13601_v40 = vld [vmem:[#allocation3 + $0x464] sm:$0xf0]  ;;  %v10349_v53 = vor.u32 %v13553_v39, %v10348_v37  ;;  %v13499_v44 = vld [vmem:[#allocation3 + $0x134] sm:$0xf0] }
 0x1f9   : > { %v10541_v41 = vor.u32 %v13601_v40, %v10540_v48  ;;  %v10732_v52 = vld [vmem:[#allocation3 + $0x5d0] sm:$0xf]  ;;  %v13649_v42 = vld [vmem:[#allocation3 + $0x5e4] sm:$0xf0]  ;;  %3616 = vmatpush.bf16.msra.mxu0 %v10157_v38  ;;  %v10324_v45 = vld [vmem:[#allocation3 + $0x2a0] sm:$0xf]  ;;  %v10133_v47 = vor.u32 %v13499_v44, %v10132_v56 }
 0x1fa   : > { %v10733_v43 = vor.u32 %v13649_v42, %v10732_v52  ;;  %v13547_v46 = vld [vmem:[#allocation3 + $0x2b4] sm:$0xf0]  ;;  %3630 = vmatpush.bf16.msra.mxu1 %v10349_v53  ;;  %v10516_v50 = vld [vmem:[#allocation3 + $0x420] sm:$0xf]  ;;  %v10108_v58 = vld [vmem:[#allocation3 + $0xf0] sm:$0xf] }
 0x1fb   : > { %3644 = vmatpush.bf16.msra.mxu2 %v10541_v41  ;;  %v10325_v49 = vor.u32 %v13547_v46, %v10324_v45  ;;  %v13595_v51 = vld [vmem:[#allocation3 + $0x434] sm:$0xf0]  ;;  %v10708_v54 = vld [vmem:[#allocation3 + $0x5a0] sm:$0xf]  ;;  %v13493_v59 = vld [vmem:[#allocation3 + $0x104] sm:$0xf0] }
 0x1fc   : > { %3658 = vmatpush.bf16.msra.mxu3 %v10733_v43  ;;  %v10517_v55 = vor.u32 %v13595_v51, %v10516_v50  ;;  %v13643_v57 = vld [vmem:[#allocation3 + $0x5b4] sm:$0xf0]  ;;  %v10300_v63 = vld [vmem:[#allocation3 + $0x270] sm:$0xf]  ;;  %v13541_v4 = vld [vmem:[#allocation3 + $0x284] sm:$0xf0]  ;;  %v10109_v6 = vor.u32 %v13493_v59, %v10108_v58 }
 0x1fd   : > { %v10709_v62 = vor.u32 %v13643_v57, %v10708_v54  ;;  %v10492_v5 = vld [vmem:[#allocation3 + $0x3f0] sm:$0xf]  ;;  %3617 = vmatpush.bf16.msra.mxu0 %v10133_v47  ;;  %v13589_v7 = vld [vmem:[#allocation3 + $0x404] sm:$0xf0]  ;;  %v10301_v11 = vor.u32 %v13541_v4, %v10300_v63  ;;  %v10084_v13 = vld [vmem:[#allocation3 + $0xc0] sm:$0xf] }
 0x1fe   : > { %v10684_v8 = vld [vmem:[#allocation3 + $0x570] sm:$0xf]  ;;  %v13637_v9 = vld [vmem:[#allocation3 + $0x584] sm:$0xf0]  ;;  %3631 = vmatpush.bf16.msra.mxu1 %v10325_v49  ;;  %v10493_v12 = vor.u32 %v13589_v7, %v10492_v5  ;;  %v13487_v14 = vld [vmem:[#allocation3 + $0xd4] sm:$0xf0] }
 0x1ff   : > { %3645 = vmatpush.bf16.msra.mxu2 %v10517_v55  ;;  %v10276_v15 = vld [vmem:[#allocation3 + $0x240] sm:$0xf]  ;;  %v10685_v16 = vor.u32 %v13637_v9, %v10684_v8  ;;  %v13535_v17 = vld [vmem:[#allocation3 + $0x254] sm:$0xf0]  ;;  %v10085_v21 = vor.u32 %v13487_v14, %v10084_v13  ;;  %v10060_v3 = vld [vmem:[#allocation3 + $0x90] sm:$0xf] }
 0x200   : > { %3659 = vmatpush.bf16.msra.mxu3 %v10709_v62  ;;  %v10468_v10 = vld [vmem:[#allocation3 + $0x3c0] sm:$0xf]  ;;  %v13583_v18 = vld [vmem:[#allocation3 + $0x3d4] sm:$0xf0]  ;;  %v10277_v22 = vor.u32 %v13535_v17, %v10276_v15  ;;  %v13481_v24 = vld [vmem:[#allocation3 + $0xa4] sm:$0xf0] }
 0x201   : > { %v10660_v20 = vld [vmem:[#allocation3 + $0x540] sm:$0xf]  ;;  %v13631_v26 = vld [vmem:[#allocation3 + $0x554] sm:$0xf0]  ;;  %3618 = vmatpush.bf16.msra.mxu0 %v10109_v6  ;;  %v10469_v23 = vor.u32 %v13583_v18, %v10468_v10  ;;  %v10252_v25 = vld [vmem:[#allocation3 + $0x210] sm:$0xf]  ;;  %v10061_v36 = vor.u32 %v13481_v24, %v10060_v3 }
 0x202   : > { %3632 = vmatpush.bf16.msra.mxu1 %v10301_v11  ;;  %v10661_v19 = vor.u32 %v13631_v26, %v10660_v20  ;;  %v13529_v27 = vld [vmem:[#allocation3 + $0x224] sm:$0xf0]  ;;  %v10444_v28 = vld [vmem:[#allocation3 + $0x390] sm:$0xf]  ;;  %v10036_v39 = vld [vmem:[#allocation3 + $0x60] sm:$0xf] }
 0x203   : > { %3646 = vmatpush.bf16.msra.mxu2 %v10493_v12  ;;  %v13577_v29 = vld [vmem:[#allocation3 + $0x3a4] sm:$0xf0]  ;;  %v10636_v30 = vld [vmem:[#allocation3 + $0x510] sm:$0xf]  ;;  %v10253_v37 = vor.u32 %v13529_v27, %v10252_v25  ;;  %v13475_v48 = vld [vmem:[#allocation3 + $0x74] sm:$0xf0] }
 0x204   : > { %3660 = vmatpush.bf16.msra.mxu3 %v10685_v16  ;;  %v13625_v35 = vld [vmem:[#allocation3 + $0x524] sm:$0xf0]  ;;  %v10445_v38 = vor.u32 %v13577_v29, %v10444_v28  ;;  %v10228_v40 = vld [vmem:[#allocation3 + $0x1e0] sm:$0xf]  ;;  %v13523_v41 = vld [vmem:[#allocation3 + $0x1f4] sm:$0xf0]  ;;  %v10037_v44 = vor.u32 %v13475_v48, %v10036_v39 }
 0x205   : > { %3619 = vmatpush.bf16.msra.mxu0 %v10085_v21  ;;  %v10637_v53 = vor.u32 %v13625_v35, %v10636_v30  ;;  %v10420_v52 = vld [vmem:[#allocation3 + $0x360] sm:$0xf]  ;;  %v13571_v42 = vld [vmem:[#allocation3 + $0x374] sm:$0xf0]  ;;  %v10229_v45 = vor.u32 %v13523_v41, %v10228_v40  ;;  %v10012_v47 = vld [vmem:[#allocation3 + $0x30] sm:$0xf] }
 0x206   : > { %3633 = vmatpush.bf16.msra.mxu1 %v10277_v22  ;;  %v10612_v56 = vld [vmem:[#allocation3 + $0x4e0] sm:$0xf]  ;;  %v13619_v43 = vld [vmem:[#allocation3 + $0x4f4] sm:$0xf0]  ;;  %v10421_v46 = vor.u32 %v13571_v42, %v10420_v52  ;;  %v13469_v49 = vld [vmem:[#allocation3 + $0x44] sm:$0xf0] }
 0x207   : > { %3647 = vmatpush.bf16.msra.mxu2 %v10469_v23  ;;  %v10204_v50 = vld [vmem:[#allocation3 + $0x1b0] sm:$0xf]  ;;  %v10613_v51 = vor.u32 %v13619_v43, %v10612_v56  ;;  %v13517_v54 = vld [vmem:[#allocation3 + $0x1c4] sm:$0xf0]  ;;  %v10013_v62 = vor.u32 %v13469_v49, %v10012_v47  ;;  %v9988_v63 = vld [vmem:[#allocation3] sm:$0xf] }
 0x208   : > { %3661 = vmatpush.bf16.msra.mxu3 %v10661_v19  ;;  %v10396_v55 = vld [vmem:[#allocation3 + $0x330] sm:$0xf]  ;;  %v13565_v57 = vld [vmem:[#allocation3 + $0x344] sm:$0xf0]  ;;  %v13463_v4 = vld [vmem:[#allocation3 + $0x14] sm:$0xf0]  ;;  %v10205_v5 = vor.u32 %v13517_v54, %v10204_v50 }
 0x209   : > { %3620 = vmatpush.bf16.msra.mxu0 %v10061_v36  ;;  %v10588_v58 = vld [vmem:[#allocation3 + $0x4b0] sm:$0xf]  ;;  %v13613_v59 = vld [vmem:[#allocation3 + $0x4c4] sm:$0xf0]  ;;  %v10397_v6 = vor.u32 %v13565_v57, %v10396_v55  ;;  %v10180_v7 = vld [vmem:[#allocation3 + $0x180] sm:$0xf]  ;;  %v9989_v10 = vor.u32 %v13463_v4, %v9988_v63 }
 0x20a   : > { %3634 = vmatpush.bf16.msra.mxu1 %v10253_v37  ;;  %v13511_v8 = vld [vmem:[#allocation3 + $0x194] sm:$0xf0]  ;;  %v10372_v9 = vld [vmem:[#allocation3 + $0x300] sm:$0xf]  ;;  %v10589_v11 = vor.u32 %v13613_v59, %v10588_v58  ;;  %v13502_v15 = vld [vmem:[#allocation3 + $0x154] sm:$0xf] }
 0x20b   : > { %3648 = vmatpush.bf16.msra.mxu2 %v10445_v38  ;;  %v13559_v12 = vld [vmem:[#allocation3 + $0x314] sm:$0xf0]  ;;  %v10564_v13 = vld [vmem:[#allocation3 + $0x480] sm:$0xf]  ;;  %v10158_v16 = vld [vmem:[#allocation3 + $0x168] sm:$0xf0]  ;;  %v10181_v21 = vor.u32 %v13511_v8, %v10180_v7 }
 0x20c   : > { %3662 = vmatpush.bf16.msra.mxu3 %v10637_v53  ;;  %v13607_v14 = vld [vmem:[#allocation3 + $0x494] sm:$0xf0]  ;;  %v13550_v17 = vld [vmem:[#allocation3 + $0x2d4] sm:$0xf]  ;;  %v10350_v18 = vld [vmem:[#allocation3 + $0x2e8] sm:$0xf0]  ;;  %v10373_v22 = vor.u32 %v13559_v12, %v10372_v9  ;;  %v10161_v25 = vor.u32 %v13502_v15, %v10158_v16 }
 0x20d   : > { %3621 = vmatpush.bf16.msra.mxu0 %v10037_v44  ;;  %v13598_v20 = vld [vmem:[#allocation3 + $0x454] sm:$0xf]  ;;  %v10542_v26 = vld [vmem:[#allocation3 + $0x468] sm:$0xf0]  ;;  %v10565_v24 = vor.u32 %v13607_v14, %v10564_v13  ;;  %v10353_v19 = vor.u32 %v13550_v17, %v10350_v18  ;;  %v13496_v28 = vld [vmem:[#allocation3 + $0x124] sm:$0xf] }
 0x20e   : > { %3635 = vmatpush.bf16.msra.mxu1 %v10229_v45  ;;  %v13646_v23 = vld [vmem:[#allocation3 + $0x5d4] sm:$0xf]  ;;  %v10734_v3 = vld [vmem:[#allocation3 + $0x5e8] sm:$0xf0]  ;;  %v10545_v27 = vor.u32 %v13598_v20, %v10542_v26  ;;  %v10134_v29 = vld [vmem:[#allocation3 + $0x138] sm:$0xf0] }
 0x20f   : > { %3649 = vmatpush.bf16.msra.mxu2 %v10421_v46  ;;  %v13544_v30 = vld [vmem:[#allocation3 + $0x2a4] sm:$0xf]  ;;  %v10737_v35 = vor.u32 %v13646_v23, %v10734_v3  ;;  %v10326_v36 = vld [vmem:[#allocation3 + $0x2b8] sm:$0xf0]  ;;  %v10137_v40 = vor.u32 %v13496_v28, %v10134_v29  ;;  %v13490_v52 = vld [vmem:[#allocation3 + $0xf4] sm:$0xf] }
 0x210   : > { %3663 = vmatpush.bf16.msra.mxu3 %v10613_v51  ;;  %v13592_v37 = vld [vmem:[#allocation3 + $0x424] sm:$0xf]  ;;  %v10518_v38 = vld [vmem:[#allocation3 + $0x438] sm:$0xf0]  ;;  %v10329_v53 = vor.u32 %v13544_v30, %v10326_v36  ;;  %v10110_v42 = vld [vmem:[#allocation3 + $0x108] sm:$0xf0] }
 0x211   : > { %3622 = vmatpush.bf16.msra.mxu0 %v10013_v62  ;;  %v13640_v39 = vld [vmem:[#allocation3 + $0x5a4] sm:$0xf]  ;;  %v10710_v48 = vld [vmem:[#allocation3 + $0x5b8] sm:$0xf0]  ;;  %v10521_v41 = vor.u32 %v13592_v37, %v10518_v38  ;;  %v13538_v56 = vld [vmem:[#allocation3 + $0x274] sm:$0xf]  ;;  %v10113_v50 = vor.u32 %v13490_v52, %v10110_v42 }
 0x212   : > { %3636 = vmatpush.bf16.msra.mxu1 %v10205_v5  ;;  %v10713_v43 = vor.u32 %v13640_v39, %v10710_v48  ;;  %v10302_v44 = vld [vmem:[#allocation3 + $0x288] sm:$0xf0]  ;;  %v13586_v45 = vld [vmem:[#allocation3 + $0x3f4] sm:$0xf]  ;;  %v13484_v55 = vld [vmem:[#allocation3 + $0xc4] sm:$0xf] }
 0x213   : > { %3650 = vmatpush.bf16.msra.mxu2 %v10397_v6  ;;  %v10494_v46 = vld [vmem:[#allocation3 + $0x408] sm:$0xf0]  ;;  %v13634_v47 = vld [vmem:[#allocation3 + $0x574] sm:$0xf]  ;;  %v10305_v51 = vor.u32 %v13538_v56, %v10302_v44  ;;  %v10086_v57 = vld [vmem:[#allocation3 + $0xd8] sm:$0xf0] }
 0x214   : > { %3664 = vmatpush.bf16.msra.mxu3 %v10589_v11  ;;  %v10686_v49 = vld [vmem:[#allocation3 + $0x588] sm:$0xf0]  ;;  %v10497_v54 = vor.u32 %v13586_v45, %v10494_v46  ;;  %v13532_v58 = vld [vmem:[#allocation3 + $0x244] sm:$0xf]  ;;  %v10278_v62 = vld [vmem:[#allocation3 + $0x258] sm:$0xf0]  ;;  %v10089_v7 = vor.u32 %v13484_v55, %v10086_v57 }
 0x215   : > { %3623 = vmatpush.bf16.msra.mxu0 %v9989_v10  ;;  %v10689_v59 = vor.u32 %v13634_v47, %v10686_v49  ;;  %v13580_v63 = vld [vmem:[#allocation3 + $0x3c4] sm:$0xf]  ;;  %v10470_v4 = vld [vmem:[#allocation3 + $0x3d8] sm:$0xf0]  ;;  %v10281_v8 = vor.u32 %v13532_v58, %v10278_v62  ;;  %v13478_v11 = vld [vmem:[#allocation3 + $0x94] sm:$0xf] }
 0x216   : > { %3637 = vmatpush.bf16.msra.mxu1 %v10181_v21  ;;  %v13628_v5 = vld [vmem:[#allocation3 + $0x544] sm:$0xf]  ;;  %v10662_v6 = vld [vmem:[#allocation3 + $0x558] sm:$0xf0]  ;;  %v10473_v9 = vor.u32 %v13580_v63, %v10470_v4  ;;  %v10062_v12 = vld [vmem:[#allocation3 + $0xa8] sm:$0xf0] }
 0x217   : > { %3651 = vmatpush.bf16.msra.mxu2 %v10373_v22  ;;  %v13526_v13 = vld [vmem:[#allocation3 + $0x214] sm:$0xf]  ;;  %v10665_v14 = vor.u32 %v13628_v5, %v10662_v6  ;;  %v10254_v15 = vld [vmem:[#allocation3 + $0x228] sm:$0xf0]  ;;  %v10065_v20 = vor.u32 %v13478_v11, %v10062_v12  ;;  %v13472_v22 = vld [vmem:[#allocation3 + $0x64] sm:$0xf] }
 0x218   : > { %3665 = vmatpush.bf16.msra.mxu3 %v10565_v24  ;;  %3624 = vmatmul.bf16.vlgmr.msra.gmra.mxu0 %v15296_v31  ;;  %v13574_v16 = vld [vmem:[#allocation3 + $0x394] sm:$0xf]  ;;  %v10446_v17 = vld [vmem:[#allocation3 + $0x3a8] sm:$0xf0]  ;;  %v10257_v26 = vor.u32 %v13526_v13, %v10254_v15  ;;  %v10038_v23 = vld [vmem:[#allocation3 + $0x78] sm:$0xf0] }
 0x219   : > { %3672 = vmatpush.bf16.msrb.mxu0 %v10161_v25  ;;  %3638 = vmatmul.bf16.vlgmr.msra.gmra.mxu1 %v15298_v32  ;;  %v13622_v10 = vld [vmem:[#allocation3 + $0x514] sm:$0xf]  ;;  %v10638_v18 = vld [vmem:[#allocation3 + $0x528] sm:$0xf0]  ;;  %v10449_v21 = vor.u32 %v13574_v16, %v10446_v17  ;;  %v13520_v3 = vld [vmem:[#allocation3 + $0x1e4] sm:$0xf]  ;;  %v10041_v30 = vor.u32 %v13472_v22, %v10038_v23 }
 0x21a   : > { %3686 = vmatpush.bf16.msrb.mxu1 %v10353_v19  ;;  %3652 = vmatmul.bf16.vlgmr.msra.gmra.mxu2 %v15300_v33  ;;  %v10641_v24 = vor.u32 %v13622_v10, %v10638_v18  ;;  %v10230_v25 = vld [vmem:[#allocation3 + $0x1f8] sm:$0xf0]  ;;  %v13568_v19 = vld [vmem:[#allocation3 + $0x364] sm:$0xf]  ;;  %v13466_v37 = vld [vmem:[#allocation3 + $0x34] sm:$0xf] }
 0x21b   : > { %3700 = vmatpush.bf16.msrb.mxu2 %v10545_v27  ;;  %3666 = vmatmul.bf16.vlgmr.msra.gmra.mxu3 %v15302_v34  ;;  %v10422_v27 = vld [vmem:[#allocation3 + $0x378] sm:$0xf0]  ;;  %v13616_v28 = vld [vmem:[#allocation3 + $0x4e4] sm:$0xf]  ;;  %v10014_v38 = vld [vmem:[#allocation3 + $0x48] sm:$0xf0] }
 0x21c   : > { %3714 = vmatpush.bf16.msrb.mxu3 %v10737_v35  ;;  %v10614_v29 = vld [vmem:[#allocation3 + $0x4f8] sm:$0xf0]  ;;  %v10233_v35 = vor.u32 %v13520_v3, %v10230_v25  ;;  %v10425_v36 = vor.u32 %v13568_v19, %v10422_v27  ;;  %v13514_v39 = vld [vmem:[#allocation3 + $0x1b4] sm:$0xf]  ;;  %v10590_v42 = vld [vmem:[#allocation3 + $0x4c8] sm:$0xf0]  ;;  %v10017_v56 = vor.u32 %v13466_v37, %v10014_v38 }
 0x21d   : > { %3673 = vmatpush.bf16.msrb.mxu0 %v10137_v40  ;;  %v10617_v48 = vor.u32 %v13616_v28, %v10614_v29  ;;  %v10206_v40 = vld [vmem:[#allocation3 + $0x1c8] sm:$0xf0]  ;;  %v13610_v52 = vld [vmem:[#allocation3 + $0x4b4] sm:$0xf]  ;;  %v9990_v44 = vld [vmem:[#allocation3 + $0x18] sm:$0xf0] }
 0x21e   : > { %3687 = vmatpush.bf16.msrb.mxu1 %v10329_v53  ;;  %v13562_v53 = vld [vmem:[#allocation3 + $0x334] sm:$0xf]  ;;  %v10209_v45 = vor.u32 %v13514_v39, %v10206_v40  ;;  %v13508_v47 = vld [vmem:[#allocation3 + $0x184] sm:$0xf]  ;;  %v10182_v49 = vld [vmem:[#allocation3 + $0x198] sm:$0xf0] }
 0x21f   : > { %3701 = vmatpush.bf16.msrb.mxu2 %v10521_v41  ;;  %v10398_v41 = vld [vmem:[#allocation3 + $0x348] sm:$0xf0]  ;;  %v13604_v55 = vld [vmem:[#allocation3 + $0x484] sm:$0xf]  ;;  %v10566_v57 = vld [vmem:[#allocation3 + $0x498] sm:$0xf0] }
 0x220   : > { %3715 = vmatpush.bf16.msrb.mxu3 %v10713_v43  ;;  %v13460_v43 = vld [vmem:[#allocation3 + $0x4] sm:$0xf]  ;;  %v10401_v46 = vor.u32 %v13562_v53, %v10398_v41  ;;  %v10164_v58 = vld [vmem:[#allocation3 + $0x158] sm:$0xf]  ;;  %v13554_v4 = vld [vmem:[#allocation3 + $0x2ec] sm:$0xf0]  ;;  %v10569_v12 = vor.u32 %v13604_v55, %v10566_v57 }
 0x221   : > { %3674 = vmatpush.bf16.msrb.mxu0 %v10113_v50  ;;  %v13556_v50 = vld [vmem:[#allocation3 + $0x304] sm:$0xf]  ;;  %v10356_v62 = vld [vmem:[#allocation3 + $0x2d8] sm:$0xf]  ;;  %v9993_v63 = vor.u32 %v13460_v43, %v9990_v44  ;;  %v13602_v6 = vld [vmem:[#allocation3 + $0x46c] sm:$0xf0] }
 0x222   : > { %3688 = vmatpush.bf16.msrb.mxu1 %v10305_v51  ;;  %v10593_v51 = vor.u32 %v13610_v52, %v10590_v42  ;;  %v10548_v5 = vld [vmem:[#allocation3 + $0x458] sm:$0xf]  ;;  %v13650_v11 = vld [vmem:[#allocation3 + $0x5ec] sm:$0xf0]  ;;  %v10140_v16 = vld [vmem:[#allocation3 + $0x128] sm:$0xf] }
 0x223   : > { %3702 = vmatpush.bf16.msrb.mxu2 %v10497_v54  ;;  %v10374_v54 = vld [vmem:[#allocation3 + $0x318] sm:$0xf0]  ;;  %v10549_v15 = vor.u32 %v13602_v6, %v10548_v5  ;;  %v13500_v17 = vld [vmem:[#allocation3 + $0x13c] sm:$0xf0]  ;;  %v10332_v10 = vld [vmem:[#allocation3 + $0x2a8] sm:$0xf] }
 0x224   : > { %3716 = vmatpush.bf16.msrb.mxu3 %v10689_v59  ;;  %v13506_v59 = vld [vmem:[#allocation3 + $0x16c] sm:$0xf0]  ;;  %v10716_v22 = vld [vmem:[#allocation3 + $0x5a8] sm:$0xf]  ;;  %v13644_v23 = vld [vmem:[#allocation3 + $0x5bc] sm:$0xf0]  ;;  %v10141_v3 = vor.u32 %v13500_v17, %v10140_v16 }
 0x225   : > { %3675 = vmatpush.bf16.msrb.mxu0 %v10089_v7  ;;  %v10185_v7 = vor.u32 %v13508_v47, %v10182_v49  ;;  %v10165_v13 = vor.u32 %v13506_v59, %v10164_v58  ;;  %v10116_v19 = vld [vmem:[#allocation3 + $0xf8] sm:$0xf]  ;;  %v13494_v27 = vld [vmem:[#allocation3 + $0x10c] sm:$0xf0]  ;;  %v10717_v29 = vor.u32 %v13644_v23, %v10716_v22  ;;  %v10092_v53 = vld [vmem:[#allocation3 + $0xc8] sm:$0xf] }
 0x226   : > { %3689 = vmatpush.bf16.msrb.mxu1 %v10281_v8  ;;  %v10377_v8 = vor.u32 %v13556_v50, %v10374_v54  ;;  %v10308_v28 = vld [vmem:[#allocation3 + $0x278] sm:$0xf]  ;;  %v13638_v38 = vld [vmem:[#allocation3 + $0x58c] sm:$0xf0]  ;;  %v10117_v39 = vor.u32 %v13494_v27, %v10116_v19  ;;  %v13488_v41 = vld [vmem:[#allocation3 + $0xdc] sm:$0xf0] }
 0x227   : > { %3703 = vmatpush.bf16.msrb.mxu2 %v10473_v9  ;;  %v10740_v9 = vld [vmem:[#allocation3 + $0x5d8] sm:$0xf]  ;;  %v10284_v52 = vld [vmem:[#allocation3 + $0x248] sm:$0xf]  ;;  %v13584_v44 = vld [vmem:[#allocation3 + $0x3dc] sm:$0xf0]  ;;  %v10093_v47 = vor.u32 %v13488_v41, %v10092_v53 }
 0x228   : > { %3717 = vmatpush.bf16.msrb.mxu3 %v10665_v14  ;;  %v10357_v14 = vor.u32 %v13554_v4, %v10356_v62  ;;  %v10741_v18 = vor.u32 %v13650_v11, %v10740_v9  ;;  %v10692_v37 = vld [vmem:[#allocation3 + $0x578] sm:$0xf]  ;;  %v10476_v43 = vld [vmem:[#allocation3 + $0x3c8] sm:$0xf]  ;;  %v13482_v54 = vld [vmem:[#allocation3 + $0xac] sm:$0xf0] }
 0x229   : > { %3676 = vmatpush.bf16.msrb.mxu0 %v10065_v20  ;;  %v13548_v20 = vld [vmem:[#allocation3 + $0x2bc] sm:$0xf0]  ;;  %v10693_v42 = vor.u32 %v13638_v38, %v10692_v37  ;;  %v10477_v50 = vor.u32 %v13584_v44, %v10476_v43  ;;  %v10260_v55 = vld [vmem:[#allocation3 + $0x218] sm:$0xf]  ;;  %v13530_v58 = vld [vmem:[#allocation3 + $0x22c] sm:$0xf0] }
 0x22a   : > { %3690 = vmatpush.bf16.msrb.mxu1 %v10257_v26  ;;  %v10524_v26 = vld [vmem:[#allocation3 + $0x428] sm:$0xf]  ;;  %v10452_v59 = vld [vmem:[#allocation3 + $0x398] sm:$0xf]  ;;  %v13578_v62 = vld [vmem:[#allocation3 + $0x3ac] sm:$0xf0]  ;;  %v10261_v6 = vor.u32 %v13530_v58, %v10260_v55 }
 0x22b   : > { %3704 = vmatpush.bf16.msrb.mxu2 %v10449_v21  ;;  %v13596_v21 = vld [vmem:[#allocation3 + $0x43c] sm:$0xf0]  ;;  %v13626_v4 = vld [vmem:[#allocation3 + $0x52c] sm:$0xf0]  ;;  %v10236_v11 = vld [vmem:[#allocation3 + $0x1e8] sm:$0xf] }
 0x22c   : > { %3718 = vmatpush.bf16.msrb.mxu3 %v10641_v24  ;;  %v10333_v24 = vor.u32 %v13548_v20, %v10332_v10  ;;  %v10525_v25 = vor.u32 %v13596_v21, %v10524_v26  ;;  %v13476_v9 = vld [vmem:[#allocation3 + $0x7c] sm:$0xf0]  ;;  %v10620_v16 = vld [vmem:[#allocation3 + $0x4e8] sm:$0xf]  ;;  %v10020_v26 = vld [vmem:[#allocation3 + $0x38] sm:$0xf] }
 0x22d   : > { %3677 = vmatpush.bf16.msrb.mxu0 %v10041_v30  ;;  %v13542_v30 = vld [vmem:[#allocation3 + $0x28c] sm:$0xf0]  ;;  %v13620_v17 = vld [vmem:[#allocation3 + $0x4fc] sm:$0xf0]  ;;  %v10212_v22 = vld [vmem:[#allocation3 + $0x1b8] sm:$0xf] }
 0x22e   : > { %3691 = vmatpush.bf16.msrb.mxu1 %v10233_v35  ;;  %v10500_v35 = vld [vmem:[#allocation3 + $0x3f8] sm:$0xf]  ;;  %v13470_v21 = vld [vmem:[#allocation3 + $0x4c] sm:$0xf0]  ;;  %v10621_v23 = vor.u32 %v13620_v17, %v10620_v16  ;;  %v10188_v37 = vld [vmem:[#allocation3 + $0x188] sm:$0xf] }
 0x22f   : > { %3705 = vmatpush.bf16.msrb.mxu2 %v10425_v36  ;;  %v13590_v36 = vld [vmem:[#allocation3 + $0x40c] sm:$0xf0]  ;;  %v10596_v19 = vld [vmem:[#allocation3 + $0x4b8] sm:$0xf]  ;;  %v13512_v38 = vld [vmem:[#allocation3 + $0x19c] sm:$0xf0] }
 0x230   : > { %3719 = vmatpush.bf16.msrb.mxu3 %v10617_v48  ;;  %v10309_v48 = vor.u32 %v13542_v30, %v10308_v28  ;;  %v10501_v40 = vor.u32 %v13590_v36, %v10500_v35  ;;  %v13614_v27 = vld [vmem:[#allocation3 + $0x4cc] sm:$0xf0]  ;;  %v10021_v28 = vor.u32 %v13470_v21, %v10020_v26  ;;  %v13464_v30 = vld [vmem:[#allocation3 + $0x1c] sm:$0xf0]  ;;  %v10572_v53 = vld [vmem:[#allocation3 + $0x488] sm:$0xf] }
 0x231   : > { %3678 = vmatpush.bf16.msrb.mxu0 %v10017_v56  ;;  %v13536_v56 = vld [vmem:[#allocation3 + $0x25c] sm:$0xf0]  ;;  %v10358_v44 = vld [vmem:[#allocation3 + $0x2f0] sm:$0xf0]  ;;  %v13539_v16 = vld [vmem:[#allocation3 + $0x27c] sm:$0xf] }
 0x232   : > { %3692 = vmatpush.bf16.msrb.mxu1 %v10209_v45  ;;  %v10668_v45 = vld [vmem:[#allocation3 + $0x548] sm:$0xf]  ;;  %v10285_v49 = vor.u32 %v13536_v56, %v10284_v52  ;;  %v13608_v41 = vld [vmem:[#allocation3 + $0x49c] sm:$0xf0]  ;;  %v13503_v52 = vld [vmem:[#allocation3 + $0x15c] sm:$0xf] }
 0x233   : > { %3706 = vmatpush.bf16.msrb.mxu2 %v10401_v46  ;;  %v13632_v46 = vld [vmem:[#allocation3 + $0x55c] sm:$0xf0]  ;;  %v13551_v56 = vld [vmem:[#allocation3 + $0x2dc] sm:$0xf]  ;;  %v10694_v21 = vld [vmem:[#allocation3 + $0x590] sm:$0xf0] }
 0x234   : > { %3720 = vmatpush.bf16.msrb.mxu3 %v10593_v51  ;;  %v10068_v51 = vld [vmem:[#allocation3 + $0x98] sm:$0xf]  ;;  %v10669_v57 = vor.u32 %v13632_v46, %v10668_v45  ;;  %v13599_v45 = vld [vmem:[#allocation3 + $0x45c] sm:$0xf]  ;;  %v10550_v46 = vld [vmem:[#allocation3 + $0x470] sm:$0xf0] }
 0x235   : > { %3679 = vmatpush.bf16.msrb.mxu0 %v9993_v63  ;;  %v10644_v63 = vld [vmem:[#allocation3 + $0x518] sm:$0xf]  ;;  %v10069_v5 = vor.u32 %v13482_v54, %v10068_v51  ;;  %v10742_v51 = vld [vmem:[#allocation3 + $0x5f0] sm:$0xf0]  ;;  %v10573_v54 = vor.u32 %v13608_v41, %v10572_v53  ;;  %v10553_v58 = vor.u32 %v13599_v45, %v10550_v46  ;;  %v13635_v26 = vld [vmem:[#allocation3 + $0x57c] sm:$0xf] }
 0x236   : > { %3693 = vmatpush.bf16.msrb.mxu1 %v10185_v7  ;;  %v10453_v7 = vor.u32 %v13578_v62, %v10452_v59  ;;  %v13497_v59 = vld [vmem:[#allocation3 + $0x12c] sm:$0xf]  ;;  %v10142_v62 = vld [vmem:[#allocation3 + $0x140] sm:$0xf0]  ;;  %v13527_v53 = vld [vmem:[#allocation3 + $0x21c] sm:$0xf] }
 0x237   : > { %3707 = vmatpush.bf16.msrb.mxu2 %v10377_v8  ;;  %v10044_v8 = vld [vmem:[#allocation3 + $0x68] sm:$0xf] }
 0x238   : > { %3721 = vmatpush.bf16.msrb.mxu3 %v10569_v12  ;;  %3680 = vmatmul.bf16.vlgmr.msrb.gmra.mxu0 %v15296_v31  ;;  %v10645_v12 = vor.u32 %v13626_v4, %v10644_v63  ;;  %v10045_v10 = vor.u32 %v13476_v9, %v10044_v8  ;;  %v13545_v63 = vld [vmem:[#allocation3 + $0x2ac] sm:$0xf]  ;;  %v10718_v9 = vld [vmem:[#allocation3 + $0x5c0] sm:$0xf0] }
 0x239   : > { %3728 = vmatpush.bf16.msra.mxu0 %v10165_v13  ;;  %3694 = vmatmul.bf16.vlgmr.msrb.gmra.mxu1 %v15298_v32  ;;  %v13524_v13 = vld [vmem:[#allocation3 + $0x1fc] sm:$0xf0]  ;;  %v13641_v8 = vld [vmem:[#allocation3 + $0x5ac] sm:$0xf] }
 0x23a   : > { %3742 = vmatpush.bf16.msra.mxu1 %v10357_v14  ;;  %3708 = vmatmul.bf16.vlgmr.msrb.gmra.mxu2 %v15300_v33  ;;  %v10428_v14 = vld [vmem:[#allocation3 + $0x368] sm:$0xf]  ;;  %v10721_v17 = vor.u32 %v13641_v8, %v10718_v9  ;;  %v13515_v8 = vld [vmem:[#allocation3 + $0x1bc] sm:$0xf] }
 0x23b   : > { %3756 = vmatpush.bf16.msra.mxu2 %v10549_v15  ;;  %3722 = vmatmul.bf16.vlgmr.msrb.gmra.mxu3 %v15302_v34  ;;  %v13572_v15 = vld [vmem:[#allocation3 + $0x37c] sm:$0xf0] }
 0x23c   : > { %3770 = vmatpush.bf16.msra.mxu3 %v10741_v18  ;;  %v10237_v18 = vor.u32 %v13524_v13, %v10236_v11  ;;  %v10429_v20 = vor.u32 %v13572_v15, %v10428_v14  ;;  %v10145_v11 = vor.u32 %v13497_v59, %v10142_v62  ;;  %v13491_v14 = vld [vmem:[#allocation3 + $0xfc] sm:$0xf]  ;;  %v10118_v15 = vld [vmem:[#allocation3 + $0x110] sm:$0xf0]  ;;  %v13617_v59 = vld [vmem:[#allocation3 + $0x4ec] sm:$0xf] }
 0x23d   : > { %3729 = vmatpush.bf16.msra.mxu0 %v10141_v3  ;;  %v13518_v3 = vld [vmem:[#allocation3 + $0x1cc] sm:$0xf0]  ;;  %v10622_v62 = vld [vmem:[#allocation3 + $0x500] sm:$0xf0] }
 0x23e   : > { %3743 = vmatpush.bf16.msra.mxu1 %v10333_v24  ;;  %v10404_v24 = vld [vmem:[#allocation3 + $0x338] sm:$0xf]  ;;  %v10213_v35 = vor.u32 %v13518_v3, %v10212_v22  ;;  %v10121_v22 = vor.u32 %v13491_v14, %v10118_v15  ;;  %v10625_v9 = vor.u32 %v13617_v59, %v10622_v62  ;;  %v13611_v14 = vld [vmem:[#allocation3 + $0x4bc] sm:$0xf]  ;;  %v10598_v15 = vld [vmem:[#allocation3 + $0x4d0] sm:$0xf0] }
 0x23f   : > { %3757 = vmatpush.bf16.msra.mxu2 %v10525_v25  ;;  %v13566_v25 = vld [vmem:[#allocation3 + $0x34c] sm:$0xf0]  ;;  %v10316_v59 = vld [vmem:[#allocation3 + $0x280] sm:$0xf] }
 0x240   : > { %3771 = vmatpush.bf16.msra.mxu3 %v10717_v29  ;;  %v9996_v29 = vld [vmem:[#allocation3 + $0x8] sm:$0xf]  ;;  %v10405_v36 = vor.u32 %v13566_v25, %v10404_v24  ;;  %v13485_v24 = vld [vmem:[#allocation3 + $0xcc] sm:$0xf]  ;;  %v10094_v25 = vld [vmem:[#allocation3 + $0xe0] sm:$0xf0] }
 0x241   : > { %3730 = vmatpush.bf16.msra.mxu0 %v10117_v39  ;;  %v10380_v39 = vld [vmem:[#allocation3 + $0x308] sm:$0xf]  ;;  %v9997_v43 = vor.u32 %v13464_v30, %v9996_v29  ;;  %v13581_v29 = vld [vmem:[#allocation3 + $0x3cc] sm:$0xf]  ;;  %v10478_v30 = vld [vmem:[#allocation3 + $0x3e0] sm:$0xf0] }
 0x242   : > { %3744 = vmatpush.bf16.msra.mxu1 %v10309_v48  ;;  %v10597_v48 = vor.u32 %v13614_v27, %v10596_v19  ;;  %v13533_v19 = vld [vmem:[#allocation3 + $0x24c] sm:$0xf]  ;;  %v10697_v27 = vor.u32 %v13635_v26, %v10694_v21  ;;  %v10190_v21 = vld [vmem:[#allocation3 + $0x1a0] sm:$0xf0] }
 0x243   : > { %3758 = vmatpush.bf16.msra.mxu2 %v10501_v40  ;;  %v13560_v40 = vld [vmem:[#allocation3 + $0x31c] sm:$0xf0]  ;;  %v13509_v26 = vld [vmem:[#allocation3 + $0x18c] sm:$0xf] }
 0x244   : > { %3772 = vmatpush.bf16.msra.mxu3 %v10693_v42  ;;  %v10166_v42 = vld [vmem:[#allocation3 + $0x170] sm:$0xf0] }
 0x245   : > { %3731 = vmatpush.bf16.msra.mxu0 %v10093_v47  ;;  %v10189_v47 = vor.u32 %v13512_v38, %v10188_v37  ;;  %v10169_v55 = vor.u32 %v13503_v52, %v10166_v42  ;;  %v10097_v37 = vor.u32 %v13485_v24, %v10094_v25  ;;  %v10262_v52 = vld [vmem:[#allocation3 + $0x230] sm:$0xf0]  ;;  %v13575_v42 = vld [vmem:[#allocation3 + $0x39c] sm:$0xf]  ;;  %v13605_v24 = vld [vmem:[#allocation3 + $0x48c] sm:$0xf] }
 0x246   : > { %3745 = vmatpush.bf16.msra.mxu1 %v10285_v49  ;;  %v10381_v49 = vor.u32 %v13560_v40, %v10380_v39  ;;  %v10481_v39 = vor.u32 %v13581_v29, %v10478_v30  ;;  %v10070_v40 = vld [vmem:[#allocation3 + $0xb0] sm:$0xf0]  ;;  %v10265_v46 = vor.u32 %v13527_v53, %v10262_v52  ;;  %v10574_v25 = vld [vmem:[#allocation3 + $0x4a0] sm:$0xf0]  ;;  %v13555_v30 = vld [vmem:[#allocation3 + $0x2f4] sm:$0xf0] }
 0x247   : > { %3759 = vmatpush.bf16.msra.mxu2 %v10477_v50  ;;  %v13647_v50 = vld [vmem:[#allocation3 + $0x5dc] sm:$0xf] }
 0x248   : > { %3773 = vmatpush.bf16.msra.mxu3 %v10669_v57  ;;  %v10361_v57 = vor.u32 %v13551_v56, %v10358_v44  ;;  %v10745_v4 = vor.u32 %v13647_v50, %v10742_v51  ;;  %v10454_v56 = vld [vmem:[#allocation3 + $0x3b0] sm:$0xf0]  ;;  %v10046_v50 = vld [vmem:[#allocation3 + $0x80] sm:$0xf0]  ;;  %v13521_v51 = vld [vmem:[#allocation3 + $0x1ec] sm:$0xf] }
 0x249   : > { %3732 = vmatpush.bf16.msra.mxu0 %v10069_v5  ;;  %v10334_v5 = vld [vmem:[#allocation3 + $0x2c0] sm:$0xf0]  ;;  %v10646_v44 = vld [vmem:[#allocation3 + $0x530] sm:$0xf0] }
 0x24a   : > { %3746 = vmatpush.bf16.msra.mxu1 %v10261_v6  ;;  %v13593_v6 = vld [vmem:[#allocation3 + $0x42c] sm:$0xf] }
 0x24b   : > { %3760 = vmatpush.bf16.msra.mxu2 %v10453_v7  ;;  %v10526_v7 = vld [vmem:[#allocation3 + $0x440] sm:$0xf0] }
 0x24c   : > { %3774 = vmatpush.bf16.msra.mxu3 %v10645_v12  ;;  %v10337_v12 = vor.u32 %v13545_v63, %v10334_v5  ;;  %v10529_v13 = vor.u32 %v13593_v6, %v10526_v7  ;;  %v13467_v6 = vld [vmem:[#allocation3 + $0x3c] sm:$0xf]  ;;  %v10022_v7 = vld [vmem:[#allocation3 + $0x50] sm:$0xf0] }
 0x24d   : > { %3733 = vmatpush.bf16.msra.mxu0 %v10045_v10  ;;  %v10310_v10 = vld [vmem:[#allocation3 + $0x290] sm:$0xf0] }
 0x24e   : > { %3747 = vmatpush.bf16.msra.mxu1 %v10237_v18  ;;  %v13587_v18 = vld [vmem:[#allocation3 + $0x3fc] sm:$0xf] }
 0x24f   : > { %3761 = vmatpush.bf16.msra.mxu2 %v10429_v20  ;;  %v10502_v20 = vld [vmem:[#allocation3 + $0x410] sm:$0xf0] }
 0x250   : > { %3775 = vmatpush.bf16.msra.mxu3 %v10621_v23  ;;  %v10313_v23 = vor.u32 %v13539_v16, %v10310_v10  ;;  %v10505_v3 = vor.u32 %v13587_v18, %v10502_v20  ;;  %v10025_v16 = vor.u32 %v13467_v6, %v10022_v7  ;;  %v9998_v10 = vld [vmem:[#allocation3 + $0x20] sm:$0xf0]  ;;  %v10700_v6 = vld [vmem:[#allocation3 + $0x580] sm:$0xf]  ;;  %v13639_v7 = vld [vmem:[#allocation3 + $0x594] sm:$0xf0] }
 0x251   : > { %3734 = vmatpush.bf16.msra.mxu0 %v10021_v28  ;;  %v10286_v28 = vld [vmem:[#allocation3 + $0x260] sm:$0xf0] }
 0x252   : > { %3748 = vmatpush.bf16.msra.mxu1 %v10213_v35  ;;  %v13629_v35 = vld [vmem:[#allocation3 + $0x54c] sm:$0xf]  ;;  %v10289_v38 = vor.u32 %v13533_v19, %v10286_v28  ;;  %v10172_v19 = vld [vmem:[#allocation3 + $0x160] sm:$0xf] }
 0x253   : > { %3762 = vmatpush.bf16.msra.mxu2 %v10405_v36  ;;  %v10670_v36 = vld [vmem:[#allocation3 + $0x560] sm:$0xf0]  ;;  %v10364_v28 = vld [vmem:[#allocation3 + $0x2e0] sm:$0xf] }
 0x254   : > { %3776 = vmatpush.bf16.msra.mxu3 %v10597_v48  ;;  %v13479_v48 = vld [vmem:[#allocation3 + $0x9c] sm:$0xf]  ;;  %v10673_v41 = vor.u32 %v13629_v35, %v10670_v36  ;;  %v10556_v35 = vld [vmem:[#allocation3 + $0x460] sm:$0xf]  ;;  %v13603_v36 = vld [vmem:[#allocation3 + $0x474] sm:$0xf0] }
 0x255   : > { %3735 = vmatpush.bf16.msra.mxu0 %v9997_v43  ;;  %v13623_v43 = vld [vmem:[#allocation3 + $0x51c] sm:$0xf]  ;;  %v10073_v45 = vor.u32 %v13479_v48, %v10070_v40  ;;  %v13651_v48 = vld [vmem:[#allocation3 + $0x5f4] sm:$0xf0]  ;;  %v10577_v40 = vor.u32 %v13605_v24, %v10574_v25  ;;  %v10557_v52 = vor.u32 %v13603_v36, %v10556_v35  ;;  %v10268_v24 = vld [vmem:[#allocation3 + $0x220] sm:$0xf] }
 0x256   : > { %3749 = vmatpush.bf16.msra.mxu1 %v10189_v47  ;;  %v10457_v47 = vor.u32 %v13575_v42, %v10454_v56  ;;  %v10148_v42 = vld [vmem:[#allocation3 + $0x130] sm:$0xf]  ;;  %v13501_v56 = vld [vmem:[#allocation3 + $0x144] sm:$0xf0] }
 0x257   : > { %3763 = vmatpush.bf16.msra.mxu2 %v10381_v49  ;;  %v13473_v49 = vld [vmem:[#allocation3 + $0x6c] sm:$0xf] }
 0x258   : > { %3777 = vmatpush.bf16.msra.mxu3 %v10573_v54  ;;  %3736 = vmatmul.bf16.vlgmr.msra.gmra.mxu0 %v15296_v31  ;;  %v10649_v54 = vor.u32 %v13623_v43, %v10646_v44  ;;  %v10049_v63 = vor.u32 %v13473_v49, %v10046_v50  ;;  %v10340_v43 = vld [vmem:[#allocation3 + $0x2b0] sm:$0xf]  ;;  %v13645_v50 = vld [vmem:[#allocation3 + $0x5c4] sm:$0xf0] }
 0x259   : > { %3784 = vmatpush.bf16.msrb.mxu0 %v10169_v55  ;;  %3750 = vmatmul.bf16.vlgmr.msra.gmra.mxu1 %v15298_v32  ;;  %v10238_v55 = vld [vmem:[#allocation3 + $0x200] sm:$0xf0]  ;;  %v10724_v49 = vld [vmem:[#allocation3 + $0x5b0] sm:$0xf] }
 0x25a   : > { %3798 = vmatpush.bf16.msrb.mxu1 %v10361_v57  ;;  %3764 = vmatmul.bf16.vlgmr.msra.gmra.mxu2 %v15300_v33  ;;  %v13569_v57 = vld [vmem:[#allocation3 + $0x36c] sm:$0xf]  ;;  %v10725_v62 = vor.u32 %v13645_v50, %v10724_v49  ;;  %v10220_v49 = vld [vmem:[#allocation3 + $0x1c0] sm:$0xf] }
 0x25b   : > { %3812 = vmatpush.bf16.msrb.mxu2 %v10553_v58  ;;  %3778 = vmatmul.bf16.vlgmr.msra.gmra.mxu3 %v15302_v34  ;;  %v10430_v58 = vld [vmem:[#allocation3 + $0x380] sm:$0xf0] }
 0x25c   : > { %3826 = vmatpush.bf16.msrb.mxu3 %v10745_v4  ;;  %v10241_v4 = vor.u32 %v13521_v51, %v10238_v55  ;;  %v10433_v5 = vor.u32 %v13569_v57, %v10430_v58  ;;  %v10149_v51 = vor.u32 %v13501_v56, %v10148_v42  ;;  %v10124_v57 = vld [vmem:[#allocation3 + $0x100] sm:$0xf]  ;;  %v13495_v58 = vld [vmem:[#allocation3 + $0x114] sm:$0xf0]  ;;  %v10628_v42 = vld [vmem:[#allocation3 + $0x4f0] sm:$0xf] }
 0x25d   : > { %3785 = vmatpush.bf16.msrb.mxu0 %v10145_v11  ;;  %v10214_v11 = vld [vmem:[#allocation3 + $0x1d0] sm:$0xf0]  ;;  %v13621_v56 = vld [vmem:[#allocation3 + $0x504] sm:$0xf0] }
 0x25e   : > { %3799 = vmatpush.bf16.msrb.mxu1 %v10337_v12  ;;  %v13563_v12 = vld [vmem:[#allocation3 + $0x33c] sm:$0xf]  ;;  %v10217_v18 = vor.u32 %v13515_v8, %v10214_v11  ;;  %v10125_v8 = vor.u32 %v13495_v58, %v10124_v57  ;;  %v10629_v50 = vor.u32 %v13621_v56, %v10628_v42  ;;  %v10604_v57 = vld [vmem:[#allocation3 + $0x4c0] sm:$0xf]  ;;  %v13615_v58 = vld [vmem:[#allocation3 + $0x4d4] sm:$0xf0] }
 0x25f   : > { %3813 = vmatpush.bf16.msrb.mxu2 %v10529_v13  ;;  %v10406_v13 = vld [vmem:[#allocation3 + $0x350] sm:$0xf0]  ;;  %v13540_v42 = vld [vmem:[#allocation3 + $0x284] sm:$0xf] }
 0x260   : > { %3827 = vmatpush.bf16.msrb.mxu3 %v10721_v17  ;;  %v13461_v17 = vld [vmem:[#allocation3 + $0xc] sm:$0xf]  ;;  %v10409_v20 = vor.u32 %v13563_v12, %v10406_v13  ;;  %v10100_v12 = vld [vmem:[#allocation3 + $0xd0] sm:$0xf]  ;;  %v13489_v13 = vld [vmem:[#allocation3 + $0xe4] sm:$0xf0] }
 0x261   : > { %3786 = vmatpush.bf16.msrb.mxu0 %v10121_v22  ;;  %v13557_v22 = vld [vmem:[#allocation3 + $0x30c] sm:$0xf]  ;;  %v10001_v29 = vor.u32 %v13461_v17, %v9998_v10  ;;  %v10484_v17 = vld [vmem:[#allocation3 + $0x3d0] sm:$0xf]  ;;  %v13585_v10 = vld [vmem:[#allocation3 + $0x3e4] sm:$0xf0] }
 0x262   : > { %3800 = vmatpush.bf16.msrb.mxu1 %v10313_v23  ;;  %v10601_v23 = vor.u32 %v13611_v14, %v10598_v15  ;;  %v10292_v14 = vld [vmem:[#allocation3 + $0x250] sm:$0xf]  ;;  %v10701_v15 = vor.u32 %v13639_v7, %v10700_v6  ;;  %v13513_v7 = vld [vmem:[#allocation3 + $0x1a4] sm:$0xf0] }
 0x263   : > { %3814 = vmatpush.bf16.msrb.mxu2 %v10505_v3  ;;  %v10382_v3 = vld [vmem:[#allocation3 + $0x320] sm:$0xf0]  ;;  %v10196_v6 = vld [vmem:[#allocation3 + $0x190] sm:$0xf] }
 0x264   : > { %3828 = vmatpush.bf16.msrb.mxu3 %v10697_v27  ;;  %v13507_v27 = vld [vmem:[#allocation3 + $0x174] sm:$0xf0] }
 0x265   : > { %3787 = vmatpush.bf16.msrb.mxu0 %v10097_v37  ;;  %v10193_v37 = vor.u32 %v13509_v26, %v10190_v21  ;;  %v10173_v53 = vor.u32 %v13507_v27, %v10172_v19  ;;  %v10101_v26 = vor.u32 %v13489_v13, %v10100_v12  ;;  %v13531_v19 = vld [vmem:[#allocation3 + $0x234] sm:$0xf0]  ;;  %v10460_v27 = vld [vmem:[#allocation3 + $0x3a0] sm:$0xf]  ;;  %v10580_v12 = vld [vmem:[#allocation3 + $0x490] sm:$0xf] }
 0x266   : > { %3801 = vmatpush.bf16.msrb.mxu1 %v10289_v38  ;;  %v10385_v38 = vor.u32 %v13557_v22, %v10382_v3  ;;  %v10485_v22 = vor.u32 %v13585_v10, %v10484_v17  ;;  %v13483_v3 = vld [vmem:[#allocation3 + $0xb4] sm:$0xf0]  ;;  %v10269_v36 = vor.u32 %v13531_v19, %v10268_v24  ;;  %v13609_v13 = vld [vmem:[#allocation3 + $0x4a4] sm:$0xf0]  ;;  %v10366_v10 = vld [vmem:[#allocation3 + $0x2f8] sm:$0xf0] }
 0x267   : > { %3815 = vmatpush.bf16.msrb.mxu2 %v10481_v39  ;;  %v10748_v39 = vld [vmem:[#allocation3 + $0x5e0] sm:$0xf] }
 0x268   : > { %3829 = vmatpush.bf16.msrb.mxu3 %v10673_v41  ;;  %v10365_v41 = vor.u32 %v13555_v30, %v10364_v28  ;;  %v10749_v44 = vor.u32 %v13651_v48, %v10748_v39  ;;  %v13579_v28 = vld [vmem:[#allocation3 + $0x3b4] sm:$0xf0]  ;;  %v13477_v39 = vld [vmem:[#allocation3 + $0x84] sm:$0xf0]  ;;  %v10244_v48 = vld [vmem:[#allocation3 + $0x1f0] sm:$0xf] }
 0x269   : > { %3788 = vmatpush.bf16.msrb.mxu0 %v10073_v45  ;;  %v13549_v45 = vld [vmem:[#allocation3 + $0x2c4] sm:$0xf0]  ;;  %v13627_v30 = vld [vmem:[#allocation3 + $0x534] sm:$0xf0] }
 0x26a   : > { %3802 = vmatpush.bf16.msrb.mxu1 %v10265_v46  ;;  %v10532_v46 = vld [vmem:[#allocation3 + $0x430] sm:$0xf] }
 0x26b   : > { %3816 = vmatpush.bf16.msrb.mxu2 %v10457_v47  ;;  %v13597_v47 = vld [vmem:[#allocation3 + $0x444] sm:$0xf0] }
 0x26c   : > { %3830 = vmatpush.bf16.msrb.mxu3 %v10649_v54  ;;  %v10341_v54 = vor.u32 %v13549_v45, %v10340_v43  ;;  %v10533_v55 = vor.u32 %v13597_v47, %v10532_v46  ;;  %v10028_v46 = vld [vmem:[#allocation3 + $0x40] sm:$0xf]  ;;  %v13471_v47 = vld [vmem:[#allocation3 + $0x54] sm:$0xf0] }
 0x26d   : > { %3789 = vmatpush.bf16.msrb.mxu0 %v10049_v63  ;;  %v13543_v63 = vld [vmem:[#allocation3 + $0x294] sm:$0xf0] }
 0x26e   : > { %3803 = vmatpush.bf16.msrb.mxu1 %v10241_v4  ;;  %v10508_v4 = vld [vmem:[#allocation3 + $0x400] sm:$0xf] }
 0x26f   : > { %3817 = vmatpush.bf16.msrb.mxu2 %v10433_v5  ;;  %v13591_v5 = vld [vmem:[#allocation3 + $0x414] sm:$0xf0] }
 0x270   : > { %3831 = vmatpush.bf16.msrb.mxu3 %v10625_v9  ;;  %v10317_v9 = vor.u32 %v13543_v63, %v10316_v59  ;;  %v10509_v11 = vor.u32 %v13591_v5, %v10508_v4  ;;  %v10029_v59 = vor.u32 %v13471_v47, %v10028_v46  ;;  %v13465_v63 = vld [vmem:[#allocation3 + $0x24] sm:$0xf0]  ;;  %v13636_v46 = vld [vmem:[#allocation3 + $0x584] sm:$0xf]  ;;  %v10702_v47 = vld [vmem:[#allocation3 + $0x598] sm:$0xf0] }
 0x271   : > { %3790 = vmatpush.bf16.msrb.mxu0 %v10025_v16  ;;  %v13537_v16 = vld [vmem:[#allocation3 + $0x264] sm:$0xf0] }
 0x272   : > { %3804 = vmatpush.bf16.msrb.mxu1 %v10217_v18  ;;  %v10676_v18 = vld [vmem:[#allocation3 + $0x550] sm:$0xf]  ;;  %v10293_v21 = vor.u32 %v13537_v16, %v10292_v14  ;;  %v13504_v14 = vld [vmem:[#allocation3 + $0x164] sm:$0xf] }
 0x273   : > { %3818 = vmatpush.bf16.msrb.mxu2 %v10409_v20  ;;  %v13633_v20 = vld [vmem:[#allocation3 + $0x564] sm:$0xf0]  ;;  %v13552_v16 = vld [vmem:[#allocation3 + $0x2e4] sm:$0xf] }
 0x274   : > { %3832 = vmatpush.bf16.msrb.mxu3 %v10601_v23  ;;  %v10076_v23 = vld [vmem:[#allocation3 + $0xa0] sm:$0xf]  ;;  %v10677_v25 = vor.u32 %v13633_v20, %v10676_v18  ;;  %v13600_v18 = vld [vmem:[#allocation3 + $0x464] sm:$0xf]  ;;  %v10558_v20 = vld [vmem:[#allocation3 + $0x478] sm:$0xf0] }
 0x275   : > { %3791 = vmatpush.bf16.msrb.mxu0 %v10001_v29  ;;  %v10652_v29 = vld [vmem:[#allocation3 + $0x520] sm:$0xf]  ;;  %v10077_v35 = vor.u32 %v13483_v3, %v10076_v23  ;;  %v10750_v23 = vld [vmem:[#allocation3 + $0x5f8] sm:$0xf0]  ;;  %v10581_v3 = vor.u32 %v13609_v13, %v10580_v12  ;;  %v10561_v19 = vor.u32 %v13600_v18, %v10558_v20  ;;  %v13480_v12 = vld [vmem:[#allocation3 + $0xa4] sm:$0xf] }
 0x276   : > { %3805 = vmatpush.bf16.msrb.mxu1 %v10193_v37  ;;  %v10461_v37 = vor.u32 %v13579_v28, %v10460_v27  ;;  %v13498_v27 = vld [vmem:[#allocation3 + $0x134] sm:$0xf]  ;;  %v10150_v28 = vld [vmem:[#allocation3 + $0x148] sm:$0xf0]  ;;  %v10078_v13 = vld [vmem:[#allocation3 + $0xb8] sm:$0xf0] }
 0x277   : > { %3819 = vmatpush.bf16.msrb.mxu2 %v10385_v38  ;;  %v10052_v38 = vld [vmem:[#allocation3 + $0x70] sm:$0xf]  ;;  %v13576_v18 = vld [vmem:[#allocation3 + $0x3a4] sm:$0xf]  ;;  %v10462_v20 = vld [vmem:[#allocation3 + $0x3b8] sm:$0xf0] }
 0x278   : > { %3833 = vmatpush.bf16.msrb.mxu3 %v10577_v40  ;;  %3792 = vmatmul.bf16.vlgmr.msrb.gmra.mxu0 %v15296_v31  ;;  %v10653_v40 = vor.u32 %v13627_v30, %v10652_v29  ;;  %v10053_v43 = vor.u32 %v13477_v39, %v10052_v38  ;;  %v13546_v29 = vld [vmem:[#allocation3 + $0x2b4] sm:$0xf]  ;;  %v10726_v39 = vld [vmem:[#allocation3 + $0x5c8] sm:$0xf0] }
 0x279   : > { %3840 = vmatpush.bf16.msra.mxu0 %v10173_v53  ;;  %3806 = vmatmul.bf16.vlgmr.msrb.gmra.mxu1 %v15298_v32  ;;  %v13525_v53 = vld [vmem:[#allocation3 + $0x204] sm:$0xf0]  ;;  %v13642_v38 = vld [vmem:[#allocation3 + $0x5b4] sm:$0xf] }
 0x27a   : > { %3854 = vmatpush.bf16.msra.mxu1 %v10365_v41  ;;  %3820 = vmatmul.bf16.vlgmr.msrb.gmra.mxu2 %v15300_v33  ;;  %v10436_v41 = vld [vmem:[#allocation3 + $0x370] sm:$0xf]  ;;  %v10729_v56 = vor.u32 %v13642_v38, %v10726_v39  ;;  %v13618_v39 = vld [vmem:[#allocation3 + $0x4f4] sm:$0xf] }
 0x27b   : > { %3868 = vmatpush.bf16.msra.mxu2 %v10557_v52  ;;  %3834 = vmatmul.bf16.vlgmr.msrb.gmra.mxu3 %v15302_v34  ;;  %v13573_v52 = vld [vmem:[#allocation3 + $0x384] sm:$0xf0] }
 0x27c   : > { %3882 = vmatpush.bf16.msra.mxu3 %v10749_v44  ;;  %v10245_v44 = vor.u32 %v13525_v53, %v10244_v48  ;;  %v10437_v45 = vor.u32 %v13573_v52, %v10436_v41  ;;  %v10153_v48 = vor.u32 %v13498_v27, %v10150_v28  ;;  %v13492_v41 = vld [vmem:[#allocation3 + $0x104] sm:$0xf]  ;;  %v10126_v52 = vld [vmem:[#allocation3 + $0x118] sm:$0xf0]  ;;  %v13522_v27 = vld [vmem:[#allocation3 + $0x1f4] sm:$0xf] }
 0x27d   : > { %3841 = vmatpush.bf16.msra.mxu0 %v10149_v51  ;;  %v13519_v51 = vld [vmem:[#allocation3 + $0x1d4] sm:$0xf0] }
 0x27e   : > { %3855 = vmatpush.bf16.msra.mxu1 %v10341_v54  ;;  %v10412_v54 = vld [vmem:[#allocation3 + $0x340] sm:$0xf]  ;;  %v10221_v4 = vor.u32 %v13519_v51, %v10220_v49  ;;  %v10129_v49 = vor.u32 %v13492_v41, %v10126_v52 }
 0x27f   : > { %3869 = vmatpush.bf16.msra.mxu2 %v10533_v55  ;;  %v13567_v55 = vld [vmem:[#allocation3 + $0x354] sm:$0xf0] }
 0x280   : > { %3883 = vmatpush.bf16.msra.mxu3 %v10725_v62  ;;  %v10004_v62 = vld [vmem:[#allocation3 + $0x10] sm:$0xf]  ;;  %v10413_v5 = vor.u32 %v13567_v55, %v10412_v54  ;;  %v10102_v55 = vld [vmem:[#allocation3 + $0xe8] sm:$0xf0] }
 0x281   : > { %3842 = vmatpush.bf16.msra.mxu0 %v10125_v8  ;;  %v10388_v8 = vld [vmem:[#allocation3 + $0x310] sm:$0xf]  ;;  %v10005_v17 = vor.u32 %v13465_v63, %v10004_v62  ;;  %v10294_v62 = vld [vmem:[#allocation3 + $0x268] sm:$0xf0]  ;;  %v13582_v63 = vld [vmem:[#allocation3 + $0x3d4] sm:$0xf] }
 0x282   : > { %3856 = vmatpush.bf16.msra.mxu1 %v10317_v9  ;;  %v10605_v9 = vor.u32 %v13615_v58, %v10604_v57  ;;  %v13534_v57 = vld [vmem:[#allocation3 + $0x254] sm:$0xf]  ;;  %v2644_v58 = vperm.slane %v15288_v61, 0 }
 0x283   : > { %3870 = vmatpush.bf16.msra.mxu2 %v10509_v11  ;;  %v13561_v11 = vld [vmem:[#allocation3 + $0x324] sm:$0xf0] }
 0x284   : > { %3884 = vmatpush.bf16.msra.mxu3 %v10701_v15  ;;  %v10174_v15 = vld [vmem:[#allocation3 + $0x178] sm:$0xf0] }
 0x285   : > { %3843 = vmatpush.bf16.msra.mxu0 %v10101_v26  ;;  %v10197_v26 = vor.u32 %v13513_v7, %v10196_v6  ;;  %v10177_v24 = vor.u32 %v13504_v14, %v10174_v15  ;;  %v10678_v6 = vld [vmem:[#allocation3 + $0x568] sm:$0xf0]  ;;  %v13528_v14 = vld [vmem:[#allocation3 + $0x224] sm:$0xf] }
 0x286   : > { %3857 = vmatpush.bf16.msra.mxu1 %v10293_v21  ;;  %v10389_v21 = vor.u32 %v13561_v11, %v10388_v8 }
 0x287   : > { %3871 = vmatpush.bf16.msra.mxu2 %v10485_v22  ;;  %v13648_v22 = vld [vmem:[#allocation3 + $0x5e4] sm:$0xf] }
 0x288   : > { %3885 = vmatpush.bf16.msra.mxu3 %v10677_v25  ;;  %v10369_v25 = vor.u32 %v13552_v16, %v10366_v10  ;;  %v10753_v30 = vor.u32 %v13648_v22, %v10750_v23  ;;  %v10270_v10 = vld [vmem:[#allocation3 + $0x238] sm:$0xf0]  ;;  %v10081_v23 = vor.u32 %v13480_v12, %v10078_v13 }
 0x289   : > { %3844 = vmatpush.bf16.msra.mxu0 %v10077_v35  ;;  %v10342_v35 = vld [vmem:[#allocation3 + $0x2c8] sm:$0xf0] }
 0x28a   : > { %3858 = vmatpush.bf16.msra.mxu1 %v10269_v36  ;;  %v13594_v36 = vld [vmem:[#allocation3 + $0x434] sm:$0xf] }
 0x28b   : > { %3872 = vmatpush.bf16.msra.mxu2 %v10461_v37  ;;  %v10534_v37 = vld [vmem:[#allocation3 + $0x448] sm:$0xf0] }
 0x28c   : > { %3886 = vmatpush.bf16.msra.mxu3 %v10653_v40  ;;  %v10345_v40 = vor.u32 %v13546_v29, %v10342_v35  ;;  %v10537_v53 = vor.u32 %v13594_v36, %v10534_v37  ;;  %v13570_v35 = vld [vmem:[#allocation3 + $0x374] sm:$0xf]  ;;  %v10438_v36 = vld [vmem:[#allocation3 + $0x388] sm:$0xf0] }
 0x28d   : > { %3845 = vmatpush.bf16.msra.mxu0 %v10053_v43  ;;  %v10318_v43 = vld [vmem:[#allocation3 + $0x298] sm:$0xf0] }
 0x28e   : > { %3859 = vmatpush.bf16.msra.mxu1 %v10245_v44  ;;  %v13588_v44 = vld [vmem:[#allocation3 + $0x404] sm:$0xf]  ;;  %v10321_v51 = vor.u32 %v13540_v42, %v10318_v43  ;;  %v10441_v42 = vor.u32 %v13570_v35, %v10438_v36  ;;  %v10030_v43 = vld [vmem:[#allocation3 + $0x58] sm:$0xf0] }
 0x28f   : > { %3873 = vmatpush.bf16.msra.mxu2 %v10437_v45  ;;  %v10510_v45 = vld [vmem:[#allocation3 + $0x418] sm:$0xf0] }
 0x290   : > { %3887 = vmatpush.bf16.msra.mxu3 %v10629_v50  ;;  %v13486_v50 = vld [vmem:[#allocation3 + $0xd4] sm:$0xf]  ;;  %v10513_v54 = vor.u32 %v13588_v44, %v10510_v45  ;;  %v13516_v44 = vld [vmem:[#allocation3 + $0x1c4] sm:$0xf] }
 0x291   : > { %3846 = vmatpush.bf16.msra.mxu0 %v10029_v59  ;;  %v10705_v59 = vor.u32 %v13636_v46, %v10702_v47  ;;  %v10105_v7 = vor.u32 %v13486_v50, %v10102_v55  ;;  %v13564_v50 = vld [vmem:[#allocation3 + $0x344] sm:$0xf]  ;;  %v10606_v55 = vld [vmem:[#allocation3 + $0x4d8] sm:$0xf0] }
 0x292   : > { %3860 = vmatpush.bf16.msra.mxu1 %v10221_v4  ;;  %v10486_v4 = vld [vmem:[#allocation3 + $0x3e8] sm:$0xf0] }
 0x293   : > { %3874 = vmatpush.bf16.msra.mxu2 %v10413_v5  ;;  %v13630_v5 = vld [vmem:[#allocation3 + $0x554] sm:$0xf]  ;;  %v10489_v11 = vor.u32 %v13582_v63, %v10486_v4 }
 0x294   : > { %3888 = vmatpush.bf16.msra.mxu3 %v10605_v9  ;;  %v10297_v9 = vor.u32 %v13534_v57, %v10294_v62  ;;  %v13462_v4 = vld [vmem:[#allocation3 + $0x14] sm:$0xf] }
 0x295   : > { %3847 = vmatpush.bf16.msra.mxu0 %v10005_v17  ;;  %v3625_v8 = vpop.f32.mrf.mxu0  ;;  %v10681_v17 = vor.u32 %v13630_v5, %v10678_v6  ;;  %v10006_v5 = vld [vmem:[#allocation3 + $0x28] sm:$0xf0]  ;;  %v13510_v6 = vld [vmem:[#allocation3 + $0x194] sm:$0xf] }
 0x296   : > { %3861 = vmatpush.bf16.msra.mxu1 %v10197_v26  ;;  %v3626_v15 = vadd.f32 %v3625_v8, %v2644_v58  ;;  %v3639_v16 = vpop.f32.mrf.mxu1  ;;  %v13624_v26 = vld [vmem:[#allocation3 + $0x524] sm:$0xf]  ;;  %v10198_v8 = vld [vmem:[#allocation3 + $0x1a8] sm:$0xf0] }
 0x297   : > { %3875 = vmatpush.bf16.msra.mxu2 %v10389_v21  ;;  %v10654_v21 = vld [vmem:[#allocation3 + $0x538] sm:$0xf0] }
 0x298   : > { %3889 = vmatpush.bf16.msra.mxu3 %v10581_v3  ;;  %3848 = vmatmul.bf16.vlgmr.msra.gmra.mxu0 %v15296_v31  ;;  %v3640_v22 = vadd.f32 %v3639_v16, %v3626_v15  ;;  %v10273_v3 = vor.u32 %v13528_v14, %v10270_v10  ;;  %v10657_v29 = vor.u32 %v13624_v26, %v10654_v21  ;;  %v13606_v14 = vld [vmem:[#allocation3 + $0x494] sm:$0xf]  ;;  %v10582_v15 = vld [vmem:[#allocation3 + $0x4a8] sm:$0xf0]  ;;  %v2645_v21 = vperm.slane %v15288_v61, 1 }
 0x299   : > { %3896 = vmatpush.bf16.msrb.mxu0 %v10177_v24  ;;  %3862 = vmatmul.bf16.vlgmr.msra.gmra.mxu1 %v15298_v32  ;;  %v10465_v24 = vor.u32 %v13576_v18, %v10462_v20  ;;  %v10009_v16 = vor.u32 %v13462_v4, %v10006_v5  ;;  %v10201_v10 = vor.u32 %v13510_v6, %v10198_v8 }
 0x29a   : > { %3910 = vmatpush.bf16.msrb.mxu1 %v10369_v25  ;;  %3876 = vmatmul.bf16.vlgmr.msra.gmra.mxu2 %v15300_v33  ;;  %v13474_v25 = vld [vmem:[#allocation3 + $0x74] sm:$0xf]  ;;  %v10585_v20 = vor.u32 %v13606_v14, %v10582_v15 }
 0x29b   : > { %3924 = vmatpush.bf16.msrb.mxu2 %v10561_v19  ;;  %3890 = vmatmul.bf16.vlgmr.msra.gmra.mxu3 %v15302_v34  ;;  %v10054_v19 = vld [vmem:[#allocation3 + $0x88] sm:$0xf0] }
 0x29c   : > { %3938 = vmatpush.bf16.msrb.mxu3 %v10753_v30  ;;  %v10246_v30 = vld [vmem:[#allocation3 + $0x208] sm:$0xf0] }
 0x29d   : > { %3897 = vmatpush.bf16.msrb.mxu0 %v10153_v48  ;;  %v3653_v28 = vpop.f32.mrf.mxu2  ;;  %v10630_v48 = vld [vmem:[#allocation3 + $0x508] sm:$0xf0]  ;;  %v3627_v41 = vpop.f32.mrf.mxu0  ;;  %v10249_v52 = vor.u32 %v13522_v27, %v10246_v30 }
 0x29e   : > { %3911 = vmatpush.bf16.msrb.mxu1 %v10345_v40  ;;  %v3654_v37 = vadd.f32 %v3653_v28, %v3640_v22  ;;  %v3667_v38 = vpop.f32.mrf.mxu3  ;;  %v10057_v40 = vor.u32 %v13474_v25, %v10054_v19  ;;  %v3628_v45 = vadd.f32 %v3627_v41, %v2644_v58  ;;  %v3641_v46 = vpop.f32.mrf.mxu1  ;;  %v10633_v47 = vor.u32 %v13618_v39, %v10630_v48 }
 0x29f   : > { %3925 = vmatpush.bf16.msrb.mxu2 %v10537_v53 }
 0x2a0   : > { %3939 = vmatpush.bf16.msrb.mxu3 %v10729_v56  ;;  %v3668_v53 = vadd.f32 %v3667_v38, %v3654_v37  ;;  %v13468_v56 = vld [vmem:[#allocation3 + $0x44] sm:$0xf]  ;;  %v3642_v57 = vadd.f32 %v3641_v46, %v3628_v45 }
 0x2a1   : > { %3898 = vmatpush.bf16.msrb.mxu0 %v10129_v49  ;;  %v10222_v49 = vld [vmem:[#allocation3 + $0x1d8] sm:$0xf0] }
 0x2a2   : > { %3912 = vmatpush.bf16.msrb.mxu1 %v10321_v51  ;;  %v10414_v51 = vld [vmem:[#allocation3 + $0x358] sm:$0xf0]  ;;  %v10225_v62 = vor.u32 %v13516_v44, %v10222_v49 }
 0x2a3   : > { %3926 = vmatpush.bf16.msrb.mxu2 %v10513_v54  ;;  %v13612_v54 = vld [vmem:[#allocation3 + $0x4c4] sm:$0xf]  ;;  %v10417_v63 = vor.u32 %v13564_v50, %v10414_v51 }
 0x2a4   : > { %3940 = vmatpush.bf16.msrb.mxu3 %v10705_v59  ;;  %v10033_v59 = vor.u32 %v13468_v56, %v10030_v43  ;;  %v10609_v58 = vor.u32 %v13612_v54, %v10606_v55  ;;  %v2647_v55 = vperm.slane %v15288_v61, 3 }
 0x2a5   : > { %3899 = vmatpush.bf16.msrb.mxu0 %v10105_v7  ;;  %v3655_v7 = vpop.f32.mrf.mxu2 }
 0x2a6   : > { %3913 = vmatpush.bf16.msrb.mxu1 %v10297_v9  ;;  %v13558_v9 = vld [vmem:[#allocation3 + $0x314] sm:$0xf]  ;;  %v3656_v12 = vadd.f32 %v3655_v7, %v3642_v57  ;;  %v3669_v13 = vpop.f32.mrf.mxu3 }
 0x2a7   : > { %3927 = vmatpush.bf16.msrb.mxu2 %v10489_v11  ;;  %v10390_v11 = vld [vmem:[#allocation3 + $0x328] sm:$0xf0] }
 0x2a8   : > { %3941 = vmatpush.bf16.msrb.mxu3 %v10681_v17  ;;  %v3670_v17 = vadd.f32 %v3669_v13, %v3656_v12  ;;  %v10393_v18 = vor.u32 %v13558_v9, %v10390_v11 }
 0x2a9   : > { %3900 = vmatpush.bf16.msrb.mxu0 %v10081_v23 }
 0x2aa   : > { %3914 = vmatpush.bf16.msrb.mxu1 %v10273_v3  ;;  %v15325_v26 = vpack.c.bf16 %v3670_v17, %v3668_v53  ;;  %v2648_v17 = vperm.slane %v15288_v61, 4 }
 0x2ab   : > { %3928 = vmatpush.bf16.msrb.mxu2 %v10465_v24 }
 0x2ac   : > { %3942 = vmatpush.bf16.msrb.mxu3 %v10657_v29 }
 0x2ad   : > { %3901 = vmatpush.bf16.msrb.mxu0 %v10057_v40 }
 0x2ae   : > { %3915 = vmatpush.bf16.msrb.mxu1 %v10249_v52 }
 0x2af   : > { %3929 = vmatpush.bf16.msrb.mxu2 %v10441_v42 }
 0x2b0   : > { %3943 = vmatpush.bf16.msrb.mxu3 %v10633_v47 }
 0x2b1   : > { %3902 = vmatpush.bf16.msrb.mxu0 %v10033_v59 }
 0x2b2   : > { %3916 = vmatpush.bf16.msrb.mxu1 %v10225_v62 }
 0x2b3   : > { %3930 = vmatpush.bf16.msrb.mxu2 %v10417_v63 }
 0x2b4   : > { %3944 = vmatpush.bf16.msrb.mxu3 %v10609_v58 }
 0x2b5   : > { %3903 = vmatpush.bf16.msrb.mxu0 %v10009_v16  ;;  %v3681_v22 = vpop.f32.mrf.mxu0 }
 0x2b6   : > { %3917 = vmatpush.bf16.msrb.mxu1 %v10201_v10  ;;  %v3682_v23 = vadd.f32 %v3681_v22, %v2645_v21  ;;  %v3695_v3 = vpop.f32.mrf.mxu1 }
 0x2b7   : > { %3931 = vmatpush.bf16.msrb.mxu2 %v10393_v18 }
 0x2b8   : > { %3945 = vmatpush.bf16.msrb.mxu3 %v10585_v20  ;;  %3904 = vmatmul.bf16.vlgmr.msrb.gmra.mxu0 %v15296_v31  ;;  %v3696_v24 = vadd.f32 %v3695_v3, %v3682_v23 }
 0x2b9   : > { %3918 = vmatmul.bf16.vlgmr.msrb.gmra.mxu1 %v15298_v32 }
 0x2ba   : > { %3932 = vmatmul.bf16.vlgmr.msrb.gmra.mxu2 %v15300_v33 }
 0x2bb   : > { %3946 = vmatmul.bf16.vlgmr.msrb.gmra.mxu3 %v15302_v34  ;;  %v2646_v34 = vperm.slane %v15288_v61, 2 }
 0x2bd   : > { %v3709_v25 = vpop.f32.mrf.mxu2  ;;  %v3683_v29 = vpop.f32.mrf.mxu0 }
 0x2be   : > { %v3710_v19 = vadd.f32 %v3709_v25, %v3696_v24  ;;  %v3723_v27 = vpop.f32.mrf.mxu3  ;;  %v3684_v30 = vadd.f32 %v3683_v29, %v2645_v21  ;;  %v3697_v35 = vpop.f32.mrf.mxu1 }
 0x2c0   : > { %v3724_v28 = vadd.f32 %v3723_v27, %v3710_v19  ;;  %v3698_v31 = vadd.f32 %v3697_v35, %v3684_v30 }
 0x2c5   : > { %v3711_v36 = vpop.f32.mrf.mxu2 }
 0x2c6   : > { %v3712_v32 = vadd.f32 %v3711_v36, %v3698_v31  ;;  %v3725_v37 = vpop.f32.mrf.mxu3 }
 0x2c8   : > { %v3726_v33 = vadd.f32 %v3725_v37, %v3712_v32  ;;  %v2649_v37 = vperm.slane %v15288_v61, 5 }
 0x2ca   : > { %v15332_v38 = vpack.c.bf16 %v3726_v33, %v3724_v28 }
 0x2d5   : > { %v3737_v39 = vpop.f32.mrf.mxu0 }
 0x2d6   : > { %v3751_v48 = vpop.f32.mrf.mxu1  ;;  %v3738_v40 = vadd.f32 %v3737_v39, %v2646_v34 }
 0x2d8   : > { %v3752_v41 = vadd.f32 %v3751_v48, %v3738_v40 }
 0x2dd   : > { %v3765_v53 = vpop.f32.mrf.mxu2  ;;  %v3739_v42 = vpop.f32.mrf.mxu0 }
 0x2de   : > { %v3779_v52 = vpop.f32.mrf.mxu3  ;;  %v3740_v56 = vadd.f32 %v3739_v42, %v2646_v34  ;;  %v3753_v43 = vpop.f32.mrf.mxu1  ;;  %v3766_v44 = vadd.f32 %v3765_v53, %v3752_v41 }
 0x2e0   : > { %v3754_v45 = vadd.f32 %v3753_v43, %v3740_v56  ;;  %v3780_v47 = vadd.f32 %v3779_v52, %v3766_v44 }
 0x2e5   : > { %v3767_v46 = vpop.f32.mrf.mxu2 }
 0x2e6   : > { %v3768_v49 = vadd.f32 %v3767_v46, %v3754_v45  ;;  %v3781_v50 = vpop.f32.mrf.mxu3 }
 0x2e8   : > { %v3782_v51 = vadd.f32 %v3781_v50, %v3768_v49 }
 0x2ea   : > { %v15335_v54 = vpack.c.bf16 %v3782_v51, %v3780_v47 }
 0x2f5   : > { %v3793_v57 = vpop.f32.mrf.mxu0 }
 0x2f6   : > { %v3807_v59 = vpop.f32.mrf.mxu1  ;;  %v3794_v62 = vadd.f32 %v3793_v57, %v2647_v55 }
 0x2f8   : > { %v3808_v4 = vadd.f32 %v3807_v59, %v3794_v62 }
 0x2fd   : > { %v3821_v63 = vpop.f32.mrf.mxu2  ;;  %v3795_v6 = vpop.f32.mrf.mxu0 }
 0x2fe   : > { %v3835_v5 = vpop.f32.mrf.mxu3  ;;  %v3796_v7 = vadd.f32 %v3795_v6, %v2647_v55  ;;  %v3809_v58 = vpop.f32.mrf.mxu1  ;;  %v3822_v8 = vadd.f32 %v3821_v63, %v3808_v4 }
 0x300   : > { %v3810_v9 = vadd.f32 %v3809_v58, %v3796_v7  ;;  %v3836_v12 = vadd.f32 %v3835_v5, %v3822_v8 }
 0x305   : > { %v3823_v11 = vpop.f32.mrf.mxu2 }
 0x306   : > { %v3824_v13 = vadd.f32 %v3823_v11, %v3810_v9  ;;  %v3837_v14 = vpop.f32.mrf.mxu3 }
 0x308   : > { %v3838_v15 = vadd.f32 %v3837_v14, %v3824_v13 }
 0x30a   : > { %v15338_v16 = vpack.c.bf16 %v3838_v15, %v3836_v12 }
 0x315   : > { %v3849_v10 = vpop.f32.mrf.mxu0 }
 0x316   : > { %v3863_v18 = vpop.f32.mrf.mxu1  ;;  %v3850_v20 = vadd.f32 %v3849_v10, %v2648_v17 }
 0x318   : > { %v3864_v22 = vadd.f32 %v3863_v18, %v3850_v20 }
 0x31d   : > { %v3877_v21 = vpop.f32.mrf.mxu2  ;;  %v3851_v3 = vpop.f32.mrf.mxu0 }
 0x31e   : > { %v3891_v23 = vpop.f32.mrf.mxu3  ;;  %v3852_v24 = vadd.f32 %v3851_v3, %v2648_v17  ;;  %v3865_v25 = vpop.f32.mrf.mxu1  ;;  %v3878_v19 = vadd.f32 %v3877_v21, %v3864_v22 }
 0x320   : > { %v3866_v27 = vadd.f32 %v3865_v25, %v3852_v24  ;;  %v3892_v29 = vadd.f32 %v3891_v23, %v3878_v19 }
 0x325   : > { %v3879_v28 = vpop.f32.mrf.mxu2 }
 0x326   : > { %v3880_v30 = vadd.f32 %v3879_v28, %v3866_v27  ;;  %v3893_v35 = vpop.f32.mrf.mxu3 }
 0x328   : > { %v3894_v31 = vadd.f32 %v3893_v35, %v3880_v30 }
 0x32a   : > { %v15341_v36 = vpack.c.bf16 %v3894_v31, %v3892_v29 }
 0x335   : > { %v3905_v32 = vpop.f32.mrf.mxu0 }
 0x336   : > { %v3919_v33 = vpop.f32.mrf.mxu1  ;;  %v3906_v34 = vadd.f32 %v3905_v32, %v2649_v37 }
 0x338   : > { %v3920_v53 = vadd.f32 %v3919_v33, %v3906_v34 }
 0x33d   : > { %v3933_v39 = vpop.f32.mrf.mxu2  ;;  %v3907_v40 = vpop.f32.mrf.mxu0 }
 0x33e   : > { %v3947_v48 = vpop.f32.mrf.mxu3  ;;  %v3908_v41 = vadd.f32 %v3907_v40, %v2649_v37  ;;  %v3921_v52 = vpop.f32.mrf.mxu1  ;;  %v3934_v42 = vadd.f32 %v3933_v39, %v3920_v53 }
 0x340   : > { %v3922_v56 = vadd.f32 %v3921_v52, %v3908_v41  ;;  %v3948_v46 = vadd.f32 %v3947_v48, %v3934_v42 }
 0x345   : > { %v3935_v43 = vpop.f32.mrf.mxu2 }
 0x346   : > { %v3936_v44 = vadd.f32 %v3935_v43, %v3922_v56  ;;  %v3949_v45 = vpop.f32.mrf.mxu3 }
 0x348   : > { %v3950_v47 = vadd.f32 %v3949_v45, %v3936_v44 }
 0x34a   : > { %v15344_v49 = vpack.c.bf16 %v3950_v47, %v3948_v46 }
 0x34b   : > { %14517 = dma.done.wait [#allocation8 + $0x1], 24576 }
 0x34c   : > { %14518 = vsyncadd [#allocation8 + $0x1], 4294942720  ;;  %v10868_v61 = vld [vmem:[#allocation4 + $0xe0] sm:$0xf]  ;;  %v13682_v50 = vld [vmem:[#allocation4 + $0xec] sm:$0xf0] }
 0x34d   : > { %v10996_v51 = vld [vmem:[#allocation4 + $0x1e0] sm:$0xf]  ;;  %v10869_v55 = vor.u32 %v13682_v50, %v10868_v61  ;;  %v13714_v57 = vld [vmem:[#allocation4 + $0x1ec] sm:$0xf0] }
 0x34e   : > { %v11124_v59 = vld [vmem:[#allocation4 + $0x2e0] sm:$0xf]  ;;  %v13746_v62 = vld [vmem:[#allocation4 + $0x2ec] sm:$0xf0]  ;;  %v10997_v63 = vor.u32 %v13714_v57, %v10996_v51 }
 0x34f   : > { %v11125_v4 = vor.u32 %v13746_v62, %v11124_v59  ;;  %v11252_v5 = vld [vmem:[#allocation4 + $0x3e0] sm:$0xf]  ;;  %v13778_v6 = vld [vmem:[#allocation4 + $0x3ec] sm:$0xf0]  ;;  %5124 = vmatpush.bf16.msra.mxu0 %v10869_v55 }
 0x350   : > { %v10852_v7 = vld [vmem:[#allocation4 + $0xc0] sm:$0xf]  ;;  %v11253_v58 = vor.u32 %v13778_v6, %v11252_v5  ;;  %v13678_v8 = vld [vmem:[#allocation4 + $0xcc] sm:$0xf0]  ;;  %5138 = vmatpush.bf16.msra.mxu1 %v10997_v63 }
 0x351   : > { %v10980_v9 = vld [vmem:[#allocation4 + $0x1c0] sm:$0xf]  ;;  %v13710_v11 = vld [vmem:[#allocation4 + $0x1cc] sm:$0xf0]  ;;  %5152 = vmatpush.bf16.msra.mxu2 %v11125_v4  ;;  %v10853_v12 = vor.u32 %v13678_v8, %v10852_v7 }
 0x352   : > { %v10981_v13 = vor.u32 %v13710_v11, %v10980_v9  ;;  %v11108_v14 = vld [vmem:[#allocation4 + $0x2c0] sm:$0xf]  ;;  %v13742_v15 = vld [vmem:[#allocation4 + $0x2cc] sm:$0xf0]  ;;  %5166 = vmatpush.bf16.msra.mxu3 %v11253_v58 }
 0x353   : > { %v11236_v17 = vld [vmem:[#allocation4 + $0x3c0] sm:$0xf]  ;;  %v11109_v10 = vor.u32 %v13742_v15, %v11108_v14  ;;  %v13774_v18 = vld [vmem:[#allocation4 + $0x3cc] sm:$0xf0]  ;;  %5125 = vmatpush.bf16.msra.mxu0 %v10853_v12 }
 0x354   : > { %v10836_v20 = vld [vmem:[#allocation4 + $0xa0] sm:$0xf]  ;;  %v13674_v21 = vld [vmem:[#allocation4 + $0xac] sm:$0xf0]  ;;  %v11237_v22 = vor.u32 %v13774_v18, %v11236_v17  ;;  %5139 = vmatpush.bf16.msra.mxu1 %v10981_v13 }
 0x355   : > { %v10964_v23 = vld [vmem:[#allocation4 + $0x1a0] sm:$0xf]  ;;  %v13706_v3 = vld [vmem:[#allocation4 + $0x1ac] sm:$0xf0]  ;;  %v10837_v25 = vor.u32 %v13674_v21, %v10836_v20  ;;  %5153 = vmatpush.bf16.msra.mxu2 %v11109_v10 }
 0x356   : > { %v11092_v24 = vld [vmem:[#allocation4 + $0x2a0] sm:$0xf]  ;;  %v13738_v19 = vld [vmem:[#allocation4 + $0x2ac] sm:$0xf0]  ;;  %v10965_v29 = vor.u32 %v13706_v3, %v10964_v23  ;;  %5167 = vmatpush.bf16.msra.mxu3 %v11237_v22 }
 0x357   : > { %v11220_v27 = vld [vmem:[#allocation4 + $0x3a0] sm:$0xf]  ;;  %v13770_v28 = vld [vmem:[#allocation4 + $0x3ac] sm:$0xf0]  ;;  %v11093_v30 = vor.u32 %v13738_v19, %v11092_v24  ;;  %5126 = vmatpush.bf16.msra.mxu0 %v10837_v25 }
 0x358   : > { %v10820_v35 = vld [vmem:[#allocation4 + $0x80] sm:$0xf]  ;;  %v13670_v31 = vld [vmem:[#allocation4 + $0x8c] sm:$0xf0]  ;;  %v11221_v37 = vor.u32 %v13770_v28, %v11220_v27  ;;  %5140 = vmatpush.bf16.msra.mxu1 %v10965_v29 }
 0x359   : > { %v10948_v32 = vld [vmem:[#allocation4 + $0x180] sm:$0xf]  ;;  %v13702_v33 = vld [vmem:[#allocation4 + $0x18c] sm:$0xf0]  ;;  %v10821_v53 = vor.u32 %v13670_v31, %v10820_v35  ;;  %5154 = vmatpush.bf16.msra.mxu2 %v11093_v30 }
 0x35a   : > { %v11076_v34 = vld [vmem:[#allocation4 + $0x280] sm:$0xf]  ;;  %v13734_v39 = vld [vmem:[#allocation4 + $0x28c] sm:$0xf0]  ;;  %v10949_v41 = vor.u32 %v13702_v33, %v10948_v32  ;;  %5168 = vmatpush.bf16.msra.mxu3 %v11221_v37 }
 0x35b   : > { %v11204_v48 = vld [vmem:[#allocation4 + $0x380] sm:$0xf]  ;;  %v13766_v40 = vld [vmem:[#allocation4 + $0x38c] sm:$0xf0]  ;;  %v11077_v52 = vor.u32 %v13734_v39, %v11076_v34  ;;  %5127 = vmatpush.bf16.msra.mxu0 %v10821_v53  ;;  %v10870_v53 = vld [vmem:[#allocation4 + $0xf0] sm:$0xf0] }
 0x35c   : > { %v10804_v42 = vld [vmem:[#allocation4 + $0x60] sm:$0xf]  ;;  %v13666_v56 = vld [vmem:[#allocation4 + $0x6c] sm:$0xf0]  ;;  %v11205_v44 = vor.u32 %v13766_v40, %v11204_v48  ;;  %5141 = vmatpush.bf16.msra.mxu1 %v10949_v41  ;;  %v13680_v40 = vld [vmem:[#allocation4 + $0xe4] sm:$0xf] }
 0x35d   : > { %v10932_v43 = vld [vmem:[#allocation4 + $0x160] sm:$0xf]  ;;  %v13698_v45 = vld [vmem:[#allocation4 + $0x16c] sm:$0xf0]  ;;  %v10805_v51 = vor.u32 %v13666_v56, %v10804_v42  ;;  %5155 = vmatpush.bf16.msra.mxu2 %v11077_v52  ;;  %v13712_v42 = vld [vmem:[#allocation4 + $0x1e4] sm:$0xf] }
 0x35e   : > { %v11060_v46 = vld [vmem:[#allocation4 + $0x260] sm:$0xf]  ;;  %v13730_v47 = vld [vmem:[#allocation4 + $0x26c] sm:$0xf0]  ;;  %v10933_v55 = vor.u32 %v13698_v45, %v10932_v43  ;;  %5169 = vmatpush.bf16.msra.mxu3 %v11205_v44  ;;  %v10998_v56 = vld [vmem:[#allocation4 + $0x1f0] sm:$0xf0] }
 0x35f   : > { %v11188_v61 = vld [vmem:[#allocation4 + $0x360] sm:$0xf]  ;;  %v13762_v50 = vld [vmem:[#allocation4 + $0x36c] sm:$0xf0]  ;;  %v11061_v57 = vor.u32 %v13730_v47, %v11060_v46  ;;  %5128 = vmatpush.bf16.msra.mxu0 %v10805_v51  ;;  %v10873_v46 = vor.u32 %v13680_v40, %v10870_v53  ;;  %v11001_v51 = vor.u32 %v13712_v42, %v10998_v56  ;;  %v10934_v40 = vld [vmem:[#allocation4 + $0x170] sm:$0xf0] }
 0x360   : > { %v10788_v59 = vld [vmem:[#allocation4 + $0x40] sm:$0xf]  ;;  %v13662_v62 = vld [vmem:[#allocation4 + $0x4c] sm:$0xf0]  ;;  %v11189_v4 = vor.u32 %v13762_v50, %v11188_v61  ;;  %5142 = vmatpush.bf16.msra.mxu1 %v10933_v55 }
 0x361   : > { %v10916_v63 = vld [vmem:[#allocation4 + $0x140] sm:$0xf]  ;;  %v13694_v5 = vld [vmem:[#allocation4 + $0x14c] sm:$0xf0]  ;;  %v10789_v9 = vor.u32 %v13662_v62, %v10788_v59  ;;  %5156 = vmatpush.bf16.msra.mxu2 %v11061_v57  ;;  %v13676_v57 = vld [vmem:[#allocation4 + $0xc4] sm:$0xf] }
 0x362   : > { %v11044_v6 = vld [vmem:[#allocation4 + $0x240] sm:$0xf]  ;;  %v13726_v7 = vld [vmem:[#allocation4 + $0x24c] sm:$0xf0]  ;;  %v10917_v11 = vor.u32 %v13694_v5, %v10916_v63  ;;  %5170 = vmatpush.bf16.msra.mxu3 %v11189_v4  ;;  %v10854_v59 = vld [vmem:[#allocation4 + $0xd0] sm:$0xf0] }
 0x363   : > { %v11172_v58 = vld [vmem:[#allocation4 + $0x340] sm:$0xf]  ;;  %v13758_v8 = vld [vmem:[#allocation4 + $0x34c] sm:$0xf0]  ;;  %v11045_v12 = vor.u32 %v13726_v7, %v11044_v6  ;;  %5129 = vmatpush.bf16.msra.mxu0 %v10789_v9  ;;  %v13708_v62 = vld [vmem:[#allocation4 + $0x1c4] sm:$0xf]  ;;  %v10857_v6 = vor.u32 %v13676_v57, %v10854_v59 }
 0x364   : > { %v10772_v13 = vld [vmem:[#allocation4 + $0x20] sm:$0xf]  ;;  %v13658_v14 = vld [vmem:[#allocation4 + $0x2c] sm:$0xf0]  ;;  %v11173_v17 = vor.u32 %v13758_v8, %v11172_v58  ;;  %5143 = vmatpush.bf16.msra.mxu1 %v10917_v11  ;;  %v10982_v63 = vld [vmem:[#allocation4 + $0x1d0] sm:$0xf0] }
 0x365   : > { %v10900_v15 = vld [vmem:[#allocation4 + $0x120] sm:$0xf]  ;;  %v13690_v10 = vld [vmem:[#allocation4 + $0x12c] sm:$0xf0]  ;;  %v10773_v23 = vor.u32 %v13658_v14, %v10772_v13  ;;  %5157 = vmatpush.bf16.msra.mxu2 %v11045_v12  ;;  %v10985_v9 = vor.u32 %v13708_v62, %v10982_v63  ;;  %v13672_v12 = vld [vmem:[#allocation4 + $0xa4] sm:$0xf] }
 0x366   : > { %v11028_v18 = vld [vmem:[#allocation4 + $0x220] sm:$0xf]  ;;  %v13722_v20 = vld [vmem:[#allocation4 + $0x22c] sm:$0xf0]  ;;  %v10901_v25 = vor.u32 %v13690_v10, %v10900_v15  ;;  %5171 = vmatpush.bf16.msra.mxu3 %v11173_v17  ;;  %v10838_v13 = vld [vmem:[#allocation4 + $0xb0] sm:$0xf0] }
 0x367   : > { %v11156_v21 = vld [vmem:[#allocation4 + $0x320] sm:$0xf]  ;;  %v13754_v22 = vld [vmem:[#allocation4 + $0x32c] sm:$0xf0]  ;;  %v11029_v19 = vor.u32 %v13722_v20, %v11028_v18  ;;  %5130 = vmatpush.bf16.msra.mxu0 %v10773_v23  ;;  %v13704_v14 = vld [vmem:[#allocation4 + $0x1a4] sm:$0xf]  ;;  %v10841_v18 = vor.u32 %v13672_v12, %v10838_v13 }
 0x368   : > { %v10756_v3 = vld [vmem:[#allocation4] sm:$0xf]  ;;  %v13654_v24 = vld [vmem:[#allocation4 + $0xc] sm:$0xf0]  ;;  %v11157_v30 = vor.u32 %v13754_v22, %v11156_v21  ;;  %5144 = vmatpush.bf16.msra.mxu1 %v10901_v25  ;;  %v10966_v15 = vld [vmem:[#allocation4 + $0x1b0] sm:$0xf0] }
 0x369   : > { %v10884_v27 = vld [vmem:[#allocation4 + $0x100] sm:$0xf]  ;;  %v13686_v28 = vld [vmem:[#allocation4 + $0x10c] sm:$0xf0]  ;;  %v10757_v39 = vor.u32 %v13654_v24, %v10756_v3  ;;  %5158 = vmatpush.bf16.msra.mxu2 %v11029_v19  ;;  %v10969_v23 = vor.u32 %v13704_v14, %v10966_v15  ;;  %v13668_v24 = vld [vmem:[#allocation4 + $0x84] sm:$0xf] }
 0x36a   : > { %v11012_v29 = vld [vmem:[#allocation4 + $0x200] sm:$0xf]  ;;  %v13718_v35 = vld [vmem:[#allocation4 + $0x20c] sm:$0xf0]  ;;  %v10885_v41 = vor.u32 %v13686_v28, %v10884_v27  ;;  %5172 = vmatpush.bf16.msra.mxu3 %v11157_v30  ;;  %v10822_v25 = vld [vmem:[#allocation4 + $0x90] sm:$0xf0] }
 0x36b   : > { %v11140_v31 = vld [vmem:[#allocation4 + $0x300] sm:$0xf]  ;;  %v13750_v32 = vld [vmem:[#allocation4 + $0x30c] sm:$0xf0]  ;;  %v11013_v52 = vor.u32 %v13718_v35, %v11012_v29  ;;  %5131 = vmatpush.bf16.msra.mxu0 %v10757_v39  ;;  %v13700_v19 = vld [vmem:[#allocation4 + $0x184] sm:$0xf]  ;;  %v10825_v30 = vor.u32 %v13668_v24, %v10822_v25 }
 0x36c   : > { %v11380_v37 = vld [vmem:[#allocation4 + $0x4e0] sm:$0xf]  ;;  %v13810_v33 = vld [vmem:[#allocation4 + $0x4ec] sm:$0xf0]  ;;  %v11141_v43 = vor.u32 %v13750_v32, %v11140_v31  ;;  %5145 = vmatpush.bf16.msra.mxu1 %v10885_v41  ;;  %v10950_v27 = vld [vmem:[#allocation4 + $0x190] sm:$0xf0] }
 0x36d   : > { %v11508_v34 = vld [vmem:[#allocation4 + $0x5e0] sm:$0xf]  ;;  %v13842_v48 = vld [vmem:[#allocation4 + $0x5ec] sm:$0xf0]  ;;  %v11381_v44 = vor.u32 %v13810_v33, %v11380_v37  ;;  %5159 = vmatpush.bf16.msra.mxu2 %v11013_v52  ;;  %v10953_v37 = vor.u32 %v13700_v19, %v10950_v27  ;;  %v10806_v39 = vld [vmem:[#allocation4 + $0x70] sm:$0xf0] }
 0x36e   : > { %v11509_v45 = vor.u32 %v13842_v48, %v11508_v34  ;;  %v11364_v47 = vld [vmem:[#allocation4 + $0x4c0] sm:$0xf]  ;;  %v13806_v61 = vld [vmem:[#allocation4 + $0x4cc] sm:$0xf0]  ;;  %5173 = vmatpush.bf16.msra.mxu3 %v11141_v43  ;;  %5132 = vmatmul.bf16.vlgmr.msra.gmra.mxu0 %v15325_v26  ;;  %v13664_v34 = vld [vmem:[#allocation4 + $0x64] sm:$0xf] }
 0x36f   : > { %v11492_v50 = vld [vmem:[#allocation4 + $0x5c0] sm:$0xf]  ;;  %v13838_v55 = vld [vmem:[#allocation4 + $0x5cc] sm:$0xf0]  ;;  %5180 = vmatpush.bf16.msrb.mxu0 %v11381_v44  ;;  %v11365_v4 = vor.u32 %v13806_v61, %v11364_v47  ;;  %5146 = vmatmul.bf16.vlgmr.msra.gmra.mxu1 %v15332_v38  ;;  %v13696_v48 = vld [vmem:[#allocation4 + $0x164] sm:$0xf]  ;;  %v10809_v52 = vor.u32 %v13664_v34, %v10806_v39 }
 0x370   : > { %5194 = vmatpush.bf16.msrb.mxu1 %v11509_v45  ;;  %v11493_v5 = vor.u32 %v13838_v55, %v11492_v50  ;;  %v11348_v7 = vld [vmem:[#allocation4 + $0x4a0] sm:$0xf]  ;;  %v13802_v58 = vld [vmem:[#allocation4 + $0x4ac] sm:$0xf0]  ;;  %5160 = vmatmul.bf16.vlgmr.msra.gmra.mxu2 %v15335_v54  ;;  %v10937_v44 = vor.u32 %v13696_v48, %v10934_v40  ;;  %v10790_v47 = vld [vmem:[#allocation4 + $0x50] sm:$0xf0] }
 0x371   : > { %5208 = vmatpush.bf16.msrb.mxu2 %v10873_v46  ;;  %v11476_v8 = vld [vmem:[#allocation4 + $0x5a0] sm:$0xf]  ;;  %v13834_v11 = vld [vmem:[#allocation4 + $0x5ac] sm:$0xf0]  ;;  %v11349_v17 = vor.u32 %v13802_v58, %v11348_v7  ;;  %5174 = vmatmul.bf16.vlgmr.msra.gmra.mxu3 %v15338_v16  ;;  %v13660_v46 = vld [vmem:[#allocation4 + $0x44] sm:$0xf] }
 0x372   : > { %5222 = vmatpush.bf16.msrb.mxu3 %v11001_v51  ;;  %v11477_v10 = vor.u32 %v13834_v11, %v11476_v8  ;;  %v11332_v20 = vld [vmem:[#allocation4 + $0x480] sm:$0xf]  ;;  %v13798_v21 = vld [vmem:[#allocation4 + $0x48c] sm:$0xf0]  ;;  %v13692_v61 = vld [vmem:[#allocation4 + $0x144] sm:$0xf]  ;;  %v10793_v57 = vor.u32 %v13660_v46, %v10790_v47 }
 0x373   : > { %5181 = vmatpush.bf16.msrb.mxu0 %v11365_v4  ;;  %v11460_v22 = vld [vmem:[#allocation4 + $0x580] sm:$0xf]  ;;  %v13830_v3 = vld [vmem:[#allocation4 + $0x58c] sm:$0xf0]  ;;  %v11333_v28 = vor.u32 %v13798_v21, %v11332_v20  ;;  %v10918_v50 = vld [vmem:[#allocation4 + $0x150] sm:$0xf0] }
 0x374   : > { %5195 = vmatpush.bf16.msrb.mxu1 %v11493_v5  ;;  %v11461_v29 = vor.u32 %v13830_v3, %v11460_v22  ;;  %v11316_v35 = vld [vmem:[#allocation4 + $0x460] sm:$0xf]  ;;  %v13794_v31 = vld [vmem:[#allocation4 + $0x46c] sm:$0xf0]  ;;  %v10921_v4 = vor.u32 %v13692_v61, %v10918_v50  ;;  %v10774_v7 = vld [vmem:[#allocation4 + $0x30] sm:$0xf0] }
 0x375   : > { %5209 = vmatpush.bf16.msrb.mxu2 %v10857_v6  ;;  %v11444_v32 = vld [vmem:[#allocation4 + $0x560] sm:$0xf]  ;;  %v13826_v33 = vld [vmem:[#allocation4 + $0x56c] sm:$0xf0]  ;;  %v11317_v53 = vor.u32 %v13794_v31, %v11316_v35  ;;  %v13656_v6 = vld [vmem:[#allocation4 + $0x24] sm:$0xf] }
 0x376   : > { %5223 = vmatpush.bf16.msrb.mxu3 %v10985_v9  ;;  %v11445_v41 = vor.u32 %v13826_v33, %v11444_v32  ;;  %v11300_v42 = vld [vmem:[#allocation4 + $0x440] sm:$0xf]  ;;  %v13790_v56 = vld [vmem:[#allocation4 + $0x44c] sm:$0xf0]  ;;  %v13688_v58 = vld [vmem:[#allocation4 + $0x124] sm:$0xf]  ;;  %v10777_v14 = vor.u32 %v13656_v6, %v10774_v7 }
 0x377   : > { %5182 = vmatpush.bf16.msrb.mxu0 %v11349_v17  ;;  %v11428_v43 = vld [vmem:[#allocation4 + $0x540] sm:$0xf]  ;;  %v13822_v45 = vld [vmem:[#allocation4 + $0x54c] sm:$0xf0]  ;;  %v11301_v51 = vor.u32 %v13790_v56, %v11300_v42  ;;  %v10902_v8 = vld [vmem:[#allocation4 + $0x130] sm:$0xf0] }
 0x378   : > { %5196 = vmatpush.bf16.msrb.mxu1 %v11477_v10  ;;  %v11429_v55 = vor.u32 %v13822_v45, %v11428_v43  ;;  %v11284_v59 = vld [vmem:[#allocation4 + $0x420] sm:$0xf]  ;;  %v13786_v62 = vld [vmem:[#allocation4 + $0x42c] sm:$0xf0]  ;;  %v13652_v10 = vld [vmem:[#allocation4 + $0x4] sm:$0xf] }
 0x379   : > { %5210 = vmatpush.bf16.msrb.mxu2 %v10841_v18  ;;  %v11412_v63 = vld [vmem:[#allocation4 + $0x520] sm:$0xf]  ;;  %v13818_v5 = vld [vmem:[#allocation4 + $0x52c] sm:$0xf0]  ;;  %v11285_v9 = vor.u32 %v13786_v62, %v11284_v59  ;;  %v10905_v18 = vor.u32 %v13688_v58, %v10902_v8  ;;  %v10758_v20 = vld [vmem:[#allocation4 + $0x10] sm:$0xf0] }
 0x37a   : > { %5224 = vmatpush.bf16.msrb.mxu3 %v10969_v23  ;;  %v11268_v11 = vld [vmem:[#allocation4 + $0x400] sm:$0xf]  ;;  %v13782_v12 = vld [vmem:[#allocation4 + $0x40c] sm:$0xf0]  ;;  %v11413_v13 = vor.u32 %v13818_v5, %v11412_v63  ;;  %v13684_v21 = vld [vmem:[#allocation4 + $0x104] sm:$0xf] }
 0x37b   : > { %5183 = vmatpush.bf16.msrb.mxu0 %v11333_v28  ;;  %v11396_v15 = vld [vmem:[#allocation4 + $0x500] sm:$0xf]  ;;  %v13814_v17 = vld [vmem:[#allocation4 + $0x50c] sm:$0xf0]  ;;  %v10886_v22 = vld [vmem:[#allocation4 + $0x110] sm:$0xf0]  ;;  %v11269_v25 = vor.u32 %v13782_v12, %v11268_v11 }
 0x37c   : > { %5197 = vmatpush.bf16.msrb.mxu1 %v11461_v29  ;;  %v13744_v23 = vld [vmem:[#allocation4 + $0x2e4] sm:$0xf]  ;;  %v11126_v3 = vld [vmem:[#allocation4 + $0x2f0] sm:$0xf0]  ;;  %v11397_v29 = vor.u32 %v13814_v17, %v11396_v15  ;;  %v10889_v32 = vor.u32 %v13684_v21, %v10886_v22 }
 0x37d   : > { %5211 = vmatpush.bf16.msrb.mxu2 %v10825_v30  ;;  %v13776_v24 = vld [vmem:[#allocation4 + $0x3e4] sm:$0xf]  ;;  %v11254_v19 = vld [vmem:[#allocation4 + $0x3f0] sm:$0xf0]  ;;  %v10761_v30 = vor.u32 %v13652_v10, %v10758_v20 }
 0x37e   : > { %5225 = vmatpush.bf16.msrb.mxu3 %v10953_v37  ;;  %v13808_v27 = vld [vmem:[#allocation4 + $0x4e4] sm:$0xf]  ;;  %v11382_v28 = vld [vmem:[#allocation4 + $0x4f0] sm:$0xf0]  ;;  %v11129_v37 = vor.u32 %v13744_v23, %v11126_v3  ;;  %v11257_v33 = vor.u32 %v13776_v24, %v11254_v19 }
 0x37f   : > { %5184 = vmatpush.bf16.msrb.mxu0 %v11317_v53  ;;  %v13840_v35 = vld [vmem:[#allocation4 + $0x5e4] sm:$0xf]  ;;  %v11510_v31 = vld [vmem:[#allocation4 + $0x5f0] sm:$0xf0]  ;;  %v11385_v34 = vor.u32 %v13808_v27, %v11382_v28 }
 0x380   : > { %5198 = vmatpush.bf16.msrb.mxu1 %v11445_v41  ;;  %v13740_v39 = vld [vmem:[#allocation4 + $0x2c4] sm:$0xf]  ;;  %v11110_v48 = vld [vmem:[#allocation4 + $0x2d0] sm:$0xf0]  ;;  %v11513_v53 = vor.u32 %v13840_v35, %v11510_v31 }
 0x381   : > { %5212 = vmatpush.bf16.msrb.mxu2 %v10809_v52  ;;  %v13772_v40 = vld [vmem:[#allocation4 + $0x3c4] sm:$0xf]  ;;  %v11238_v41 = vld [vmem:[#allocation4 + $0x3d0] sm:$0xf0] }
 0x382   : > { %5226 = vmatpush.bf16.msrb.mxu3 %v10937_v44  ;;  %v13804_v52 = vld [vmem:[#allocation4 + $0x4c4] sm:$0xf]  ;;  %v11366_v42 = vld [vmem:[#allocation4 + $0x4d0] sm:$0xf0]  ;;  %v11113_v44 = vor.u32 %v13740_v39, %v11110_v48  ;;  %v11241_v45 = vor.u32 %v13772_v40, %v11238_v41 }
 0x383   : > { %5185 = vmatpush.bf16.msrb.mxu0 %v11301_v51  ;;  %v13836_v56 = vld [vmem:[#allocation4 + $0x5c4] sm:$0xf]  ;;  %v11494_v43 = vld [vmem:[#allocation4 + $0x5d0] sm:$0xf0]  ;;  %v11369_v46 = vor.u32 %v13804_v52, %v11366_v42 }
 0x384   : > { %5199 = vmatpush.bf16.msrb.mxu1 %v11429_v55  ;;  %v13736_v47 = vld [vmem:[#allocation4 + $0x2a4] sm:$0xf]  ;;  %v11094_v61 = vld [vmem:[#allocation4 + $0x2b0] sm:$0xf0]  ;;  %v11497_v51 = vor.u32 %v13836_v56, %v11494_v43 }
 0x385   : > { %5213 = vmatpush.bf16.msrb.mxu2 %v10793_v57  ;;  %v13768_v50 = vld [vmem:[#allocation4 + $0x3a4] sm:$0xf]  ;;  %v11222_v55 = vld [vmem:[#allocation4 + $0x3b0] sm:$0xf0] }
 0x386   : > { %5227 = vmatpush.bf16.msrb.mxu3 %v10921_v4  ;;  %v13800_v57 = vld [vmem:[#allocation4 + $0x4a4] sm:$0xf]  ;;  %v11350_v59 = vld [vmem:[#allocation4 + $0x4b0] sm:$0xf0]  ;;  %v11097_v4 = vor.u32 %v13736_v47, %v11094_v61  ;;  %v11225_v5 = vor.u32 %v13768_v50, %v11222_v55 }
 0x387   : > { %5186 = vmatpush.bf16.msrb.mxu0 %v11285_v9  ;;  %v13832_v62 = vld [vmem:[#allocation4 + $0x5a4] sm:$0xf]  ;;  %v11478_v63 = vld [vmem:[#allocation4 + $0x5b0] sm:$0xf0]  ;;  %v11353_v6 = vor.u32 %v13800_v57, %v11350_v59 }
 0x388   : > { %5200 = vmatpush.bf16.msrb.mxu1 %v11413_v13  ;;  %v13732_v7 = vld [vmem:[#allocation4 + $0x284] sm:$0xf]  ;;  %v11078_v58 = vld [vmem:[#allocation4 + $0x290] sm:$0xf0]  ;;  %v11481_v9 = vor.u32 %v13832_v62, %v11478_v63 }
 0x389   : > { %5214 = vmatpush.bf16.msrb.mxu2 %v10777_v14  ;;  %v13764_v8 = vld [vmem:[#allocation4 + $0x384] sm:$0xf]  ;;  %v11206_v11 = vld [vmem:[#allocation4 + $0x390] sm:$0xf0]  ;;  %v11081_v17 = vor.u32 %v13732_v7, %v11078_v58 }
 0x38a   : > { %5228 = vmatpush.bf16.msrb.mxu3 %v10905_v18  ;;  %v13796_v12 = vld [vmem:[#allocation4 + $0x484] sm:$0xf]  ;;  %v11334_v13 = vld [vmem:[#allocation4 + $0x490] sm:$0xf0]  ;;  %v11209_v10 = vor.u32 %v13764_v8, %v11206_v11  ;;  %v13683_v11 = vld [vmem:[#allocation4 + $0xf4] sm:$0xf0] }
 0x38b   : > { %5187 = vmatpush.bf16.msrb.mxu0 %v11269_v25  ;;  %v13828_v14 = vld [vmem:[#allocation4 + $0x584] sm:$0xf]  ;;  %v11462_v15 = vld [vmem:[#allocation4 + $0x590] sm:$0xf0]  ;;  %v11337_v18 = vor.u32 %v13796_v12, %v11334_v13  ;;  %v11004_v12 = vld [vmem:[#allocation4 + $0x1e8] sm:$0xf] }
 0x38c   : > { %5201 = vmatpush.bf16.msrb.mxu1 %v11397_v29  ;;  %v13728_v20 = vld [vmem:[#allocation4 + $0x264] sm:$0xf]  ;;  %v11062_v21 = vld [vmem:[#allocation4 + $0x270] sm:$0xf0]  ;;  %v11465_v23 = vor.u32 %v13828_v14, %v11462_v15  ;;  %v13715_v14 = vld [vmem:[#allocation4 + $0x1f4] sm:$0xf0] }
 0x38d   : > { %5215 = vmatpush.bf16.msrb.mxu2 %v10761_v30  ;;  %v13760_v22 = vld [vmem:[#allocation4 + $0x364] sm:$0xf]  ;;  %v11190_v3 = vld [vmem:[#allocation4 + $0x370] sm:$0xf0]  ;;  %v11065_v28 = vor.u32 %v13728_v20, %v11062_v21  ;;  %v11132_v15 = vld [vmem:[#allocation4 + $0x2e8] sm:$0xf] }
 0x38e   : > { %5229 = vmatpush.bf16.msrb.mxu3 %v10889_v32  ;;  %5188 = vmatmul.bf16.vlgmr.msrb.gmra.mxu0 %v15341_v36  ;;  %v13792_v24 = vld [vmem:[#allocation4 + $0x464] sm:$0xf]  ;;  %v11318_v25 = vld [vmem:[#allocation4 + $0x470] sm:$0xf0]  ;;  %v11193_v29 = vor.u32 %v13760_v22, %v11190_v3  ;;  %v11260_v20 = vld [vmem:[#allocation4 + $0x3e8] sm:$0xf]  ;;  %v11005_v3 = vor.u32 %v13715_v14, %v11004_v12 }
 0x38f   : > { %5236 = vmatpush.bf16.msra.mxu0 %v11129_v37  ;;  %5202 = vmatmul.bf16.vlgmr.msrb.gmra.mxu1 %v15344_v49  ;;  %v13824_v19 = vld [vmem:[#allocation4 + $0x564] sm:$0xf]  ;;  %v11446_v27 = vld [vmem:[#allocation4 + $0x570] sm:$0xf0]  ;;  %v11321_v30 = vor.u32 %v13792_v24, %v11318_v25  ;;  %v13779_v21 = vld [vmem:[#allocation4 + $0x3f4] sm:$0xf0] }
 0x390   : > { %5250 = vmatpush.bf16.msra.mxu1 %v11257_v33  ;;  %5216 = vmatmul.bf16.vlgmr.msrb.gmra.mxu2 %v15325_v26  ;;  %v13724_v35 = vld [vmem:[#allocation4 + $0x244] sm:$0xf]  ;;  %v11046_v31 = vld [vmem:[#allocation4 + $0x250] sm:$0xf0]  ;;  %v11449_v37 = vor.u32 %v13824_v19, %v11446_v27  ;;  %v10860_v25 = vld [vmem:[#allocation4 + $0xc8] sm:$0xf] }
 0x391   : > { %5264 = vmatpush.bf16.msra.mxu2 %v11385_v34  ;;  %5230 = vmatmul.bf16.vlgmr.msrb.gmra.mxu3 %v15332_v38  ;;  %v13756_v32 = vld [vmem:[#allocation4 + $0x344] sm:$0xf]  ;;  %v11174_v33 = vld [vmem:[#allocation4 + $0x350] sm:$0xf0]  ;;  %v13679_v19 = vld [vmem:[#allocation4 + $0xd4] sm:$0xf0] }
 0x392   : > { %5278 = vmatpush.bf16.msra.mxu3 %v11513_v53  ;;  %v13788_v34 = vld [vmem:[#allocation4 + $0x444] sm:$0xf]  ;;  %v11302_v39 = vld [vmem:[#allocation4 + $0x450] sm:$0xf0]  ;;  %v11049_v53 = vor.u32 %v13724_v35, %v11046_v31  ;;  %v11177_v41 = vor.u32 %v13756_v32, %v11174_v33  ;;  %v10988_v27 = vld [vmem:[#allocation4 + $0x1c8] sm:$0xf] }
 0x393   : > { %5237 = vmatpush.bf16.msra.mxu0 %v11113_v44  ;;  %v13820_v48 = vld [vmem:[#allocation4 + $0x544] sm:$0xf]  ;;  %v11430_v40 = vld [vmem:[#allocation4 + $0x550] sm:$0xf0]  ;;  %v11305_v52 = vor.u32 %v13788_v34, %v11302_v39  ;;  %v13743_v35 = vld [vmem:[#allocation4 + $0x2d4] sm:$0xf0] }
 0x394   : > { %5251 = vmatpush.bf16.msra.mxu1 %v11241_v45  ;;  %v13720_v42 = vld [vmem:[#allocation4 + $0x224] sm:$0xf]  ;;  %v11030_v56 = vld [vmem:[#allocation4 + $0x230] sm:$0xf0]  ;;  %v11433_v44 = vor.u32 %v13820_v48, %v11430_v40  ;;  %v11244_v31 = vld [vmem:[#allocation4 + $0x3c8] sm:$0xf] }
 0x395   : > { %5265 = vmatpush.bf16.msra.mxu2 %v11369_v46  ;;  %v13752_v43 = vld [vmem:[#allocation4 + $0x324] sm:$0xf]  ;;  %v11158_v45 = vld [vmem:[#allocation4 + $0x330] sm:$0xf0]  ;;  %v13775_v32 = vld [vmem:[#allocation4 + $0x3d4] sm:$0xf0] }
 0x396   : > { %5279 = vmatpush.bf16.msra.mxu3 %v11497_v51  ;;  %v13784_v46 = vld [vmem:[#allocation4 + $0x424] sm:$0xf]  ;;  %v11286_v47 = vld [vmem:[#allocation4 + $0x430] sm:$0xf0]  ;;  %v11033_v51 = vor.u32 %v13720_v42, %v11030_v56  ;;  %v11161_v59 = vor.u32 %v13752_v43, %v11158_v45  ;;  %v10844_v39 = vld [vmem:[#allocation4 + $0xa8] sm:$0xf] }
 0x397   : > { %5238 = vmatpush.bf16.msra.mxu0 %v11097_v4  ;;  %v13816_v61 = vld [vmem:[#allocation4 + $0x524] sm:$0xf]  ;;  %v11414_v50 = vld [vmem:[#allocation4 + $0x530] sm:$0xf0]  ;;  %v11289_v62 = vor.u32 %v13784_v46, %v11286_v47  ;;  %v13675_v48 = vld [vmem:[#allocation4 + $0xb4] sm:$0xf0] }
 0x398   : > { %5252 = vmatpush.bf16.msra.mxu1 %v11225_v5  ;;  %v13716_v55 = vld [vmem:[#allocation4 + $0x204] sm:$0xf]  ;;  %v11014_v57 = vld [vmem:[#allocation4 + $0x210] sm:$0xf0]  ;;  %v10972_v40 = vld [vmem:[#allocation4 + $0x1a8] sm:$0xf] }
 0x399   : > { %5266 = vmatpush.bf16.msra.mxu2 %v11353_v6  ;;  %v13748_v63 = vld [vmem:[#allocation4 + $0x304] sm:$0xf]  ;;  %v11142_v4 = vld [vmem:[#allocation4 + $0x310] sm:$0xf0]  ;;  %v11417_v6 = vor.u32 %v13816_v61, %v11414_v50  ;;  %v11017_v13 = vor.u32 %v13716_v55, %v11014_v57  ;;  %v13739_v42 = vld [vmem:[#allocation4 + $0x2b4] sm:$0xf0] }
 0x39a   : > { %5280 = vmatpush.bf16.msra.mxu3 %v11481_v9  ;;  %v13780_v5 = vld [vmem:[#allocation4 + $0x404] sm:$0xf]  ;;  %v11270_v7 = vld [vmem:[#allocation4 + $0x410] sm:$0xf0]  ;;  %v10876_v9 = vld [vmem:[#allocation4 + $0xe8] sm:$0xf] }
 0x39b   : > { %5239 = vmatpush.bf16.msra.mxu0 %v11081_v17  ;;  %v13812_v58 = vld [vmem:[#allocation4 + $0x504] sm:$0xf]  ;;  %v11398_v8 = vld [vmem:[#allocation4 + $0x510] sm:$0xf0]  ;;  %v13747_v17 = vld [vmem:[#allocation4 + $0x2f4] sm:$0xf0] }
 0x39c   : > { %5253 = vmatpush.bf16.msra.mxu1 %v11209_v10  ;;  %v11145_v10 = vor.u32 %v13748_v63, %v11142_v4  ;;  %v11401_v22 = vor.u32 %v13812_v58, %v11398_v8  ;;  %v11133_v24 = vor.u32 %v13747_v17, %v11132_v15  ;;  %v11228_v56 = vld [vmem:[#allocation4 + $0x3a8] sm:$0xf]  ;;  %v13771_v43 = vld [vmem:[#allocation4 + $0x3b4] sm:$0xf0] }
 0x39d   : > { %5267 = vmatpush.bf16.msra.mxu2 %v11337_v18  ;;  %v11273_v18 = vor.u32 %v13780_v5, %v11270_v7  ;;  %v10828_v47 = vld [vmem:[#allocation4 + $0x88] sm:$0xf]  ;;  %v13671_v61 = vld [vmem:[#allocation4 + $0x94] sm:$0xf0] }
 0x39e   : > { %5281 = vmatpush.bf16.msra.mxu3 %v11465_v23  ;;  %v10877_v23 = vor.u32 %v13683_v11, %v10876_v9  ;;  %v10956_v50 = vld [vmem:[#allocation4 + $0x188] sm:$0xf]  ;;  %v13703_v55 = vld [vmem:[#allocation4 + $0x194] sm:$0xf0]  ;;  %v10829_v4 = vor.u32 %v13671_v61, %v10828_v47 }
 0x39f   : > { %5240 = vmatpush.bf16.msra.mxu0 %v11065_v28  ;;  %v11261_v28 = vor.u32 %v13779_v21, %v11260_v20  ;;  %v11084_v57 = vld [vmem:[#allocation4 + $0x288] sm:$0xf]  ;;  %v13767_v63 = vld [vmem:[#allocation4 + $0x394] sm:$0xf0]  ;;  %v10957_v5 = vor.u32 %v13703_v55, %v10956_v50 }
 0x3a0   : > { %5254 = vmatpush.bf16.msra.mxu1 %v11193_v29  ;;  %v13711_v29 = vld [vmem:[#allocation4 + $0x1d4] sm:$0xf0]  ;;  %v10812_v7 = vld [vmem:[#allocation4 + $0x68] sm:$0xf] }
 0x3a1   : > { %5268 = vmatpush.bf16.msra.mxu2 %v11321_v30  ;;  %v11116_v30 = vld [vmem:[#allocation4 + $0x2c8] sm:$0xf]  ;;  %v10989_v33 = vor.u32 %v13711_v29, %v10988_v27  ;;  %v13667_v58 = vld [vmem:[#allocation4 + $0x74] sm:$0xf0] }
 0x3a2   : > { %5282 = vmatpush.bf16.msra.mxu3 %v11449_v37  ;;  %v10861_v37 = vor.u32 %v13679_v19, %v10860_v25  ;;  %v11117_v34 = vor.u32 %v13743_v35, %v11116_v30  ;;  %v10940_v8 = vld [vmem:[#allocation4 + $0x168] sm:$0xf]  ;;  %v13699_v11 = vld [vmem:[#allocation4 + $0x174] sm:$0xf0]  ;;  %v10813_v17 = vor.u32 %v13667_v58, %v10812_v7  ;;  %v13713_v7 = vld [vmem:[#allocation4 + $0x1ec] sm:$0xf] }
 0x3a3   : > { %5241 = vmatpush.bf16.msra.mxu0 %v11049_v53  ;;  %v11245_v53 = vor.u32 %v13775_v32, %v11244_v31  ;;  %v11068_v12 = vld [vmem:[#allocation4 + $0x268] sm:$0xf]  ;;  %v13763_v15 = vld [vmem:[#allocation4 + $0x374] sm:$0xf0]  ;;  %v11006_v58 = vld [vmem:[#allocation4 + $0x1f8] sm:$0xf0] }
 0x3a4   : > { %5255 = vmatpush.bf16.msra.mxu1 %v11177_v41  ;;  %v13707_v41 = vld [vmem:[#allocation4 + $0x1b4] sm:$0xf0]  ;;  %v11196_v14 = vld [vmem:[#allocation4 + $0x368] sm:$0xf] }
 0x3a5   : > { %5269 = vmatpush.bf16.msra.mxu2 %v11305_v52  ;;  %v11100_v52 = vld [vmem:[#allocation4 + $0x2a8] sm:$0xf]  ;;  %v10973_v45 = vor.u32 %v13707_v41, %v10972_v40  ;;  %v13663_v21 = vld [vmem:[#allocation4 + $0x54] sm:$0xf0] }
 0x3a6   : > { %5283 = vmatpush.bf16.msra.mxu3 %v11433_v44  ;;  %v10845_v44 = vor.u32 %v13675_v48, %v10844_v39  ;;  %v11101_v46 = vor.u32 %v13739_v42, %v11100_v52  ;;  %v10796_v20 = vld [vmem:[#allocation4 + $0x48] sm:$0xf]  ;;  %v13727_v25 = vld [vmem:[#allocation4 + $0x254] sm:$0xf0] }
 0x3a7   : > { %5242 = vmatpush.bf16.msra.mxu0 %v11033_v51  ;;  %v11229_v51 = vor.u32 %v13771_v43, %v11228_v56  ;;  %v11180_v19 = vld [vmem:[#allocation4 + $0x348] sm:$0xf]  ;;  %v13759_v27 = vld [vmem:[#allocation4 + $0x354] sm:$0xf0] }
 0x3a8   : > { %5256 = vmatpush.bf16.msra.mxu1 %v11161_v59  ;;  %v13735_v59 = vld [vmem:[#allocation4 + $0x294] sm:$0xf0]  ;;  %v10780_v35 = vld [vmem:[#allocation4 + $0x28] sm:$0xf] }
 0x3a9   : > { %5270 = vmatpush.bf16.msra.mxu2 %v11289_v62  ;;  %v11212_v62 = vld [vmem:[#allocation4 + $0x388] sm:$0xf]  ;;  %v13659_v31 = vld [vmem:[#allocation4 + $0x34] sm:$0xf0] }
 0x3aa   : > { %5284 = vmatpush.bf16.msra.mxu3 %v11417_v6  ;;  %v11085_v6 = vor.u32 %v13735_v59, %v11084_v57  ;;  %v11213_v9 = vor.u32 %v13767_v63, %v11212_v62  ;;  %v10908_v32 = vld [vmem:[#allocation4 + $0x128] sm:$0xf]  ;;  %v13723_v39 = vld [vmem:[#allocation4 + $0x234] sm:$0xf0]  ;;  %v13681_v63 = vld [vmem:[#allocation4 + $0xec] sm:$0xf] }
 0x3ab   : > { %5243 = vmatpush.bf16.msra.mxu0 %v11017_v13  ;;  %v13731_v13 = vld [vmem:[#allocation4 + $0x274] sm:$0xf0]  ;;  %v11164_v48 = vld [vmem:[#allocation4 + $0x328] sm:$0xf] }
 0x3ac   : > { %5257 = vmatpush.bf16.msra.mxu1 %v11145_v10  ;;  %v10941_v10 = vor.u32 %v13699_v11, %v10940_v8  ;;  %v13755_v40 = vld [vmem:[#allocation4 + $0x334] sm:$0xf0]  ;;  %v10764_v41 = vld [vmem:[#allocation4 + $0x8] sm:$0xf] }
 0x3ad   : > { %5271 = vmatpush.bf16.msra.mxu2 %v11273_v18  ;;  %v11069_v18 = vor.u32 %v13731_v13, %v11068_v12  ;;  %v13655_v52 = vld [vmem:[#allocation4 + $0x14] sm:$0xf0]  ;;  %v10892_v43 = vld [vmem:[#allocation4 + $0x108] sm:$0xf] }
 0x3ae   : > { %5285 = vmatpush.bf16.msra.mxu3 %v11401_v22  ;;  %5244 = vmatmul.bf16.vlgmr.msra.gmra.mxu0 %v15335_v54  ;;  %v10924_v22 = vld [vmem:[#allocation4 + $0x148] sm:$0xf]  ;;  %v13719_v47 = vld [vmem:[#allocation4 + $0x214] sm:$0xf0]  ;;  %v10765_v59 = vor.u32 %v13655_v52, %v10764_v41  ;;  %v13669_v52 = vld [vmem:[#allocation4 + $0x8c] sm:$0xf] }
 0x3af   : > { %5292 = vmatpush.bf16.msrb.mxu0 %v10877_v23  ;;  %5258 = vmatmul.bf16.vlgmr.msra.gmra.mxu1 %v15338_v16  ;;  %v11197_v23 = vor.u32 %v13763_v15, %v11196_v14  ;;  %v11148_v61 = vld [vmem:[#allocation4 + $0x308] sm:$0xf]  ;;  %v13751_v50 = vld [vmem:[#allocation4 + $0x314] sm:$0xf0] }
 0x3b0   : > { %5306 = vmatpush.bf16.msrb.mxu1 %v11005_v3  ;;  %5272 = vmatmul.bf16.vlgmr.msra.gmra.mxu2 %v15341_v36  ;;  %v13695_v3 = vld [vmem:[#allocation4 + $0x154] sm:$0xf0]  ;;  %v11516_v57 = vld [vmem:[#allocation4 + $0x5e8] sm:$0xf]  ;;  %v11149_v8 = vor.u32 %v13751_v50, %v11148_v61 }
 0x3b1   : > { %5320 = vmatpush.bf16.msrb.mxu2 %v11133_v24  ;;  %5286 = vmatmul.bf16.vlgmr.msra.gmra.mxu3 %v15344_v49  ;;  %v11052_v24 = vld [vmem:[#allocation4 + $0x248] sm:$0xf]  ;;  %v10925_v29 = vor.u32 %v13695_v3, %v10924_v22  ;;  %v13811_v55 = vld [vmem:[#allocation4 + $0x4f4] sm:$0xf0]  ;;  %v10990_v22 = vld [vmem:[#allocation4 + $0x1d8] sm:$0xf0] }
 0x3b2   : > { %5334 = vmatpush.bf16.msrb.mxu3 %v11261_v28  ;;  %v10797_v28 = vor.u32 %v13663_v21, %v10796_v20  ;;  %v11053_v30 = vor.u32 %v13727_v25, %v11052_v24  ;;  %v13843_v62 = vld [vmem:[#allocation4 + $0x5f4] sm:$0xf0]  ;;  %v11372_v13 = vld [vmem:[#allocation4 + $0x4c8] sm:$0xf]  ;;  %v10862_v20 = vld [vmem:[#allocation4 + $0xd8] sm:$0xf0] }
 0x3b3   : > { %5293 = vmatpush.bf16.msrb.mxu0 %v10861_v37  ;;  %v11181_v37 = vor.u32 %v13759_v27, %v11180_v19  ;;  %v11517_v11 = vor.u32 %v13843_v62, %v11516_v57  ;;  %v13807_v14 = vld [vmem:[#allocation4 + $0x4d4] sm:$0xf0]  ;;  %v11500_v15 = vld [vmem:[#allocation4 + $0x5c8] sm:$0xf]  ;;  %v13709_v21 = vld [vmem:[#allocation4 + $0x1cc] sm:$0xf] }
 0x3b4   : > { %5307 = vmatpush.bf16.msrb.mxu1 %v10989_v33  ;;  %v13691_v33 = vld [vmem:[#allocation4 + $0x134] sm:$0xf0]  ;;  %v11356_v25 = vld [vmem:[#allocation4 + $0x4a8] sm:$0xf]  ;;  %v13665_v57 = vld [vmem:[#allocation4 + $0x6c] sm:$0xf] }
 0x3b5   : > { %5321 = vmatpush.bf16.msrb.mxu2 %v11117_v34  ;;  %v11036_v34 = vld [vmem:[#allocation4 + $0x228] sm:$0xf]  ;;  %v10909_v42 = vor.u32 %v13691_v33, %v10908_v32  ;;  %v13803_v19 = vld [vmem:[#allocation4 + $0x4b4] sm:$0xf0]  ;;  %v10974_v32 = vld [vmem:[#allocation4 + $0x1b8] sm:$0xf0] }
 0x3b6   : > { %5335 = vmatpush.bf16.msrb.mxu3 %v11245_v53  ;;  %v10781_v53 = vor.u32 %v13659_v31, %v10780_v35  ;;  %v11037_v56 = vor.u32 %v13723_v39, %v11036_v34  ;;  %v11484_v27 = vld [vmem:[#allocation4 + $0x5a8] sm:$0xf]  ;;  %v10846_v35 = vld [vmem:[#allocation4 + $0xb8] sm:$0xf0]  ;;  %v13705_v31 = vld [vmem:[#allocation4 + $0x1ac] sm:$0xf] }
 0x3b7   : > { %5294 = vmatpush.bf16.msrb.mxu0 %v10845_v44  ;;  %v13687_v44 = vld [vmem:[#allocation4 + $0x114] sm:$0xf0]  ;;  %v11340_v39 = vld [vmem:[#allocation4 + $0x488] sm:$0xf]  ;;  %v13697_v62 = vld [vmem:[#allocation4 + $0x16c] sm:$0xf] }
 0x3b8   : > { %5308 = vmatpush.bf16.msrb.mxu1 %v10973_v45  ;;  %v11020_v45 = vld [vmem:[#allocation4 + $0x208] sm:$0xf]  ;;  %v13831_v41 = vld [vmem:[#allocation4 + $0x594] sm:$0xf0] }
 0x3b9   : > { %5322 = vmatpush.bf16.msrb.mxu2 %v11101_v46  ;;  %v11165_v46 = vor.u32 %v13755_v40, %v11164_v48  ;;  %v13799_v48 = vld [vmem:[#allocation4 + $0x494] sm:$0xf0]  ;;  %v11468_v40 = vld [vmem:[#allocation4 + $0x588] sm:$0xf] }
 0x3ba   : > { %5336 = vmatpush.bf16.msrb.mxu3 %v11229_v51  ;;  %v11388_v51 = vld [vmem:[#allocation4 + $0x4e8] sm:$0xf]  ;;  %v13795_v61 = vld [vmem:[#allocation4 + $0x474] sm:$0xf0] }
 0x3bb   : > { %5295 = vmatpush.bf16.msrb.mxu0 %v10829_v4  ;;  %v10878_v4 = vld [vmem:[#allocation4 + $0xf8] sm:$0xf0]  ;;  %v11452_v50 = vld [vmem:[#allocation4 + $0x568] sm:$0xf] }
 0x3bc   : > { %5309 = vmatpush.bf16.msrb.mxu1 %v10957_v5  ;;  %v10893_v5 = vor.u32 %v13687_v44, %v10892_v43  ;;  %v10881_v12 = vor.u32 %v13681_v63, %v10878_v4  ;;  %v10958_v43 = vld [vmem:[#allocation4 + $0x198] sm:$0xf0]  ;;  %v11341_v44 = vor.u32 %v13799_v48, %v11340_v39  ;;  %v13685_v48 = vld [vmem:[#allocation4 + $0x10c] sm:$0xf] }
 0x3bd   : > { %5323 = vmatpush.bf16.msrb.mxu2 %v11085_v6  ;;  %v11021_v6 = vor.u32 %v13719_v47, %v11020_v45  ;;  %v11469_v45 = vor.u32 %v13831_v41, %v11468_v40  ;;  %v11324_v47 = vld [vmem:[#allocation4 + $0x468] sm:$0xf]  ;;  %v10942_v63 = vld [vmem:[#allocation4 + $0x178] sm:$0xf0] }
 0x3be   : > { %5337 = vmatpush.bf16.msrb.mxu3 %v11213_v9  ;;  %v11389_v9 = vor.u32 %v13811_v55, %v11388_v51  ;;  %v13827_v55 = vld [vmem:[#allocation4 + $0x574] sm:$0xf0]  ;;  %v11325_v4 = vor.u32 %v13795_v61, %v11324_v47  ;;  %v10766_v39 = vld [vmem:[#allocation4 + $0x18] sm:$0xf0]  ;;  %v13841_v47 = vld [vmem:[#allocation4 + $0x5ec] sm:$0xf] }
 0x3bf   : > { %5296 = vmatpush.bf16.msrb.mxu0 %v10813_v17  ;;  %v11009_v17 = vor.u32 %v13713_v7, %v11006_v58  ;;  %v11308_v7 = vld [vmem:[#allocation4 + $0x448] sm:$0xf]  ;;  %v13791_v58 = vld [vmem:[#allocation4 + $0x454] sm:$0xf0]  ;;  %v10894_v40 = vld [vmem:[#allocation4 + $0x118] sm:$0xf0] }
 0x3c0   : > { %5310 = vmatpush.bf16.msrb.mxu1 %v10941_v10  ;;  %v13839_v10 = vld [vmem:[#allocation4 + $0x5d4] sm:$0xf0]  ;;  %v11134_v41 = vld [vmem:[#allocation4 + $0x2f8] sm:$0xf0] }
 0x3c1   : > { %5324 = vmatpush.bf16.msrb.mxu2 %v11069_v18  ;;  %v13677_v18 = vld [vmem:[#allocation4 + $0xcc] sm:$0xf]  ;;  %v11501_v3 = vor.u32 %v13839_v10, %v11500_v15  ;;  %v10926_v15 = vld [vmem:[#allocation4 + $0x158] sm:$0xf0] }
 0x3c2   : > { %5338 = vmatpush.bf16.msrb.mxu3 %v11197_v23  ;;  %v11373_v23 = vor.u32 %v13807_v14, %v11372_v13  ;;  %v10865_v24 = vor.u32 %v13677_v18, %v10862_v20  ;;  %v10798_v13 = vld [vmem:[#allocation4 + $0x58] sm:$0xf0]  ;;  %v13693_v14 = vld [vmem:[#allocation4 + $0x14c] sm:$0xf]  ;;  %v11292_v20 = vld [vmem:[#allocation4 + $0x428] sm:$0xf] }
 0x3c3   : > { %5297 = vmatpush.bf16.msrb.mxu0 %v10797_v28  ;;  %v10993_v28 = vor.u32 %v13709_v21, %v10990_v22  ;;  %v13787_v21 = vld [vmem:[#allocation4 + $0x434] sm:$0xf0]  ;;  %v11420_v22 = vld [vmem:[#allocation4 + $0x528] sm:$0xf]  ;;  %v11518_v61 = vld [vmem:[#allocation4 + $0x5f8] sm:$0xf0] }
 0x3c4   : > { %5311 = vmatpush.bf16.msrb.mxu1 %v10925_v29  ;;  %v13835_v29 = vld [vmem:[#allocation4 + $0x5b4] sm:$0xf0] }
 0x3c5   : > { %5325 = vmatpush.bf16.msrb.mxu2 %v11053_v30  ;;  %v13673_v30 = vld [vmem:[#allocation4 + $0xac] sm:$0xf]  ;;  %v11485_v33 = vor.u32 %v13835_v29, %v11484_v27  ;;  %v10910_v27 = vld [vmem:[#allocation4 + $0x138] sm:$0xf0]  ;;  %v11276_v29 = vld [vmem:[#allocation4 + $0x408] sm:$0xf] }
 0x3c6   : > { %5339 = vmatpush.bf16.msrb.mxu3 %v11181_v37  ;;  %v11357_v37 = vor.u32 %v13803_v19, %v11356_v25  ;;  %v10849_v34 = vor.u32 %v13673_v30, %v10846_v35  ;;  %v10782_v25 = vld [vmem:[#allocation4 + $0x38] sm:$0xf0]  ;;  %v13689_v19 = vld [vmem:[#allocation4 + $0x12c] sm:$0xf]  ;;  %v13783_v30 = vld [vmem:[#allocation4 + $0x414] sm:$0xf0] }
 0x3c7   : > { %5298 = vmatpush.bf16.msrb.mxu0 %v10781_v53  ;;  %v10977_v53 = vor.u32 %v13705_v31, %v10974_v32  ;;  %v11404_v32 = vld [vmem:[#allocation4 + $0x508] sm:$0xf] }
 0x3c8   : > { %5312 = vmatpush.bf16.msrb.mxu1 %v10909_v42  ;;  %v10830_v42 = vld [vmem:[#allocation4 + $0x98] sm:$0xf0] }
 0x3c9   : > { %5326 = vmatpush.bf16.msrb.mxu2 %v11037_v56  ;;  %v13701_v56 = vld [vmem:[#allocation4 + $0x18c] sm:$0xf] }
 0x3ca   : > { %5340 = vmatpush.bf16.msrb.mxu3 %v11165_v46  ;;  %v10833_v46 = vor.u32 %v13669_v52, %v10830_v42  ;;  %v10961_v51 = vor.u32 %v13701_v56, %v10958_v43  ;;  %v13777_v52 = vld [vmem:[#allocation4 + $0x3ec] sm:$0xf]  ;;  %v11277_v42 = vor.u32 %v13783_v30, %v11276_v29  ;;  %v11262_v56 = vld [vmem:[#allocation4 + $0x3f8] sm:$0xf0] }
 0x3cb   : > { %5299 = vmatpush.bf16.msrb.mxu0 %v10765_v59  ;;  %v10814_v59 = vld [vmem:[#allocation4 + $0x78] sm:$0xf0]  ;;  %v13809_v43 = vld [vmem:[#allocation4 + $0x4ec] sm:$0xf] }
 0x3cc   : > { %5313 = vmatpush.bf16.msrb.mxu1 %v10893_v5  ;;  %v11453_v5 = vor.u32 %v13827_v55, %v11452_v50  ;;  %v10897_v50 = vor.u32 %v13685_v48, %v10894_v40  ;;  %v11265_v55 = vor.u32 %v13777_v52, %v11262_v56  ;;  %v11214_v30 = vld [vmem:[#allocation4 + $0x398] sm:$0xf0]  ;;  %v13729_v40 = vld [vmem:[#allocation4 + $0x26c] sm:$0xf] }
 0x3cd   : > { %5327 = vmatpush.bf16.msrb.mxu2 %v11021_v6  ;;  %v10817_v6 = vor.u32 %v13665_v57, %v10814_v59  ;;  %v13741_v59 = vld [vmem:[#allocation4 + $0x2cc] sm:$0xf] }
 0x3ce   : > { %5341 = vmatpush.bf16.msrb.mxu3 %v11149_v8  ;;  %5300 = vmatmul.bf16.vlgmr.msrb.gmra.mxu0 %v15325_v26  ;;  %v11436_v8 = vld [vmem:[#allocation4 + $0x548] sm:$0xf]  ;;  %v13793_v56 = vld [vmem:[#allocation4 + $0x46c] sm:$0xf] }
 0x3cf   : > { %5348 = vmatpush.bf16.msra.mxu0 %v11389_v9  ;;  %5314 = vmatmul.bf16.vlgmr.msrb.gmra.mxu1 %v15332_v38  ;;  %v10945_v9 = vor.u32 %v13697_v62, %v10942_v63  ;;  %v11118_v62 = vld [vmem:[#allocation4 + $0x2d8] sm:$0xf0]  ;;  %v13773_v63 = vld [vmem:[#allocation4 + $0x3cc] sm:$0xf] }
 0x3d0   : > { %5362 = vmatpush.bf16.msra.mxu1 %v11517_v11  ;;  %5328 = vmatmul.bf16.vlgmr.msrb.gmra.mxu2 %v15335_v54  ;;  %v13823_v11 = vld [vmem:[#allocation4 + $0x554] sm:$0xf0] }
 0x3d1   : > { %5376 = vmatpush.bf16.msra.mxu2 %v10881_v12  ;;  %5342 = vmatmul.bf16.vlgmr.msrb.gmra.mxu3 %v15338_v16  ;;  %v13661_v12 = vld [vmem:[#allocation4 + $0x4c] sm:$0xf]  ;;  %v11437_v10 = vor.u32 %v13823_v11, %v11436_v8  ;;  %v11502_v8 = vld [vmem:[#allocation4 + $0x5d8] sm:$0xf0] }
 0x3d2   : > { %5390 = vmatpush.bf16.msra.mxu3 %v11009_v17  ;;  %v11309_v17 = vor.u32 %v13791_v58, %v11308_v7  ;;  %v10801_v18 = vor.u32 %v13661_v12, %v10798_v13  ;;  %v11374_v7 = vld [vmem:[#allocation4 + $0x4d8] sm:$0xf0]  ;;  %v13837_v58 = vld [vmem:[#allocation4 + $0x5cc] sm:$0xf] }
 0x3d3   : > { %5349 = vmatpush.bf16.msra.mxu0 %v11373_v23  ;;  %v10929_v23 = vor.u32 %v13693_v14, %v10926_v15  ;;  %v13737_v13 = vld [vmem:[#allocation4 + $0x2ac] sm:$0xf]  ;;  %v11102_v14 = vld [vmem:[#allocation4 + $0x2b8] sm:$0xf0] }
 0x3d4   : > { %5363 = vmatpush.bf16.msra.mxu1 %v11501_v3  ;;  %v13819_v3 = vld [vmem:[#allocation4 + $0x534] sm:$0xf0]  ;;  %v13769_v15 = vld [vmem:[#allocation4 + $0x3ac] sm:$0xf] }
 0x3d5   : > { %5377 = vmatpush.bf16.msra.mxu2 %v10865_v24  ;;  %v13657_v24 = vld [vmem:[#allocation4 + $0x2c] sm:$0xf]  ;;  %v11421_v35 = vor.u32 %v13819_v3, %v11420_v22  ;;  %v11486_v22 = vld [vmem:[#allocation4 + $0x5b8] sm:$0xf0]  ;;  %v4156_v3 = vperm.slane %v15286_v60, 0 }
 0x3d6   : > { %5391 = vmatpush.bf16.msra.mxu3 %v10993_v28  ;;  %v11293_v28 = vor.u32 %v13787_v21, %v11292_v20  ;;  %v10785_v31 = vor.u32 %v13657_v24, %v10782_v25  ;;  %v11358_v20 = vld [vmem:[#allocation4 + $0x4b8] sm:$0xf0]  ;;  %v13833_v21 = vld [vmem:[#allocation4 + $0x5ac] sm:$0xf] }
 0x3d7   : > { %5350 = vmatpush.bf16.msra.mxu0 %v11357_v37  ;;  %v13815_v37 = vld [vmem:[#allocation4 + $0x514] sm:$0xf0]  ;;  %v11489_v29 = vor.u32 %v13833_v21, %v11486_v22  ;;  %v11166_v22 = vld [vmem:[#allocation4 + $0x338] sm:$0xf0] }
 0x3d8   : > { %5364 = vmatpush.bf16.msra.mxu1 %v11485_v33  ;;  %v13653_v33 = vld [vmem:[#allocation4 + $0xc] sm:$0xf] }
 0x3d9   : > { %5378 = vmatpush.bf16.msra.mxu2 %v10849_v34  ;;  %v10913_v34 = vor.u32 %v13689_v19, %v10910_v27  ;;  %v13733_v19 = vld [vmem:[#allocation4 + $0x28c] sm:$0xf]  ;;  %v11086_v27 = vld [vmem:[#allocation4 + $0x298] sm:$0xf0] }
 0x3da   : > { %5392 = vmatpush.bf16.msra.mxu3 %v10977_v53  ;;  %v13745_v53 = vld [vmem:[#allocation4 + $0x2ec] sm:$0xf] }
 0x3db   : > { %5351 = vmatpush.bf16.msra.mxu0 %v11341_v44  ;;  %v11390_v44 = vld [vmem:[#allocation4 + $0x4f8] sm:$0xf0] }
 0x3dc   : > { %5365 = vmatpush.bf16.msra.mxu1 %v11469_v45  ;;  %v11405_v45 = vor.u32 %v13815_v37, %v11404_v32  ;;  %v11393_v57 = vor.u32 %v13809_v43, %v11390_v44  ;;  %v11470_v32 = vld [vmem:[#allocation4 + $0x598] sm:$0xf0] }
 0x3dd   : > { %5379 = vmatpush.bf16.msra.mxu2 %v10833_v46  ;;  %v10769_v46 = vor.u32 %v13653_v33, %v10766_v39  ;;  %v11089_v33 = vor.u32 %v13733_v19, %v11086_v27  ;;  %v11326_v43 = vld [vmem:[#allocation4 + $0x478] sm:$0xf0]  ;;  %v13817_v19 = vld [vmem:[#allocation4 + $0x52c] sm:$0xf] }
 0x3de   : > { %5393 = vmatpush.bf16.msra.mxu3 %v10961_v51  ;;  %v11137_v51 = vor.u32 %v13745_v53, %v11134_v41  ;;  %v11070_v53 = vld [vmem:[#allocation4 + $0x278] sm:$0xf0]  ;;  %v13761_v41 = vld [vmem:[#allocation4 + $0x36c] sm:$0xf] }
 0x3df   : > { %5352 = vmatpush.bf16.msra.mxu0 %v11325_v4  ;;  %v11521_v4 = vor.u32 %v13841_v47, %v11518_v61  ;;  %v11073_v47 = vor.u32 %v13729_v40, %v11070_v53  ;;  %v11422_v27 = vld [vmem:[#allocation4 + $0x538] sm:$0xf0] }
 0x3e0   : > { %5366 = vmatpush.bf16.msra.mxu1 %v11453_v5  ;;  %v11246_v5 = vld [vmem:[#allocation4 + $0x3d8] sm:$0xf0] }
 0x3e1   : > { %5380 = vmatpush.bf16.msra.mxu2 %v10817_v6  ;;  %v13805_v6 = vld [vmem:[#allocation4 + $0x4cc] sm:$0xf]  ;;  %v11249_v11 = vor.u32 %v13773_v63, %v11246_v5 }
 0x3e2   : > { %5394 = vmatpush.bf16.msra.mxu3 %v10945_v9  ;;  %v11121_v9 = vor.u32 %v13741_v59, %v11118_v62  ;;  %v11377_v12 = vor.u32 %v13805_v6, %v11374_v7  ;;  %v11182_v62 = vld [vmem:[#allocation4 + $0x358] sm:$0xf0]  ;;  %v13789_v63 = vld [vmem:[#allocation4 + $0x44c] sm:$0xf] }
 0x3e3   : > { %5353 = vmatpush.bf16.msra.mxu0 %v11309_v17  ;;  %v11505_v17 = vor.u32 %v13837_v58, %v11502_v8  ;;  %v13821_v6 = vld [vmem:[#allocation4 + $0x54c] sm:$0xf]  ;;  %v11438_v7 = vld [vmem:[#allocation4 + $0x558] sm:$0xf0] }
 0x3e4   : > { %5367 = vmatpush.bf16.msra.mxu1 %v11437_v10  ;;  %v11230_v10 = vld [vmem:[#allocation4 + $0x3b8] sm:$0xf0]  ;;  %v11441_v21 = vor.u32 %v13821_v6, %v11438_v7 }
 0x3e5   : > { %5381 = vmatpush.bf16.msra.mxu2 %v10801_v18  ;;  %v13801_v18 = vld [vmem:[#allocation4 + $0x4ac] sm:$0xf]  ;;  %v11233_v24 = vor.u32 %v13769_v15, %v11230_v10 }
 0x3e6   : > { %5395 = vmatpush.bf16.msra.mxu3 %v10929_v23  ;;  %v11105_v23 = vor.u32 %v13737_v13, %v11102_v14  ;;  %v11361_v25 = vor.u32 %v13801_v18, %v11358_v20  ;;  %v13721_v15 = vld [vmem:[#allocation4 + $0x22c] sm:$0xf] }
 0x3e7   : > { %5354 = vmatpush.bf16.msra.mxu0 %v11293_v28  ;;  %v13765_v28 = vld [vmem:[#allocation4 + $0x38c] sm:$0xf] }
 0x3e8   : > { %5368 = vmatpush.bf16.msra.mxu1 %v11421_v35  ;;  %v13797_v35 = vld [vmem:[#allocation4 + $0x48c] sm:$0xf]  ;;  %v11217_v39 = vor.u32 %v13765_v28, %v11214_v30 }
 0x3e9   : > { %5382 = vmatpush.bf16.msra.mxu2 %v10785_v31  ;;  %v13829_v31 = vld [vmem:[#allocation4 + $0x58c] sm:$0xf] }
 0x3ea   : > { %5396 = vmatpush.bf16.msra.mxu3 %v10913_v34  ;;  %v11473_v52 = vor.u32 %v13829_v31, %v11470_v32  ;;  %v13753_v10 = vld [vmem:[#allocation4 + $0x32c] sm:$0xf]  ;;  %v11425_v31 = vor.u32 %v13817_v19, %v11422_v27  ;;  %v11150_v32 = vld [vmem:[#allocation4 + $0x318] sm:$0xf0] }
 0x3eb   : > { %5355 = vmatpush.bf16.msra.mxu0 %v11277_v42  ;;  %v5133_v37 = vpop.f32.mrf.mxu0  ;;  %v11198_v42 = vld [vmem:[#allocation4 + $0x378] sm:$0xf0]  ;;  %v13717_v30 = vld [vmem:[#allocation4 + $0x20c] sm:$0xf] }
 0x3ec   : > { %5369 = vmatpush.bf16.msra.mxu1 %v11405_v45  ;;  %v5147_v34 = vpop.f32.mrf.mxu1  ;;  %v13825_v45 = vld [vmem:[#allocation4 + $0x56c] sm:$0xf]  ;;  %v11201_v61 = vor.u32 %v13761_v41, %v11198_v42 }
 0x3ed   : > { %5383 = vmatpush.bf16.msra.mxu2 %v10769_v46  ;;  %v11454_v46 = vld [vmem:[#allocation4 + $0x578] sm:$0xf0] }
 0x3ee   : > { %5397 = vmatpush.bf16.msra.mxu3 %v10897_v50  ;;  %5356 = vmatmul.bf16.vlgmr.msra.gmra.mxu0 %v15341_v36  ;;  %v11329_v50 = vor.u32 %v13793_v56, %v11326_v43  ;;  %v11457_v59 = vor.u32 %v13825_v45, %v11454_v46 }
 0x3ef   : > { %5404 = vmatpush.bf16.msrb.mxu0 %v11137_v51  ;;  %5370 = vmatmul.bf16.vlgmr.msra.gmra.mxu1 %v15344_v49  ;;  %v13725_v51 = vld [vmem:[#allocation4 + $0x24c] sm:$0xf] }
 0x3f0   : > { %5418 = vmatpush.bf16.msrb.mxu1 %v11265_v55  ;;  %5384 = vmatmul.bf16.vlgmr.msra.gmra.mxu2 %v15325_v26  ;;  %v11342_v26 = vld [vmem:[#allocation4 + $0x498] sm:$0xf0] }
 0x3f1   : > { %5432 = vmatpush.bf16.msrb.mxu2 %v11393_v57  ;;  %5398 = vmatmul.bf16.vlgmr.msra.gmra.mxu3 %v15332_v38  ;;  %v5134_v38 = vadd.f32 %v5133_v37, %v4156_v3  ;;  %v11345_v48 = vor.u32 %v13797_v35, %v11342_v26  ;;  %v11054_v55 = vld [vmem:[#allocation4 + $0x258] sm:$0xf0]  ;;  %v13757_v57 = vld [vmem:[#allocation4 + $0x34c] sm:$0xf] }
 0x3f2   : > { %5446 = vmatpush.bf16.msrb.mxu3 %v11521_v4  ;;  %v11310_v4 = vld [vmem:[#allocation4 + $0x458] sm:$0xf0]  ;;  %v11185_v13 = vor.u32 %v13757_v57, %v11182_v62  ;;  %v13749_v26 = vld [vmem:[#allocation4 + $0x30c] sm:$0xf] }
 0x3f3   : > { %5405 = vmatpush.bf16.msrb.mxu0 %v11121_v9  ;;  %v5148_v44 = vadd.f32 %v5147_v34, %v5134_v38  ;;  %v5161_v5 = vpop.f32.mrf.mxu2  ;;  %v5135_v58 = vpop.f32.mrf.mxu0  ;;  %v11313_v14 = vor.u32 %v13789_v63, %v11310_v4  ;;  %v11022_v35 = vld [vmem:[#allocation4 + $0x218] sm:$0xf0]  ;;  %v13781_v37 = vld [vmem:[#allocation4 + $0x40c] sm:$0xf]  ;;  %v11153_v41 = vor.u32 %v13749_v26, %v11150_v32 }
 0x3f4   : > { %5419 = vmatpush.bf16.msrb.mxu1 %v11249_v11  ;;  %v5175_v9 = vpop.f32.mrf.mxu3  ;;  %v11057_v11 = vor.u32 %v13725_v51, %v11054_v55  ;;  %v5149_v18 = vpop.f32.mrf.mxu1  ;;  %v13813_v34 = vld [vmem:[#allocation4 + $0x50c] sm:$0xf]  ;;  %v11025_v53 = vor.u32 %v13717_v30, %v11022_v35 }
 0x3f5   : > { %5433 = vmatpush.bf16.msrb.mxu2 %v11377_v12  ;;  %v5162_v8 = vadd.f32 %v5161_v5, %v5148_v44  ;;  %v5136_v12 = vadd.f32 %v5135_v58, %v4156_v3  ;;  %v11169_v3 = vor.u32 %v13753_v10, %v11166_v22 }
 0x3f6   : > { %5447 = vmatpush.bf16.msrb.mxu3 %v11505_v17  ;;  %v11038_v17 = vld [vmem:[#allocation4 + $0x238] sm:$0xf0] }
 0x3f7   : > { %5406 = vmatpush.bf16.msrb.mxu0 %v11105_v23  ;;  %v5176_v20 = vadd.f32 %v5175_v9, %v5162_v8  ;;  %v13785_v23 = vld [vmem:[#allocation4 + $0x42c] sm:$0xf]  ;;  %v11041_v28 = vor.u32 %v13721_v15, %v11038_v17 }
 0x3f8   : > { %5420 = vmatpush.bf16.msrb.mxu1 %v11233_v24  ;;  %v11294_v24 = vld [vmem:[#allocation4 + $0x438] sm:$0xf0] }
 0x3f9   : > { %5434 = vmatpush.bf16.msrb.mxu2 %v11361_v25  ;;  %v5150_v25 = vadd.f32 %v5149_v18, %v5136_v12 }
 0x3fa   : > { %5448 = vmatpush.bf16.msrb.mxu3 %v11489_v29  ;;  %v11297_v29 = vor.u32 %v13785_v23, %v11294_v24 }
 0x3fb   : > { %5407 = vmatpush.bf16.msrb.mxu0 %v11089_v33  ;;  %v11278_v33 = vld [vmem:[#allocation4 + $0x418] sm:$0xf0]  ;;  %v5163_v38 = vpop.f32.mrf.mxu2 }
 0x3fc   : > { %5421 = vmatpush.bf16.msrb.mxu1 %v11217_v39  ;;  %v11406_v39 = vld [vmem:[#allocation4 + $0x518] sm:$0xf0]  ;;  %v5177_v40 = vpop.f32.mrf.mxu3 }
 0x3fd   : > { %5435 = vmatpush.bf16.msrb.mxu2 %v11345_v48  ;;  %v5164_v48 = vadd.f32 %v5163_v38, %v5150_v25  ;;  %v11409_v56 = vor.u32 %v13813_v34, %v11406_v39 }
 0x3fe   : > { %5449 = vmatpush.bf16.msrb.mxu3 %v11473_v52  ;;  %v11281_v52 = vor.u32 %v13781_v37, %v11278_v33 }
 0x3ff   : > { %5408 = vmatpush.bf16.msrb.mxu0 %v11073_v47  ;;  %v5178_v42 = vadd.f32 %v5177_v40, %v5164_v48  ;;  %v4157_v47 = vperm.slane %v15286_v60, 1 }
 0x400   : > { %5422 = vmatpush.bf16.msrb.mxu1 %v11201_v61 }
 0x401   : > { %5436 = vmatpush.bf16.msrb.mxu2 %v11329_v50 }
 0x402   : > { %5450 = vmatpush.bf16.msrb.mxu3 %v11457_v59 }
 0x403   : > { %5409 = vmatpush.bf16.msrb.mxu0 %v11057_v11 }
 0x404   : > { %5423 = vmatpush.bf16.msrb.mxu1 %v11185_v13 }
 0x405   : > { %5437 = vmatpush.bf16.msrb.mxu2 %v11313_v14 }
 0x406   : > { %5451 = vmatpush.bf16.msrb.mxu3 %v11441_v21 }
 0x407   : > { %5410 = vmatpush.bf16.msrb.mxu0 %v11041_v28 }
 0x408   : > { %5424 = vmatpush.bf16.msrb.mxu1 %v11169_v3  ;;  %v4158_v3 = vperm.slane %v15286_v60, 2 }
 0x409   : > { %5438 = vmatpush.bf16.msrb.mxu2 %v11297_v29 }
 0x40a   : > { %5452 = vmatpush.bf16.msrb.mxu3 %v11425_v31 }
 0x40b   : > { %5411 = vmatpush.bf16.msrb.mxu0 %v11025_v53  ;;  %v5189_v43 = vpop.f32.mrf.mxu0 }
 0x40c   : > { %5425 = vmatpush.bf16.msrb.mxu1 %v11153_v41  ;;  %v5190_v44 = vadd.f32 %v5189_v43, %v5176_v20  ;;  %v5203_v45 = vpop.f32.mrf.mxu1 }
 0x40d   : > { %5439 = vmatpush.bf16.msrb.mxu2 %v11281_v52 }
 0x40e   : > { %5453 = vmatpush.bf16.msrb.mxu3 %v11409_v56  ;;  %5412 = vmatmul.bf16.vlgmr.msrb.gmra.mxu0 %v15335_v54  ;;  %v5204_v46 = vadd.f32 %v5203_v45, %v5190_v44 }
 0x40f   : > { %5426 = vmatmul.bf16.vlgmr.msrb.gmra.mxu1 %v15338_v16 }
 0x410   : > { %5440 = vmatmul.bf16.vlgmr.msrb.gmra.mxu2 %v15341_v36  ;;  %v5460_v54 = vmax.f32 %v5204_v46, 0.0 }
 0x411   : > { %5454 = vmatmul.bf16.vlgmr.msrb.gmra.mxu3 %v15344_v49 }
 0x413   : > { %v5217_v61 = vpop.f32.mrf.mxu2  ;;  %v5191_v50 = vpop.f32.mrf.mxu0 }
 0x414   : > { %v5218_v51 = vadd.f32 %v5217_v61, %v4157_v47  ;;  %v5192_v55 = vadd.f32 %v5191_v50, %v5178_v42  ;;  %v5205_v57 = vpop.f32.mrf.mxu1  ;;  %v5231_v59 = vpop.f32.mrf.mxu3 }
 0x416   : > { %v5232_v62 = vadd.f32 %v5231_v59, %v5218_v51  ;;  %v5206_v63 = vadd.f32 %v5205_v57, %v5192_v55  ;;  %v4159_v57 = vperm.slane %v15286_v60, 3 }
 0x418   : > { %v5464_v16 = vmax.f32 %v5206_v63, 0.0 }
 0x41a   : > { %v15372_v4 = vpack.c.bf16 %v5464_v16, %v5460_v54 }
 0x41b   : > { %v5219_v36 = vpop.f32.mrf.mxu2 }
 0x41c   : > { %v5233_v49 = vpop.f32.mrf.mxu3  ;;  %v5220_v7 = vadd.f32 %v5219_v36, %v4157_v47 }
 0x41e   : > { %v5234_v8 = vadd.f32 %v5233_v49, %v5220_v7 }
 0x42b   : > { %v5245_v5 = vpop.f32.mrf.mxu0 }
 0x42c   : > { %v5259_v6 = vpop.f32.mrf.mxu1  ;;  %v5246_v58 = vadd.f32 %v5245_v5, %v5232_v62 }
 0x42e   : > { %v5260_v11 = vadd.f32 %v5259_v6, %v5246_v58 }
 0x433   : > { %v5273_v9 = vpop.f32.mrf.mxu2  ;;  %v5247_v12 = vpop.f32.mrf.mxu0 }
 0x434   : > { %v5287_v13 = vpop.f32.mrf.mxu3  ;;  %v5248_v14 = vadd.f32 %v5247_v12, %v5234_v8  ;;  %v5261_v15 = vpop.f32.mrf.mxu1  ;;  %v5274_v17 = vadd.f32 %v5273_v9, %v5260_v11 }
 0x436   : > { %v5262_v10 = vadd.f32 %v5261_v15, %v5248_v14  ;;  %v5288_v20 = vadd.f32 %v5287_v13, %v5274_v17 }
 0x438   : > { %v5461_v24 = vmax.f32 %v5288_v20, 0.0 }
 0x43b   : > { %v5275_v18 = vpop.f32.mrf.mxu2 }
 0x43c   : > { %v5276_v21 = vadd.f32 %v5275_v18, %v5262_v10  ;;  %v5289_v22 = vpop.f32.mrf.mxu3 }
 0x43e   : > { %v5290_v23 = vadd.f32 %v5289_v22, %v5276_v21 }
 0x440   : > { %v5465_v25 = vmax.f32 %v5290_v23, 0.0 }
 0x442   : > { %v15374_v19 = vpack.c.bf16 %v5465_v25, %v5461_v24 }
 0x44b   : > { %v5301_v27 = vpop.f32.mrf.mxu0 }
 0x44c   : > { %v5315_v28 = vpop.f32.mrf.mxu1  ;;  %v5302_v29 = vadd.f32 %v5301_v27, %v4158_v3 }
 0x44e   : > { %v5316_v26 = vadd.f32 %v5315_v28, %v5302_v29 }
 0x453   : > { %v5329_v30 = vpop.f32.mrf.mxu2  ;;  %v5303_v35 = vpop.f32.mrf.mxu0 }
 0x454   : > { %v5317_v31 = vpop.f32.mrf.mxu1  ;;  %v5343_v32 = vpop.f32.mrf.mxu3  ;;  %v5304_v37 = vadd.f32 %v5303_v35, %v4158_v3  ;;  %v5330_v33 = vadd.f32 %v5329_v30, %v5316_v26 }
 0x456   : > { %v5318_v38 = vadd.f32 %v5317_v31, %v5304_v37  ;;  %v5344_v39 = vadd.f32 %v5343_v32, %v5330_v33 }
 0x45b   : > { %v5331_v34 = vpop.f32.mrf.mxu2 }
 0x45c   : > { %v5332_v53 = vadd.f32 %v5331_v34, %v5318_v38  ;;  %v5345_v41 = vpop.f32.mrf.mxu3 }
 0x45e   : > { %v5346_v42 = vadd.f32 %v5345_v41, %v5332_v53 }
 0x46b   : > { %v5357_v48 = vpop.f32.mrf.mxu0 }
 0x46c   : > { %v5371_v40 = vpop.f32.mrf.mxu1  ;;  %v5358_v52 = vadd.f32 %v5357_v48, %v5344_v39 }
 0x46e   : > { %v5372_v56 = vadd.f32 %v5371_v40, %v5358_v52 }
 0x470   : > { %v5462_v46 = vmax.f32 %v5372_v56, 0.0 }
 0x473   : > { %v5359_v43 = vpop.f32.mrf.mxu0  ;;  %v5385_v51 = vpop.f32.mrf.mxu2 }
 0x474   : > { %v5360_v44 = vadd.f32 %v5359_v43, %v5346_v42  ;;  %v5373_v45 = vpop.f32.mrf.mxu1  ;;  %v5399_v55 = vpop.f32.mrf.mxu3  ;;  %v5386_v62 = vadd.f32 %v5385_v51, %v4159_v57 }
 0x476   : > { %v5374_v47 = vadd.f32 %v5373_v45, %v5360_v44  ;;  %v5400_v36 = vadd.f32 %v5399_v55, %v5386_v62 }
 0x478   : > { %v5466_v61 = vmax.f32 %v5374_v47, 0.0 }
 0x47a   : > { %v15377_v50 = vpack.c.bf16 %v5466_v61, %v5462_v46 }
 0x47b   : > { %v5387_v59 = vpop.f32.mrf.mxu2 }
 0x47c   : > { %v5401_v54 = vpop.f32.mrf.mxu3  ;;  %v5388_v49 = vadd.f32 %v5387_v59, %v4159_v57 }
 0x47e   : > { %v5402_v7 = vadd.f32 %v5401_v54, %v5388_v49 }
 0x48b   : > { %v5413_v63 = vpop.f32.mrf.mxu0 }
 0x48c   : > { %v5427_v16 = vpop.f32.mrf.mxu1  ;;  %v5414_v5 = vadd.f32 %v5413_v63, %v5400_v36 }
 0x48e   : > { %v5428_v9 = vadd.f32 %v5427_v16, %v5414_v5 }
 0x493   : > { %v5441_v6 = vpop.f32.mrf.mxu2  ;;  %v5415_v8 = vpop.f32.mrf.mxu0 }
 0x494   : > { %v5455_v58 = vpop.f32.mrf.mxu3  ;;  %v5416_v11 = vadd.f32 %v5415_v8, %v5402_v7  ;;  %v5442_v12 = vadd.f32 %v5441_v6, %v5428_v9  ;;  %v5429_v13 = vpop.f32.mrf.mxu1 }
 0x496   : > { %v5430_v14 = vadd.f32 %v5429_v13, %v5416_v11  ;;  %v5456_v17 = vadd.f32 %v5455_v58, %v5442_v12 }
 0x498   : > { %v5463_v20 = vmax.f32 %v5456_v17, 0.0 }
 0x49b   : > { %v5443_v15 = vpop.f32.mrf.mxu2 }
 0x49c   : > { %v5444_v60 = vadd.f32 %v5443_v15, %v5430_v14  ;;  %v5457_v10 = vpop.f32.mrf.mxu3 }
 0x49e   : > { %v5458_v18 = vadd.f32 %v5457_v10, %v5444_v60 }
 0x4a0   : > { %v5467_v21 = vmax.f32 %v5458_v18, 0.0 }
 0x4a2   : > { %v15380_v22 = vpack.c.bf16 %v5467_v21, %v5463_v20 }
 0x4a3   : > { %14519 = dma.done.wait [#allocation8 + $0x2], 24576 }
 0x4a4   : > { %14520 = vsyncadd [#allocation8 + $0x2], 4294942720  ;;  %v11692_v23 = vld [vmem:[#allocation5 + $0x150] sm:$0xf]  ;;  %v13889_v24 = vld [vmem:[#allocation5 + $0x164] sm:$0xf0] }
 0x4a5   : > { %v11884_v25 = vld [vmem:[#allocation5 + $0x2d0] sm:$0xf]  ;;  %v11693_v27 = vor.u32 %v13889_v24, %v11692_v23  ;;  %v13937_v28 = vld [vmem:[#allocation5 + $0x2e4] sm:$0xf0]  ;;  %v11668_v32 = vld [vmem:[#allocation5 + $0x120] sm:$0xf] }
 0x4a6   : > { %v12076_v3 = vld [vmem:[#allocation5 + $0x450] sm:$0xf]  ;;  %v13985_v29 = vld [vmem:[#allocation5 + $0x464] sm:$0xf0]  ;;  %v11885_v30 = vor.u32 %v13937_v28, %v11884_v25  ;;  %v13883_v33 = vld [vmem:[#allocation5 + $0x134] sm:$0xf0] }
 0x4a7   : > { %v12077_v35 = vor.u32 %v13985_v29, %v12076_v3  ;;  %v12268_v26 = vld [vmem:[#allocation5 + $0x5d0] sm:$0xf]  ;;  %v14033_v31 = vld [vmem:[#allocation5 + $0x5e4] sm:$0xf0]  ;;  %6640 = vmatpush.bf16.msra.mxu0 %v11693_v27  ;;  %v11860_v38 = vld [vmem:[#allocation5 + $0x2a0] sm:$0xf]  ;;  %v11669_v39 = vor.u32 %v13883_v33, %v11668_v32 }
 0x4a8   : > { %v12269_v37 = vor.u32 %v14033_v31, %v12268_v26  ;;  %v13931_v34 = vld [vmem:[#allocation5 + $0x2b4] sm:$0xf0]  ;;  %6654 = vmatpush.bf16.msra.mxu1 %v11885_v30  ;;  %v12052_v40 = vld [vmem:[#allocation5 + $0x420] sm:$0xf]  ;;  %v11644_v56 = vld [vmem:[#allocation5 + $0xf0] sm:$0xf] }
 0x4a9   : > { %6668 = vmatpush.bf16.msra.mxu2 %v12077_v35  ;;  %v11861_v48 = vor.u32 %v13931_v34, %v11860_v38  ;;  %v13979_v53 = vld [vmem:[#allocation5 + $0x434] sm:$0xf0]  ;;  %v12244_v41 = vld [vmem:[#allocation5 + $0x5a0] sm:$0xf]  ;;  %v13877_v43 = vld [vmem:[#allocation5 + $0x104] sm:$0xf0] }
 0x4aa   : > { %6682 = vmatpush.bf16.msra.mxu3 %v12269_v37  ;;  %v12053_v52 = vor.u32 %v13979_v53, %v12052_v40  ;;  %v14027_v42 = vld [vmem:[#allocation5 + $0x5b4] sm:$0xf0]  ;;  %v11836_v45 = vld [vmem:[#allocation5 + $0x270] sm:$0xf]  ;;  %v13925_v46 = vld [vmem:[#allocation5 + $0x284] sm:$0xf0]  ;;  %v11645_v61 = vor.u32 %v13877_v43, %v11644_v56 }
 0x4ab   : > { %v12245_v44 = vor.u32 %v14027_v42, %v12244_v41  ;;  %v12028_v47 = vld [vmem:[#allocation5 + $0x3f0] sm:$0xf]  ;;  %6641 = vmatpush.bf16.msra.mxu0 %v11669_v39  ;;  %v13973_v51 = vld [vmem:[#allocation5 + $0x404] sm:$0xf0]  ;;  %v11837_v59 = vor.u32 %v13925_v46, %v11836_v45  ;;  %v11620_v54 = vld [vmem:[#allocation5 + $0xc0] sm:$0xf] }
 0x4ac   : > { %v12220_v55 = vld [vmem:[#allocation5 + $0x570] sm:$0xf]  ;;  %v14021_v57 = vld [vmem:[#allocation5 + $0x584] sm:$0xf0]  ;;  %6655 = vmatpush.bf16.msra.mxu1 %v11861_v48  ;;  %v12029_v62 = vor.u32 %v13973_v51, %v12028_v47  ;;  %v13871_v63 = vld [vmem:[#allocation5 + $0xd4] sm:$0xf0] }
 0x4ad   : > { %6669 = vmatpush.bf16.msra.mxu2 %v12053_v52  ;;  %v11812_v16 = vld [vmem:[#allocation5 + $0x240] sm:$0xf]  ;;  %v12221_v36 = vor.u32 %v14021_v57, %v12220_v55  ;;  %v13919_v49 = vld [vmem:[#allocation5 + $0x254] sm:$0xf0]  ;;  %v11621_v8 = vor.u32 %v13871_v63, %v11620_v54  ;;  %v11596_v12 = vld [vmem:[#allocation5 + $0x90] sm:$0xf] }
 0x4ae   : > { %6683 = vmatpush.bf16.msra.mxu3 %v12245_v44  ;;  %v12004_v5 = vld [vmem:[#allocation5 + $0x3c0] sm:$0xf]  ;;  %v13967_v6 = vld [vmem:[#allocation5 + $0x3d4] sm:$0xf0]  ;;  %v11813_v9 = vor.u32 %v13919_v49, %v11812_v16  ;;  %v13865_v13 = vld [vmem:[#allocation5 + $0xa4] sm:$0xf0] }
 0x4af   : > { %v12196_v7 = vld [vmem:[#allocation5 + $0x540] sm:$0xf]  ;;  %v14015_v58 = vld [vmem:[#allocation5 + $0x554] sm:$0xf0]  ;;  %6642 = vmatpush.bf16.msra.mxu0 %v11645_v61  ;;  %v12005_v11 = vor.u32 %v13967_v6, %v12004_v5  ;;  %v11788_v14 = vld [vmem:[#allocation5 + $0x210] sm:$0xf]  ;;  %v11597_v21 = vor.u32 %v13865_v13, %v11596_v12 }
 0x4b0   : > { %6656 = vmatpush.bf16.msra.mxu1 %v11837_v59  ;;  %v12197_v15 = vor.u32 %v14015_v58, %v12196_v7  ;;  %v13913_v17 = vld [vmem:[#allocation5 + $0x224] sm:$0xf0]  ;;  %v11980_v60 = vld [vmem:[#allocation5 + $0x390] sm:$0xf]  ;;  %v11572_v25 = vld [vmem:[#allocation5 + $0x60] sm:$0xf] }
 0x4b1   : > { %6670 = vmatpush.bf16.msra.mxu2 %v12029_v62  ;;  %v13961_v10 = vld [vmem:[#allocation5 + $0x3a4] sm:$0xf0]  ;;  %v12172_v18 = vld [vmem:[#allocation5 + $0x510] sm:$0xf]  ;;  %v11789_v23 = vor.u32 %v13913_v17, %v11788_v14  ;;  %v13859_v27 = vld [vmem:[#allocation5 + $0x74] sm:$0xf0] }
 0x4b2   : > { %6684 = vmatpush.bf16.msra.mxu3 %v12221_v36  ;;  %v14009_v20 = vld [vmem:[#allocation5 + $0x524] sm:$0xf0]  ;;  %v11981_v24 = vor.u32 %v13961_v10, %v11980_v60  ;;  %v11764_v28 = vld [vmem:[#allocation5 + $0x1e0] sm:$0xf]  ;;  %v13907_v29 = vld [vmem:[#allocation5 + $0x1f4] sm:$0xf0]  ;;  %v11573_v32 = vor.u32 %v13859_v27, %v11572_v25 }
 0x4b3   : > { %6643 = vmatpush.bf16.msra.mxu0 %v11621_v8  ;;  %v12173_v3 = vor.u32 %v14009_v20, %v12172_v18  ;;  %v11956_v30 = vld [vmem:[#allocation5 + $0x360] sm:$0xf]  ;;  %v13955_v35 = vld [vmem:[#allocation5 + $0x374] sm:$0xf0]  ;;  %v11765_v37 = vor.u32 %v13907_v29, %v11764_v28  ;;  %v11548_v38 = vld [vmem:[#allocation5 + $0x30] sm:$0xf] }
 0x4b4   : > { %6657 = vmatpush.bf16.msra.mxu1 %v11813_v9  ;;  %v12148_v26 = vld [vmem:[#allocation5 + $0x4e0] sm:$0xf]  ;;  %v14003_v31 = vld [vmem:[#allocation5 + $0x4f4] sm:$0xf0]  ;;  %v11957_v33 = vor.u32 %v13955_v35, %v11956_v30  ;;  %v13853_v34 = vld [vmem:[#allocation5 + $0x44] sm:$0xf0] }
 0x4b5   : > { %6671 = vmatpush.bf16.msra.mxu2 %v12005_v11  ;;  %v11740_v39 = vld [vmem:[#allocation5 + $0x1b0] sm:$0xf]  ;;  %v12149_v48 = vor.u32 %v14003_v31, %v12148_v26  ;;  %v13901_v40 = vld [vmem:[#allocation5 + $0x1c4] sm:$0xf0]  ;;  %v11549_v56 = vor.u32 %v13853_v34, %v11548_v38  ;;  %v11524_v43 = vld [vmem:[#allocation5] sm:$0xf] }
 0x4b6   : > { %6685 = vmatpush.bf16.msra.mxu3 %v12197_v15  ;;  %v11932_v53 = vld [vmem:[#allocation5 + $0x330] sm:$0xf]  ;;  %v13949_v41 = vld [vmem:[#allocation5 + $0x344] sm:$0xf0]  ;;  %v13847_v44 = vld [vmem:[#allocation5 + $0x14] sm:$0xf0]  ;;  %v11741_v45 = vor.u32 %v13901_v40, %v11740_v39 }
 0x4b7   : > { %6644 = vmatpush.bf16.msra.mxu0 %v11597_v21  ;;  %v12124_v52 = vld [vmem:[#allocation5 + $0x4b0] sm:$0xf]  ;;  %v13997_v42 = vld [vmem:[#allocation5 + $0x4c4] sm:$0xf0]  ;;  %v11933_v46 = vor.u32 %v13949_v41, %v11932_v53  ;;  %v11716_v47 = vld [vmem:[#allocation5 + $0x180] sm:$0xf]  ;;  %v11525_v36 = vor.u32 %v13847_v44, %v11524_v43 }
 0x4b8   : > { %6658 = vmatpush.bf16.msra.mxu1 %v11789_v23  ;;  %v13895_v61 = vld [vmem:[#allocation5 + $0x194] sm:$0xf0]  ;;  %v11908_v51 = vld [vmem:[#allocation5 + $0x300] sm:$0xf]  ;;  %v12125_v55 = vor.u32 %v13997_v42, %v12124_v52  ;;  %v13886_v54 = vld [vmem:[#allocation5 + $0x154] sm:$0xf] }
 0x4b9   : > { %6672 = vmatpush.bf16.msra.mxu2 %v11981_v24  ;;  %v13943_v57 = vld [vmem:[#allocation5 + $0x314] sm:$0xf0]  ;;  %v12100_v59 = vld [vmem:[#allocation5 + $0x480] sm:$0xf]  ;;  %v11694_v63 = vld [vmem:[#allocation5 + $0x168] sm:$0xf0]  ;;  %v11717_v7 = vor.u32 %v13895_v61, %v11716_v47 }
 0x4ba   : > { %6686 = vmatpush.bf16.msra.mxu3 %v12173_v3  ;;  %v13991_v62 = vld [vmem:[#allocation5 + $0x494] sm:$0xf0]  ;;  %v13934_v16 = vld [vmem:[#allocation5 + $0x2d4] sm:$0xf]  ;;  %v11886_v49 = vld [vmem:[#allocation5 + $0x2e8] sm:$0xf0]  ;;  %v11909_v58 = vor.u32 %v13943_v57, %v11908_v51  ;;  %v11697_v12 = vor.u32 %v13886_v54, %v11694_v63 }
 0x4bb   : > { %6645 = vmatpush.bf16.msra.mxu0 %v11573_v32  ;;  %v13982_v5 = vld [vmem:[#allocation5 + $0x454] sm:$0xf]  ;;  %v12078_v6 = vld [vmem:[#allocation5 + $0x468] sm:$0xf0]  ;;  %v12101_v11 = vor.u32 %v13991_v62, %v12100_v59  ;;  %v11889_v13 = vor.u32 %v13934_v16, %v11886_v49  ;;  %v13880_v15 = vld [vmem:[#allocation5 + $0x124] sm:$0xf] }
 0x4bc   : > { %6659 = vmatpush.bf16.msra.mxu1 %v11765_v37  ;;  %v14030_v8 = vld [vmem:[#allocation5 + $0x5d4] sm:$0xf]  ;;  %v12270_v9 = vld [vmem:[#allocation5 + $0x5e8] sm:$0xf0]  ;;  %v12081_v14 = vor.u32 %v13982_v5, %v12078_v6  ;;  %v11670_v17 = vld [vmem:[#allocation5 + $0x138] sm:$0xf0] }
 0x4bd   : > { %6673 = vmatpush.bf16.msra.mxu2 %v11957_v33  ;;  %v13928_v60 = vld [vmem:[#allocation5 + $0x2a4] sm:$0xf]  ;;  %v12273_v10 = vor.u32 %v14030_v8, %v12270_v9  ;;  %v11862_v18 = vld [vmem:[#allocation5 + $0x2b8] sm:$0xf0]  ;;  %v11673_v25 = vor.u32 %v13880_v15, %v11670_v17  ;;  %v13874_v3 = vld [vmem:[#allocation5 + $0xf4] sm:$0xf] }
 0x4be   : > { %6687 = vmatpush.bf16.msra.mxu3 %v12149_v48  ;;  %v13976_v20 = vld [vmem:[#allocation5 + $0x424] sm:$0xf]  ;;  %v12054_v21 = vld [vmem:[#allocation5 + $0x438] sm:$0xf0]  ;;  %v11865_v27 = vor.u32 %v13928_v60, %v11862_v18  ;;  %v11646_v29 = vld [vmem:[#allocation5 + $0x108] sm:$0xf0] }
 0x4bf   : > { %6646 = vmatpush.bf16.msra.mxu0 %v11549_v56  ;;  %v14024_v23 = vld [vmem:[#allocation5 + $0x5a4] sm:$0xf]  ;;  %v12246_v24 = vld [vmem:[#allocation5 + $0x5b8] sm:$0xf0]  ;;  %v12057_v28 = vor.u32 %v13976_v20, %v12054_v21  ;;  %v13922_v30 = vld [vmem:[#allocation5 + $0x274] sm:$0xf]  ;;  %v11649_v38 = vor.u32 %v13874_v3, %v11646_v29 }
 0x4c0   : > { %6660 = vmatpush.bf16.msra.mxu1 %v11741_v45  ;;  %v12249_v35 = vor.u32 %v14024_v23, %v12246_v24  ;;  %v11838_v26 = vld [vmem:[#allocation5 + $0x288] sm:$0xf0]  ;;  %v13970_v31 = vld [vmem:[#allocation5 + $0x3f4] sm:$0xf]  ;;  %v13868_v48 = vld [vmem:[#allocation5 + $0xc4] sm:$0xf] }
 0x4c1   : > { %6674 = vmatpush.bf16.msra.mxu2 %v11933_v46  ;;  %v12030_v32 = vld [vmem:[#allocation5 + $0x408] sm:$0xf0]  ;;  %v14018_v37 = vld [vmem:[#allocation5 + $0x574] sm:$0xf]  ;;  %v11841_v34 = vor.u32 %v13922_v30, %v11838_v26  ;;  %v11622_v40 = vld [vmem:[#allocation5 + $0xd8] sm:$0xf0] }
 0x4c2   : > { %6688 = vmatpush.bf16.msra.mxu3 %v12125_v55  ;;  %v12222_v33 = vld [vmem:[#allocation5 + $0x588] sm:$0xf0]  ;;  %v12033_v39 = vor.u32 %v13970_v31, %v12030_v32  ;;  %v13916_v53 = vld [vmem:[#allocation5 + $0x244] sm:$0xf]  ;;  %v11814_v52 = vld [vmem:[#allocation5 + $0x258] sm:$0xf0]  ;;  %v11625_v45 = vor.u32 %v13868_v48, %v11622_v40 }
 0x4c3   : > { %6647 = vmatpush.bf16.msra.mxu0 %v11525_v36  ;;  %v12225_v41 = vor.u32 %v14018_v37, %v12222_v33  ;;  %v13964_v42 = vld [vmem:[#allocation5 + $0x3c4] sm:$0xf]  ;;  %v12006_v56 = vld [vmem:[#allocation5 + $0x3d8] sm:$0xf0]  ;;  %v11817_v46 = vor.u32 %v13916_v53, %v11814_v52  ;;  %v13862_v61 = vld [vmem:[#allocation5 + $0x94] sm:$0xf] }
 0x4c4   : > { %6661 = vmatpush.bf16.msra.mxu1 %v11717_v7  ;;  %v14012_v43 = vld [vmem:[#allocation5 + $0x544] sm:$0xf]  ;;  %v12198_v44 = vld [vmem:[#allocation5 + $0x558] sm:$0xf0]  ;;  %v12009_v47 = vor.u32 %v13964_v42, %v12006_v56  ;;  %v11598_v51 = vld [vmem:[#allocation5 + $0xa8] sm:$0xf0] }
 0x4c5   : > { %6675 = vmatpush.bf16.msra.mxu2 %v11909_v58  ;;  %v13910_v55 = vld [vmem:[#allocation5 + $0x214] sm:$0xf]  ;;  %v12201_v57 = vor.u32 %v14012_v43, %v12198_v44  ;;  %v11790_v59 = vld [vmem:[#allocation5 + $0x228] sm:$0xf0]  ;;  %v11601_v36 = vor.u32 %v13862_v61, %v11598_v51  ;;  %v13856_v6 = vld [vmem:[#allocation5 + $0x64] sm:$0xf] }
 0x4c6   : > { %6689 = vmatpush.bf16.msra.mxu3 %v12101_v11  ;;  %6648 = vmatmul.bf16.vlgmr.msra.gmra.mxu0 %v15372_v4  ;;  %v13958_v62 = vld [vmem:[#allocation5 + $0x394] sm:$0xf]  ;;  %v11982_v54 = vld [vmem:[#allocation5 + $0x3a8] sm:$0xf0]  ;;  %v11793_v49 = vor.u32 %v13910_v55, %v11790_v59  ;;  %v11574_v7 = vld [vmem:[#allocation5 + $0x78] sm:$0xf0] }
 0x4c7   : > { %6696 = vmatpush.bf16.msrb.mxu0 %v11697_v12  ;;  %6662 = vmatmul.bf16.vlgmr.msra.gmra.mxu1 %v15374_v19  ;;  %v14006_v63 = vld [vmem:[#allocation5 + $0x514] sm:$0xf]  ;;  %v12174_v16 = vld [vmem:[#allocation5 + $0x528] sm:$0xf0]  ;;  %v11985_v5 = vor.u32 %v13958_v62, %v11982_v54  ;;  %v13904_v58 = vld [vmem:[#allocation5 + $0x1e4] sm:$0xf]  ;;  %v11577_v15 = vor.u32 %v13856_v6, %v11574_v7 }
 0x4c8   : > { %6710 = vmatpush.bf16.msrb.mxu1 %v11889_v13  ;;  %6676 = vmatmul.bf16.vlgmr.msra.gmra.mxu2 %v15377_v50  ;;  %v12177_v8 = vor.u32 %v14006_v63, %v12174_v16  ;;  %v11766_v9 = vld [vmem:[#allocation5 + $0x1f8] sm:$0xf0]  ;;  %v13952_v11 = vld [vmem:[#allocation5 + $0x364] sm:$0xf]  ;;  %v11550_v18 = vld [vmem:[#allocation5 + $0x48] sm:$0xf0] }
 0x4c9   : > { %6724 = vmatpush.bf16.msrb.mxu2 %v12081_v14  ;;  %6690 = vmatmul.bf16.vlgmr.msra.gmra.mxu3 %v15380_v22  ;;  %v11958_v12 = vld [vmem:[#allocation5 + $0x378] sm:$0xf0]  ;;  %v14000_v13 = vld [vmem:[#allocation5 + $0x4e4] sm:$0xf]  ;;  %v11769_v17 = vor.u32 %v13904_v58, %v11766_v9  ;;  %v13898_v20 = vld [vmem:[#allocation5 + $0x1b4] sm:$0xf] }
 0x4ca   : > { %6738 = vmatpush.bf16.msrb.mxu3 %v12273_v10  ;;  %v12150_v14 = vld [vmem:[#allocation5 + $0x4f8] sm:$0xf0]  ;;  %v11961_v60 = vor.u32 %v13952_v11, %v11958_v12  ;;  %v13850_v10 = vld [vmem:[#allocation5 + $0x34] sm:$0xf]  ;;  %v11742_v23 = vld [vmem:[#allocation5 + $0x1c8] sm:$0xf0] }
 0x4cb   : > { %6697 = vmatpush.bf16.msrb.mxu0 %v11673_v25  ;;  %v12153_v21 = vor.u32 %v14000_v13, %v12150_v14  ;;  %v13946_v24 = vld [vmem:[#allocation5 + $0x334] sm:$0xf]  ;;  %v11934_v25 = vld [vmem:[#allocation5 + $0x348] sm:$0xf0]  ;;  %v11553_v3 = vor.u32 %v13850_v10, %v11550_v18  ;;  %v13844_v29 = vld [vmem:[#allocation5 + $0x4] sm:$0xf] }
 0x4cc   : > { %6711 = vmatpush.bf16.msrb.mxu1 %v11865_v27  ;;  %v13994_v27 = vld [vmem:[#allocation5 + $0x4b4] sm:$0xf]  ;;  %v11526_v30 = vld [vmem:[#allocation5 + $0x18] sm:$0xf0]  ;;  %v11937_v26 = vor.u32 %v13946_v24, %v11934_v25  ;;  %v13892_v31 = vld [vmem:[#allocation5 + $0x184] sm:$0xf] }
 0x4cd   : > { %6725 = vmatpush.bf16.msrb.mxu2 %v12057_v28  ;;  %v12126_v28 = vld [vmem:[#allocation5 + $0x4c8] sm:$0xf0]  ;;  %v11718_v32 = vld [vmem:[#allocation5 + $0x198] sm:$0xf0]  ;;  %v13940_v37 = vld [vmem:[#allocation5 + $0x304] sm:$0xf] }
 0x4ce   : > { %6739 = vmatpush.bf16.msrb.mxu3 %v12249_v35  ;;  %v11745_v35 = vor.u32 %v13898_v20, %v11742_v23  ;;  %v12129_v33 = vor.u32 %v13994_v27, %v12126_v28  ;;  %v11700_v48 = vld [vmem:[#allocation5 + $0x158] sm:$0xf]  ;;  %v13890_v40 = vld [vmem:[#allocation5 + $0x16c] sm:$0xf0]  ;;  %v11721_v43 = vor.u32 %v13892_v31, %v11718_v32  ;;  %v13884_v59 = vld [vmem:[#allocation5 + $0x13c] sm:$0xf0] }
 0x4cf   : > { %6698 = vmatpush.bf16.msrb.mxu0 %v11649_v38  ;;  %v11910_v38 = vld [vmem:[#allocation5 + $0x318] sm:$0xf0]  ;;  %v11892_v53 = vld [vmem:[#allocation5 + $0x2d8] sm:$0xf]  ;;  %v13938_v52 = vld [vmem:[#allocation5 + $0x2ec] sm:$0xf0]  ;;  %v11701_v61 = vor.u32 %v13890_v40, %v11700_v48 }
 0x4d0   : > { %6712 = vmatpush.bf16.msrb.mxu1 %v11841_v34  ;;  %v13988_v34 = vld [vmem:[#allocation5 + $0x484] sm:$0xf]  ;;  %v12084_v42 = vld [vmem:[#allocation5 + $0x458] sm:$0xf]  ;;  %v13986_v56 = vld [vmem:[#allocation5 + $0x46c] sm:$0xf0]  ;;  %v11913_v44 = vor.u32 %v13940_v37, %v11910_v38  ;;  %v11893_v51 = vor.u32 %v13938_v52, %v11892_v53 }
 0x4d1   : > { %6726 = vmatpush.bf16.msrb.mxu2 %v12033_v39  ;;  %v12102_v39 = vld [vmem:[#allocation5 + $0x498] sm:$0xf0]  ;;  %v12085_v55 = vor.u32 %v13986_v56, %v12084_v42  ;;  %v11868_v62 = vld [vmem:[#allocation5 + $0x2a8] sm:$0xf]  ;;  %v13932_v63 = vld [vmem:[#allocation5 + $0x2bc] sm:$0xf0] }
 0x4d2   : > { %6740 = vmatpush.bf16.msrb.mxu3 %v12225_v41  ;;  %v11529_v41 = vor.u32 %v13844_v29, %v11526_v30  ;;  %v12060_v16 = vld [vmem:[#allocation5 + $0x428] sm:$0xf]  ;;  %v11869_v7 = vor.u32 %v13932_v63, %v11868_v62  ;;  %v13878_v9 = vld [vmem:[#allocation5 + $0x10c] sm:$0xf0]  ;;  %v11844_v11 = vld [vmem:[#allocation5 + $0x278] sm:$0xf] }
 0x4d3   : > { %6699 = vmatpush.bf16.msrb.mxu0 %v11625_v45  ;;  %v12276_v45 = vld [vmem:[#allocation5 + $0x5d8] sm:$0xf]  ;;  %v13926_v13 = vld [vmem:[#allocation5 + $0x28c] sm:$0xf0]  ;;  %v13872_v23 = vld [vmem:[#allocation5 + $0xdc] sm:$0xf0] }
 0x4d4   : > { %6713 = vmatpush.bf16.msrb.mxu1 %v11817_v46  ;;  %v14034_v46 = vld [vmem:[#allocation5 + $0x5ec] sm:$0xf0]  ;;  %v12036_v14 = vld [vmem:[#allocation5 + $0x3f8] sm:$0xf]  ;;  %v11845_v18 = vor.u32 %v13926_v13, %v11844_v11  ;;  %v11820_v24 = vld [vmem:[#allocation5 + $0x248] sm:$0xf] }
 0x4d5   : > { %6727 = vmatpush.bf16.msrb.mxu2 %v12009_v47  ;;  %v12105_v47 = vor.u32 %v13988_v34, %v12102_v39  ;;  %v12277_v54 = vor.u32 %v14034_v46, %v12276_v45  ;;  %v13920_v27 = vld [vmem:[#allocation5 + $0x25c] sm:$0xf0]  ;;  %v12012_v28 = vld [vmem:[#allocation5 + $0x3c8] sm:$0xf]  ;;  %v11604_v32 = vld [vmem:[#allocation5 + $0x98] sm:$0xf] }
 0x4d6   : > { %6741 = vmatpush.bf16.msrb.mxu3 %v12201_v57  ;;  %v11676_v57 = vld [vmem:[#allocation5 + $0x128] sm:$0xf]  ;;  %v14016_v30 = vld [vmem:[#allocation5 + $0x55c] sm:$0xf0]  ;;  %v13866_v37 = vld [vmem:[#allocation5 + $0xac] sm:$0xf0] }
 0x4d7   : > { %6700 = vmatpush.bf16.msrb.mxu0 %v11601_v36  ;;  %v13980_v36 = vld [vmem:[#allocation5 + $0x43c] sm:$0xf0]  ;;  %v11677_v6 = vor.u32 %v13884_v59, %v11676_v57  ;;  %v12204_v29 = vld [vmem:[#allocation5 + $0x548] sm:$0xf]  ;;  %v13914_v34 = vld [vmem:[#allocation5 + $0x22c] sm:$0xf0] }
 0x4d8   : > { %6714 = vmatpush.bf16.msrb.mxu1 %v11793_v49  ;;  %v12252_v49 = vld [vmem:[#allocation5 + $0x5a8] sm:$0xf]  ;;  %v12061_v58 = vor.u32 %v13980_v36, %v12060_v16  ;;  %v12205_v38 = vor.u32 %v14016_v30, %v12204_v29  ;;  %v11988_v39 = vld [vmem:[#allocation5 + $0x398] sm:$0xf]  ;;  %v13962_v48 = vld [vmem:[#allocation5 + $0x3ac] sm:$0xf0] }
 0x4d9   : > { %6728 = vmatpush.bf16.msrb.mxu2 %v11985_v5  ;;  %v14028_v5 = vld [vmem:[#allocation5 + $0x5bc] sm:$0xf0]  ;;  %v12180_v40 = vld [vmem:[#allocation5 + $0x518] sm:$0xf]  ;;  %v14010_v53 = vld [vmem:[#allocation5 + $0x52c] sm:$0xf0]  ;;  %v11989_v42 = vor.u32 %v13962_v48, %v11988_v39 }
 0x4da   : > { %6742 = vmatpush.bf16.msrb.mxu3 %v12177_v8  ;;  %v11652_v8 = vld [vmem:[#allocation5 + $0xf8] sm:$0xf]  ;;  %v12253_v12 = vor.u32 %v14028_v5, %v12252_v49  ;;  %v11580_v56 = vld [vmem:[#allocation5 + $0x68] sm:$0xf]  ;;  %v12181_v45 = vor.u32 %v14010_v53, %v12180_v40  ;;  %v13908_v46 = vld [vmem:[#allocation5 + $0x1fc] sm:$0xf0] }
 0x4db   : > { %6701 = vmatpush.bf16.msrb.mxu0 %v11577_v15  ;;  %v13974_v15 = vld [vmem:[#allocation5 + $0x40c] sm:$0xf0]  ;;  %v11653_v10 = vor.u32 %v13878_v9, %v11652_v8  ;;  %v11748_v16 = vld [vmem:[#allocation5 + $0x1b8] sm:$0xf]  ;;  %v11532_v9 = vld [vmem:[#allocation5 + $0x8] sm:$0xf] }
 0x4dc   : > { %6715 = vmatpush.bf16.msrb.mxu1 %v11769_v17  ;;  %v12228_v17 = vld [vmem:[#allocation5 + $0x578] sm:$0xf]  ;;  %v12037_v20 = vor.u32 %v13974_v15, %v12036_v14  ;;  %v13854_v63 = vld [vmem:[#allocation5 + $0x4c] sm:$0xf0]  ;;  %v13848_v11 = vld [vmem:[#allocation5 + $0x1c] sm:$0xf0] }
 0x4dd   : > { %6729 = vmatpush.bf16.msrb.mxu2 %v11961_v60  ;;  %v14022_v60 = vld [vmem:[#allocation5 + $0x58c] sm:$0xf0]  ;;  %v11940_v5 = vld [vmem:[#allocation5 + $0x338] sm:$0xf]  ;;  %v11724_v14 = vld [vmem:[#allocation5 + $0x188] sm:$0xf] }
 0x4de   : > { %6743 = vmatpush.bf16.msrb.mxu3 %v12153_v21  ;;  %v11628_v21 = vld [vmem:[#allocation5 + $0xc8] sm:$0xf]  ;;  %v12229_v25 = vor.u32 %v14022_v60, %v12228_v17  ;;  %v13902_v49 = vld [vmem:[#allocation5 + $0x1cc] sm:$0xf0]  ;;  %v13896_v15 = vld [vmem:[#allocation5 + $0x19c] sm:$0xf0] }
 0x4df   : > { %6702 = vmatpush.bf16.msrb.mxu0 %v11553_v3  ;;  %v13968_v3 = vld [vmem:[#allocation5 + $0x3dc] sm:$0xf0]  ;;  %v11916_v17 = vld [vmem:[#allocation5 + $0x308] sm:$0xf]  ;;  %v11725_v29 = vor.u32 %v13896_v15, %v11724_v14  ;;  %v13929_v39 = vld [vmem:[#allocation5 + $0x2ac] sm:$0xf] }
 0x4e0   : > { %6716 = vmatpush.bf16.msrb.mxu1 %v11745_v35  ;;  %v11629_v35 = vor.u32 %v13872_v23, %v11628_v21  ;;  %v12013_v31 = vor.u32 %v13968_v3, %v12012_v28  ;;  %v13887_v21 = vld [vmem:[#allocation5 + $0x15c] sm:$0xf]  ;;  %v11702_v23 = vld [vmem:[#allocation5 + $0x170] sm:$0xf0]  ;;  %v11870_v40 = vld [vmem:[#allocation5 + $0x2c0] sm:$0xf0] }
 0x4e1   : > { %6730 = vmatpush.bf16.msrb.mxu2 %v11937_v26  ;;  %v11821_v26 = vor.u32 %v13920_v27, %v11820_v24  ;;  %v13935_v24 = vld [vmem:[#allocation5 + $0x2dc] sm:$0xf]  ;;  %v11894_v27 = vld [vmem:[#allocation5 + $0x2f0] sm:$0xf0]  ;;  %v13977_v53 = vld [vmem:[#allocation5 + $0x42c] sm:$0xf] }
 0x4e2   : > { %6744 = vmatpush.bf16.msrb.mxu3 %v12129_v33  ;;  %v11796_v33 = vld [vmem:[#allocation5 + $0x218] sm:$0xf]  ;;  %v13983_v28 = vld [vmem:[#allocation5 + $0x45c] sm:$0xf]  ;;  %v12086_v3 = vld [vmem:[#allocation5 + $0x470] sm:$0xf0] }
 0x4e3   : > { %6703 = vmatpush.bf16.msrb.mxu0 %v11529_v41  ;;  %v11605_v41 = vor.u32 %v13866_v37, %v11604_v32  ;;  %v11797_v52 = vor.u32 %v13914_v34, %v11796_v33  ;;  %v11705_v32 = vor.u32 %v13887_v21, %v11702_v23  ;;  %v11897_v37 = vor.u32 %v13935_v24, %v11894_v27  ;;  %v11678_v34 = vld [vmem:[#allocation5 + $0x140] sm:$0xf0]  ;;  %v13863_v15 = vld [vmem:[#allocation5 + $0x9c] sm:$0xf]  ;;  %v11990_v21 = vld [vmem:[#allocation5 + $0x3b0] sm:$0xf0] }
 0x4e4   : > { %6717 = vmatpush.bf16.msrb.mxu1 %v11721_v43  ;;  %v13860_v43 = vld [vmem:[#allocation5 + $0x7c] sm:$0xf0]  ;;  %v12089_v33 = vor.u32 %v13983_v28, %v12086_v3  ;;  %v14007_v23 = vld [vmem:[#allocation5 + $0x51c] sm:$0xf]  ;;  %v12182_v24 = vld [vmem:[#allocation5 + $0x530] sm:$0xf0] }
 0x4e5   : > { %6731 = vmatpush.bf16.msrb.mxu2 %v11913_v44  ;;  %v11772_v44 = vld [vmem:[#allocation5 + $0x1e8] sm:$0xf]  ;;  %v11581_v57 = vor.u32 %v13860_v43, %v11580_v56  ;;  %v11873_v43 = vor.u32 %v13929_v39, %v11870_v40  ;;  %v13857_v3 = vld [vmem:[#allocation5 + $0x6c] sm:$0xf]  ;;  %v11558_v40 = vld [vmem:[#allocation5 + $0x50] sm:$0xf0] }
 0x4e6   : > { %6745 = vmatpush.bf16.msrb.mxu3 %v12105_v47  ;;  %6704 = vmatmul.bf16.vlgmr.msrb.gmra.mxu0 %v15372_v4  ;;  %v11964_v47 = vld [vmem:[#allocation5 + $0x368] sm:$0xf]  ;;  %v11773_v59 = vor.u32 %v13908_v46, %v11772_v44  ;;  %v11654_v46 = vld [vmem:[#allocation5 + $0x110] sm:$0xf0] }
 0x4e7   : > { %6752 = vmatpush.bf16.msra.mxu0 %v11701_v61  ;;  %6718 = vmatmul.bf16.vlgmr.msrb.gmra.mxu1 %v15374_v19  ;;  %v13956_v61 = vld [vmem:[#allocation5 + $0x37c] sm:$0xf0] }
 0x4e8   : > { %6766 = vmatpush.bf16.msra.mxu1 %v11893_v51  ;;  %6732 = vmatmul.bf16.vlgmr.msrb.gmra.mxu2 %v15377_v50  ;;  %v12156_v51 = vld [vmem:[#allocation5 + $0x4e8] sm:$0xf]  ;;  %v11965_v62 = vor.u32 %v13956_v61, %v11964_v47  ;;  %v13923_v47 = vld [vmem:[#allocation5 + $0x27c] sm:$0xf] }
 0x4e9   : > { %6780 = vmatpush.bf16.msra.mxu2 %v12085_v55  ;;  %6746 = vmatmul.bf16.vlgmr.msrb.gmra.mxu3 %v15380_v22  ;;  %v14004_v55 = vld [vmem:[#allocation5 + $0x4fc] sm:$0xf0] }
 0x4ea   : > { %6794 = vmatpush.bf16.msra.mxu3 %v12277_v54  ;;  %v11556_v54 = vld [vmem:[#allocation5 + $0x38] sm:$0xf]  ;;  %v12157_v36 = vor.u32 %v14004_v55, %v12156_v51  ;;  %v11846_v51 = vld [vmem:[#allocation5 + $0x290] sm:$0xf0]  ;;  %v13971_v55 = vld [vmem:[#allocation5 + $0x3fc] sm:$0xf] }
 0x4eb   : > { %6753 = vmatpush.bf16.msra.mxu0 %v11677_v6  ;;  %v13950_v6 = vld [vmem:[#allocation5 + $0x34c] sm:$0xf0]  ;;  %v11557_v8 = vor.u32 %v13854_v63, %v11556_v54  ;;  %v11849_v63 = vor.u32 %v13923_v47, %v11846_v51  ;;  %v11534_v47 = vld [vmem:[#allocation5 + $0x20] sm:$0xf0] }
 0x4ec   : > { %6767 = vmatpush.bf16.msra.mxu1 %v11869_v7  ;;  %v12132_v7 = vld [vmem:[#allocation5 + $0x4b8] sm:$0xf]  ;;  %v11941_v13 = vor.u32 %v13950_v6, %v11940_v5  ;;  %v13917_v5 = vld [vmem:[#allocation5 + $0x24c] sm:$0xf] }
 0x4ed   : > { %6781 = vmatpush.bf16.msra.mxu2 %v12061_v58  ;;  %v13998_v58 = vld [vmem:[#allocation5 + $0x4cc] sm:$0xf0] }
 0x4ee   : > { %6795 = vmatpush.bf16.msra.mxu3 %v12253_v12  ;;  %v11749_v12 = vor.u32 %v13902_v49, %v11748_v16  ;;  %v12133_v60 = vor.u32 %v13998_v58, %v12132_v7  ;;  %v11630_v49 = vld [vmem:[#allocation5 + $0xe0] sm:$0xf0]  ;;  %v13965_v58 = vld [vmem:[#allocation5 + $0x3cc] sm:$0xf] }
 0x4ef   : > { %6754 = vmatpush.bf16.msra.mxu0 %v11653_v10  ;;  %v13944_v10 = vld [vmem:[#allocation5 + $0x31c] sm:$0xf0]  ;;  %v11822_v7 = vld [vmem:[#allocation5 + $0x260] sm:$0xf0] }
 0x4f0   : > { %6768 = vmatpush.bf16.msra.mxu1 %v11845_v18  ;;  %v12108_v18 = vld [vmem:[#allocation5 + $0x488] sm:$0xf]  ;;  %v11917_v30 = vor.u32 %v13944_v10, %v11916_v17  ;;  %v11606_v17 = vld [vmem:[#allocation5 + $0xb0] sm:$0xf0] }
 0x4f1   : > { %6782 = vmatpush.bf16.msra.mxu2 %v12037_v20  ;;  %v13992_v20 = vld [vmem:[#allocation5 + $0x49c] sm:$0xf0] }
 0x4f2   : > { %6796 = vmatpush.bf16.msra.mxu3 %v12229_v25  ;;  %v11533_v25 = vor.u32 %v13848_v11, %v11532_v9  ;;  %v14013_v9 = vld [vmem:[#allocation5 + $0x54c] sm:$0xf]  ;;  %v12206_v11 = vld [vmem:[#allocation5 + $0x560] sm:$0xf0] }
 0x4f3   : > { %6755 = vmatpush.bf16.msra.mxu0 %v11629_v35  ;;  %v14031_v35 = vld [vmem:[#allocation5 + $0x5dc] sm:$0xf]  ;;  %v12209_v10 = vor.u32 %v14013_v9, %v12206_v11 }
 0x4f4   : > { %6769 = vmatpush.bf16.msra.mxu1 %v11821_v26  ;;  %v12278_v26 = vld [vmem:[#allocation5 + $0x5f0] sm:$0xf0] }
 0x4f5   : > { %6783 = vmatpush.bf16.msra.mxu2 %v12013_v31  ;;  %v12109_v31 = vor.u32 %v13992_v20, %v12108_v18  ;;  %v12281_v48 = vor.u32 %v14031_v35, %v12278_v26  ;;  %v11798_v18 = vld [vmem:[#allocation5 + $0x230] sm:$0xf0]  ;;  %v13959_v20 = vld [vmem:[#allocation5 + $0x39c] sm:$0xf]  ;;  %v12185_v35 = vor.u32 %v14007_v23, %v12182_v24  ;;  %v11774_v26 = vld [vmem:[#allocation5 + $0x200] sm:$0xf0] }
 0x4f6   : > { %6797 = vmatpush.bf16.msra.mxu3 %v12205_v38  ;;  %v13881_v38 = vld [vmem:[#allocation5 + $0x12c] sm:$0xf]  ;;  %v11993_v28 = vor.u32 %v13959_v20, %v11990_v21  ;;  %v11876_v20 = vld [vmem:[#allocation5 + $0x2b0] sm:$0xf]  ;;  %v13933_v23 = vld [vmem:[#allocation5 + $0x2c4] sm:$0xf0] }
 0x4f7   : > { %6756 = vmatpush.bf16.msra.mxu0 %v11605_v41  ;;  %v12062_v41 = vld [vmem:[#allocation5 + $0x440] sm:$0xf0]  ;;  %v11681_v56 = vor.u32 %v13881_v38, %v11678_v34  ;;  %v12068_v24 = vld [vmem:[#allocation5 + $0x430] sm:$0xf] }
 0x4f8   : > { %6770 = vmatpush.bf16.msra.mxu1 %v11797_v52  ;;  %v14025_v52 = vld [vmem:[#allocation5 + $0x5ac] sm:$0xf]  ;;  %v12065_v44 = vor.u32 %v13977_v53, %v12062_v41  ;;  %v13899_v53 = vld [vmem:[#allocation5 + $0x1bc] sm:$0xf] }
 0x4f9   : > { %6784 = vmatpush.bf16.msra.mxu2 %v11989_v42  ;;  %v12254_v42 = vld [vmem:[#allocation5 + $0x5c0] sm:$0xf0] }
 0x4fa   : > { %6798 = vmatpush.bf16.msra.mxu3 %v12181_v45  ;;  %v13875_v45 = vld [vmem:[#allocation5 + $0xfc] sm:$0xf]  ;;  %v12257_v61 = vor.u32 %v14025_v52, %v12254_v42  ;;  %v11750_v52 = vld [vmem:[#allocation5 + $0x1d0] sm:$0xf0] }
 0x4fb   : > { %6757 = vmatpush.bf16.msra.mxu0 %v11581_v57  ;;  %v12038_v57 = vld [vmem:[#allocation5 + $0x410] sm:$0xf0]  ;;  %v11657_v54 = vor.u32 %v13875_v45, %v11654_v46  ;;  %v13947_v42 = vld [vmem:[#allocation5 + $0x33c] sm:$0xf]  ;;  %v13845_v46 = vld [vmem:[#allocation5 + $0xc] sm:$0xf] }
 0x4fc   : > { %6771 = vmatpush.bf16.msra.mxu1 %v11773_v59  ;;  %v14019_v59 = vld [vmem:[#allocation5 + $0x57c] sm:$0xf]  ;;  %v12041_v16 = vor.u32 %v13971_v55, %v12038_v57  ;;  %v13893_v55 = vld [vmem:[#allocation5 + $0x18c] sm:$0xf]  ;;  %v11726_v57 = vld [vmem:[#allocation5 + $0x1a0] sm:$0xf0] }
 0x4fd   : > { %6785 = vmatpush.bf16.msra.mxu2 %v11965_v62  ;;  %v12230_v62 = vld [vmem:[#allocation5 + $0x590] sm:$0xf0]  ;;  %v11729_v9 = vor.u32 %v13893_v55, %v11726_v57  ;;  %v11612_v57 = vld [vmem:[#allocation5 + $0xa0] sm:$0xf] }
 0x4fe   : > { %6799 = vmatpush.bf16.msra.mxu3 %v12157_v36  ;;  %v13869_v36 = vld [vmem:[#allocation5 + $0xcc] sm:$0xf]  ;;  %v12233_v6 = vor.u32 %v14019_v59, %v12230_v62 }
 0x4ff   : > { %6758 = vmatpush.bf16.msra.mxu0 %v11557_v8  ;;  %v12014_v8 = vld [vmem:[#allocation5 + $0x3e0] sm:$0xf0]  ;;  %v13941_v59 = vld [vmem:[#allocation5 + $0x30c] sm:$0xf] }
 0x500   : > { %6772 = vmatpush.bf16.msra.mxu1 %v11749_v12  ;;  %v11633_v12 = vor.u32 %v13869_v36, %v11630_v49  ;;  %v12017_v14 = vor.u32 %v13965_v58, %v12014_v8  ;;  %v11708_v36 = vld [vmem:[#allocation5 + $0x160] sm:$0xf]  ;;  %v13891_v49 = vld [vmem:[#allocation5 + $0x174] sm:$0xf0] }
 0x501   : > { %6786 = vmatpush.bf16.msra.mxu2 %v11941_v13  ;;  %v11825_v13 = vor.u32 %v13917_v5, %v11822_v7  ;;  %v11900_v5 = vld [vmem:[#allocation5 + $0x2e0] sm:$0xf]  ;;  %v13939_v7 = vld [vmem:[#allocation5 + $0x2f4] sm:$0xf0] }
 0x502   : > { %6800 = vmatpush.bf16.msra.mxu3 %v12133_v60  ;;  %v13911_v60 = vld [vmem:[#allocation5 + $0x21c] sm:$0xf]  ;;  %v12092_v58 = vld [vmem:[#allocation5 + $0x460] sm:$0xf]  ;;  %v13987_v8 = vld [vmem:[#allocation5 + $0x474] sm:$0xf0] }
 0x503   : > { %6759 = vmatpush.bf16.msra.mxu0 %v11533_v25  ;;  %v11609_v25 = vor.u32 %v13863_v15, %v11606_v17  ;;  %v11801_v27 = vor.u32 %v13911_v60, %v11798_v18  ;;  %v11709_v15 = vor.u32 %v13891_v49, %v11708_v36  ;;  %v11901_v17 = vor.u32 %v13939_v7, %v11900_v5  ;;  %v13885_v18 = vld [vmem:[#allocation5 + $0x144] sm:$0xf0]  ;;  %v13963_v36 = vld [vmem:[#allocation5 + $0x3b4] sm:$0xf0]  ;;  %v12188_v49 = vld [vmem:[#allocation5 + $0x520] sm:$0xf] }
 0x504   : > { %6773 = vmatpush.bf16.msra.mxu1 %v11725_v29  ;;  %v11582_v29 = vld [vmem:[#allocation5 + $0x80] sm:$0xf0]  ;;  %v12093_v60 = vor.u32 %v13987_v8, %v12092_v58  ;;  %v14011_v5 = vld [vmem:[#allocation5 + $0x534] sm:$0xf0]  ;;  %v11588_v8 = vld [vmem:[#allocation5 + $0x70] sm:$0xf] }
 0x505   : > { %6787 = vmatpush.bf16.msra.mxu2 %v11917_v30  ;;  %v13905_v30 = vld [vmem:[#allocation5 + $0x1ec] sm:$0xf]  ;;  %v11585_v38 = vor.u32 %v13857_v3, %v11582_v29  ;;  %v11877_v29 = vor.u32 %v13933_v23, %v11876_v20  ;;  %v13855_v23 = vld [vmem:[#allocation5 + $0x54] sm:$0xf0] }
 0x506   : > { %6801 = vmatpush.bf16.msra.mxu3 %v12109_v31  ;;  %6760 = vmatmul.bf16.vlgmr.msra.gmra.mxu0 %v15372_v4  ;;  %v13953_v31 = vld [vmem:[#allocation5 + $0x36c] sm:$0xf]  ;;  %v11777_v34 = vor.u32 %v13905_v30, %v11774_v26  ;;  %v13879_v26 = vld [vmem:[#allocation5 + $0x114] sm:$0xf0] }
 0x507   : > { %6808 = vmatpush.bf16.msrb.mxu0 %v11705_v32  ;;  %6774 = vmatmul.bf16.vlgmr.msra.gmra.mxu1 %v15374_v19  ;;  %v11966_v32 = vld [vmem:[#allocation5 + $0x380] sm:$0xf0] }
 0x508   : > { %6822 = vmatpush.bf16.msrb.mxu1 %v11897_v37  ;;  %6788 = vmatmul.bf16.vlgmr.msra.gmra.mxu2 %v15377_v50  ;;  %v14001_v37 = vld [vmem:[#allocation5 + $0x4ec] sm:$0xf]  ;;  %v11969_v39 = vor.u32 %v13953_v31, %v11966_v32  ;;  %v11852_v31 = vld [vmem:[#allocation5 + $0x280] sm:$0xf] }
 0x509   : > { %6836 = vmatpush.bf16.msrb.mxu2 %v12089_v33  ;;  %6802 = vmatmul.bf16.vlgmr.msra.gmra.mxu3 %v15380_v22  ;;  %v12158_v33 = vld [vmem:[#allocation5 + $0x500] sm:$0xf0] }
 0x50a   : > { %6850 = vmatpush.bf16.msrb.mxu3 %v12281_v48  ;;  %v13851_v48 = vld [vmem:[#allocation5 + $0x3c] sm:$0xf]  ;;  %v12161_v41 = vor.u32 %v14001_v37, %v12158_v33  ;;  %v13927_v37 = vld [vmem:[#allocation5 + $0x294] sm:$0xf0]  ;;  %v12044_v33 = vld [vmem:[#allocation5 + $0x400] sm:$0xf] }
 0x50b   : > { %6809 = vmatpush.bf16.msrb.mxu0 %v11681_v56  ;;  %v11942_v56 = vld [vmem:[#allocation5 + $0x350] sm:$0xf0]  ;;  %v11561_v45 = vor.u32 %v13851_v48, %v11558_v40  ;;  %v11853_v40 = vor.u32 %v13927_v37, %v11852_v31  ;;  %v13849_v31 = vld [vmem:[#allocation5 + $0x24] sm:$0xf0] }
 0x50c   : > { %6823 = vmatpush.bf16.msrb.mxu1 %v11873_v43  ;;  %v13995_v43 = vld [vmem:[#allocation5 + $0x4bc] sm:$0xf]  ;;  %v11945_v51 = vor.u32 %v13947_v42, %v11942_v56  ;;  %v11828_v42 = vld [vmem:[#allocation5 + $0x250] sm:$0xf] }
 0x50d   : > { %6837 = vmatpush.bf16.msrb.mxu2 %v12065_v44  ;;  %v12134_v44 = vld [vmem:[#allocation5 + $0x4d0] sm:$0xf0] }
 0x50e   : > { %6851 = vmatpush.bf16.msrb.mxu3 %v12257_v61  ;;  %v11753_v61 = vor.u32 %v13899_v53, %v11750_v52  ;;  %v12137_v62 = vor.u32 %v13995_v43, %v12134_v44  ;;  %v13873_v52 = vld [vmem:[#allocation5 + $0xe4] sm:$0xf0]  ;;  %v12020_v44 = vld [vmem:[#allocation5 + $0x3d0] sm:$0xf] }
 0x50f   : > { %6810 = vmatpush.bf16.msrb.mxu0 %v11657_v54  ;;  %v11918_v54 = vld [vmem:[#allocation5 + $0x320] sm:$0xf0]  ;;  %v13921_v43 = vld [vmem:[#allocation5 + $0x264] sm:$0xf0] }
 0x510   : > { %6824 = vmatpush.bf16.msrb.mxu1 %v11849_v63  ;;  %v13989_v63 = vld [vmem:[#allocation5 + $0x48c] sm:$0xf]  ;;  %v11921_v11 = vor.u32 %v13941_v59, %v11918_v54  ;;  %v13867_v59 = vld [vmem:[#allocation5 + $0xb4] sm:$0xf0] }
 0x511   : > { %6838 = vmatpush.bf16.msrb.mxu2 %v12041_v16  ;;  %v12110_v16 = vld [vmem:[#allocation5 + $0x4a0] sm:$0xf0] }
 0x512   : > { %6852 = vmatpush.bf16.msrb.mxu3 %v12233_v6  ;;  %v11537_v6 = vor.u32 %v13845_v46, %v11534_v47  ;;  %v12212_v46 = vld [vmem:[#allocation5 + $0x550] sm:$0xf]  ;;  %v14017_v47 = vld [vmem:[#allocation5 + $0x564] sm:$0xf0] }
 0x513   : > { %6811 = vmatpush.bf16.msrb.mxu0 %v11633_v12  ;;  %v12284_v12 = vld [vmem:[#allocation5 + $0x5e0] sm:$0xf]  ;;  %v12213_v54 = vor.u32 %v14017_v47, %v12212_v46 }
 0x514   : > { %6825 = vmatpush.bf16.msrb.mxu1 %v11825_v13  ;;  %v14035_v13 = vld [vmem:[#allocation5 + $0x5f4] sm:$0xf0] }
 0x515   : > { %6839 = vmatpush.bf16.msrb.mxu2 %v12017_v14  ;;  %v12113_v14 = vor.u32 %v13989_v63, %v12110_v16  ;;  %v12285_v21 = vor.u32 %v14035_v13, %v12284_v12  ;;  %v13915_v63 = vld [vmem:[#allocation5 + $0x234] sm:$0xf0]  ;;  %v11996_v16 = vld [vmem:[#allocation5 + $0x3a0] sm:$0xf]  ;;  %v12189_v12 = vor.u32 %v14011_v5, %v12188_v49  ;;  %v13909_v13 = vld [vmem:[#allocation5 + $0x204] sm:$0xf0] }
 0x516   : > { %6853 = vmatpush.bf16.msrb.mxu3 %v12209_v10  ;;  %v11684_v10 = vld [vmem:[#allocation5 + $0x130] sm:$0xf]  ;;  %v11997_v58 = vor.u32 %v13963_v36, %v11996_v16  ;;  %v13930_v16 = vld [vmem:[#allocation5 + $0x2b4] sm:$0xf]  ;;  %v11878_v49 = vld [vmem:[#allocation5 + $0x2c8] sm:$0xf0] }
 0x517   : > { %6812 = vmatpush.bf16.msrb.mxu0 %v11609_v25  ;;  %v13981_v25 = vld [vmem:[#allocation5 + $0x444] sm:$0xf0]  ;;  %v11685_v3 = vor.u32 %v13885_v18, %v11684_v10  ;;  %v13978_v5 = vld [vmem:[#allocation5 + $0x434] sm:$0xf] }
 0x518   : > { %6826 = vmatpush.bf16.msrb.mxu1 %v11801_v27  ;;  %v12260_v27 = vld [vmem:[#allocation5 + $0x5b0] sm:$0xf]  ;;  %v12069_v30 = vor.u32 %v13981_v25, %v12068_v24  ;;  %v11756_v24 = vld [vmem:[#allocation5 + $0x1c0] sm:$0xf] }
 0x519   : > { %6840 = vmatpush.bf16.msrb.mxu2 %v11993_v28  ;;  %v14029_v28 = vld [vmem:[#allocation5 + $0x5c4] sm:$0xf0] }
 0x51a   : > { %6854 = vmatpush.bf16.msrb.mxu3 %v12185_v35  ;;  %v11660_v35 = vld [vmem:[#allocation5 + $0x100] sm:$0xf]  ;;  %v12261_v32 = vor.u32 %v14029_v28, %v12260_v27  ;;  %v13903_v27 = vld [vmem:[#allocation5 + $0x1d4] sm:$0xf0] }
 0x51b   : > { %6813 = vmatpush.bf16.msrb.mxu0 %v11585_v38  ;;  %v13975_v38 = vld [vmem:[#allocation5 + $0x414] sm:$0xf0]  ;;  %v11661_v48 = vor.u32 %v13879_v26, %v11660_v35  ;;  %v11948_v28 = vld [vmem:[#allocation5 + $0x340] sm:$0xf]  ;;  %v11540_v26 = vld [vmem:[#allocation5 + $0x10] sm:$0xf] }
 0x51c   : > { %6827 = vmatpush.bf16.msrb.mxu1 %v11777_v34  ;;  %v12236_v34 = vld [vmem:[#allocation5 + $0x580] sm:$0xf]  ;;  %v12045_v53 = vor.u32 %v13975_v38, %v12044_v33  ;;  %v11732_v33 = vld [vmem:[#allocation5 + $0x190] sm:$0xf]  ;;  %v13897_v38 = vld [vmem:[#allocation5 + $0x1a4] sm:$0xf0] }
 0x51d   : > { %6841 = vmatpush.bf16.msrb.mxu2 %v11969_v39  ;;  %v14023_v39 = vld [vmem:[#allocation5 + $0x594] sm:$0xf0]  ;;  %v11733_v46 = vor.u32 %v13897_v38, %v11732_v33 }
 0x51e   : > { %6855 = vmatpush.bf16.msrb.mxu3 %v12161_v41  ;;  %v11636_v41 = vld [vmem:[#allocation5 + $0xd0] sm:$0xf]  ;;  %v12237_v56 = vor.u32 %v14023_v39, %v12236_v34 }
 0x51f   : > { %6814 = vmatpush.bf16.msrb.mxu0 %v11561_v45  ;;  %v13969_v45 = vld [vmem:[#allocation5 + $0x3e4] sm:$0xf0]  ;;  %v11924_v34 = vld [vmem:[#allocation5 + $0x310] sm:$0xf] }
 0x520   : > { %6828 = vmatpush.bf16.msrb.mxu1 %v11753_v61  ;;  %v11637_v61 = vor.u32 %v13873_v52, %v11636_v41  ;;  %v12021_v55 = vor.u32 %v13969_v45, %v12020_v44  ;;  %v13888_v41 = vld [vmem:[#allocation5 + $0x164] sm:$0xf]  ;;  %v11710_v52 = vld [vmem:[#allocation5 + $0x178] sm:$0xf0] }
 0x521   : > { %6842 = vmatpush.bf16.msrb.mxu2 %v11945_v51  ;;  %v11829_v51 = vor.u32 %v13921_v43, %v11828_v42  ;;  %v13936_v42 = vld [vmem:[#allocation5 + $0x2e4] sm:$0xf]  ;;  %v11902_v43 = vld [vmem:[#allocation5 + $0x2f8] sm:$0xf0] }
 0x522   : > { %6856 = vmatpush.bf16.msrb.mxu3 %v12137_v62  ;;  %v11804_v62 = vld [vmem:[#allocation5 + $0x220] sm:$0xf]  ;;  %v13984_v44 = vld [vmem:[#allocation5 + $0x464] sm:$0xf]  ;;  %v12094_v45 = vld [vmem:[#allocation5 + $0x478] sm:$0xf0] }
 0x523   : > { %6815 = vmatpush.bf16.msrb.mxu0 %v11537_v6  ;;  %v11613_v6 = vor.u32 %v13867_v59, %v11612_v57  ;;  %v11805_v7 = vor.u32 %v13915_v63, %v11804_v62  ;;  %v11713_v57 = vor.u32 %v13888_v41, %v11710_v52  ;;  %v11905_v59 = vor.u32 %v13936_v42, %v11902_v43  ;;  %v11686_v63 = vld [vmem:[#allocation5 + $0x148] sm:$0xf0]  ;;  %v11806_v42 = vld [vmem:[#allocation5 + $0x238] sm:$0xf0] }
 0x524   : > { %6829 = vmatpush.bf16.msrb.mxu1 %v11729_v9  ;;  %v13861_v9 = vld [vmem:[#allocation5 + $0x84] sm:$0xf0]  ;;  %v12097_v62 = vor.u32 %v13984_v44, %v12094_v45  ;;  %v11998_v43 = vld [vmem:[#allocation5 + $0x3b8] sm:$0xf0]  ;;  %v14008_v44 = vld [vmem:[#allocation5 + $0x524] sm:$0xf] }
 0x525   : > { %6843 = vmatpush.bf16.msrb.mxu2 %v11921_v11  ;;  %v11780_v11 = vld [vmem:[#allocation5 + $0x1f0] sm:$0xf]  ;;  %v11589_v10 = vor.u32 %v13861_v9, %v11588_v8  ;;  %v11881_v9 = vor.u32 %v13930_v16, %v11878_v49  ;;  %v12190_v45 = vld [vmem:[#allocation5 + $0x538] sm:$0xf0]  ;;  %v13954_v16 = vld [vmem:[#allocation5 + $0x374] sm:$0xf] }
 0x526   : > { %6857 = vmatpush.bf16.msrb.mxu3 %v12113_v14  ;;  %6816 = vmatmul.bf16.vlgmr.msrb.gmra.mxu0 %v15372_v4  ;;  %v11972_v14 = vld [vmem:[#allocation5 + $0x370] sm:$0xf]  ;;  %v11781_v18 = vor.u32 %v13909_v13, %v11780_v11  ;;  %v11662_v13 = vld [vmem:[#allocation5 + $0x118] sm:$0xf0] }
 0x527   : > { %6864 = vmatpush.bf16.msra.mxu0 %v11709_v15  ;;  %6830 = vmatmul.bf16.vlgmr.msrb.gmra.mxu1 %v15374_v19  ;;  %v13957_v15 = vld [vmem:[#allocation5 + $0x384] sm:$0xf0] }
 0x528   : > { %6878 = vmatpush.bf16.msra.mxu1 %v11901_v17  ;;  %6844 = vmatmul.bf16.vlgmr.msrb.gmra.mxu2 %v15377_v50  ;;  %v12164_v17 = vld [vmem:[#allocation5 + $0x4f0] sm:$0xf]  ;;  %v11973_v20 = vor.u32 %v13957_v15, %v11972_v14  ;;  %v13924_v14 = vld [vmem:[#allocation5 + $0x284] sm:$0xf] }
 0x529   : > { %6892 = vmatpush.bf16.msra.mxu2 %v12093_v60  ;;  %6858 = vmatmul.bf16.vlgmr.msrb.gmra.mxu3 %v15380_v22  ;;  %v14005_v60 = vld [vmem:[#allocation5 + $0x504] sm:$0xf0] }
 0x52a   : > { %6906 = vmatpush.bf16.msra.mxu3 %v12285_v21  ;;  %v11564_v21 = vld [vmem:[#allocation5 + $0x40] sm:$0xf]  ;;  %v12165_v25 = vor.u32 %v14005_v60, %v12164_v17  ;;  %v11854_v17 = vld [vmem:[#allocation5 + $0x298] sm:$0xf0]  ;;  %v13972_v60 = vld [vmem:[#allocation5 + $0x404] sm:$0xf] }
 0x52b   : > { %6865 = vmatpush.bf16.msra.mxu0 %v11685_v3  ;;  %v13951_v3 = vld [vmem:[#allocation5 + $0x354] sm:$0xf0]  ;;  %v11565_v35 = vor.u32 %v13855_v23, %v11564_v21  ;;  %v13870_v23 = vld [vmem:[#allocation5 + $0xd4] sm:$0xf] }
 0x52c   : > { %6879 = vmatpush.bf16.msra.mxu1 %v11877_v29  ;;  %v12140_v29 = vld [vmem:[#allocation5 + $0x4c0] sm:$0xf]  ;;  %v11949_v37 = vor.u32 %v13951_v3, %v11948_v28  ;;  %v13918_v28 = vld [vmem:[#allocation5 + $0x254] sm:$0xf]  ;;  %v5668_v3 = vperm.slane %v15290_v0, 0 }
 0x52d   : > { %6893 = vmatpush.bf16.msra.mxu2 %v12069_v30  ;;  %v13999_v30 = vld [vmem:[#allocation5 + $0x4d4] sm:$0xf0] }
 0x52e   : > { %6907 = vmatpush.bf16.msra.mxu3 %v12261_v32  ;;  %v11757_v32 = vor.u32 %v13903_v27, %v11756_v24  ;;  %v12141_v39 = vor.u32 %v13999_v30, %v12140_v29  ;;  %v11857_v24 = vor.u32 %v13924_v14, %v11854_v17  ;;  %v11638_v27 = vld [vmem:[#allocation5 + $0xe8] sm:$0xf0]  ;;  %v11566_v14 = vld [vmem:[#allocation5 + $0x58] sm:$0xf0] }
 0x52f   : > { %6866 = vmatpush.bf16.msra.mxu0 %v11661_v48  ;;  %v13945_v48 = vld [vmem:[#allocation5 + $0x324] sm:$0xf0]  ;;  %v11830_v30 = vld [vmem:[#allocation5 + $0x268] sm:$0xf0] }
 0x530   : > { %6880 = vmatpush.bf16.msra.mxu1 %v11853_v40  ;;  %v12116_v40 = vld [vmem:[#allocation5 + $0x490] sm:$0xf]  ;;  %v11925_v47 = vor.u32 %v13945_v48, %v11924_v34  ;;  %v11833_v38 = vor.u32 %v13918_v28, %v11830_v30  ;;  %v11614_v48 = vld [vmem:[#allocation5 + $0xb8] sm:$0xf0]  ;;  %v13846_v30 = vld [vmem:[#allocation5 + $0x14] sm:$0xf] }
 0x531   : > { %6894 = vmatpush.bf16.msra.mxu2 %v12045_v53  ;;  %v13993_v53 = vld [vmem:[#allocation5 + $0x4a4] sm:$0xf0] }
 0x532   : > { %6908 = vmatpush.bf16.msra.mxu3 %v12237_v56  ;;  %v11541_v56 = vor.u32 %v13849_v31, %v11540_v26  ;;  %v12022_v26 = vld [vmem:[#allocation5 + $0x3e8] sm:$0xf0]  ;;  %v14014_v31 = vld [vmem:[#allocation5 + $0x554] sm:$0xf] }
 0x533   : > { %6867 = vmatpush.bf16.msra.mxu0 %v11637_v61  ;;  %v14032_v61 = vld [vmem:[#allocation5 + $0x5e4] sm:$0xf] }
 0x534   : > { %6881 = vmatpush.bf16.msra.mxu1 %v11829_v51  ;;  %v12286_v51 = vld [vmem:[#allocation5 + $0x5f8] sm:$0xf0] }
 0x535   : > { %6895 = vmatpush.bf16.msra.mxu2 %v12021_v55  ;;  %v12117_v55 = vor.u32 %v13993_v53, %v12116_v40  ;;  %v12289_v36 = vor.u32 %v14032_v61, %v12286_v51  ;;  %v13912_v40 = vld [vmem:[#allocation5 + $0x224] sm:$0xf] }
 0x536   : > { %6909 = vmatpush.bf16.msra.mxu3 %v12213_v54  ;;  %v13882_v54 = vld [vmem:[#allocation5 + $0x134] sm:$0xf]  ;;  %v11809_v61 = vor.u32 %v13912_v40, %v11806_v42 }
 0x537   : > { %6868 = vmatpush.bf16.msra.mxu0 %v11613_v6  ;;  %v12070_v6 = vld [vmem:[#allocation5 + $0x448] sm:$0xf0]  ;;  %v11689_v8 = vor.u32 %v13882_v54, %v11686_v63  ;;  %v12193_v54 = vor.u32 %v14008_v44, %v12190_v45 }
 0x538   : > { %6882 = vmatpush.bf16.msra.mxu1 %v11805_v7  ;;  %v14026_v7 = vld [vmem:[#allocation5 + $0x5b4] sm:$0xf]  ;;  %v12073_v11 = vor.u32 %v13978_v5, %v12070_v6  ;;  %v11782_v63 = vld [vmem:[#allocation5 + $0x208] sm:$0xf0] }
 0x539   : > { %6896 = vmatpush.bf16.msra.mxu2 %v11997_v58  ;;  %v12262_v58 = vld [vmem:[#allocation5 + $0x5c8] sm:$0xf0]  ;;  %v14002_v6 = vld [vmem:[#allocation5 + $0x4f4] sm:$0xf] }
 0x53a   : > { %6910 = vmatpush.bf16.msra.mxu3 %v12189_v12  ;;  %v13876_v12 = vld [vmem:[#allocation5 + $0x104] sm:$0xf]  ;;  %v12265_v15 = vor.u32 %v14026_v7, %v12262_v58  ;;  %v12166_v7 = vld [vmem:[#allocation5 + $0x508] sm:$0xf0] }
 0x53b   : > { %6869 = vmatpush.bf16.msra.mxu0 %v11589_v10  ;;  %v12046_v10 = vld [vmem:[#allocation5 + $0x418] sm:$0xf0]  ;;  %v11665_v21 = vor.u32 %v13876_v12, %v11662_v13  ;;  %v13852_v13 = vld [vmem:[#allocation5 + $0x44] sm:$0xf] }
 0x53c   : > { %6883 = vmatpush.bf16.msra.mxu1 %v11781_v18  ;;  %v14020_v18 = vld [vmem:[#allocation5 + $0x584] sm:$0xf] }
 0x53d   : > { %6897 = vmatpush.bf16.msra.mxu2 %v11973_v20  ;;  %v12238_v20 = vld [vmem:[#allocation5 + $0x598] sm:$0xf0] }
 0x53e   : > { %6911 = vmatpush.bf16.msra.mxu3 %v12165_v25  ;;  %v12049_v25 = vor.u32 %v13972_v60, %v12046_v10  ;;  %v12241_v29 = vor.u32 %v14020_v18, %v12238_v20  ;;  %v12169_v10 = vor.u32 %v14002_v6, %v12166_v7  ;;  %v11758_v18 = vld [vmem:[#allocation5 + $0x1d8] sm:$0xf0]  ;;  %v13948_v20 = vld [vmem:[#allocation5 + $0x344] sm:$0xf] }
 0x53f   : > { %6870 = vmatpush.bf16.msra.mxu0 %v11565_v35  ;;  %v13966_v35 = vld [vmem:[#allocation5 + $0x3d4] sm:$0xf] }
 0x540   : > { %6884 = vmatpush.bf16.msra.mxu1 %v11757_v32  ;;  %v12214_v32 = vld [vmem:[#allocation5 + $0x568] sm:$0xf0]  ;;  %v12025_v34 = vor.u32 %v13966_v35, %v12022_v26  ;;  %v13894_v26 = vld [vmem:[#allocation5 + $0x194] sm:$0xf] }
 0x541   : > { %6898 = vmatpush.bf16.msra.mxu2 %v11949_v37  ;;  %v11641_v37 = vor.u32 %v13870_v23, %v11638_v27  ;;  %v12217_v52 = vor.u32 %v14014_v31, %v12214_v32  ;;  %v13996_v23 = vld [vmem:[#allocation5 + $0x4c4] sm:$0xf]  ;;  %v11569_v27 = vor.u32 %v13852_v13, %v11566_v14  ;;  %v11542_v35 = vld [vmem:[#allocation5 + $0x28] sm:$0xf0] }
 0x542   : > { %6912 = vmatpush.bf16.msra.mxu3 %v12141_v39  ;;  %v13864_v39 = vld [vmem:[#allocation5 + $0xa4] sm:$0xf]  ;;  %v11734_v32 = vld [vmem:[#allocation5 + $0x1a8] sm:$0xf0]  ;;  %v11545_v40 = vor.u32 %v13846_v30, %v11542_v35 }
 0x543   : > { %6871 = vmatpush.bf16.msra.mxu0 %v11541_v56  ;;  %v6649_v33 = vpop.f32.mrf.mxu0  ;;  %v13960_v56 = vld [vmem:[#allocation5 + $0x3a4] sm:$0xf] }
 0x544   : > { %6885 = vmatpush.bf16.msra.mxu1 %v11733_v46  ;;  %v6650_v53 = vadd.f32 %v6649_v33, %v5668_v3  ;;  %v6663_v41 = vpop.f32.mrf.mxu1  ;;  %v12001_v51 = vor.u32 %v13960_v56, %v11998_v43  ;;  %v11926_v33 = vld [vmem:[#allocation5 + $0x328] sm:$0xf0]  ;;  %v5669_v43 = vperm.slane %v15290_v0, 1 }
 0x545   : > { %6899 = vmatpush.bf16.msra.mxu2 %v11925_v47  ;;  %v11617_v47 = vor.u32 %v13864_v39, %v11614_v48  ;;  %v13990_v39 = vld [vmem:[#allocation5 + $0x494] sm:$0xf]  ;;  %v12118_v48 = vld [vmem:[#allocation5 + $0x4a8] sm:$0xf0] }
 0x546   : > { %6913 = vmatpush.bf16.msra.mxu3 %v12117_v55  ;;  %6872 = vmatmul.bf16.vlgmr.msra.gmra.mxu0 %v15372_v4  ;;  %v6664_v46 = vadd.f32 %v6663_v41, %v6650_v53  ;;  %v13858_v55 = vld [vmem:[#allocation5 + $0x74] sm:$0xf]  ;;  %v11737_v41 = vor.u32 %v13894_v26, %v11734_v32  ;;  %v12121_v42 = vor.u32 %v13990_v39, %v12118_v48  ;;  %v5672_v48 = vperm.slane %v15290_v0, 4 }
 0x547   : > { %6920 = vmatpush.bf16.msrb.mxu0 %v11713_v57  ;;  %6886 = vmatmul.bf16.vlgmr.msra.gmra.mxu1 %v15374_v19  ;;  %v11590_v57 = vld [vmem:[#allocation5 + $0x88] sm:$0xf0] }
 0x548   : > { %6934 = vmatpush.bf16.msrb.mxu1 %v11905_v59  ;;  %6900 = vmatmul.bf16.vlgmr.msra.gmra.mxu2 %v15377_v50  ;;  %v13906_v59 = vld [vmem:[#allocation5 + $0x1f4] sm:$0xf]  ;;  %v11593_v58 = vor.u32 %v13858_v55, %v11590_v57 }
 0x549   : > { %6948 = vmatpush.bf16.msrb.mxu2 %v12097_v62  ;;  %6914 = vmatmul.bf16.vlgmr.msra.gmra.mxu3 %v15380_v22 }
 0x54a   : > { %6962 = vmatpush.bf16.msrb.mxu3 %v12289_v36  ;;  %v11974_v36 = vld [vmem:[#allocation5 + $0x388] sm:$0xf0] }
 0x54b   : > { %6921 = vmatpush.bf16.msrb.mxu0 %v11689_v8  ;;  %v6677_v62 = vpop.f32.mrf.mxu2  ;;  %v11977_v12 = vor.u32 %v13954_v16, %v11974_v36 }
 0x54c   : > { %6935 = vmatpush.bf16.msrb.mxu1 %v11881_v9  ;;  %v6678_v49 = vadd.f32 %v6677_v62, %v6664_v46  ;;  %v6691_v5 = vpop.f32.mrf.mxu3  ;;  %v6651_v9 = vpop.f32.mrf.mxu0 }
 0x54d   : > { %6949 = vmatpush.bf16.msrb.mxu2 %v12073_v11  ;;  %v11785_v11 = vor.u32 %v13906_v59, %v11782_v63  ;;  %v6652_v17 = vadd.f32 %v6651_v9, %v5668_v3  ;;  %v6665_v60 = vpop.f32.mrf.mxu1 }
 0x54e   : > { %6963 = vmatpush.bf16.msrb.mxu3 %v12265_v15  ;;  %v6692_v8 = vadd.f32 %v6691_v5, %v6678_v49  ;;  %v13900_v15 = vld [vmem:[#allocation5 + $0x1c4] sm:$0xf] }
 0x54f   : > { %6922 = vmatpush.bf16.msrb.mxu0 %v11665_v21  ;;  %v11950_v21 = vld [vmem:[#allocation5 + $0x358] sm:$0xf0]  ;;  %v11761_v28 = vor.u32 %v13900_v15, %v11758_v18 }
 0x550   : > { %6936 = vmatpush.bf16.msrb.mxu1 %v11857_v24  ;;  %v12142_v24 = vld [vmem:[#allocation5 + $0x4d8] sm:$0xf0] }
 0x551   : > { %6950 = vmatpush.bf16.msrb.mxu2 %v12049_v25  ;;  %v6666_v25 = vadd.f32 %v6665_v60, %v6652_v17  ;;  %v12145_v3 = vor.u32 %v13996_v23, %v12142_v24 }
 0x552   : > { %6964 = vmatpush.bf16.msrb.mxu3 %v12241_v29  ;;  %v11953_v29 = vor.u32 %v13948_v20, %v11950_v21  ;;  %v5671_v21 = vperm.slane %v15290_v0, 3 }
 0x553   : > { %6923 = vmatpush.bf16.msrb.mxu0 %v11641_v37  ;;  %v6679_v31 = vpop.f32.mrf.mxu2  ;;  %v13942_v37 = vld [vmem:[#allocation5 + $0x314] sm:$0xf] }
 0x554   : > { %6937 = vmatpush.bf16.msrb.mxu1 %v11833_v38  ;;  %v6680_v38 = vadd.f32 %v6679_v31, %v6666_v25 }
 0x555   : > { %6951 = vmatpush.bf16.msrb.mxu2 %v12025_v34  ;;  %v6693_v34 = vpop.f32.mrf.mxu3 }
 0x556   : > { %6965 = vmatpush.bf16.msrb.mxu3 %v12217_v52  ;;  %v6694_v53 = vadd.f32 %v6693_v34, %v6680_v38  ;;  %v11929_v52 = vor.u32 %v13942_v37, %v11926_v33 }
 0x557   : > { %6924 = vmatpush.bf16.msrb.mxu0 %v11617_v47 }
 0x558   : > { %6938 = vmatpush.bf16.msrb.mxu1 %v11809_v61  ;;  %v15403_v56 = vpack.c.bf16 %v6694_v53, %v6692_v8 }
 0x559   : > { %6952 = vmatpush.bf16.msrb.mxu2 %v12001_v51 }
 0x55a   : > { %6966 = vmatpush.bf16.msrb.mxu3 %v12193_v54 }
 0x55b   : > { %6925 = vmatpush.bf16.msrb.mxu0 %v11593_v58 }
 0x55c   : > { %6939 = vmatpush.bf16.msrb.mxu1 %v11785_v11 }
 0x55d   : > { %6953 = vmatpush.bf16.msrb.mxu2 %v11977_v12 }
 0x55e   : > { %6967 = vmatpush.bf16.msrb.mxu3 %v12169_v10 }
 0x55f   : > { %6926 = vmatpush.bf16.msrb.mxu0 %v11569_v27 }
 0x560   : > { %6940 = vmatpush.bf16.msrb.mxu1 %v11761_v28 }
 0x561   : > { %6954 = vmatpush.bf16.msrb.mxu2 %v11953_v29 }
 0x562   : > { %6968 = vmatpush.bf16.msrb.mxu3 %v12145_v3 }
 0x563   : > { %6927 = vmatpush.bf16.msrb.mxu0 %v11545_v40  ;;  %v6705_v44 = vpop.f32.mrf.mxu0 }
 0x564   : > { %6941 = vmatpush.bf16.msrb.mxu1 %v11737_v41  ;;  %v6706_v45 = vadd.f32 %v6705_v44, %v5669_v43  ;;  %v6719_v46 = vpop.f32.mrf.mxu1 }
 0x565   : > { %6955 = vmatpush.bf16.msrb.mxu2 %v11929_v52 }
 0x566   : > { %6969 = vmatpush.bf16.msrb.mxu3 %v12121_v42  ;;  %6928 = vmatmul.bf16.vlgmr.msrb.gmra.mxu0 %v15372_v4  ;;  %v6720_v47 = vadd.f32 %v6719_v46, %v6706_v45 }
 0x567   : > { %6942 = vmatmul.bf16.vlgmr.msrb.gmra.mxu1 %v15374_v19 }
 0x568   : > { %6956 = vmatmul.bf16.vlgmr.msrb.gmra.mxu2 %v15377_v50 }
 0x569   : > { %6970 = vmatmul.bf16.vlgmr.msrb.gmra.mxu3 %v15380_v22  ;;  %v5670_v22 = vperm.slane %v15290_v0, 2 }
 0x56b   : > { %v6733_v61 = vpop.f32.mrf.mxu2  ;;  %v6707_v59 = vpop.f32.mrf.mxu0 }
 0x56c   : > { %v6734_v51 = vadd.f32 %v6733_v61, %v6720_v47  ;;  %v6747_v55 = vpop.f32.mrf.mxu3  ;;  %v6708_v62 = vadd.f32 %v6707_v59, %v5669_v43  ;;  %v6721_v54 = vpop.f32.mrf.mxu1 }
 0x56e   : > { %v6748_v57 = vadd.f32 %v6747_v55, %v6734_v51  ;;  %v6722_v4 = vadd.f32 %v6721_v54, %v6708_v62 }
 0x573   : > { %v6735_v63 = vpop.f32.mrf.mxu2 }
 0x574   : > { %v6736_v19 = vadd.f32 %v6735_v63, %v6722_v4  ;;  %v6749_v16 = vpop.f32.mrf.mxu3  ;;  %v5673_v63 = vperm.slane %v15290_v0, 5 }
 0x576   : > { %v6750_v50 = vadd.f32 %v6749_v16, %v6736_v19 }
 0x578   : > { %v15410_v36 = vpack.c.bf16 %v6750_v50, %v6748_v57 }
 0x583   : > { %v6761_v49 = vpop.f32.mrf.mxu0 }
 0x584   : > { %v6775_v5 = vpop.f32.mrf.mxu1  ;;  %v6762_v6 = vadd.f32 %v6761_v49, %v5670_v22 }
 0x586   : > { %v6776_v58 = vadd.f32 %v6775_v5, %v6762_v6 }
 0x58b   : > { %v6789_v7 = vpop.f32.mrf.mxu2  ;;  %v6763_v9 = vpop.f32.mrf.mxu0 }
 0x58c   : > { %v6803_v8 = vpop.f32.mrf.mxu3  ;;  %v6764_v11 = vadd.f32 %v6763_v9, %v5670_v22  ;;  %v6777_v12 = vpop.f32.mrf.mxu1  ;;  %v6790_v13 = vadd.f32 %v6789_v7, %v6776_v58 }
 0x58e   : > { %v6778_v14 = vadd.f32 %v6777_v12, %v6764_v11  ;;  %v6804_v17 = vadd.f32 %v6803_v8, %v6790_v13 }
 0x593   : > { %v6791_v15 = vpop.f32.mrf.mxu2 }
 0x594   : > { %v6792_v60 = vadd.f32 %v6791_v15, %v6778_v14  ;;  %v6805_v10 = vpop.f32.mrf.mxu3 }
 0x596   : > { %v6806_v18 = vadd.f32 %v6805_v10, %v6792_v60 }
 0x598   : > { %v15413_v20 = vpack.c.bf16 %v6806_v18, %v6804_v17 }
 0x5a3   : > { %v6817_v23 = vpop.f32.mrf.mxu0 }
 0x5a4   : > { %v6831_v24 = vpop.f32.mrf.mxu1  ;;  %v6818_v25 = vadd.f32 %v6817_v23, %v5671_v21 }
 0x5a6   : > { %v6832_v28 = vadd.f32 %v6831_v24, %v6818_v25 }
 0x5ab   : > { %v6845_v27 = vpop.f32.mrf.mxu2  ;;  %v6819_v30 = vpop.f32.mrf.mxu0 }
 0x5ac   : > { %v6859_v29 = vpop.f32.mrf.mxu3  ;;  %v6820_v35 = vadd.f32 %v6819_v30, %v5671_v21  ;;  %v6833_v26 = vpop.f32.mrf.mxu1  ;;  %v6846_v31 = vadd.f32 %v6845_v27, %v6832_v28 }
 0x5ae   : > { %v6834_v3 = vadd.f32 %v6833_v26, %v6820_v35  ;;  %v6860_v37 = vadd.f32 %v6859_v29, %v6846_v31 }
 0x5b3   : > { %v6847_v32 = vpop.f32.mrf.mxu2 }
 0x5b4   : > { %v6848_v33 = vadd.f32 %v6847_v32, %v6834_v3  ;;  %v6861_v38 = vpop.f32.mrf.mxu3 }
 0x5b6   : > { %v6862_v34 = vadd.f32 %v6861_v38, %v6848_v33 }
 0x5b8   : > { %v15416_v39 = vpack.c.bf16 %v6862_v34, %v6860_v37 }
 0x5c3   : > { %v6873_v40 = vpop.f32.mrf.mxu0 }
 0x5c4   : > { %v6887_v53 = vpop.f32.mrf.mxu1  ;;  %v6874_v41 = vadd.f32 %v6873_v40, %v5672_v48 }
 0x5c6   : > { %v6888_v42 = vadd.f32 %v6887_v53, %v6874_v41 }
 0x5cb   : > { %v6901_v52 = vpop.f32.mrf.mxu2  ;;  %v6875_v44 = vpop.f32.mrf.mxu0 }
 0x5cc   : > { %v6915_v43 = vpop.f32.mrf.mxu3  ;;  %v6876_v45 = vadd.f32 %v6875_v44, %v5672_v48  ;;  %v6889_v46 = vpop.f32.mrf.mxu1  ;;  %v6902_v47 = vadd.f32 %v6901_v52, %v6888_v42 }
 0x5ce   : > { %v6890_v61 = vadd.f32 %v6889_v46, %v6876_v45  ;;  %v6916_v55 = vadd.f32 %v6915_v43, %v6902_v47 }
 0x5d3   : > { %v6903_v51 = vpop.f32.mrf.mxu2 }
 0x5d4   : > { %v6904_v57 = vadd.f32 %v6903_v51, %v6890_v61  ;;  %v6917_v59 = vpop.f32.mrf.mxu3 }
 0x5d6   : > { %v6918_v62 = vadd.f32 %v6917_v59, %v6904_v57 }
 0x5d8   : > { %v15419_v54 = vpack.c.bf16 %v6918_v62, %v6916_v55 }
 0x5e3   : > { %v6929_v4 = vpop.f32.mrf.mxu0 }
 0x5e4   : > { %v6943_v19 = vpop.f32.mrf.mxu1  ;;  %v6930_v16 = vadd.f32 %v6929_v4, %v5673_v63 }
 0x5e6   : > { %v6944_v5 = vadd.f32 %v6943_v19, %v6930_v16 }
 0x5eb   : > { %v6957_v50 = vpop.f32.mrf.mxu2  ;;  %v6931_v49 = vpop.f32.mrf.mxu0 }
 0x5ec   : > { %v6971_v22 = vpop.f32.mrf.mxu3  ;;  %v6932_v6 = vadd.f32 %v6931_v49, %v5673_v63  ;;  %v6945_v7 = vpop.f32.mrf.mxu1  ;;  %v6958_v58 = vadd.f32 %v6957_v50, %v6944_v5 }
 0x5ee   : > { %v6946_v8 = vadd.f32 %v6945_v7, %v6932_v6  ;;  %v6972_v13 = vadd.f32 %v6971_v22, %v6958_v58 }
 0x5f3   : > { %v6959_v9 = vpop.f32.mrf.mxu2 }
 0x5f4   : > { %v6960_v11 = vadd.f32 %v6959_v9, %v6946_v8  ;;  %v6973_v12 = vpop.f32.mrf.mxu3 }
 0x5f6   : > { %v6974_v14 = vadd.f32 %v6973_v12, %v6960_v11 }
 0x5f8   : > { %v15422_v15 = vpack.c.bf16 %v6974_v14, %v6972_v13 }
 0x5f9   : > { %14521 = dma.done.wait [#allocation8 + $0x3], 24576 }
 0x5fa   : > { %14522 = vsyncadd [#allocation8 + $0x3], 4294942720  ;;  %v12404_v0 = vld [vmem:[#allocation6 + $0xe0] sm:$0xf]  ;;  %v14066_v17 = vld [vmem:[#allocation6 + $0xec] sm:$0xf0] }
 0x5fb   : > { %v12532_v60 = vld [vmem:[#allocation6 + $0x1e0] sm:$0xf]  ;;  %v12405_v10 = vor.u32 %v14066_v17, %v12404_v0  ;;  %v14098_v18 = vld [vmem:[#allocation6 + $0x1ec] sm:$0xf0] }
 0x5fc   : > { %v12660_v21 = vld [vmem:[#allocation6 + $0x2e0] sm:$0xf]  ;;  %v14130_v23 = vld [vmem:[#allocation6 + $0x2ec] sm:$0xf0]  ;;  %v12533_v24 = vor.u32 %v14098_v18, %v12532_v60 }
 0x5fd   : > { %v12661_v25 = vor.u32 %v14130_v23, %v12660_v21  ;;  %v12788_v27 = vld [vmem:[#allocation6 + $0x3e0] sm:$0xf]  ;;  %v14162_v28 = vld [vmem:[#allocation6 + $0x3ec] sm:$0xf0]  ;;  %8146 = vmatpush.bf16.msra.mxu0 %v12405_v10 }
 0x5fe   : > { %v12388_v29 = vld [vmem:[#allocation6 + $0xc0] sm:$0xf]  ;;  %v12789_v30 = vor.u32 %v14162_v28, %v12788_v27  ;;  %v14062_v35 = vld [vmem:[#allocation6 + $0xcc] sm:$0xf0]  ;;  %8160 = vmatpush.bf16.msra.mxu1 %v12533_v24 }
 0x5ff   : > { %v12516_v26 = vld [vmem:[#allocation6 + $0x1c0] sm:$0xf]  ;;  %v14094_v31 = vld [vmem:[#allocation6 + $0x1cc] sm:$0xf0]  ;;  %8174 = vmatpush.bf16.msra.mxu2 %v12661_v25  ;;  %v12389_v3 = vor.u32 %v14062_v35, %v12388_v29 }
 0x600   : > { %v12517_v32 = vor.u32 %v14094_v31, %v12516_v26  ;;  %v12644_v37 = vld [vmem:[#allocation6 + $0x2c0] sm:$0xf]  ;;  %v14126_v33 = vld [vmem:[#allocation6 + $0x2cc] sm:$0xf0]  ;;  %8188 = vmatpush.bf16.msra.mxu3 %v12789_v30 }
 0x601   : > { %v12772_v38 = vld [vmem:[#allocation6 + $0x3c0] sm:$0xf]  ;;  %v12645_v34 = vor.u32 %v14126_v33, %v12644_v37  ;;  %v14158_v48 = vld [vmem:[#allocation6 + $0x3cc] sm:$0xf0]  ;;  %8147 = vmatpush.bf16.msra.mxu0 %v12389_v3 }
 0x602   : > { %v12372_v40 = vld [vmem:[#allocation6 + $0xa0] sm:$0xf]  ;;  %v14058_v53 = vld [vmem:[#allocation6 + $0xac] sm:$0xf0]  ;;  %v12773_v41 = vor.u32 %v14158_v48, %v12772_v38  ;;  %8161 = vmatpush.bf16.msra.mxu1 %v12517_v32 }
 0x603   : > { %v12500_v52 = vld [vmem:[#allocation6 + $0x1a0] sm:$0xf]  ;;  %v14090_v42 = vld [vmem:[#allocation6 + $0x1ac] sm:$0xf0]  ;;  %v12373_v44 = vor.u32 %v14058_v53, %v12372_v40  ;;  %8175 = vmatpush.bf16.msra.mxu2 %v12645_v34 }
 0x604   : > { %v12628_v43 = vld [vmem:[#allocation6 + $0x2a0] sm:$0xf]  ;;  %v14122_v45 = vld [vmem:[#allocation6 + $0x2ac] sm:$0xf0]  ;;  %v12501_v61 = vor.u32 %v14090_v42, %v12500_v52  ;;  %8189 = vmatpush.bf16.msra.mxu3 %v12773_v41 }
 0x605   : > { %v12756_v46 = vld [vmem:[#allocation6 + $0x3a0] sm:$0xf]  ;;  %v14154_v47 = vld [vmem:[#allocation6 + $0x3ac] sm:$0xf0]  ;;  %v12629_v51 = vor.u32 %v14122_v45, %v12628_v43  ;;  %8148 = vmatpush.bf16.msra.mxu0 %v12373_v44 }
 0x606   : > { %v12356_v55 = vld [vmem:[#allocation6 + $0x80] sm:$0xf]  ;;  %v14054_v57 = vld [vmem:[#allocation6 + $0x8c] sm:$0xf0]  ;;  %v12757_v62 = vor.u32 %v14154_v47, %v12756_v46  ;;  %8162 = vmatpush.bf16.msra.mxu1 %v12501_v61 }
 0x607   : > { %v12484_v59 = vld [vmem:[#allocation6 + $0x180] sm:$0xf]  ;;  %v14086_v4 = vld [vmem:[#allocation6 + $0x18c] sm:$0xf0]  ;;  %v12357_v22 = vor.u32 %v14054_v57, %v12356_v55  ;;  %8176 = vmatpush.bf16.msra.mxu2 %v12629_v51 }
 0x608   : > { %v12612_v63 = vld [vmem:[#allocation6 + $0x280] sm:$0xf]  ;;  %v14118_v19 = vld [vmem:[#allocation6 + $0x28c] sm:$0xf0]  ;;  %v12485_v49 = vor.u32 %v14086_v4, %v12484_v59  ;;  %8190 = vmatpush.bf16.msra.mxu3 %v12757_v62 }
 0x609   : > { %v12740_v16 = vld [vmem:[#allocation6 + $0x380] sm:$0xf]  ;;  %v14150_v50 = vld [vmem:[#allocation6 + $0x38c] sm:$0xf0]  ;;  %v12613_v5 = vor.u32 %v14118_v19, %v12612_v63  ;;  %8149 = vmatpush.bf16.msra.mxu0 %v12357_v22  ;;  %v14064_v19 = vld [vmem:[#allocation6 + $0xe4] sm:$0xf] }
 0x60a   : > { %v12340_v6 = vld [vmem:[#allocation6 + $0x60] sm:$0xf]  ;;  %v14050_v7 = vld [vmem:[#allocation6 + $0x6c] sm:$0xf0]  ;;  %v12741_v8 = vor.u32 %v14150_v50, %v12740_v16  ;;  %8163 = vmatpush.bf16.msra.mxu1 %v12485_v49  ;;  %v12406_v16 = vld [vmem:[#allocation6 + $0xf0] sm:$0xf0] }
 0x60b   : > { %v12468_v58 = vld [vmem:[#allocation6 + $0x160] sm:$0xf]  ;;  %v14082_v9 = vld [vmem:[#allocation6 + $0x16c] sm:$0xf0]  ;;  %v12341_v0 = vor.u32 %v14050_v7, %v12340_v6  ;;  %8177 = vmatpush.bf16.msra.mxu2 %v12613_v5  ;;  %v14096_v49 = vld [vmem:[#allocation6 + $0x1e4] sm:$0xf] }
 0x60c   : > { %v12596_v11 = vld [vmem:[#allocation6 + $0x260] sm:$0xf]  ;;  %v14114_v12 = vld [vmem:[#allocation6 + $0x26c] sm:$0xf0]  ;;  %v12469_v17 = vor.u32 %v14082_v9, %v12468_v58  ;;  %8191 = vmatpush.bf16.msra.mxu3 %v12741_v8  ;;  %v12534_v5 = vld [vmem:[#allocation6 + $0x1f0] sm:$0xf0]  ;;  %v12409_v8 = vor.u32 %v14064_v19, %v12406_v16 }
 0x60d   : > { %v12724_v13 = vld [vmem:[#allocation6 + $0x360] sm:$0xf]  ;;  %v14146_v14 = vld [vmem:[#allocation6 + $0x36c] sm:$0xf0]  ;;  %v12597_v60 = vor.u32 %v14114_v12, %v12596_v11  ;;  %8150 = vmatpush.bf16.msra.mxu0 %v12341_v0  ;;  %v14060_v0 = vld [vmem:[#allocation6 + $0xc4] sm:$0xf] }
 0x60e   : > { %v12324_v10 = vld [vmem:[#allocation6 + $0x40] sm:$0xf]  ;;  %v14046_v18 = vld [vmem:[#allocation6 + $0x4c] sm:$0xf0]  ;;  %v12725_v23 = vor.u32 %v14146_v14, %v12724_v13  ;;  %8164 = vmatpush.bf16.msra.mxu1 %v12469_v17  ;;  %v12537_v13 = vor.u32 %v14096_v49, %v12534_v5  ;;  %v12390_v17 = vld [vmem:[#allocation6 + $0xd0] sm:$0xf0] }
 0x60f   : > { %v12452_v21 = vld [vmem:[#allocation6 + $0x140] sm:$0xf]  ;;  %v14078_v24 = vld [vmem:[#allocation6 + $0x14c] sm:$0xf0]  ;;  %v12325_v30 = vor.u32 %v14046_v18, %v12324_v10  ;;  %8178 = vmatpush.bf16.msra.mxu2 %v12597_v60  ;;  %v14092_v60 = vld [vmem:[#allocation6 + $0x1c4] sm:$0xf] }
 0x610   : > { %v12580_v25 = vld [vmem:[#allocation6 + $0x240] sm:$0xf]  ;;  %v14110_v27 = vld [vmem:[#allocation6 + $0x24c] sm:$0xf0]  ;;  %v12453_v35 = vor.u32 %v14078_v24, %v12452_v21  ;;  %8192 = vmatpush.bf16.msra.mxu3 %v12725_v23  ;;  %v12518_v10 = vld [vmem:[#allocation6 + $0x1d0] sm:$0xf0]  ;;  %v12393_v23 = vor.u32 %v14060_v0, %v12390_v17 }
 0x611   : > { %v12708_v28 = vld [vmem:[#allocation6 + $0x340] sm:$0xf]  ;;  %v14142_v29 = vld [vmem:[#allocation6 + $0x34c] sm:$0xf0]  ;;  %v12581_v26 = vor.u32 %v14110_v27, %v12580_v25  ;;  %8151 = vmatpush.bf16.msra.mxu0 %v12325_v30  ;;  %v14056_v30 = vld [vmem:[#allocation6 + $0xa4] sm:$0xf] }
 0x612   : > { %v12308_v31 = vld [vmem:[#allocation6 + $0x20] sm:$0xf]  ;;  %v14042_v3 = vld [vmem:[#allocation6 + $0x2c] sm:$0xf0]  ;;  %v12709_v37 = vor.u32 %v14142_v29, %v12708_v28  ;;  %8165 = vmatpush.bf16.msra.mxu1 %v12453_v35  ;;  %v12521_v28 = vor.u32 %v14092_v60, %v12518_v10  ;;  %v12374_v35 = vld [vmem:[#allocation6 + $0xb0] sm:$0xf0] }
 0x613   : > { %v12436_v32 = vld [vmem:[#allocation6 + $0x120] sm:$0xf]  ;;  %v14074_v33 = vld [vmem:[#allocation6 + $0x12c] sm:$0xf0]  ;;  %v12309_v53 = vor.u32 %v14042_v3, %v12308_v31  ;;  %8179 = vmatpush.bf16.msra.mxu2 %v12581_v26  ;;  %v14088_v26 = vld [vmem:[#allocation6 + $0x1a4] sm:$0xf] }
 0x614   : > { %v12564_v38 = vld [vmem:[#allocation6 + $0x220] sm:$0xf]  ;;  %v14106_v34 = vld [vmem:[#allocation6 + $0x22c] sm:$0xf0]  ;;  %v12437_v42 = vor.u32 %v14074_v33, %v12436_v32  ;;  %8193 = vmatpush.bf16.msra.mxu3 %v12709_v37  ;;  %v12502_v31 = vld [vmem:[#allocation6 + $0x1b0] sm:$0xf0]  ;;  %v12377_v37 = vor.u32 %v14056_v30, %v12374_v35 }
 0x615   : > { %v12692_v48 = vld [vmem:[#allocation6 + $0x320] sm:$0xf]  ;;  %v14138_v40 = vld [vmem:[#allocation6 + $0x32c] sm:$0xf0]  ;;  %v12565_v43 = vor.u32 %v14106_v34, %v12564_v38  ;;  %8152 = vmatpush.bf16.msra.mxu0 %v12309_v53  ;;  %v14052_v53 = vld [vmem:[#allocation6 + $0x84] sm:$0xf] }
 0x616   : > { %v12292_v41 = vld [vmem:[#allocation6] sm:$0xf]  ;;  %v14038_v52 = vld [vmem:[#allocation6 + $0xc] sm:$0xf0]  ;;  %v12693_v47 = vor.u32 %v14138_v40, %v12692_v48  ;;  %8166 = vmatpush.bf16.msra.mxu1 %v12437_v42  ;;  %v12505_v48 = vor.u32 %v14088_v26, %v12502_v31  ;;  %v12486_v42 = vld [vmem:[#allocation6 + $0x190] sm:$0xf0] }
 0x617   : > { %v12420_v44 = vld [vmem:[#allocation6 + $0x100] sm:$0xf]  ;;  %v14070_v45 = vld [vmem:[#allocation6 + $0x10c] sm:$0xf0]  ;;  %v12293_v4 = vor.u32 %v14038_v52, %v12292_v41  ;;  %8180 = vmatpush.bf16.msra.mxu2 %v12565_v43  ;;  %v12358_v41 = vld [vmem:[#allocation6 + $0x90] sm:$0xf0] }
 0x618   : > { %v12548_v46 = vld [vmem:[#allocation6 + $0x200] sm:$0xf]  ;;  %v14102_v61 = vld [vmem:[#allocation6 + $0x20c] sm:$0xf0]  ;;  %v12421_v50 = vor.u32 %v14070_v45, %v12420_v44  ;;  %8194 = vmatpush.bf16.msra.mxu3 %v12693_v47  ;;  %v14084_v52 = vld [vmem:[#allocation6 + $0x184] sm:$0xf]  ;;  %v12361_v45 = vor.u32 %v14052_v53, %v12358_v41 }
 0x619   : > { %v12676_v51 = vld [vmem:[#allocation6 + $0x300] sm:$0xf]  ;;  %v14134_v55 = vld [vmem:[#allocation6 + $0x30c] sm:$0xf0]  ;;  %v12549_v22 = vor.u32 %v14102_v61, %v12548_v46  ;;  %8153 = vmatpush.bf16.msra.mxu0 %v12293_v4  ;;  %v12470_v4 = vld [vmem:[#allocation6 + $0x170] sm:$0xf0] }
 0x61a   : > { %v12916_v57 = vld [vmem:[#allocation6 + $0x4e0] sm:$0xf]  ;;  %v14194_v59 = vld [vmem:[#allocation6 + $0x4ec] sm:$0xf0]  ;;  %v12677_v6 = vor.u32 %v14134_v55, %v12676_v51  ;;  %8167 = vmatpush.bf16.msra.mxu1 %v12421_v50  ;;  %v12489_v51 = vor.u32 %v14084_v52, %v12486_v42  ;;  %v14036_v31 = vld [vmem:[#allocation6 + $0x4] sm:$0xf] }
 0x61b   : > { %v13044_v62 = vld [vmem:[#allocation6 + $0x5e0] sm:$0xf]  ;;  %v14226_v63 = vld [vmem:[#allocation6 + $0x5ec] sm:$0xf0]  ;;  %v12917_v7 = vor.u32 %v14194_v59, %v12916_v57  ;;  %8181 = vmatpush.bf16.msra.mxu2 %v12549_v22  ;;  %v14048_v57 = vld [vmem:[#allocation6 + $0x64] sm:$0xf] }
 0x61c   : > { %v13045_v58 = vor.u32 %v14226_v63, %v13044_v62  ;;  %v12900_v9 = vld [vmem:[#allocation6 + $0x4c0] sm:$0xf]  ;;  %v14190_v11 = vld [vmem:[#allocation6 + $0x4cc] sm:$0xf0]  ;;  %8195 = vmatpush.bf16.msra.mxu3 %v12677_v6  ;;  %8154 = vmatmul.bf16.vlgmr.msra.gmra.mxu0 %v15403_v56  ;;  %v12342_v59 = vld [vmem:[#allocation6 + $0x70] sm:$0xf0] }
 0x61d   : > { %v13028_v12 = vld [vmem:[#allocation6 + $0x5c0] sm:$0xf]  ;;  %v14222_v14 = vld [vmem:[#allocation6 + $0x5cc] sm:$0xf0]  ;;  %8202 = vmatpush.bf16.msrb.mxu0 %v12917_v7  ;;  %v12901_v18 = vor.u32 %v14190_v11, %v12900_v9  ;;  %8168 = vmatmul.bf16.vlgmr.msra.gmra.mxu1 %v15410_v36  ;;  %v14080_v62 = vld [vmem:[#allocation6 + $0x164] sm:$0xf]  ;;  %v12345_v16 = vor.u32 %v14048_v57, %v12342_v59 }
 0x61e   : > { %8216 = vmatpush.bf16.msrb.mxu1 %v13045_v58  ;;  %v13029_v21 = vor.u32 %v14222_v14, %v13028_v12  ;;  %v12884_v24 = vld [vmem:[#allocation6 + $0x4a0] sm:$0xf]  ;;  %v14186_v25 = vld [vmem:[#allocation6 + $0x4ac] sm:$0xf0]  ;;  %8182 = vmatmul.bf16.vlgmr.msra.gmra.mxu2 %v15413_v20  ;;  %v12473_v5 = vor.u32 %v14080_v62, %v12470_v4  ;;  %v14044_v7 = vld [vmem:[#allocation6 + $0x44] sm:$0xf] }
 0x61f   : > { %8230 = vmatpush.bf16.msrb.mxu2 %v12409_v8  ;;  %v13012_v27 = vld [vmem:[#allocation6 + $0x5a0] sm:$0xf]  ;;  %v14218_v29 = vld [vmem:[#allocation6 + $0x5ac] sm:$0xf0]  ;;  %v12885_v3 = vor.u32 %v14186_v25, %v12884_v24  ;;  %8196 = vmatmul.bf16.vlgmr.msra.gmra.mxu3 %v15416_v39  ;;  %v12326_v58 = vld [vmem:[#allocation6 + $0x50] sm:$0xf0] }
 0x620   : > { %8244 = vmatpush.bf16.msrb.mxu3 %v12537_v13  ;;  %v13013_v32 = vor.u32 %v14218_v29, %v13012_v27  ;;  %v12868_v33 = vld [vmem:[#allocation6 + $0x480] sm:$0xf]  ;;  %v14182_v38 = vld [vmem:[#allocation6 + $0x48c] sm:$0xf0]  ;;  %v14076_v8 = vld [vmem:[#allocation6 + $0x144] sm:$0xf]  ;;  %v12329_v13 = vor.u32 %v14044_v7, %v12326_v58 }
 0x621   : > { %8203 = vmatpush.bf16.msrb.mxu0 %v12901_v18  ;;  %v12996_v34 = vld [vmem:[#allocation6 + $0x580] sm:$0xf]  ;;  %v14214_v40 = vld [vmem:[#allocation6 + $0x58c] sm:$0xf0]  ;;  %v12869_v43 = vor.u32 %v14182_v38, %v12868_v33  ;;  %v12454_v9 = vld [vmem:[#allocation6 + $0x150] sm:$0xf0] }
 0x622   : > { %8217 = vmatpush.bf16.msrb.mxu1 %v13029_v21  ;;  %v12997_v44 = vor.u32 %v14214_v40, %v12996_v34  ;;  %v12852_v46 = vld [vmem:[#allocation6 + $0x460] sm:$0xf]  ;;  %v14178_v47 = vld [vmem:[#allocation6 + $0x46c] sm:$0xf0]  ;;  %v12457_v60 = vor.u32 %v14076_v8, %v12454_v9  ;;  %v14040_v18 = vld [vmem:[#allocation6 + $0x24] sm:$0xf] }
 0x623   : > { %8231 = vmatpush.bf16.msrb.mxu2 %v12393_v23  ;;  %v12980_v61 = vld [vmem:[#allocation6 + $0x560] sm:$0xf]  ;;  %v14210_v55 = vld [vmem:[#allocation6 + $0x56c] sm:$0xf0]  ;;  %v12853_v63 = vor.u32 %v14178_v47, %v12852_v46  ;;  %v12310_v21 = vld [vmem:[#allocation6 + $0x30] sm:$0xf0] }
 0x624   : > { %8245 = vmatpush.bf16.msrb.mxu3 %v12521_v28  ;;  %v12981_v19 = vor.u32 %v14210_v55, %v12980_v61  ;;  %v12836_v50 = vld [vmem:[#allocation6 + $0x440] sm:$0xf]  ;;  %v14174_v22 = vld [vmem:[#allocation6 + $0x44c] sm:$0xf0]  ;;  %v14072_v23 = vld [vmem:[#allocation6 + $0x124] sm:$0xf]  ;;  %v12313_v30 = vor.u32 %v14040_v18, %v12310_v21 }
 0x625   : > { %8204 = vmatpush.bf16.msrb.mxu0 %v12885_v3  ;;  %v12964_v49 = vld [vmem:[#allocation6 + $0x540] sm:$0xf]  ;;  %v14206_v6 = vld [vmem:[#allocation6 + $0x54c] sm:$0xf0]  ;;  %v12837_v11 = vor.u32 %v14174_v22, %v12836_v50  ;;  %v12438_v24 = vld [vmem:[#allocation6 + $0x130] sm:$0xf0] }
 0x626   : > { %8218 = vmatpush.bf16.msrb.mxu1 %v13013_v32  ;;  %v12965_v12 = vor.u32 %v14206_v6, %v12964_v49  ;;  %v12820_v14 = vld [vmem:[#allocation6 + $0x420] sm:$0xf]  ;;  %v14170_v0 = vld [vmem:[#allocation6 + $0x42c] sm:$0xf0]  ;;  %v12441_v3 = vor.u32 %v14072_v23, %v12438_v24  ;;  %v12294_v32 = vld [vmem:[#allocation6 + $0x10] sm:$0xf0] }
 0x627   : > { %8232 = vmatpush.bf16.msrb.mxu2 %v12377_v37  ;;  %v12948_v17 = vld [vmem:[#allocation6 + $0x520] sm:$0xf]  ;;  %v14202_v10 = vld [vmem:[#allocation6 + $0x52c] sm:$0xf0]  ;;  %v12821_v25 = vor.u32 %v14170_v0, %v12820_v14  ;;  %v14068_v37 = vld [vmem:[#allocation6 + $0x104] sm:$0xf] }
 0x628   : > { %8246 = vmatpush.bf16.msrb.mxu3 %v12505_v48  ;;  %v12804_v27 = vld [vmem:[#allocation6 + $0x400] sm:$0xf]  ;;  %v14166_v28 = vld [vmem:[#allocation6 + $0x40c] sm:$0xf0]  ;;  %v12949_v29 = vor.u32 %v14202_v10, %v12948_v17  ;;  %v12422_v33 = vld [vmem:[#allocation6 + $0x110] sm:$0xf0] }
 0x629   : > { %8205 = vmatpush.bf16.msrb.mxu0 %v12869_v43  ;;  %v12932_v35 = vld [vmem:[#allocation6 + $0x500] sm:$0xf]  ;;  %v14198_v26 = vld [vmem:[#allocation6 + $0x50c] sm:$0xf0]  ;;  %v14128_v38 = vld [vmem:[#allocation6 + $0x2e4] sm:$0xf]  ;;  %v12805_v40 = vor.u32 %v14166_v28, %v12804_v27  ;;  %v12297_v43 = vor.u32 %v14036_v31, %v12294_v32  ;;  %v12425_v46 = vor.u32 %v14068_v37, %v12422_v33 }
 0x62a   : > { %8219 = vmatpush.bf16.msrb.mxu1 %v12997_v44  ;;  %v12662_v34 = vld [vmem:[#allocation6 + $0x2f0] sm:$0xf0]  ;;  %v14160_v48 = vld [vmem:[#allocation6 + $0x3e4] sm:$0xf]  ;;  %v12933_v42 = vor.u32 %v14198_v26, %v12932_v35 }
 0x62b   : > { %8233 = vmatpush.bf16.msrb.mxu2 %v12361_v45  ;;  %v12790_v53 = vld [vmem:[#allocation6 + $0x3f0] sm:$0xf0]  ;;  %v14192_v41 = vld [vmem:[#allocation6 + $0x4e4] sm:$0xf]  ;;  %v12665_v47 = vor.u32 %v14128_v38, %v12662_v34 }
 0x62c   : > { %8247 = vmatpush.bf16.msrb.mxu3 %v12489_v51  ;;  %v12918_v52 = vld [vmem:[#allocation6 + $0x4f0] sm:$0xf0]  ;;  %v14224_v44 = vld [vmem:[#allocation6 + $0x5e4] sm:$0xf]  ;;  %v12793_v61 = vor.u32 %v14160_v48, %v12790_v53 }
 0x62d   : > { %8206 = vmatpush.bf16.msrb.mxu0 %v12853_v63  ;;  %v13046_v45 = vld [vmem:[#allocation6 + $0x5f0] sm:$0xf0]  ;;  %v12921_v51 = vor.u32 %v14192_v41, %v12918_v52  ;;  %v14124_v55 = vld [vmem:[#allocation6 + $0x2c4] sm:$0xf] }
 0x62e   : > { %8220 = vmatpush.bf16.msrb.mxu1 %v12981_v19  ;;  %v12646_v57 = vld [vmem:[#allocation6 + $0x2d0] sm:$0xf0]  ;;  %v14156_v59 = vld [vmem:[#allocation6 + $0x3c4] sm:$0xf]  ;;  %v13049_v62 = vor.u32 %v14224_v44, %v13046_v45 }
 0x62f   : > { %8234 = vmatpush.bf16.msrb.mxu2 %v12345_v16  ;;  %v12774_v4 = vld [vmem:[#allocation6 + $0x3d0] sm:$0xf0]  ;;  %v14188_v63 = vld [vmem:[#allocation6 + $0x4c4] sm:$0xf]  ;;  %v12649_v22 = vor.u32 %v14124_v55, %v12646_v57 }
 0x630   : > { %8248 = vmatpush.bf16.msrb.mxu3 %v12473_v5  ;;  %v12902_v19 = vld [vmem:[#allocation6 + $0x4d0] sm:$0xf0]  ;;  %v14220_v16 = vld [vmem:[#allocation6 + $0x5c4] sm:$0xf]  ;;  %v12777_v49 = vor.u32 %v14156_v59, %v12774_v4 }
 0x631   : > { %8207 = vmatpush.bf16.msrb.mxu0 %v12837_v11  ;;  %v13030_v50 = vld [vmem:[#allocation6 + $0x5d0] sm:$0xf0]  ;;  %v12905_v5 = vor.u32 %v14188_v63, %v12902_v19  ;;  %v14120_v6 = vld [vmem:[#allocation6 + $0x2a4] sm:$0xf] }
 0x632   : > { %8221 = vmatpush.bf16.msrb.mxu1 %v12965_v12  ;;  %v12630_v7 = vld [vmem:[#allocation6 + $0x2b0] sm:$0xf0]  ;;  %v14152_v58 = vld [vmem:[#allocation6 + $0x3a4] sm:$0xf]  ;;  %v13033_v8 = vor.u32 %v14220_v16, %v13030_v50 }
 0x633   : > { %8235 = vmatpush.bf16.msrb.mxu2 %v12329_v13  ;;  %v12758_v9 = vld [vmem:[#allocation6 + $0x3b0] sm:$0xf0]  ;;  %v14184_v11 = vld [vmem:[#allocation6 + $0x4a4] sm:$0xf]  ;;  %v12633_v0 = vor.u32 %v14120_v6, %v12630_v7 }
 0x634   : > { %8249 = vmatpush.bf16.msrb.mxu3 %v12457_v60  ;;  %v12886_v12 = vld [vmem:[#allocation6 + $0x4b0] sm:$0xf0]  ;;  %v14216_v13 = vld [vmem:[#allocation6 + $0x5a4] sm:$0xf]  ;;  %v12761_v17 = vor.u32 %v14152_v58, %v12758_v9 }
 0x635   : > { %8208 = vmatpush.bf16.msrb.mxu0 %v12821_v25  ;;  %v13014_v14 = vld [vmem:[#allocation6 + $0x5b0] sm:$0xf0]  ;;  %v12889_v60 = vor.u32 %v14184_v11, %v12886_v12  ;;  %v14116_v10 = vld [vmem:[#allocation6 + $0x284] sm:$0xf] }
 0x636   : > { %8222 = vmatpush.bf16.msrb.mxu1 %v12949_v29  ;;  %v12614_v18 = vld [vmem:[#allocation6 + $0x290] sm:$0xf0]  ;;  %v14148_v21 = vld [vmem:[#allocation6 + $0x384] sm:$0xf]  ;;  %v13017_v23 = vor.u32 %v14216_v13, %v13014_v14 }
 0x637   : > { %8236 = vmatpush.bf16.msrb.mxu2 %v12313_v30  ;;  %v12742_v24 = vld [vmem:[#allocation6 + $0x390] sm:$0xf0]  ;;  %v14180_v25 = vld [vmem:[#allocation6 + $0x484] sm:$0xf]  ;;  %v12617_v30 = vor.u32 %v14116_v10, %v12614_v18  ;;  %v12412_v18 = vld [vmem:[#allocation6 + $0xe8] sm:$0xf] }
 0x638   : > { %8250 = vmatpush.bf16.msrb.mxu3 %v12441_v3  ;;  %v12870_v27 = vld [vmem:[#allocation6 + $0x490] sm:$0xf0]  ;;  %v14212_v28 = vld [vmem:[#allocation6 + $0x584] sm:$0xf]  ;;  %v12745_v35 = vor.u32 %v14148_v21, %v12742_v24  ;;  %v14067_v21 = vld [vmem:[#allocation6 + $0xf4] sm:$0xf0] }
 0x639   : > { %8209 = vmatpush.bf16.msrb.mxu0 %v12805_v40  ;;  %v12998_v29 = vld [vmem:[#allocation6 + $0x590] sm:$0xf0]  ;;  %v12873_v26 = vor.u32 %v14180_v25, %v12870_v27  ;;  %v14112_v31 = vld [vmem:[#allocation6 + $0x264] sm:$0xf]  ;;  %v14099_v25 = vld [vmem:[#allocation6 + $0x1f4] sm:$0xf0] }
 0x63a   : > { %8223 = vmatpush.bf16.msrb.mxu1 %v12933_v42  ;;  %v12598_v3 = vld [vmem:[#allocation6 + $0x270] sm:$0xf0]  ;;  %v14144_v32 = vld [vmem:[#allocation6 + $0x364] sm:$0xf]  ;;  %v13001_v37 = vor.u32 %v14212_v28, %v12998_v29  ;;  %v12668_v27 = vld [vmem:[#allocation6 + $0x2e8] sm:$0xf] }
 0x63b   : > { %8237 = vmatpush.bf16.msrb.mxu2 %v12297_v43  ;;  %v12726_v33 = vld [vmem:[#allocation6 + $0x370] sm:$0xf0]  ;;  %v14176_v38 = vld [vmem:[#allocation6 + $0x464] sm:$0xf]  ;;  %v12601_v53 = vor.u32 %v14112_v31, %v12598_v3  ;;  %v14131_v28 = vld [vmem:[#allocation6 + $0x2f4] sm:$0xf0]  ;;  %v12413_v3 = vor.u32 %v14067_v21, %v12412_v18 }
 0x63c   : > { %8251 = vmatpush.bf16.msrb.mxu3 %v12425_v46  ;;  %8210 = vmatmul.bf16.vlgmr.msrb.gmra.mxu0 %v15419_v54  ;;  %v12854_v34 = vld [vmem:[#allocation6 + $0x470] sm:$0xf0]  ;;  %v14208_v48 = vld [vmem:[#allocation6 + $0x564] sm:$0xf]  ;;  %v12729_v41 = vor.u32 %v14144_v32, %v12726_v33  ;;  %v12396_v33 = vld [vmem:[#allocation6 + $0xc8] sm:$0xf] }
 0x63d   : > { %8258 = vmatpush.bf16.msra.mxu0 %v12665_v47  ;;  %8224 = vmatmul.bf16.vlgmr.msrb.gmra.mxu1 %v15422_v15  ;;  %v12982_v40 = vld [vmem:[#allocation6 + $0x570] sm:$0xf0]  ;;  %v12857_v52 = vor.u32 %v14176_v38, %v12854_v34  ;;  %v14108_v42 = vld [vmem:[#allocation6 + $0x244] sm:$0xf]  ;;  %v14063_v38 = vld [vmem:[#allocation6 + $0xd4] sm:$0xf0] }
 0x63e   : > { %8272 = vmatpush.bf16.msra.mxu1 %v12793_v61  ;;  %8238 = vmatmul.bf16.vlgmr.msrb.gmra.mxu2 %v15403_v56  ;;  %v12582_v43 = vld [vmem:[#allocation6 + $0x250] sm:$0xf0]  ;;  %v14140_v44 = vld [vmem:[#allocation6 + $0x344] sm:$0xf]  ;;  %v12985_v45 = vor.u32 %v14208_v48, %v12982_v40  ;;  %v12524_v34 = vld [vmem:[#allocation6 + $0x1c8] sm:$0xf] }
 0x63f   : > { %8286 = vmatpush.bf16.msra.mxu2 %v12921_v51  ;;  %8252 = vmatmul.bf16.vlgmr.msrb.gmra.mxu3 %v15410_v36  ;;  %v12710_v46 = vld [vmem:[#allocation6 + $0x350] sm:$0xf0]  ;;  %v14172_v47 = vld [vmem:[#allocation6 + $0x444] sm:$0xf]  ;;  %v12585_v57 = vor.u32 %v14108_v42, %v12582_v43  ;;  %v14095_v40 = vld [vmem:[#allocation6 + $0x1d4] sm:$0xf0]  ;;  %v12397_v43 = vor.u32 %v14063_v38, %v12396_v33 }
 0x640   : > { %8300 = vmatpush.bf16.msra.mxu3 %v13049_v62  ;;  %v12838_v61 = vld [vmem:[#allocation6 + $0x450] sm:$0xf0]  ;;  %v14204_v51 = vld [vmem:[#allocation6 + $0x544] sm:$0xf]  ;;  %v12713_v59 = vor.u32 %v14140_v44, %v12710_v46  ;;  %v14159_v42 = vld [vmem:[#allocation6 + $0x3d4] sm:$0xf0]  ;;  %v12525_v44 = vor.u32 %v14095_v40, %v12524_v34 }
 0x641   : > { %8259 = vmatpush.bf16.msra.mxu0 %v12649_v22  ;;  %v12966_v55 = vld [vmem:[#allocation6 + $0x550] sm:$0xf0]  ;;  %v12841_v62 = vor.u32 %v14172_v47, %v12838_v61  ;;  %v14104_v4 = vld [vmem:[#allocation6 + $0x224] sm:$0xf]  ;;  %v12380_v46 = vld [vmem:[#allocation6 + $0xa8] sm:$0xf] }
 0x642   : > { %8273 = vmatpush.bf16.msra.mxu1 %v12777_v49  ;;  %v12566_v63 = vld [vmem:[#allocation6 + $0x230] sm:$0xf0]  ;;  %v14136_v19 = vld [vmem:[#allocation6 + $0x324] sm:$0xf]  ;;  %v12969_v16 = vor.u32 %v14204_v51, %v12966_v55  ;;  %v14059_v47 = vld [vmem:[#allocation6 + $0xb4] sm:$0xf0] }
 0x643   : > { %8287 = vmatpush.bf16.msra.mxu2 %v12905_v5  ;;  %v12694_v50 = vld [vmem:[#allocation6 + $0x330] sm:$0xf0]  ;;  %v14168_v22 = vld [vmem:[#allocation6 + $0x424] sm:$0xf]  ;;  %v12569_v7 = vor.u32 %v14104_v4, %v12566_v63  ;;  %v12508_v61 = vld [vmem:[#allocation6 + $0x1a8] sm:$0xf]  ;;  %v12381_v63 = vor.u32 %v14059_v47, %v12380_v46 }
 0x644   : > { %8301 = vmatpush.bf16.msra.mxu3 %v13033_v8  ;;  %v12822_v49 = vld [vmem:[#allocation6 + $0x430] sm:$0xf0]  ;;  %v14200_v5 = vld [vmem:[#allocation6 + $0x524] sm:$0xf]  ;;  %v12697_v9 = vor.u32 %v14136_v19, %v12694_v50  ;;  %v14091_v55 = vld [vmem:[#allocation6 + $0x1b4] sm:$0xf0] }
 0x645   : > { %8260 = vmatpush.bf16.msra.mxu0 %v12633_v0  ;;  %v12950_v6 = vld [vmem:[#allocation6 + $0x530] sm:$0xf0]  ;;  %v14100_v58 = vld [vmem:[#allocation6 + $0x204] sm:$0xf]  ;;  %v12825_v11 = vor.u32 %v14168_v22, %v12822_v49  ;;  %v14155_v4 = vld [vmem:[#allocation6 + $0x3b4] sm:$0xf0]  ;;  %v12509_v19 = vor.u32 %v14091_v55, %v12508_v61 }
 0x646   : > { %8274 = vmatpush.bf16.msra.mxu1 %v12761_v17  ;;  %v12550_v8 = vld [vmem:[#allocation6 + $0x210] sm:$0xf0]  ;;  %v14132_v12 = vld [vmem:[#allocation6 + $0x304] sm:$0xf]  ;;  %v12953_v0 = vor.u32 %v14200_v5, %v12950_v6  ;;  %v12364_v50 = vld [vmem:[#allocation6 + $0x88] sm:$0xf] }
 0x647   : > { %8288 = vmatpush.bf16.msra.mxu2 %v12889_v60  ;;  %v12678_v13 = vld [vmem:[#allocation6 + $0x310] sm:$0xf0]  ;;  %v14164_v14 = vld [vmem:[#allocation6 + $0x404] sm:$0xf]  ;;  %v12553_v24 = vor.u32 %v14100_v58, %v12550_v8  ;;  %v14055_v22 = vld [vmem:[#allocation6 + $0x94] sm:$0xf0] }
 0x648   : > { %8302 = vmatpush.bf16.msra.mxu3 %v13017_v23  ;;  %v12806_v17 = vld [vmem:[#allocation6 + $0x410] sm:$0xf0]  ;;  %v14196_v60 = vld [vmem:[#allocation6 + $0x504] sm:$0xf]  ;;  %v12540_v23 = vld [vmem:[#allocation6 + $0x1e8] sm:$0xf]  ;;  %v12681_v29 = vor.u32 %v14132_v12, %v12678_v13 }
 0x649   : > { %8261 = vmatpush.bf16.msra.mxu0 %v12617_v30  ;;  %v12934_v10 = vld [vmem:[#allocation6 + $0x510] sm:$0xf0]  ;;  %v12809_v30 = vor.u32 %v14164_v14, %v12806_v17  ;;  %v12541_v32 = vor.u32 %v14099_v25, %v12540_v23  ;;  %v12492_v49 = vld [vmem:[#allocation6 + $0x188] sm:$0xf]  ;;  %v14087_v6 = vld [vmem:[#allocation6 + $0x194] sm:$0xf0] }
 0x64a   : > { %8275 = vmatpush.bf16.msra.mxu1 %v12745_v35  ;;  %v12796_v35 = vld [vmem:[#allocation6 + $0x3e8] sm:$0xf]  ;;  %v12937_v31 = vor.u32 %v14196_v60, %v12934_v10  ;;  %v14119_v58 = vld [vmem:[#allocation6 + $0x294] sm:$0xf0]  ;;  %v12493_v12 = vor.u32 %v14087_v6, %v12492_v49 }
 0x64b   : > { %8289 = vmatpush.bf16.msra.mxu2 %v12873_v26  ;;  %v14163_v26 = vld [vmem:[#allocation6 + $0x3f4] sm:$0xf0]  ;;  %v12748_v8 = vld [vmem:[#allocation6 + $0x388] sm:$0xf] }
 0x64c   : > { %8303 = vmatpush.bf16.msra.mxu3 %v13001_v37  ;;  %v12669_v37 = vor.u32 %v14131_v28, %v12668_v27  ;;  %v12797_v48 = vor.u32 %v14163_v26, %v12796_v35  ;;  %v12348_v14 = vld [vmem:[#allocation6 + $0x68] sm:$0xf]  ;;  %v14083_v10 = vld [vmem:[#allocation6 + $0x174] sm:$0xf0] }
 0x64d   : > { %8262 = vmatpush.bf16.msra.mxu0 %v12601_v53  ;;  %v12652_v53 = vld [vmem:[#allocation6 + $0x2c8] sm:$0xf]  ;;  %v14115_v21 = vld [vmem:[#allocation6 + $0x274] sm:$0xf0] }
 0x64e   : > { %8276 = vmatpush.bf16.msra.mxu1 %v12729_v41  ;;  %v14127_v41 = vld [vmem:[#allocation6 + $0x2d4] sm:$0xf0]  ;;  %v12476_v17 = vld [vmem:[#allocation6 + $0x168] sm:$0xf] }
 0x64f   : > { %8290 = vmatpush.bf16.msra.mxu2 %v12857_v52  ;;  %v12780_v52 = vld [vmem:[#allocation6 + $0x3c8] sm:$0xf]  ;;  %v12477_v27 = vor.u32 %v14083_v10, %v12476_v17  ;;  %v14143_v33 = vld [vmem:[#allocation6 + $0x354] sm:$0xf0] }
 0x650   : > { %8304 = vmatpush.bf16.msra.mxu3 %v12985_v45  ;;  %v12653_v45 = vor.u32 %v14127_v41, %v12652_v53  ;;  %v12781_v51 = vor.u32 %v14159_v42, %v12780_v52  ;;  %v12604_v18 = vld [vmem:[#allocation6 + $0x268] sm:$0xf]  ;;  %v14043_v53 = vld [vmem:[#allocation6 + $0x34] sm:$0xf0] }
 0x651   : > { %8263 = vmatpush.bf16.msra.mxu0 %v12585_v57  ;;  %v12636_v57 = vld [vmem:[#allocation6 + $0x2a8] sm:$0xf]  ;;  %v12605_v28 = vor.u32 %v14115_v21, %v12604_v18  ;;  %v14075_v42 = vld [vmem:[#allocation6 + $0x134] sm:$0xf0] }
 0x652   : > { %8277 = vmatpush.bf16.msra.mxu1 %v12713_v59  ;;  %v14123_v59 = vld [vmem:[#allocation6 + $0x2b4] sm:$0xf0]  ;;  %v12732_v23 = vld [vmem:[#allocation6 + $0x368] sm:$0xf] }
 0x653   : > { %8291 = vmatpush.bf16.msra.mxu2 %v12841_v62  ;;  %v12764_v62 = vld [vmem:[#allocation6 + $0x3a8] sm:$0xf]  ;;  %v14139_v46 = vld [vmem:[#allocation6 + $0x334] sm:$0xf0] }
 0x654   : > { %8305 = vmatpush.bf16.msra.mxu3 %v12969_v16  ;;  %v12637_v16 = vor.u32 %v14123_v59, %v12636_v57  ;;  %v12765_v5 = vor.u32 %v14155_v4, %v12764_v62  ;;  %v12460_v35 = vld [vmem:[#allocation6 + $0x148] sm:$0xf]  ;;  %v14071_v62 = vld [vmem:[#allocation6 + $0x114] sm:$0xf0] }
 0x655   : > { %8264 = vmatpush.bf16.msra.mxu0 %v12569_v7  ;;  %v12620_v7 = vld [vmem:[#allocation6 + $0x288] sm:$0xf]  ;;  %v14195_v49 = vld [vmem:[#allocation6 + $0x4f4] sm:$0xf0] }
 0x656   : > { %8278 = vmatpush.bf16.msra.mxu1 %v12697_v9  ;;  %v14151_v9 = vld [vmem:[#allocation6 + $0x394] sm:$0xf0]  ;;  %v12621_v13 = vor.u32 %v14119_v58, %v12620_v7  ;;  %v12316_v40 = vld [vmem:[#allocation6 + $0x28] sm:$0xf]  ;;  %v14065_v58 = vld [vmem:[#allocation6 + $0xec] sm:$0xf] }
 0x657   : > { %8292 = vmatpush.bf16.msra.mxu2 %v12825_v11  ;;  %v12365_v11 = vor.u32 %v14055_v22, %v12364_v50  ;;  %v12749_v60 = vor.u32 %v14151_v9, %v12748_v8  ;;  %v12444_v41 = vld [vmem:[#allocation6 + $0x128] sm:$0xf]  ;;  %v12317_v47 = vor.u32 %v14043_v53, %v12316_v40  ;;  %v14135_v50 = vld [vmem:[#allocation6 + $0x314] sm:$0xf0]  ;;  %v12414_v8 = vld [vmem:[#allocation6 + $0xf8] sm:$0xf0] }
 0x658   : > { %8306 = vmatpush.bf16.msra.mxu3 %v12953_v0  ;;  %v14051_v0 = vld [vmem:[#allocation6 + $0x74] sm:$0xf0]  ;;  %v12300_v61 = vld [vmem:[#allocation6 + $0x8] sm:$0xf]  ;;  %v12445_v55 = vor.u32 %v14075_v42, %v12444_v41  ;;  %v12510_v40 = vld [vmem:[#allocation6 + $0x1b8] sm:$0xf0] }
 0x659   : > { %8265 = vmatpush.bf16.msra.mxu0 %v12553_v24  ;;  %v14147_v24 = vld [vmem:[#allocation6 + $0x374] sm:$0xf0]  ;;  %v12349_v25 = vor.u32 %v14051_v0, %v12348_v14  ;;  %v12428_v59 = vld [vmem:[#allocation6 + $0x108] sm:$0xf] }
 0x65a   : > { %8279 = vmatpush.bf16.msra.mxu1 %v12681_v29  ;;  %v12332_v29 = vld [vmem:[#allocation6 + $0x48] sm:$0xf]  ;;  %v12733_v26 = vor.u32 %v14147_v24, %v12732_v23  ;;  %v14227_v7 = vld [vmem:[#allocation6 + $0x5f4] sm:$0xf0]  ;;  %v12429_v9 = vor.u32 %v14071_v62, %v12428_v59 }
 0x65b   : > { %8293 = vmatpush.bf16.msra.mxu2 %v12809_v30  ;;  %v14047_v30 = vld [vmem:[#allocation6 + $0x54] sm:$0xf0]  ;;  %v12556_v4 = vld [vmem:[#allocation6 + $0x208] sm:$0xf] }
 0x65c   : > { %8307 = vmatpush.bf16.msra.mxu3 %v12937_v31  ;;  %8266 = vmatmul.bf16.vlgmr.msra.gmra.mxu0 %v15413_v20  ;;  %v14079_v31 = vld [vmem:[#allocation6 + $0x154] sm:$0xf0]  ;;  %v12333_v38 = vor.u32 %v14047_v30, %v12332_v29  ;;  %v12924_v22 = vld [vmem:[#allocation6 + $0x4e8] sm:$0xf]  ;;  %v12526_v29 = vld [vmem:[#allocation6 + $0x1d8] sm:$0xf0] }
 0x65d   : > { %8314 = vmatpush.bf16.msrb.mxu0 %v12413_v3  ;;  %8280 = vmatmul.bf16.vlgmr.msra.gmra.mxu1 %v15416_v39  ;;  %v12588_v3 = vld [vmem:[#allocation6 + $0x248] sm:$0xf]  ;;  %v12461_v34 = vor.u32 %v14079_v31, %v12460_v35  ;;  %v12925_v0 = vor.u32 %v14195_v49, %v12924_v22  ;;  %v14191_v18 = vld [vmem:[#allocation6 + $0x4d4] sm:$0xf0]  ;;  %v14049_v22 = vld [vmem:[#allocation6 + $0x6c] sm:$0xf] }
 0x65e   : > { %8328 = vmatpush.bf16.msrb.mxu1 %v12541_v32  ;;  %8294 = vmatmul.bf16.vlgmr.msra.gmra.mxu2 %v15419_v54  ;;  %v14111_v32 = vld [vmem:[#allocation6 + $0x254] sm:$0xf0]  ;;  %v12908_v10 = vld [vmem:[#allocation6 + $0x4c8] sm:$0xf]  ;;  %v12350_v49 = vld [vmem:[#allocation6 + $0x78] sm:$0xf0] }
 0x65f   : > { %8342 = vmatpush.bf16.msrb.mxu2 %v12669_v37  ;;  %8308 = vmatmul.bf16.vlgmr.msra.gmra.mxu3 %v15422_v15  ;;  %v12716_v37 = vld [vmem:[#allocation6 + $0x348] sm:$0xf]  ;;  %v14223_v24 = vld [vmem:[#allocation6 + $0x5d4] sm:$0xf0]  ;;  %v12909_v30 = vor.u32 %v14191_v18, %v12908_v10  ;;  %v12462_v10 = vld [vmem:[#allocation6 + $0x158] sm:$0xf0] }
 0x660   : > { %8356 = vmatpush.bf16.msrb.mxu3 %v12797_v48  ;;  %v12589_v48 = vor.u32 %v14111_v32, %v12588_v3  ;;  %v12717_v52 = vor.u32 %v14143_v33, %v12716_v37  ;;  %v13036_v21 = vld [vmem:[#allocation6 + $0x5c8] sm:$0xf]  ;;  %v14187_v3 = vld [vmem:[#allocation6 + $0x4b4] sm:$0xf0] }
 0x661   : > { %8315 = vmatpush.bf16.msrb.mxu0 %v12397_v43  ;;  %v12572_v43 = vld [vmem:[#allocation6 + $0x228] sm:$0xf]  ;;  %v13037_v35 = vor.u32 %v14223_v24, %v13036_v21  ;;  %v14219_v33 = vld [vmem:[#allocation6 + $0x5b4] sm:$0xf0] }
 0x662   : > { %8329 = vmatpush.bf16.msrb.mxu1 %v12525_v44  ;;  %v14107_v44 = vld [vmem:[#allocation6 + $0x234] sm:$0xf0]  ;;  %v12892_v31 = vld [vmem:[#allocation6 + $0x4a8] sm:$0xf] }
 0x663   : > { %8343 = vmatpush.bf16.msrb.mxu2 %v12653_v45  ;;  %v12700_v45 = vld [vmem:[#allocation6 + $0x328] sm:$0xf]  ;;  %v12573_v57 = vor.u32 %v14107_v44, %v12572_v43  ;;  %v12893_v53 = vor.u32 %v14187_v3, %v12892_v31  ;;  %v14183_v43 = vld [vmem:[#allocation6 + $0x494] sm:$0xf0]  ;;  %v12446_v31 = vld [vmem:[#allocation6 + $0x138] sm:$0xf0] }
 0x664   : > { %8357 = vmatpush.bf16.msrb.mxu3 %v12781_v51  ;;  %v14039_v51 = vld [vmem:[#allocation6 + $0x14] sm:$0xf0]  ;;  %v13020_v32 = vld [vmem:[#allocation6 + $0x5a8] sm:$0xf] }
 0x665   : > { %8316 = vmatpush.bf16.msrb.mxu0 %v12381_v63  ;;  %v12701_v63 = vor.u32 %v14139_v46, %v12700_v45  ;;  %v12301_v6 = vor.u32 %v14039_v51, %v12300_v61  ;;  %v13021_v41 = vor.u32 %v14219_v33, %v13020_v32  ;;  %v12876_v42 = vld [vmem:[#allocation6 + $0x488] sm:$0xf]  ;;  %v14215_v46 = vld [vmem:[#allocation6 + $0x594] sm:$0xf0]  ;;  %v12366_v61 = vld [vmem:[#allocation6 + $0x98] sm:$0xf0] }
 0x666   : > { %8330 = vmatpush.bf16.msrb.mxu1 %v12509_v19  ;;  %v14103_v19 = vld [vmem:[#allocation6 + $0x214] sm:$0xf0]  ;;  %v13004_v44 = vld [vmem:[#allocation6 + $0x588] sm:$0xf]  ;;  %v14085_v51 = vld [vmem:[#allocation6 + $0x18c] sm:$0xf] }
 0x667   : > { %8344 = vmatpush.bf16.msrb.mxu2 %v12637_v16  ;;  %v12684_v16 = vld [vmem:[#allocation6 + $0x308] sm:$0xf]  ;;  %v13005_v59 = vor.u32 %v14215_v46, %v13004_v44  ;;  %v12670_v44 = vld [vmem:[#allocation6 + $0x2f8] sm:$0xf0] }
 0x668   : > { %8358 = vmatpush.bf16.msrb.mxu3 %v12765_v5  ;;  %v13052_v5 = vld [vmem:[#allocation6 + $0x5e8] sm:$0xf]  ;;  %v12685_v14 = vor.u32 %v14135_v50, %v12684_v16  ;;  %v14211_v50 = vld [vmem:[#allocation6 + $0x574] sm:$0xf0] }
 0x669   : > { %8317 = vmatpush.bf16.msrb.mxu0 %v12365_v11  ;;  %v12557_v11 = vor.u32 %v14103_v19, %v12556_v4  ;;  %v13053_v17 = vor.u32 %v14227_v7, %v13052_v5  ;;  %v12860_v4 = vld [vmem:[#allocation6 + $0x468] sm:$0xf]  ;;  %v14081_v5 = vld [vmem:[#allocation6 + $0x16c] sm:$0xf] }
 0x66a   : > { %8331 = vmatpush.bf16.msrb.mxu1 %v12493_v12  ;;  %v14097_v12 = vld [vmem:[#allocation6 + $0x1ec] sm:$0xf]  ;;  %v12988_v19 = vld [vmem:[#allocation6 + $0x568] sm:$0xf] }
 0x66b   : > { %8345 = vmatpush.bf16.msrb.mxu2 %v12621_v13  ;;  %v12542_v13 = vld [vmem:[#allocation6 + $0x1f8] sm:$0xf0]  ;;  %v12828_v24 = vld [vmem:[#allocation6 + $0x428] sm:$0xf] }
 0x66c   : > { %8359 = vmatpush.bf16.msrb.mxu3 %v12749_v60  ;;  %v12417_v60 = vor.u32 %v14065_v58, %v12414_v8  ;;  %v12545_v23 = vor.u32 %v14097_v12, %v12542_v13  ;;  %v12989_v58 = vor.u32 %v14211_v50, %v12988_v19  ;;  %v12353_v8 = vor.u32 %v14049_v22, %v12350_v49  ;;  %v12972_v12 = vld [vmem:[#allocation6 + $0x548] sm:$0xf]  ;;  %v14125_v50 = vld [vmem:[#allocation6 + $0x2cc] sm:$0xf]  ;;  %v12654_v22 = vld [vmem:[#allocation6 + $0x2d8] sm:$0xf0] }
 0x66d   : > { %8318 = vmatpush.bf16.msrb.mxu0 %v12349_v25  ;;  %v14061_v25 = vld [vmem:[#allocation6 + $0xcc] sm:$0xf]  ;;  %v12812_v32 = vld [vmem:[#allocation6 + $0x408] sm:$0xf] }
 0x66e   : > { %8332 = vmatpush.bf16.msrb.mxu1 %v12477_v27  ;;  %v12398_v27 = vld [vmem:[#allocation6 + $0xd8] sm:$0xf0]  ;;  %v14157_v49 = vld [vmem:[#allocation6 + $0x3cc] sm:$0xf] }
 0x66f   : > { %8346 = vmatpush.bf16.msrb.mxu2 %v12605_v28  ;;  %v14093_v28 = vld [vmem:[#allocation6 + $0x1cc] sm:$0xf] }
 0x670   : > { %8360 = vmatpush.bf16.msrb.mxu3 %v12733_v26  ;;  %v12401_v26 = vor.u32 %v14061_v25, %v12398_v27  ;;  %v12529_v37 = vor.u32 %v14093_v28, %v12526_v29  ;;  %v14171_v25 = vld [vmem:[#allocation6 + $0x434] sm:$0xf0]  ;;  %v12956_v27 = vld [vmem:[#allocation6 + $0x528] sm:$0xf] }
 0x671   : > { %8319 = vmatpush.bf16.msrb.mxu0 %v12333_v38  ;;  %v14057_v38 = vld [vmem:[#allocation6 + $0xac] sm:$0xf]  ;;  %v14203_v29 = vld [vmem:[#allocation6 + $0x534] sm:$0xf0]  ;;  %v12829_v3 = vor.u32 %v14171_v25, %v12828_v24  ;;  %v13022_v24 = vld [vmem:[#allocation6 + $0x5b8] sm:$0xf0] }
 0x672   : > { %8333 = vmatpush.bf16.msrb.mxu1 %v12461_v34  ;;  %v12382_v34 = vld [vmem:[#allocation6 + $0xb8] sm:$0xf0]  ;;  %v12957_v33 = vor.u32 %v14203_v29, %v12956_v27  ;;  %v7178_v27 = vperm.slane %v15292_v1, 0 }
 0x673   : > { %8347 = vmatpush.bf16.msrb.mxu2 %v12589_v48  ;;  %v14089_v48 = vld [vmem:[#allocation6 + $0x1ac] sm:$0xf] }
 0x674   : > { %8361 = vmatpush.bf16.msrb.mxu3 %v12717_v52  ;;  %v12385_v52 = vor.u32 %v14057_v38, %v12382_v34  ;;  %v12513_v45 = vor.u32 %v14089_v48, %v12510_v40  ;;  %v12940_v34 = vld [vmem:[#allocation6 + $0x508] sm:$0xf]  ;;  %v14199_v48 = vld [vmem:[#allocation6 + $0x514] sm:$0xf0]  ;;  %v14037_v40 = vld [vmem:[#allocation6 + $0xc] sm:$0xf] }
 0x675   : > { %8320 = vmatpush.bf16.msrb.mxu0 %v12317_v47  ;;  %v14053_v47 = vld [vmem:[#allocation6 + $0x8c] sm:$0xf] }
 0x676   : > { %8334 = vmatpush.bf16.msrb.mxu1 %v12445_v55  ;;  %v12494_v55 = vld [vmem:[#allocation6 + $0x198] sm:$0xf0]  ;;  %v12369_v62 = vor.u32 %v14053_v47, %v12366_v61  ;;  %v14193_v61 = vld [vmem:[#allocation6 + $0x4ec] sm:$0xf] }
 0x677   : > { %8348 = vmatpush.bf16.msrb.mxu2 %v12573_v57  ;;  %v12877_v57 = vor.u32 %v14183_v43, %v12876_v42  ;;  %v12497_v16 = vor.u32 %v14085_v51, %v12494_v55  ;;  %v12430_v42 = vld [vmem:[#allocation6 + $0x118] sm:$0xf0]  ;;  %v14129_v43 = vld [vmem:[#allocation6 + $0x2ec] sm:$0xf]  ;;  %v12941_v55 = vor.u32 %v14199_v48, %v12940_v34 }
 0x678   : > { %8362 = vmatpush.bf16.msrb.mxu3 %v12701_v63  ;;  %v14179_v63 = vld [vmem:[#allocation6 + $0x474] sm:$0xf0]  ;;  %v12798_v47 = vld [vmem:[#allocation6 + $0x3f8] sm:$0xf0] }
 0x679   : > { %8321 = vmatpush.bf16.msrb.mxu0 %v12301_v6  ;;  %v12478_v6 = vld [vmem:[#allocation6 + $0x178] sm:$0xf0]  ;;  %v12861_v7 = vor.u32 %v14179_v63, %v12860_v4  ;;  %v12673_v63 = vor.u32 %v14129_v43, %v12670_v44 }
 0x67a   : > { %8335 = vmatpush.bf16.msrb.mxu1 %v12429_v9  ;;  %v12844_v9 = vld [vmem:[#allocation6 + $0x448] sm:$0xf]  ;;  %v12481_v13 = vor.u32 %v14081_v5, %v12478_v6  ;;  %v12926_v51 = vld [vmem:[#allocation6 + $0x4f8] sm:$0xf0] }
 0x67b   : > { %8349 = vmatpush.bf16.msrb.mxu2 %v12557_v11  ;;  %v14175_v11 = vld [vmem:[#allocation6 + $0x454] sm:$0xf0]  ;;  %v12782_v6 = vld [vmem:[#allocation6 + $0x3d8] sm:$0xf0] }
 0x67c   : > { %8363 = vmatpush.bf16.msrb.mxu3 %v12685_v14  ;;  %8322 = vmatmul.bf16.vlgmr.msrb.gmra.mxu0 %v15403_v56  ;;  %v14207_v14 = vld [vmem:[#allocation6 + $0x554] sm:$0xf0]  ;;  %v12845_v18 = vor.u32 %v14175_v11, %v12844_v9  ;;  %v13038_v9 = vld [vmem:[#allocation6 + $0x5d8] sm:$0xf0]  ;;  %v12657_v11 = vor.u32 %v14125_v50, %v12654_v22  ;;  %v14173_v50 = vld [vmem:[#allocation6 + $0x44c] sm:$0xf] }
 0x67d   : > { %8370 = vmatpush.bf16.msra.mxu0 %v12925_v0  ;;  %8336 = vmatmul.bf16.vlgmr.msrb.gmra.mxu1 %v15410_v36  ;;  %v14045_v0 = vld [vmem:[#allocation6 + $0x4c] sm:$0xf]  ;;  %v12973_v21 = vor.u32 %v14207_v14, %v12972_v12  ;;  %v12785_v12 = vor.u32 %v14157_v49, %v12782_v6  ;;  %v12734_v44 = vld [vmem:[#allocation6 + $0x378] sm:$0xf0] }
 0x67e   : > { %8384 = vmatpush.bf16.msra.mxu1 %v13053_v17  ;;  %8350 = vmatmul.bf16.vlgmr.msrb.gmra.mxu2 %v15413_v20  ;;  %v12334_v17 = vld [vmem:[#allocation6 + $0x58] sm:$0xf0]  ;;  %v14121_v14 = vld [vmem:[#allocation6 + $0x2ac] sm:$0xf] }
 0x67f   : > { %8398 = vmatpush.bf16.msra.mxu2 %v12417_v60  ;;  %8364 = vmatmul.bf16.vlgmr.msrb.gmra.mxu3 %v15416_v39  ;;  %v14077_v60 = vld [vmem:[#allocation6 + $0x14c] sm:$0xf]  ;;  %v12846_v22 = vld [vmem:[#allocation6 + $0x458] sm:$0xf0] }
 0x680   : > { %8412 = vmatpush.bf16.msra.mxu3 %v12545_v23  ;;  %v12337_v23 = vor.u32 %v14045_v0, %v12334_v17  ;;  %v12465_v28 = vor.u32 %v14077_v60, %v12462_v10  ;;  %v12638_v0 = vld [vmem:[#allocation6 + $0x2b8] sm:$0xf0]  ;;  %v14153_v17 = vld [vmem:[#allocation6 + $0x3ac] sm:$0xf] }
 0x681   : > { %8371 = vmatpush.bf16.msra.mxu0 %v12909_v30  ;;  %v14041_v30 = vld [vmem:[#allocation6 + $0x2c] sm:$0xf]  ;;  %v12766_v10 = vld [vmem:[#allocation6 + $0x3b8] sm:$0xf0]  ;;  %v12641_v25 = vor.u32 %v14121_v14, %v12638_v0 }
 0x682   : > { %8385 = vmatpush.bf16.msra.mxu1 %v13037_v35  ;;  %v12318_v35 = vld [vmem:[#allocation6 + $0x38] sm:$0xf0]  ;;  %v14105_v14 = vld [vmem:[#allocation6 + $0x22c] sm:$0xf] }
 0x683   : > { %8399 = vmatpush.bf16.msra.mxu2 %v12401_v26  ;;  %v14073_v26 = vld [vmem:[#allocation6 + $0x12c] sm:$0xf]  ;;  %v12321_v38 = vor.u32 %v14041_v30, %v12318_v35  ;;  %v12622_v35 = vld [vmem:[#allocation6 + $0x298] sm:$0xf0] }
 0x684   : > { %8413 = vmatpush.bf16.msra.mxu3 %v12529_v37  ;;  %v14167_v37 = vld [vmem:[#allocation6 + $0x414] sm:$0xf0]  ;;  %v14117_v30 = vld [vmem:[#allocation6 + $0x28c] sm:$0xf]  ;;  %v12974_v6 = vld [vmem:[#allocation6 + $0x558] sm:$0xf0] }
 0x685   : > { %8372 = vmatpush.bf16.msra.mxu0 %v12893_v53  ;;  %v12449_v53 = vor.u32 %v14073_v26, %v12446_v31  ;;  %v12813_v46 = vor.u32 %v14167_v37, %v12812_v32  ;;  %v14149_v26 = vld [vmem:[#allocation6 + $0x38c] sm:$0xf]  ;;  %v12625_v34 = vor.u32 %v14117_v30, %v12622_v35  ;;  %v12574_v0 = vld [vmem:[#allocation6 + $0x238] sm:$0xf0] }
 0x686   : > { %8386 = vmatpush.bf16.msra.mxu1 %v13021_v41  ;;  %v12302_v41 = vld [vmem:[#allocation6 + $0x18] sm:$0xf0]  ;;  %v14181_v32 = vld [vmem:[#allocation6 + $0x48c] sm:$0xf]  ;;  %v12577_v30 = vor.u32 %v14105_v14, %v12574_v0 }
 0x687   : > { %8400 = vmatpush.bf16.msra.mxu2 %v12385_v52  ;;  %v14069_v52 = vld [vmem:[#allocation6 + $0x10c] sm:$0xf] }
 0x688   : > { %8414 = vmatpush.bf16.msra.mxu3 %v12513_v45  ;;  %v14161_v45 = vld [vmem:[#allocation6 + $0x3ec] sm:$0xf]  ;;  %v12433_v4 = vor.u32 %v14069_v52, %v12430_v42  ;;  %v12606_v52 = vld [vmem:[#allocation6 + $0x278] sm:$0xf0] }
 0x689   : > { %8373 = vmatpush.bf16.msra.mxu0 %v12877_v57  ;;  %v12305_v57 = vor.u32 %v14037_v40, %v12302_v41  ;;  %v12801_v19 = vor.u32 %v14161_v45, %v12798_v47  ;;  %v14213_v37 = vld [vmem:[#allocation6 + $0x58c] sm:$0xf] }
 0x68a   : > { %8387 = vmatpush.bf16.msra.mxu1 %v13005_v59  ;;  %v14225_v59 = vld [vmem:[#allocation6 + $0x5ec] sm:$0xf] }
 0x68b   : > { %8401 = vmatpush.bf16.msra.mxu2 %v12369_v62  ;;  %v13054_v62 = vld [vmem:[#allocation6 + $0x5f8] sm:$0xf0]  ;;  %v14113_v41 = vld [vmem:[#allocation6 + $0x26c] sm:$0xf] }
 0x68c   : > { %8415 = vmatpush.bf16.msra.mxu3 %v12497_v16  ;;  %v12929_v16 = vor.u32 %v14193_v61, %v12926_v51  ;;  %v13057_v5 = vor.u32 %v14225_v59, %v13054_v62  ;;  %v14145_v42 = vld [vmem:[#allocation6 + $0x36c] sm:$0xf]  ;;  %v12990_v51 = vld [vmem:[#allocation6 + $0x578] sm:$0xf0] }
 0x68d   : > { %8374 = vmatpush.bf16.msra.mxu0 %v12861_v7  ;;  %v14189_v7 = vld [vmem:[#allocation6 + $0x4cc] sm:$0xf] }
 0x68e   : > { %8388 = vmatpush.bf16.msra.mxu1 %v12989_v58  ;;  %v12910_v58 = vld [vmem:[#allocation6 + $0x4d8] sm:$0xf0]  ;;  %v14177_v45 = vld [vmem:[#allocation6 + $0x46c] sm:$0xf] }
 0x68f   : > { %8402 = vmatpush.bf16.msra.mxu2 %v12353_v8  ;;  %v14221_v8 = vld [vmem:[#allocation6 + $0x5cc] sm:$0xf] }
 0x690   : > { %8416 = vmatpush.bf16.msra.mxu3 %v12481_v13  ;;  %v12913_v13 = vor.u32 %v14189_v7, %v12910_v58  ;;  %v13041_v60 = vor.u32 %v14221_v8, %v13038_v9  ;;  %v14209_v61 = vld [vmem:[#allocation6 + $0x56c] sm:$0xf] }
 0x691   : > { %8375 = vmatpush.bf16.msra.mxu0 %v12845_v18  ;;  %v14185_v18 = vld [vmem:[#allocation6 + $0x4ac] sm:$0xf] }
 0x692   : > { %8389 = vmatpush.bf16.msra.mxu1 %v12973_v21  ;;  %v12894_v21 = vld [vmem:[#allocation6 + $0x4b8] sm:$0xf0]  ;;  %v14109_v62 = vld [vmem:[#allocation6 + $0x24c] sm:$0xf] }
 0x693   : > { %8403 = vmatpush.bf16.msra.mxu2 %v12337_v23  ;;  %v14217_v23 = vld [vmem:[#allocation6 + $0x5ac] sm:$0xf]  ;;  %v12897_v29 = vor.u32 %v14185_v18, %v12894_v21  ;;  %v12702_v21 = vld [vmem:[#allocation6 + $0x338] sm:$0xf0] }
 0x694   : > { %8417 = vmatpush.bf16.msra.mxu3 %v12465_v28  ;;  %v12769_v28 = vor.u32 %v14153_v17, %v12766_v10  ;;  %v13025_v31 = vor.u32 %v14217_v23, %v13022_v24  ;;  %v14137_v17 = vld [vmem:[#allocation6 + $0x32c] sm:$0xf]  ;;  %v12830_v24 = vld [vmem:[#allocation6 + $0x438] sm:$0xf0] }
 0x695   : > { %8376 = vmatpush.bf16.msra.mxu0 %v12829_v3  ;;  %v12750_v3 = vld [vmem:[#allocation6 + $0x398] sm:$0xf0]  ;;  %v14169_v23 = vld [vmem:[#allocation6 + $0x42c] sm:$0xf] }
 0x696   : > { %8390 = vmatpush.bf16.msra.mxu1 %v12957_v33  ;;  %v13006_v33 = vld [vmem:[#allocation6 + $0x598] sm:$0xf0]  ;;  %v12753_v40 = vor.u32 %v14149_v26, %v12750_v3  ;;  %v12833_v35 = vor.u32 %v14169_v23, %v12830_v24  ;;  %v14101_v26 = vld [vmem:[#allocation6 + $0x20c] sm:$0xf] }
 0x697   : > { %8404 = vmatpush.bf16.msra.mxu2 %v12321_v38  ;;  %v13009_v43 = vor.u32 %v14213_v37, %v13006_v33  ;;  %v14133_v3 = vld [vmem:[#allocation6 + $0x30c] sm:$0xf]  ;;  %v12814_v33 = vld [vmem:[#allocation6 + $0x418] sm:$0xf0] }
 0x698   : > { %8418 = vmatpush.bf16.msra.mxu3 %v12449_v53  ;;  %v14165_v37 = vld [vmem:[#allocation6 + $0x40c] sm:$0xf] }
 0x699   : > { %8377 = vmatpush.bf16.msra.mxu0 %v12813_v46  ;;  %v8155_v38 = vpop.f32.mrf.mxu0  ;;  %v12862_v46 = vld [vmem:[#allocation6 + $0x478] sm:$0xf0] }
 0x69a   : > { %8391 = vmatpush.bf16.msra.mxu1 %v12941_v55  ;;  %v8169_v48 = vpop.f32.mrf.mxu1  ;;  %v12609_v55 = vor.u32 %v14113_v41, %v12606_v52  ;;  %v12865_v59 = vor.u32 %v14177_v45, %v12862_v46  ;;  %v12817_v52 = vor.u32 %v14165_v37, %v12814_v33 }
 0x69b   : > { %8405 = vmatpush.bf16.msra.mxu2 %v12305_v57  ;;  %v12737_v57 = vor.u32 %v14145_v42, %v12734_v44 }
 0x69c   : > { %8419 = vmatpush.bf16.msra.mxu3 %v12433_v4  ;;  %8378 = vmatmul.bf16.vlgmr.msra.gmra.mxu0 %v15419_v54  ;;  %v12590_v4 = vld [vmem:[#allocation6 + $0x258] sm:$0xf0] }
 0x69d   : > { %8426 = vmatpush.bf16.msrb.mxu0 %v12673_v63  ;;  %8392 = vmatmul.bf16.vlgmr.msra.gmra.mxu1 %v15422_v15  ;;  %v14141_v63 = vld [vmem:[#allocation6 + $0x34c] sm:$0xf]  ;;  %v12593_v9 = vor.u32 %v14109_v62, %v12590_v4 }
 0x69e   : > { %8440 = vmatpush.bf16.msrb.mxu1 %v12801_v19  ;;  %8406 = vmatmul.bf16.vlgmr.msra.gmra.mxu2 %v15403_v56  ;;  %v12878_v56 = vld [vmem:[#allocation6 + $0x498] sm:$0xf0]  ;;  %v12993_v19 = vor.u32 %v14209_v61, %v12990_v51  ;;  %v7179_v61 = vperm.slane %v15292_v1, 1 }
 0x69f   : > { %8454 = vmatpush.bf16.msrb.mxu2 %v12929_v16  ;;  %8420 = vmatmul.bf16.vlgmr.msra.gmra.mxu3 %v15410_v36  ;;  %v8156_v36 = vadd.f32 %v8155_v38, %v7178_v27  ;;  %v12881_v53 = vor.u32 %v14181_v32, %v12878_v56  ;;  %v12718_v16 = vld [vmem:[#allocation6 + $0x358] sm:$0xf0] }
 0x6a0   : > { %8468 = vmatpush.bf16.msrb.mxu3 %v13057_v5  ;;  %v14205_v5 = vld [vmem:[#allocation6 + $0x54c] sm:$0xf]  ;;  %v12686_v56 = vld [vmem:[#allocation6 + $0x318] sm:$0xf0] }
 0x6a1   : > { %8427 = vmatpush.bf16.msrb.mxu0 %v12657_v11  ;;  %v8170_v47 = vadd.f32 %v8169_v48, %v8156_v36  ;;  %v8183_v49 = vpop.f32.mrf.mxu2  ;;  %v8157_v7 = vpop.f32.mrf.mxu0  ;;  %v12977_v18 = vor.u32 %v14205_v5, %v12974_v6  ;;  %v12942_v36 = vld [vmem:[#allocation6 + $0x518] sm:$0xf0]  ;;  %v12689_v41 = vor.u32 %v14133_v3, %v12686_v56 }
 0x6a2   : > { %8441 = vmatpush.bf16.msrb.mxu1 %v12785_v12  ;;  %v8197_v8 = vpop.f32.mrf.mxu3  ;;  %v8158_v11 = vadd.f32 %v8157_v7, %v7178_v27  ;;  %v12721_v12 = vor.u32 %v14141_v63, %v12718_v16  ;;  %v12705_v27 = vor.u32 %v14137_v17, %v12702_v21 }
 0x6a3   : > { %8455 = vmatpush.bf16.msrb.mxu2 %v12913_v13  ;;  %v8184_v58 = vadd.f32 %v8183_v49, %v8170_v47  ;;  %v12849_v13 = vor.u32 %v14173_v50, %v12846_v22 }
 0x6a4   : > { %8469 = vmatpush.bf16.msrb.mxu3 %v13041_v60  ;;  %v8171_v60 = vpop.f32.mrf.mxu1 }
 0x6a5   : > { %8428 = vmatpush.bf16.msrb.mxu0 %v12641_v25  ;;  %v8198_v10 = vadd.f32 %v8197_v8, %v8184_v58  ;;  %v8172_v25 = vadd.f32 %v8171_v60, %v8158_v11 }
 0x6a6   : > { %8442 = vmatpush.bf16.msrb.mxu1 %v12769_v28  ;;  %v14201_v28 = vld [vmem:[#allocation6 + $0x52c] sm:$0xf] }
 0x6a7   : > { %8456 = vmatpush.bf16.msrb.mxu2 %v12897_v29  ;;  %v12958_v29 = vld [vmem:[#allocation6 + $0x538] sm:$0xf0] }
 0x6a8   : > { %8470 = vmatpush.bf16.msrb.mxu3 %v13025_v31  ;;  %v12558_v31 = vld [vmem:[#allocation6 + $0x218] sm:$0xf0]  ;;  %v12961_v32 = vor.u32 %v14201_v28, %v12958_v29  ;;  %v7180_v29 = vperm.slane %v15292_v1, 2 }
 0x6a9   : > { %8429 = vmatpush.bf16.msrb.mxu0 %v12625_v34  ;;  %v8185_v38 = vpop.f32.mrf.mxu2  ;;  %v14197_v34 = vld [vmem:[#allocation6 + $0x50c] sm:$0xf] }
 0x6aa   : > { %8443 = vmatpush.bf16.msrb.mxu1 %v12753_v40  ;;  %v8186_v48 = vadd.f32 %v8185_v38, %v8172_v25  ;;  %v8199_v40 = vpop.f32.mrf.mxu3 }
 0x6ab   : > { %8457 = vmatpush.bf16.msrb.mxu2 %v12881_v53  ;;  %v12561_v53 = vor.u32 %v14101_v26, %v12558_v31 }
 0x6ac   : > { %8471 = vmatpush.bf16.msrb.mxu3 %v13009_v43  ;;  %v8200_v42 = vadd.f32 %v8199_v40, %v8186_v48  ;;  %v12945_v43 = vor.u32 %v14197_v34, %v12942_v36 }
 0x6ad   : > { %8430 = vmatpush.bf16.msrb.mxu0 %v12609_v55 }
 0x6ae   : > { %8444 = vmatpush.bf16.msrb.mxu1 %v12737_v57 }
 0x6af   : > { %8458 = vmatpush.bf16.msrb.mxu2 %v12865_v59 }
 0x6b0   : > { %8472 = vmatpush.bf16.msrb.mxu3 %v12993_v19 }
 0x6b1   : > { %8431 = vmatpush.bf16.msrb.mxu0 %v12593_v9 }
 0x6b2   : > { %8445 = vmatpush.bf16.msrb.mxu1 %v12721_v12 }
 0x6b3   : > { %8459 = vmatpush.bf16.msrb.mxu2 %v12849_v13 }
 0x6b4   : > { %8473 = vmatpush.bf16.msrb.mxu3 %v12977_v18 }
 0x6b5   : > { %8432 = vmatpush.bf16.msrb.mxu0 %v12577_v30 }
 0x6b6   : > { %8446 = vmatpush.bf16.msrb.mxu1 %v12705_v27 }
 0x6b7   : > { %8460 = vmatpush.bf16.msrb.mxu2 %v12833_v35 }
 0x6b8   : > { %8474 = vmatpush.bf16.msrb.mxu3 %v12961_v32 }
 0x6b9   : > { %8433 = vmatpush.bf16.msrb.mxu0 %v12561_v53  ;;  %v8211_v44 = vpop.f32.mrf.mxu0 }
 0x6ba   : > { %8447 = vmatpush.bf16.msrb.mxu1 %v12689_v41  ;;  %v8212_v45 = vadd.f32 %v8211_v44, %v8198_v10  ;;  %v8225_v46 = vpop.f32.mrf.mxu1 }
 0x6bb   : > { %8461 = vmatpush.bf16.msrb.mxu2 %v12817_v52 }
 0x6bc   : > { %8475 = vmatpush.bf16.msrb.mxu3 %v12945_v43  ;;  %8434 = vmatmul.bf16.vlgmr.msrb.gmra.mxu0 %v15413_v20  ;;  %v8226_v47 = vadd.f32 %v8225_v46, %v8212_v45 }
 0x6bd   : > { %8448 = vmatmul.bf16.vlgmr.msrb.gmra.mxu1 %v15416_v39 }
 0x6be   : > { %8462 = vmatmul.bf16.vlgmr.msrb.gmra.mxu2 %v15419_v54  ;;  %v8482_v20 = vmax.f32 %v8226_v47, 0.0 }
 0x6bf   : > { %8476 = vmatmul.bf16.vlgmr.msrb.gmra.mxu3 %v15422_v15 }
 0x6c1   : > { %v8239_v51 = vpop.f32.mrf.mxu2  ;;  %v8213_v55 = vpop.f32.mrf.mxu0 }
 0x6c2   : > { %v8240_v57 = vadd.f32 %v8239_v51, %v7179_v61  ;;  %v8214_v59 = vadd.f32 %v8213_v55, %v8200_v42  ;;  %v8227_v62 = vpop.f32.mrf.mxu1  ;;  %v8253_v4 = vpop.f32.mrf.mxu3 }
 0x6c4   : > { %v8254_v63 = vadd.f32 %v8253_v4, %v8240_v57  ;;  %v8228_v19 = vadd.f32 %v8227_v62, %v8214_v59  ;;  %v7181_v57 = vperm.slane %v15292_v1, 3 }
 0x6c6   : > { %v8486_v39 = vmax.f32 %v8228_v19, 0.0 }
 0x6c8   : > { %v15450_v16 = vpack.c.bf16 %v8486_v39, %v8482_v20 }
 0x6c9   : > { %v8241_v54 = vpop.f32.mrf.mxu2 }
 0x6ca   : > { %v8255_v15 = vpop.f32.mrf.mxu3  ;;  %v8242_v49 = vadd.f32 %v8241_v54, %v7179_v61 }
 0x6cc   : > { %v8256_v6 = vadd.f32 %v8255_v15, %v8242_v49 }
 0x6d9   : > { %v8267_v50 = vpop.f32.mrf.mxu0 }
 0x6da   : > { %v8281_v22 = vpop.f32.mrf.mxu1  ;;  %v8268_v5 = vadd.f32 %v8267_v50, %v8254_v63 }
 0x6dc   : > { %v8282_v58 = vadd.f32 %v8281_v22, %v8268_v5 }
 0x6e1   : > { %v8295_v7 = vpop.f32.mrf.mxu2  ;;  %v8269_v8 = vpop.f32.mrf.mxu0 }
 0x6e2   : > { %v8309_v9 = vpop.f32.mrf.mxu3  ;;  %v8270_v11 = vadd.f32 %v8269_v8, %v8256_v6  ;;  %v8283_v12 = vpop.f32.mrf.mxu1  ;;  %v8296_v13 = vadd.f32 %v8295_v7, %v8282_v58 }
 0x6e4   : > { %v8284_v14 = vadd.f32 %v8283_v12, %v8270_v11  ;;  %v8310_v17 = vadd.f32 %v8309_v9, %v8296_v13 }
 0x6e6   : > { %v8483_v21 = vmax.f32 %v8310_v17, 0.0 }
 0x6e9   : > { %v8297_v0 = vpop.f32.mrf.mxu2 }
 0x6ea   : > { %v8298_v60 = vadd.f32 %v8297_v0, %v8284_v14  ;;  %v8311_v10 = vpop.f32.mrf.mxu3 }
 0x6ec   : > { %v8312_v18 = vadd.f32 %v8311_v10, %v8298_v60 }
 0x6ee   : > { %v8487_v23 = vmax.f32 %v8312_v18, 0.0 }
 0x6f0   : > { %v15452_v24 = vpack.c.bf16 %v8487_v23, %v8483_v21 }
 0x6f9   : > { %v8323_v25 = vpop.f32.mrf.mxu0 }
 0x6fa   : > { %v8337_v28 = vpop.f32.mrf.mxu1  ;;  %v8324_v30 = vadd.f32 %v8323_v25, %v7180_v29 }
 0x6fc   : > { %v8338_v26 = vadd.f32 %v8337_v28, %v8324_v30 }
 0x701   : > { %v8351_v27 = vpop.f32.mrf.mxu2  ;;  %v8325_v35 = vpop.f32.mrf.mxu0 }
 0x702   : > { %v8339_v31 = vpop.f32.mrf.mxu1  ;;  %v8365_v3 = vpop.f32.mrf.mxu3  ;;  %v8326_v32 = vadd.f32 %v8325_v35, %v7180_v29  ;;  %v8352_v56 = vadd.f32 %v8351_v27, %v8338_v26 }
 0x704   : > { %v8340_v37 = vadd.f32 %v8339_v31, %v8326_v32  ;;  %v8366_v38 = vadd.f32 %v8365_v3, %v8352_v56 }
 0x709   : > { %v8353_v33 = vpop.f32.mrf.mxu2 }
 0x70a   : > { %v8354_v48 = vadd.f32 %v8353_v33, %v8340_v37  ;;  %v8367_v40 = vpop.f32.mrf.mxu3 }
 0x70c   : > { %v8368_v41 = vadd.f32 %v8367_v40, %v8354_v48 }
 0x719   : > { %v8379_v34 = vpop.f32.mrf.mxu0 }
 0x71a   : > { %v8393_v36 = vpop.f32.mrf.mxu1  ;;  %v8380_v53 = vadd.f32 %v8379_v34, %v8366_v38 }
 0x71c   : > { %v8394_v52 = vadd.f32 %v8393_v36, %v8380_v53 }
 0x71e   : > { %v8484_v45 = vmax.f32 %v8394_v52, 0.0 }
 0x721   : > { %v8381_v42 = vpop.f32.mrf.mxu0  ;;  %v8407_v51 = vpop.f32.mrf.mxu2 }
 0x722   : > { %v8382_v43 = vadd.f32 %v8381_v42, %v8368_v41  ;;  %v8395_v44 = vpop.f32.mrf.mxu1  ;;  %v8421_v55 = vpop.f32.mrf.mxu3  ;;  %v8408_v62 = vadd.f32 %v8407_v51, %v7181_v57 }
 0x724   : > { %v8396_v46 = vadd.f32 %v8395_v44, %v8382_v43  ;;  %v8422_v19 = vadd.f32 %v8421_v55, %v8408_v62 }
 0x726   : > { %v8488_v47 = vmax.f32 %v8396_v46, 0.0 }
 0x728   : > { %v15455_v61 = vpack.c.bf16 %v8488_v47, %v8484_v45 }
 0x729   : > { %v8409_v59 = vpop.f32.mrf.mxu2 }
 0x72a   : > { %v8423_v4 = vpop.f32.mrf.mxu3  ;;  %v8410_v39 = vadd.f32 %v8409_v59, %v7181_v57 }
 0x72c   : > { %v8424_v50 = vadd.f32 %v8423_v4, %v8410_v39 }
 0x739   : > { %v8435_v63 = vpop.f32.mrf.mxu0 }
 0x73a   : > { %v8449_v20 = vpop.f32.mrf.mxu1  ;;  %v8436_v54 = vadd.f32 %v8435_v63, %v8422_v19 }
 0x73c   : > { %v8450_v5 = vadd.f32 %v8449_v20, %v8436_v54 }
 0x741   : > { %v8463_v15 = vpop.f32.mrf.mxu2  ;;  %v8437_v49 = vpop.f32.mrf.mxu0 }
 0x742   : > { %v8477_v22 = vpop.f32.mrf.mxu3  ;;  %v8438_v6 = vadd.f32 %v8437_v49, %v8424_v50  ;;  %v8464_v7 = vadd.f32 %v8463_v15, %v8450_v5  ;;  %v8451_v58 = vpop.f32.mrf.mxu1 }
 0x744   : > { %v8452_v8 = vadd.f32 %v8451_v58, %v8438_v6  ;;  %v8478_v11 = vadd.f32 %v8477_v22, %v8464_v7 }
 0x746   : > { %v8485_v14 = vmax.f32 %v8478_v11, 0.0 }
 0x749   : > { %v8465_v9 = vpop.f32.mrf.mxu2 }
 0x74a   : > { %v8466_v1 = vadd.f32 %v8465_v9, %v8452_v8  ;;  %v8479_v12 = vpop.f32.mrf.mxu3 }
 0x74c   : > { %v8480_v13 = vadd.f32 %v8479_v12, %v8466_v1 }
 0x74e   : > { %v8489_v0 = vmax.f32 %v8480_v13, 0.0 }
 0x750   : > { %v15458_v17 = vpack.c.bf16 %v8489_v0, %v8485_v14 }
 0x751   : > { %14523 = dma.done.wait [#allocation8 + $0x4], 4096 }
 0x752   : > { %14524 = vsyncadd [#allocation8 + $0x4], 4294963200  ;;  %v14235_v60 = vld [vmem:[#allocation7 + $0x38] sm:$0xff]  ;;  %v14234_v23 = vld [vmem:[#allocation7 + $0x30] sm:$0xff] }
 0x753   : > { %v14243_v10 = vld [vmem:[#allocation7 + $0x78] sm:$0xff]  ;;  %8754 = vmatpush.bf16.msra.mxu0 %v14235_v60  ;;  %v14242_v25 = vld [vmem:[#allocation7 + $0x70] sm:$0xff]  ;;  %v14233_v30 = vld [vmem:[#allocation7 + $0x28] sm:$0xff] }
 0x754   : > { %v14251_v18 = vld [vmem:[#allocation7 + $0xb8] sm:$0xff]  ;;  %8768 = vmatpush.bf16.msra.mxu1 %v14243_v10  ;;  %v14250_v28 = vld [vmem:[#allocation7 + $0xb0] sm:$0xff]  ;;  %v14241_v27 = vld [vmem:[#allocation7 + $0x68] sm:$0xff] }
 0x755   : > { %v14259_v21 = vld [vmem:[#allocation7 + $0xf8] sm:$0xff]  ;;  %8782 = vmatpush.bf16.msra.mxu2 %v14251_v18  ;;  %v14258_v29 = vld [vmem:[#allocation7 + $0xf0] sm:$0xff]  ;;  %v14249_v35 = vld [vmem:[#allocation7 + $0xa8] sm:$0xff] }
 0x756   : > { %8796 = vmatpush.bf16.msra.mxu3 %v14259_v21  ;;  %v14257_v26 = vld [vmem:[#allocation7 + $0xe8] sm:$0xff]  ;;  %v14232_v31 = vld [vmem:[#allocation7 + $0x20] sm:$0xff]  ;;  %v14231_v37 = vld [vmem:[#allocation7 + $0x18] sm:$0xff] }
 0x757   : > { %8755 = vmatpush.bf16.msra.mxu0 %v14234_v23  ;;  %v14240_v3 = vld [vmem:[#allocation7 + $0x60] sm:$0xff]  ;;  %v14239_v33 = vld [vmem:[#allocation7 + $0x58] sm:$0xff]  ;;  %v14230_v36 = vld [vmem:[#allocation7 + $0x10] sm:$0xff] }
 0x758   : > { %8769 = vmatpush.bf16.msra.mxu1 %v14242_v25  ;;  %v14248_v32 = vld [vmem:[#allocation7 + $0xa0] sm:$0xff]  ;;  %v14247_v38 = vld [vmem:[#allocation7 + $0x98] sm:$0xff]  ;;  %v14238_v48 = vld [vmem:[#allocation7 + $0x50] sm:$0xff] }
 0x759   : > { %8783 = vmatpush.bf16.msra.mxu2 %v14250_v28  ;;  %v14256_v56 = vld [vmem:[#allocation7 + $0xe0] sm:$0xff]  ;;  %v14255_v34 = vld [vmem:[#allocation7 + $0xd8] sm:$0xff]  ;;  %v14246_v40 = vld [vmem:[#allocation7 + $0x90] sm:$0xff] }
 0x75a   : > { %8797 = vmatpush.bf16.msra.mxu3 %v14258_v29  ;;  %v14254_v53 = vld [vmem:[#allocation7 + $0xd0] sm:$0xff]  ;;  %v14229_v41 = vld [vmem:[#allocation7 + $0x8] sm:$0xff]  ;;  %v14228_v44 = vld [vmem:[#allocation7] sm:$0xff] }
 0x75b   : > { %8756 = vmatpush.bf16.msra.mxu0 %v14233_v30  ;;  %v14237_v52 = vld [vmem:[#allocation7 + $0x48] sm:$0xff]  ;;  %v14236_v45 = vld [vmem:[#allocation7 + $0x40] sm:$0xff] }
 0x75c   : > { %8770 = vmatpush.bf16.msra.mxu1 %v14241_v27  ;;  %v14245_v42 = vld [vmem:[#allocation7 + $0x88] sm:$0xff]  ;;  %v14244_v46 = vld [vmem:[#allocation7 + $0x80] sm:$0xff] }
 0x75d   : > { %8784 = vmatpush.bf16.msra.mxu2 %v14249_v35  ;;  %v14253_v43 = vld [vmem:[#allocation7 + $0xc8] sm:$0xff]  ;;  %v14252_v47 = vld [vmem:[#allocation7 + $0xc0] sm:$0xff] }
 0x75e   : > { %8798 = vmatpush.bf16.msra.mxu3 %v14257_v26 }
 0x75f   : > { %8757 = vmatpush.bf16.msra.mxu0 %v14232_v31 }
 0x760   : > { %8771 = vmatpush.bf16.msra.mxu1 %v14240_v3 }
 0x761   : > { %8785 = vmatpush.bf16.msra.mxu2 %v14248_v32 }
 0x762   : > { %8799 = vmatpush.bf16.msra.mxu3 %v14256_v56 }
 0x763   : > { %8758 = vmatpush.bf16.msra.mxu0 %v14231_v37 }
 0x764   : > { %8772 = vmatpush.bf16.msra.mxu1 %v14239_v33 }
 0x765   : > { %8786 = vmatpush.bf16.msra.mxu2 %v14247_v38 }
 0x766   : > { %8800 = vmatpush.bf16.msra.mxu3 %v14255_v34 }
 0x767   : > { %8759 = vmatpush.bf16.msra.mxu0 %v14230_v36 }
 0x768   : > { %8773 = vmatpush.bf16.msra.mxu1 %v14238_v48 }
 0x769   : > { %8787 = vmatpush.bf16.msra.mxu2 %v14246_v40 }
 0x76a   : > { %8801 = vmatpush.bf16.msra.mxu3 %v14254_v53 }
 0x76b   : > { %8760 = vmatpush.bf16.msra.mxu0 %v14229_v41 }
 0x76c   : > { %8774 = vmatpush.bf16.msra.mxu1 %v14237_v52 }
 0x76d   : > { %8788 = vmatpush.bf16.msra.mxu2 %v14245_v42 }
 0x76e   : > { %8802 = vmatpush.bf16.msra.mxu3 %v14253_v43 }
 0x76f   : > { %8761 = vmatpush.bf16.msra.mxu0 %v14228_v44 }
 0x770   : > { %8775 = vmatpush.bf16.msra.mxu1 %v14236_v45 }
 0x771   : > { %8789 = vmatpush.bf16.msra.mxu2 %v14244_v46 }
 0x772   : > { %8803 = vmatpush.bf16.msra.mxu3 %v14252_v47  ;;  %8762 = vmatmul.bf16.vlgmr.msra.gmra.mxu0 %v15450_v16 }
 0x773   : > { %8776 = vmatmul.bf16.vlgmr.msra.gmra.mxu1 %v15452_v24 }
 0x774   : > { %8790 = vmatmul.bf16.vlgmr.msra.gmra.mxu2 %v15455_v61 }
 0x775   : > { %8804 = vmatmul.bf16.vlgmr.msra.gmra.mxu3 %v15458_v17 }
 0x7ef   : > { %v8763_v51 = vpop.f32.mrf.mxu0 }
 0x7f0   : > { %v8764_v55 = vadd.f32 %v8763_v51, %v15294_v2  ;;  %v8777_v57 = vpop.f32.mrf.mxu1 }
 0x7f2   : > { %v8778_v59 = vadd.f32 %v8777_v57, %v8764_v55 }
 0x7f7   : > { %v8791_v62 = vpop.f32.mrf.mxu2  ;;  %v8765_v20 = vpop.f32.mrf.mxu0 }
 0x7f8   : > { %v8805_v4 = vpop.f32.mrf.mxu3  ;;  %v8792_v63 = vadd.f32 %v8791_v62, %v8778_v59  ;;  %v8766_v39 = vadd.f32 %v8765_v20, %v15294_v2  ;;  %v8779_v16 = vpop.f32.mrf.mxu1 }
 0x7fa   : > { %v8806_v19 = vadd.f32 %v8805_v4, %v8792_v63  ;;  %v8780_v24 = vadd.f32 %v8779_v16, %v8766_v39 }
 0x7fc   : > { %8810 = vst [vmem:[%s15493_s8] sm:$0xff] %v8806_v19 }
 0x7ff   : > { %v8793_v61 = vpop.f32.mrf.mxu2 }
 0x800   : > { %v8794_v54 = vadd.f32 %v8793_v61, %v8780_v24  ;;  %v8807_v15 = vpop.f32.mrf.mxu3 }
 0x802   : > { %v8808_v50 = vadd.f32 %v8807_v15, %v8794_v54 }
 0x804   : > { %8811 = vst [vmem:[%s15493_s8 + $0x8] sm:$0xff] %v8808_v50 }
 0x805 PF: > { %p19_p5 = scmp.ge.s32.totalorder %s14617_s10, 5   ;;  %s15501_s27 = smov %s14531_s28 }
 0x806   : > { %s15502_s28 = smov %s14535_s29  ;;  %s15503_s29 = smov %s14627_s13 }
 0x807   : > { %s15504_s30 = smov %s14617_s10  ;;  %21 = sbr.rel (!%p19_p5) target bundleno = 7 (0x7), region = 147 }
 0x80c   :  { %8823 = vsyncpa [#allocation11], 1 }
 0x80d   :  { %8825 = vsyncpa [#allocation11 + $0x1], 1 }
 0x80e   :  { %8826 = vsyncpa [#allocation13], 1 }
 0x80f   :  { %8827 = vsyncmov [#allocation8] }
 0x812   :  { %s8828_s30 = vpop.sfrf %8827 }
 0x813   :  { %p13188_p8 = scmp.ne.s32.totalorder %s8828_s30, 0 }
 0x815   :  { %8832 = shalt.err (%p13188_p8)  }
 0x816   :  { %8834 = vsyncmov [#allocation8 + $0x1] }
 0x819   :  { %s8835_s19 = vpop.sfrf %8834 }
 0x81a   :  { %p13189_p9 = scmp.ne.s32.totalorder %s8835_s19, 0 }
 0x81c   :  { %8839 = shalt.err (%p13189_p9)  }
 0x81d   :  { %8841 = vsyncmov [#allocation8 + $0x2] }
 0x820   :  { %s8842_s12 = vpop.sfrf %8841 }
 0x821   :  { %p13190_p10 = scmp.ne.s32.totalorder %s8842_s12, 0 }
 0x823   :  { %8846 = shalt.err (%p13190_p10)  }
 0x824   :  { %8848 = vsyncmov [#allocation8 + $0x3] }
 0x827   :  { %s8849_s13 = vpop.sfrf %8848 }
 0x828   :  { %p13191_p12 = scmp.ne.s32.totalorder %s8849_s13, 0 }
 0x82a   :  { %8853 = shalt.err (%p13191_p12)  }
 0x82b   :  { %8855 = vsyncmov [#allocation8 + $0x4] }
 0x82e   :  { %s8856_s1 = vpop.sfrf %8855 }
 0x82f   :  { %p13192_p13 = scmp.ne.s32.totalorder %s8856_s1, 0 }
 0x831   :  { %8860 = shalt.err (%p13192_p13)  }

</bundles_post_ra>
